<compile_context>
chip_gen: v7x
topology: tpu7x:2x2x1
jax: 0.10.0
libtpu: 0.0.40
codegen_flags: <defaults>
</compile_context>

<pallas_src>
import functools

import numpy as np

import jax
import jax.numpy as jnp
from jax.experimental import pallas as pl
from jax.experimental.pallas import tpu as pltpu


# ----------------------------------------------------------------------------
# Fused kernel: conv1 (VPU) + conv2..4 (selection-matmul im2col + MXU matmul)
#               + LSTMCell + logits/value heads.
# ----------------------------------------------------------------------------
def _fused_kernel(p1_ref, w1_ref, b1_ref,
                  t2_ref, w2_ref, b2_ref,
                  t3_ref, w3_ref, b3_ref,
                  t4_ref, w4_ref, b4_ref,
                  fsel_ref, h_ref, c_ref,
                  wlstm_ref, blstm_ref, whead_ref, bhead_ref,
                  hnew_ref, cnew_ref, head_ref):
    B, H = h_ref.shape

    # ---- conv1: Cin=1, K=9 -> 9 VPU fused multiply-adds in f32 -------------
    p1 = p1_ref[...]                                    # (B*R1p, 9)  f32
    w1 = w1_ref[...]                                    # (9, 32)     f32
    acc = jnp.zeros((p1.shape[0], w1.shape[1]), jnp.float32) + b1_ref[...]
    for k in range(9):
        acc = acc + p1[:, k:k + 1] * w1[k:k + 1, :]
    act = jnp.maximum(acc, 0.0)                         # (B*R1p, 32) f32

    # ---- conv2..4: im2col via constant 0/1 selection matmuls (MXU) ---------
    def conv_block(prev, t_ref, w_ref, b_ref):
        t = t_ref[...]                                  # (9*P, Rin) bf16
        rows_in = t.shape[1]
        p_rows = t.shape[0] // 9                        # padded rows per image
        prev_bf = prev.astype(jnp.bfloat16)
        blocks = []
        for bi in range(B):                             # static, B is tiny
            img = prev_bf[bi * rows_in:(bi + 1) * rows_in, :]     # (Rin, 32)
            # all 9 shifted/strided patches of this image in one matmul
            sel = jnp.dot(t, img, preferred_element_type=jnp.float32)  # (9P,32)
            pieces = [sel[k * p_rows:(k + 1) * p_rows, :] for k in range(9)]
            blocks.append(jnp.concatenate(pieces, axis=1))        # (P, 288)
        patches = jnp.concatenate(blocks, axis=0).astype(jnp.bfloat16)
        z = jnp.dot(patches, w_ref[...],
                    preferred_element_type=jnp.float32) + b_ref[...]
        return jnp.maximum(z, 0.0)                      # (B*P, 32) f32

    act = conv_block(act, t2_ref, w2_ref, b2_ref)
    act = conv_block(act, t3_ref, w3_ref, b3_ref)
    act = conv_block(act, t4_ref, w4_ref, b4_ref)       # (B*8, 32)

    # ---- pick the single real (1x1 spatial) feature row of each image ------
    feat = jnp.dot(fsel_ref[...], act.astype(jnp.bfloat16),
                   preferred_element_type=jnp.float32)  # (B, 32)

    # ---- fused LSTMCell: one combined matmul, gate order i,f,g,o -----------
    xh = jnp.concatenate([feat, h_ref[...]], axis=1).astype(jnp.bfloat16)
    gates = (jnp.dot(xh, wlstm_ref[...], preferred_element_type=jnp.float32)
             + blstm_ref[...])                          # (B, 4H) f32
    i_g = jax.nn.sigmoid(gates[:, 0:H])
    f_g = jax.nn.sigmoid(gates[:, H:2 * H])
    g_g = jnp.tanh(gates[:, 2 * H:3 * H])
    o_g = jax.nn.sigmoid(gates[:, 3 * H:4 * H])
    c_new = f_g * c_ref[...] + i_g * g_g                # f32 state math
    h_new = o_g * jnp.tanh(c_new)
    cnew_ref[...] = c_new
    hnew_ref[...] = h_new

    # ---- both heads in one lane-dense (B, 128) matmul -----------------------
    head_ref[...] = (jnp.dot(h_new.astype(jnp.bfloat16), whead_ref[...],
                             preferred_element_type=jnp.float32)
                     + bhead_ref[...])


def _fused_forward(patches1, h_prev, c_prev, p):
    B, H = h_prev.shape
    head_w = p['whead'].shape[1]

    # rough advisory cost estimate for XLA's scheduler
    flops = 2 * patches1.shape[0] * 9 * 32
    for t_name in ('t2', 't3', 't4'):
        t = p[t_name]
        flops += 2 * B * t.shape[0] * t.shape[1] * 32          # selection
        flops += 2 * B * (t.shape[0] // 9) * (9 * 32) * 32     # conv matmul
    flops += 2 * B * p['fsel'].shape[1] * 32
    flops += 2 * B * p['wlstm'].shape[0] * p['wlstm'].shape[1]
    flops += 2 * B * H * head_w
    transcendentals = 5 * B * H
    arrays = [patches1, h_prev, c_prev] + list(p.values())
    bytes_accessed = sum(int(np.prod(a.shape)) * a.dtype.itemsize
                         for a in arrays)
    bytes_accessed += (2 * B * H + B * head_w) * 4             # outputs

    return pl.pallas_call(
        _fused_kernel,
        out_shape=(
            jax.ShapeDtypeStruct((B, H), jnp.float32),         # h_new
            jax.ShapeDtypeStruct((B, H), jnp.float32),         # c_new
            jax.ShapeDtypeStruct((B, head_w), jnp.float32),    # [logits|value|0pad]
        ),
        cost_estimate=pl.CostEstimate(flops=int(flops),
                                      transcendentals=int(transcendentals),
                                      bytes_accessed=int(bytes_accessed)),
        compiler_params=pltpu.CompilerParams(
            vmem_limit_bytes=32 * 1024 * 1024),
    )(patches1, p['w1'], p['b1'],
      p['t2'], p['w2'], p['b2'],
      p['t3'], p['w3'], p['b3'],
      p['t4'], p['w4'], p['b4'],
      p['fsel'], h_prev, c_prev,
      p['wlstm'], p['blstm'], p['whead'], p['bhead'])


# ----------------------------------------------------------------------------
# Host-side glue: first-layer 3x3/stride-2 patch gather on the raw observation
# (pure input-layout rearrangement; one small fused XLA op).
# ----------------------------------------------------------------------------
def _first_layer_patches(x, oh, ow, rows_pad):
    # x: (B, 1, H, W) float32  ->  (B*rows_pad, 9), rows ordered (b, oh, ow)
    B = x.shape[0]
    img = x[:, 0]
    cols = []
    for i in range(3):
        for j in range(3):
            cols.append(img[:, i:i + 2 * oh - 1:2, j:j + 2 * ow - 1:2])
    patches = jnp.stack(cols, axis=-1).reshape(B, oh * ow, 9)
    if rows_pad != oh * ow:
        patches = jnp.pad(patches, ((0, 0), (0, rows_pad - oh * ow), (0, 0)))
    return patches.reshape(B * rows_pad, 9)


# ----------------------------------------------------------------------------
# Parameter / constant construction (deterministic, PyTorch-style bounds).
# Conv weights are stored pre-transposed to (kh*kw*cin, cout) (offset-major),
# LSTM weights are concatenated, head weights are padded to a 128-wide slab,
# and the 0/1 patch-selection matrices for layers 2..4 are built here.
# ----------------------------------------------------------------------------
def init_params(key, obs_shape, n_actions, lstm_size, batch):
    c0, h0, w0 = obs_shape
    assert c0 == 1
    dims = []
    h, w = h0, w0
    for _ in range(4):
        oh, ow = (h - 3) // 2 + 1, (w - 3) // 2 + 1
        dims.append((h, w, oh, ow))
        h, w = oh, ow
    # TODO(synk): fused kernel assumes the conv stack reduces spatial to 1x1
    # (true for 34x34 input); general spatial flatten would need C-major order.
    assert h == 1 and w == 1, "fused kernel assumes final conv spatial 1x1"

    def ceil8(n):
        return ((n + 7) // 8) * 8

    rows_pad = [ceil8(oh * ow) for (_, _, oh, ow) in dims]   # [256, 56, 16, 8]

    keys = jax.random.split(key, 16)
    ki = iter(range(16))

    def uni(k, shape, bound):
        return jax.random.uniform(k, shape, jnp.float32, -bound, bound)

    conv_w, conv_b = [], []
    cin = 1
    for _ in range(4):
        bound = 1.0 / float(np.sqrt(cin * 9.0))
        conv_w.append(uni(keys[next(ki)], (9 * cin, 32), bound))
        conv_b.append(uni(keys[next(ki)], (1, 32), bound))
        cin = 32

    feat = 32
    hb = 1.0 / float(np.sqrt(float(lstm_size)))
    w_ih = uni(keys[next(ki)], (feat, 4 * lstm_size), hb)
    w_hh = uni(keys[next(ki)], (lstm_size, 4 * lstm_size), hb)
    b_ih = uni(keys[next(ki)], (1, 4 * lstm_size), hb)
    b_hh = uni(keys[next(ki)], (1, 4 * lstm_size), hb)
    w_l = uni(keys[next(ki)], (lstm_size, n_actions), hb)
    b_l = uni(keys[next(ki)], (n_actions,), hb)
    w_v = uni(keys[next(ki)], (lstm_size, 1), hb)
    b_v = uni(keys[next(ki)], (1,), hb)

    head_width = 128                       # lane-dense head slab
    head_w = jnp.zeros((lstm_size, head_width), jnp.float32)
    head_w = head_w.at[:, :n_actions].set(w_l)
    head_w = head_w.at[:, n_actions:n_actions + 1].set(w_v)
    head_b = jnp.zeros((1, head_width), jnp.float32)
    head_b = head_b.at[0, :n_actions].set(b_l)
    head_b = head_b.at[0, n_actions].set(b_v[0])

    # 0/1 selection matrices that implement the 3x3/stride-2 patch gather of
    # layers 2..4 as a matmul over the previous layer's (padded) rows.
    t_mats = []
    prev_rows = rows_pad[0]
    for li in range(1, 4):
        _, w_in, oh, ow = dims[li]
        rp = rows_pad[li]
        t = np.zeros((9 * rp, prev_rows), np.float32)
        for i in range(3):
            for j in range(3):
                k = i * 3 + j
                for a in range(oh):
                    for b_ in range(ow):
                        t[k * rp + a * ow + b_,
                          (2 * a + i) * w_in + (2 * b_ + j)] = 1.0
        t_mats.append(jnp.asarray(t, jnp.bfloat16))
        prev_rows = rp

    fsel = np.zeros((batch, batch * rows_pad[3]), np.float32)
    for b_ in range(batch):
        fsel[b_, b_ * rows_pad[3]] = 1.0

    params = dict(
        w1=conv_w[0], b1=conv_b[0],
        t2=t_mats[0], w2=conv_w[1].astype(jnp.bfloat16), b2=conv_b[1],
        t3=t_mats[1], w3=conv_w[2].astype(jnp.bfloat16), b3=conv_b[2],
        t4=t_mats[2], w4=conv_w[3].astype(jnp.bfloat16), b4=conv_b[3],
        fsel=jnp.asarray(fsel, jnp.bfloat16),
        wlstm=jnp.concatenate([w_ih, w_hh], axis=0).astype(jnp.bfloat16),
        blstm=(b_ih + b_hh),
        whead=head_w.astype(jnp.bfloat16), bhead=head_b,
    )
    meta = dict(dims=dims, rows_pad=rows_pad, n_actions=n_actions)
    return params, meta


# ----------------------------------------------------------------------------
# AC_Net.forward equivalent.
# ----------------------------------------------------------------------------
def ac_net_forward(params, meta, prev_state, obs_t):
    _, _, oh1, ow1 = meta['dims'][0]
    patches1 = _first_layer_patches(obs_t, oh1, ow1, meta['rows_pad'][0])
    h_prev, c_prev = prev_state
    h_new, c_new, head = _fused_forward(patches1, h_prev, c_prev, params)
    n = meta['n_actions']
    logits = head[:, :n]
    value = head[:, n:n + 1]
    return (h_new, c_new), (logits, value)


if __name__ == "__main__":
    key = jax.random.PRNGKey(0)
    batch, n_actions, lstm_size = 2, 6, 128
    obs_shape = (1, 34, 34)     # 34 -> 16 -> 7 -> 3 -> 1 ; feature_size = 32

    pkey, okey = jax.random.split(key)
    params, meta = init_params(pkey, obs_shape, n_actions, lstm_size, batch)

    obs = jax.random.normal(okey, (batch,) + obs_shape, jnp.float32)
    prev_state = (jnp.zeros((batch, lstm_size), jnp.float32),
                  jnp.zeros((batch, lstm_size), jnp.float32))

    fwd = jax.jit(lambda p, s, o: ac_net_forward(p, meta, s, o))
    (h_new, c_new), (logits, value) = fwd(params, prev_state, obs)
    jax.block_until_ready((h_new, c_new, logits, value))

    assert h_new.shape == (batch, lstm_size)
    assert c_new.shape == (batch, lstm_size)
    assert logits.shape == (batch, n_actions)
    assert value.shape == (batch, 1)
    assert bool(jnp.all(jnp.isfinite(h_new)))
    assert bool(jnp.all(jnp.isfinite(logits))) and bool(jnp.all(jnp.isfinite(value)))
    print("KERNEL_OK")
</pallas_src>

<mosaic_0001>
module attributes {stable_mosaic.version = 11 : i64} {
  func.func @_fused_kernel(%arg0: memref<512x9xf32, #tpu.memory_space<vmem>>, %arg1: memref<9x32xf32, #tpu.memory_space<vmem>>, %arg2: memref<1x32xf32, #tpu.memory_space<vmem>>, %arg3: memref<504x256xbf16, #tpu.memory_space<vmem>>, %arg4: memref<288x32xbf16, #tpu.memory_space<vmem>>, %arg5: memref<1x32xf32, #tpu.memory_space<vmem>>, %arg6: memref<144x56xbf16, #tpu.memory_space<vmem>>, %arg7: memref<288x32xbf16, #tpu.memory_space<vmem>>, %arg8: memref<1x32xf32, #tpu.memory_space<vmem>>, %arg9: memref<72x16xbf16, #tpu.memory_space<vmem>>, %arg10: memref<288x32xbf16, #tpu.memory_space<vmem>>, %arg11: memref<1x32xf32, #tpu.memory_space<vmem>>, %arg12: memref<2x16xbf16, #tpu.memory_space<vmem>>, %arg13: memref<2x128xf32, #tpu.memory_space<vmem>>, %arg14: memref<2x128xf32, #tpu.memory_space<vmem>>, %arg15: memref<160x512xbf16, #tpu.memory_space<vmem>>, %arg16: memref<1x512xf32, #tpu.memory_space<vmem>>, %arg17: memref<128x128xbf16, #tpu.memory_space<vmem>>, %arg18: memref<1x128xf32, #tpu.memory_space<vmem>>, %arg19: memref<2x128xf32, #tpu.memory_space<vmem>>, %arg20: memref<2x128xf32, #tpu.memory_space<vmem>>, %arg21: memref<2x128xf32, #tpu.memory_space<vmem>>) attributes {dimension_semantics = [], scalar_prefetch = 0 : i64, scratch_operands = 0 : i64, tpu.core_type = #tpu.core_type<tc>} {
    %c0 = arith.constant 0 : index
    %c0_0 = arith.constant 0 : index
    %0 = vector.load %arg0[%c0, %c0_0] : memref<512x9xf32, #tpu.memory_space<vmem>>, vector<512x9xf32>
    %c0_1 = arith.constant 0 : index
    %c0_2 = arith.constant 0 : index
    %1 = vector.load %arg1[%c0_1, %c0_2] : memref<9x32xf32, #tpu.memory_space<vmem>>, vector<9x32xf32>
    %cst = arith.constant 0.000000e+00 : f32
    %2 = vector.broadcast %cst : f32 to vector<512x32xf32>
    %c0_3 = arith.constant 0 : index
    %c0_4 = arith.constant 0 : index
    %3 = vector.load %arg2[%c0_3, %c0_4] : memref<1x32xf32, #tpu.memory_space<vmem>>, vector<1x32xf32>
    %4 = vector.broadcast %3 : vector<1x32xf32> to vector<512x32xf32>
    %5 = arith.addf %2, %4 : vector<512x32xf32>
    %6 = vector.extract_strided_slice %0 {offsets = [0, 0], sizes = [512, 1], strides = [1, 1]} : vector<512x9xf32> to vector<512x1xf32>
    %7 = vector.extract_strided_slice %1 {offsets = [0, 0], sizes = [1, 32], strides = [1, 1]} : vector<9x32xf32> to vector<1x32xf32>
    %8 = vector.broadcast %6 : vector<512x1xf32> to vector<512x32xf32>
    %9 = vector.broadcast %7 : vector<1x32xf32> to vector<512x32xf32>
    %10 = arith.mulf %8, %9 : vector<512x32xf32>
    %11 = arith.addf %5, %10 : vector<512x32xf32>
    %12 = vector.extract_strided_slice %0 {offsets = [0, 1], sizes = [512, 1], strides = [1, 1]} : vector<512x9xf32> to vector<512x1xf32>
    %13 = vector.extract_strided_slice %1 {offsets = [1, 0], sizes = [1, 32], strides = [1, 1]} : vector<9x32xf32> to vector<1x32xf32>
    %14 = vector.broadcast %12 : vector<512x1xf32> to vector<512x32xf32>
    %15 = vector.broadcast %13 : vector<1x32xf32> to vector<512x32xf32>
    %16 = arith.mulf %14, %15 : vector<512x32xf32>
    %17 = arith.addf %11, %16 : vector<512x32xf32>
    %18 = vector.extract_strided_slice %0 {offsets = [0, 2], sizes = [512, 1], strides = [1, 1]} : vector<512x9xf32> to vector<512x1xf32>
    %19 = vector.extract_strided_slice %1 {offsets = [2, 0], sizes = [1, 32], strides = [1, 1]} : vector<9x32xf32> to vector<1x32xf32>
    %20 = vector.broadcast %18 : vector<512x1xf32> to vector<512x32xf32>
    %21 = vector.broadcast %19 : vector<1x32xf32> to vector<512x32xf32>
    %22 = arith.mulf %20, %21 : vector<512x32xf32>
    %23 = arith.addf %17, %22 : vector<512x32xf32>
    %24 = vector.extract_strided_slice %0 {offsets = [0, 3], sizes = [512, 1], strides = [1, 1]} : vector<512x9xf32> to vector<512x1xf32>
    %25 = vector.extract_strided_slice %1 {offsets = [3, 0], sizes = [1, 32], strides = [1, 1]} : vector<9x32xf32> to vector<1x32xf32>
    %26 = vector.broadcast %24 : vector<512x1xf32> to vector<512x32xf32>
    %27 = vector.broadcast %25 : vector<1x32xf32> to vector<512x32xf32>
    %28 = arith.mulf %26, %27 : vector<512x32xf32>
    %29 = arith.addf %23, %28 : vector<512x32xf32>
    %30 = vector.extract_strided_slice %0 {offsets = [0, 4], sizes = [512, 1], strides = [1, 1]} : vector<512x9xf32> to vector<512x1xf32>
    %31 = vector.extract_strided_slice %1 {offsets = [4, 0], sizes = [1, 32], strides = [1, 1]} : vector<9x32xf32> to vector<1x32xf32>
    %32 = vector.broadcast %30 : vector<512x1xf32> to vector<512x32xf32>
    %33 = vector.broadcast %31 : vector<1x32xf32> to vector<512x32xf32>
    %34 = arith.mulf %32, %33 : vector<512x32xf32>
    %35 = arith.addf %29, %34 : vector<512x32xf32>
    %36 = vector.extract_strided_slice %0 {offsets = [0, 5], sizes = [512, 1], strides = [1, 1]} : vector<512x9xf32> to vector<512x1xf32>
    %37 = vector.extract_strided_slice %1 {offsets = [5, 0], sizes = [1, 32], strides = [1, 1]} : vector<9x32xf32> to vector<1x32xf32>
    %38 = vector.broadcast %36 : vector<512x1xf32> to vector<512x32xf32>
    %39 = vector.broadcast %37 : vector<1x32xf32> to vector<512x32xf32>
    %40 = arith.mulf %38, %39 : vector<512x32xf32>
    %41 = arith.addf %35, %40 : vector<512x32xf32>
    %42 = vector.extract_strided_slice %0 {offsets = [0, 6], sizes = [512, 1], strides = [1, 1]} : vector<512x9xf32> to vector<512x1xf32>
    %43 = vector.extract_strided_slice %1 {offsets = [6, 0], sizes = [1, 32], strides = [1, 1]} : vector<9x32xf32> to vector<1x32xf32>
    %44 = vector.broadcast %42 : vector<512x1xf32> to vector<512x32xf32>
    %45 = vector.broadcast %43 : vector<1x32xf32> to vector<512x32xf32>
    %46 = arith.mulf %44, %45 : vector<512x32xf32>
    %47 = arith.addf %41, %46 : vector<512x32xf32>
    %48 = vector.extract_strided_slice %0 {offsets = [0, 7], sizes = [512, 1], strides = [1, 1]} : vector<512x9xf32> to vector<512x1xf32>
    %49 = vector.extract_strided_slice %1 {offsets = [7, 0], sizes = [1, 32], strides = [1, 1]} : vector<9x32xf32> to vector<1x32xf32>
    %50 = vector.broadcast %48 : vector<512x1xf32> to vector<512x32xf32>
    %51 = vector.broadcast %49 : vector<1x32xf32> to vector<512x32xf32>
    %52 = arith.mulf %50, %51 : vector<512x32xf32>
    %53 = arith.addf %47, %52 : vector<512x32xf32>
    %54 = vector.extract_strided_slice %0 {offsets = [0, 8], sizes = [512, 1], strides = [1, 1]} : vector<512x9xf32> to vector<512x1xf32>
    %55 = vector.extract_strided_slice %1 {offsets = [8, 0], sizes = [1, 32], strides = [1, 1]} : vector<9x32xf32> to vector<1x32xf32>
    %56 = vector.broadcast %54 : vector<512x1xf32> to vector<512x32xf32>
    %57 = vector.broadcast %55 : vector<1x32xf32> to vector<512x32xf32>
    %58 = arith.mulf %56, %57 : vector<512x32xf32>
    %59 = arith.addf %53, %58 : vector<512x32xf32>
    %cst_5 = arith.constant 0.000000e+00 : f32
    %60 = vector.broadcast %cst_5 : f32 to vector<512x32xf32>
    %61 = arith.maximumf %59, %60 : vector<512x32xf32>
    %c0_6 = arith.constant 0 : index
    %c0_7 = arith.constant 0 : index
    %62 = vector.load %arg3[%c0_6, %c0_7] : memref<504x256xbf16, #tpu.memory_space<vmem>>, vector<504x256xbf16>
    %63 = arith.truncf %61 : vector<512x32xf32> to vector<512x32xbf16>
    %64 = vector.extract_strided_slice %63 {offsets = [0, 0], sizes = [256, 32], strides = [1, 1]} : vector<512x32xbf16> to vector<256x32xbf16>
    %cst_8 = arith.constant dense<0.000000e+00> : vector<504x32xf32>
    %65 = tpu.matmul %62, %64, %cst_8 {dimension_numbers = #tpu.dot_dimension_numbers<[1], [0], [0], [1], [0, 0, 1, 1], [], []>} : vector<504x256xbf16>, vector<256x32xbf16>, vector<504x32xf32> -> vector<504x32xf32>
    %66 = vector.extract_strided_slice %65 {offsets = [0, 0], sizes = [56, 32], strides = [1, 1]} : vector<504x32xf32> to vector<56x32xf32>
    %67 = vector.extract_strided_slice %65 {offsets = [56, 0], sizes = [56, 32], strides = [1, 1]} : vector<504x32xf32> to vector<56x32xf32>
    %68 = vector.extract_strided_slice %65 {offsets = [112, 0], sizes = [56, 32], strides = [1, 1]} : vector<504x32xf32> to vector<56x32xf32>
    %69 = vector.extract_strided_slice %65 {offsets = [168, 0], sizes = [56, 32], strides = [1, 1]} : vector<504x32xf32> to vector<56x32xf32>
    %70 = vector.extract_strided_slice %65 {offsets = [224, 0], sizes = [56, 32], strides = [1, 1]} : vector<504x32xf32> to vector<56x32xf32>
    %71 = vector.extract_strided_slice %65 {offsets = [280, 0], sizes = [56, 32], strides = [1, 1]} : vector<504x32xf32> to vector<56x32xf32>
    %72 = vector.extract_strided_slice %65 {offsets = [336, 0], sizes = [56, 32], strides = [1, 1]} : vector<504x32xf32> to vector<56x32xf32>
    %73 = vector.extract_strided_slice %65 {offsets = [392, 0], sizes = [56, 32], strides = [1, 1]} : vector<504x32xf32> to vector<56x32xf32>
    %74 = vector.extract_strided_slice %65 {offsets = [448, 0], sizes = [56, 32], strides = [1, 1]} : vector<504x32xf32> to vector<56x32xf32>
    %75 = tpu.concatenate %66, %67, %68, %69, %70, %71, %72, %73, %74 in 1 : vector<56x32xf32>, vector<56x32xf32>, vector<56x32xf32>, vector<56x32xf32>, vector<56x32xf32>, vector<56x32xf32>, vector<56x32xf32>, vector<56x32xf32>, vector<56x32xf32> -> vector<56x288xf32>
    %76 = vector.extract_strided_slice %63 {offsets = [256, 0], sizes = [256, 32], strides = [1, 1]} : vector<512x32xbf16> to vector<256x32xbf16>
    %cst_9 = arith.constant dense<0.000000e+00> : vector<504x32xf32>
    %77 = tpu.matmul %62, %76, %cst_9 {dimension_numbers = #tpu.dot_dimension_numbers<[1], [0], [0], [1], [0, 0, 1, 1], [], []>} : vector<504x256xbf16>, vector<256x32xbf16>, vector<504x32xf32> -> vector<504x32xf32>
    %78 = vector.extract_strided_slice %77 {offsets = [0, 0], sizes = [56, 32], strides = [1, 1]} : vector<504x32xf32> to vector<56x32xf32>
    %79 = vector.extract_strided_slice %77 {offsets = [56, 0], sizes = [56, 32], strides = [1, 1]} : vector<504x32xf32> to vector<56x32xf32>
    %80 = vector.extract_strided_slice %77 {offsets = [112, 0], sizes = [56, 32], strides = [1, 1]} : vector<504x32xf32> to vector<56x32xf32>
    %81 = vector.extract_strided_slice %77 {offsets = [168, 0], sizes = [56, 32], strides = [1, 1]} : vector<504x32xf32> to vector<56x32xf32>
    %82 = vector.extract_strided_slice %77 {offsets = [224, 0], sizes = [56, 32], strides = [1, 1]} : vector<504x32xf32> to vector<56x32xf32>
    %83 = vector.extract_strided_slice %77 {offsets = [280, 0], sizes = [56, 32], strides = [1, 1]} : vector<504x32xf32> to vector<56x32xf32>
    %84 = vector.extract_strided_slice %77 {offsets = [336, 0], sizes = [56, 32], strides = [1, 1]} : vector<504x32xf32> to vector<56x32xf32>
    %85 = vector.extract_strided_slice %77 {offsets = [392, 0], sizes = [56, 32], strides = [1, 1]} : vector<504x32xf32> to vector<56x32xf32>
    %86 = vector.extract_strided_slice %77 {offsets = [448, 0], sizes = [56, 32], strides = [1, 1]} : vector<504x32xf32> to vector<56x32xf32>
    %87 = tpu.concatenate %78, %79, %80, %81, %82, %83, %84, %85, %86 in 1 : vector<56x32xf32>, vector<56x32xf32>, vector<56x32xf32>, vector<56x32xf32>, vector<56x32xf32>, vector<56x32xf32>, vector<56x32xf32>, vector<56x32xf32>, vector<56x32xf32> -> vector<56x288xf32>
    %88 = tpu.concatenate %75, %87 in 0 : vector<56x288xf32>, vector<56x288xf32> -> vector<112x288xf32>
    %89 = arith.truncf %88 : vector<112x288xf32> to vector<112x288xbf16>
    %c0_10 = arith.constant 0 : index
    %c0_11 = arith.constant 0 : index
    %90 = vector.load %arg4[%c0_10, %c0_11] : memref<288x32xbf16, #tpu.memory_space<vmem>>, vector<288x32xbf16>
    %cst_12 = arith.constant dense<0.000000e+00> : vector<112x32xf32>
    %91 = tpu.matmul %89, %90, %cst_12 {dimension_numbers = #tpu.dot_dimension_numbers<[1], [0], [0], [1], [0, 0, 1, 1], [], []>} : vector<112x288xbf16>, vector<288x32xbf16>, vector<112x32xf32> -> vector<112x32xf32>
    %c0_13 = arith.constant 0 : index
    %c0_14 = arith.constant 0 : index
    %92 = vector.load %arg5[%c0_13, %c0_14] : memref<1x32xf32, #tpu.memory_space<vmem>>, vector<1x32xf32>
    %93 = vector.broadcast %92 : vector<1x32xf32> to vector<112x32xf32>
    %94 = arith.addf %91, %93 : vector<112x32xf32>
    %cst_15 = arith.constant 0.000000e+00 : f32
    %95 = vector.broadcast %cst_15 : f32 to vector<112x32xf32>
    %96 = arith.maximumf %94, %95 : vector<112x32xf32>
    %c0_16 = arith.constant 0 : index
    %c0_17 = arith.constant 0 : index
    %97 = vector.load %arg6[%c0_16, %c0_17] : memref<144x56xbf16, #tpu.memory_space<vmem>>, vector<144x56xbf16>
    %98 = arith.truncf %96 : vector<112x32xf32> to vector<112x32xbf16>
    %99 = vector.extract_strided_slice %98 {offsets = [0, 0], sizes = [56, 32], strides = [1, 1]} : vector<112x32xbf16> to vector<56x32xbf16>
    %cst_18 = arith.constant dense<0.000000e+00> : vector<144x32xf32>
    %100 = tpu.matmul %97, %99, %cst_18 {dimension_numbers = #tpu.dot_dimension_numbers<[1], [0], [0], [1], [0, 0, 1, 1], [], []>} : vector<144x56xbf16>, vector<56x32xbf16>, vector<144x32xf32> -> vector<144x32xf32>
    %101 = vector.extract_strided_slice %100 {offsets = [0, 0], sizes = [16, 32], strides = [1, 1]} : vector<144x32xf32> to vector<16x32xf32>
    %102 = vector.extract_strided_slice %100 {offsets = [16, 0], sizes = [16, 32], strides = [1, 1]} : vector<144x32xf32> to vector<16x32xf32>
    %103 = vector.extract_strided_slice %100 {offsets = [32, 0], sizes = [16, 32], strides = [1, 1]} : vector<144x32xf32> to vector<16x32xf32>
    %104 = vector.extract_strided_slice %100 {offsets = [48, 0], sizes = [16, 32], strides = [1, 1]} : vector<144x32xf32> to vector<16x32xf32>
    %105 = vector.extract_strided_slice %100 {offsets = [64, 0], sizes = [16, 32], strides = [1, 1]} : vector<144x32xf32> to vector<16x32xf32>
    %106 = vector.extract_strided_slice %100 {offsets = [80, 0], sizes = [16, 32], strides = [1, 1]} : vector<144x32xf32> to vector<16x32xf32>
    %107 = vector.extract_strided_slice %100 {offsets = [96, 0], sizes = [16, 32], strides = [1, 1]} : vector<144x32xf32> to vector<16x32xf32>
    %108 = vector.extract_strided_slice %100 {offsets = [112, 0], sizes = [16, 32], strides = [1, 1]} : vector<144x32xf32> to vector<16x32xf32>
    %109 = vector.extract_strided_slice %100 {offsets = [128, 0], sizes = [16, 32], strides = [1, 1]} : vector<144x32xf32> to vector<16x32xf32>
    %110 = tpu.concatenate %101, %102, %103, %104, %105, %106, %107, %108, %109 in 1 : vector<16x32xf32>, vector<16x32xf32>, vector<16x32xf32>, vector<16x32xf32>, vector<16x32xf32>, vector<16x32xf32>, vector<16x32xf32>, vector<16x32xf32>, vector<16x32xf32> -> vector<16x288xf32>
    %111 = vector.extract_strided_slice %98 {offsets = [56, 0], sizes = [56, 32], strides = [1, 1]} : vector<112x32xbf16> to vector<56x32xbf16>
    %cst_19 = arith.constant dense<0.000000e+00> : vector<144x32xf32>
    %112 = tpu.matmul %97, %111, %cst_19 {dimension_numbers = #tpu.dot_dimension_numbers<[1], [0], [0], [1], [0, 0, 1, 1], [], []>} : vector<144x56xbf16>, vector<56x32xbf16>, vector<144x32xf32> -> vector<144x32xf32>
    %113 = vector.extract_strided_slice %112 {offsets = [0, 0], sizes = [16, 32], strides = [1, 1]} : vector<144x32xf32> to vector<16x32xf32>
    %114 = vector.extract_strided_slice %112 {offsets = [16, 0], sizes = [16, 32], strides = [1, 1]} : vector<144x32xf32> to vector<16x32xf32>
    %115 = vector.extract_strided_slice %112 {offsets = [32, 0], sizes = [16, 32], strides = [1, 1]} : vector<144x32xf32> to vector<16x32xf32>
    %116 = vector.extract_strided_slice %112 {offsets = [48, 0], sizes = [16, 32], strides = [1, 1]} : vector<144x32xf32> to vector<16x32xf32>
    %117 = vector.extract_strided_slice %112 {offsets = [64, 0], sizes = [16, 32], strides = [1, 1]} : vector<144x32xf32> to vector<16x32xf32>
    %118 = vector.extract_strided_slice %112 {offsets = [80, 0], sizes = [16, 32], strides = [1, 1]} : vector<144x32xf32> to vector<16x32xf32>
    %119 = vector.extract_strided_slice %112 {offsets = [96, 0], sizes = [16, 32], strides = [1, 1]} : vector<144x32xf32> to vector<16x32xf32>
    %120 = vector.extract_strided_slice %112 {offsets = [112, 0], sizes = [16, 32], strides = [1, 1]} : vector<144x32xf32> to vector<16x32xf32>
    %121 = vector.extract_strided_slice %112 {offsets = [128, 0], sizes = [16, 32], strides = [1, 1]} : vector<144x32xf32> to vector<16x32xf32>
    %122 = tpu.concatenate %113, %114, %115, %116, %117, %118, %119, %120, %121 in 1 : vector<16x32xf32>, vector<16x32xf32>, vector<16x32xf32>, vector<16x32xf32>, vector<16x32xf32>, vector<16x32xf32>, vector<16x32xf32>, vector<16x32xf32>, vector<16x32xf32> -> vector<16x288xf32>
    %123 = tpu.concatenate %110, %122 in 0 : vector<16x288xf32>, vector<16x288xf32> -> vector<32x288xf32>
    %124 = arith.truncf %123 : vector<32x288xf32> to vector<32x288xbf16>
    %c0_20 = arith.constant 0 : index
    %c0_21 = arith.constant 0 : index
    %125 = vector.load %arg7[%c0_20, %c0_21] : memref<288x32xbf16, #tpu.memory_space<vmem>>, vector<288x32xbf16>
    %cst_22 = arith.constant dense<0.000000e+00> : vector<32x32xf32>
    %126 = tpu.matmul %124, %125, %cst_22 {dimension_numbers = #tpu.dot_dimension_numbers<[1], [0], [0], [1], [0, 0, 1, 1], [], []>} : vector<32x288xbf16>, vector<288x32xbf16>, vector<32x32xf32> -> vector<32x32xf32>
    %c0_23 = arith.constant 0 : index
    %c0_24 = arith.constant 0 : index
    %127 = vector.load %arg8[%c0_23, %c0_24] : memref<1x32xf32, #tpu.memory_space<vmem>>, vector<1x32xf32>
    %128 = vector.broadcast %127 : vector<1x32xf32> to vector<32x32xf32>
    %129 = arith.addf %126, %128 : vector<32x32xf32>
    %cst_25 = arith.constant 0.000000e+00 : f32
    %130 = vector.broadcast %cst_25 : f32 to vector<32x32xf32>
    %131 = arith.maximumf %129, %130 : vector<32x32xf32>
    %c0_26 = arith.constant 0 : index
    %c0_27 = arith.constant 0 : index
    %132 = vector.load %arg9[%c0_26, %c0_27] : memref<72x16xbf16, #tpu.memory_space<vmem>>, vector<72x16xbf16>
    %133 = arith.truncf %131 : vector<32x32xf32> to vector<32x32xbf16>
    %134 = vector.extract_strided_slice %133 {offsets = [0, 0], sizes = [16, 32], strides = [1, 1]} : vector<32x32xbf16> to vector<16x32xbf16>
    %cst_28 = arith.constant dense<0.000000e+00> : vector<72x32xf32>
    %135 = tpu.matmul %132, %134, %cst_28 {dimension_numbers = #tpu.dot_dimension_numbers<[1], [0], [0], [1], [0, 0, 1, 1], [], []>} : vector<72x16xbf16>, vector<16x32xbf16>, vector<72x32xf32> -> vector<72x32xf32>
    %136 = vector.extract_strided_slice %135 {offsets = [0, 0], sizes = [8, 32], strides = [1, 1]} : vector<72x32xf32> to vector<8x32xf32>
    %137 = vector.extract_strided_slice %135 {offsets = [8, 0], sizes = [8, 32], strides = [1, 1]} : vector<72x32xf32> to vector<8x32xf32>
    %138 = vector.extract_strided_slice %135 {offsets = [16, 0], sizes = [8, 32], strides = [1, 1]} : vector<72x32xf32> to vector<8x32xf32>
    %139 = vector.extract_strided_slice %135 {offsets = [24, 0], sizes = [8, 32], strides = [1, 1]} : vector<72x32xf32> to vector<8x32xf32>
    %140 = vector.extract_strided_slice %135 {offsets = [32, 0], sizes = [8, 32], strides = [1, 1]} : vector<72x32xf32> to vector<8x32xf32>
    %141 = vector.extract_strided_slice %135 {offsets = [40, 0], sizes = [8, 32], strides = [1, 1]} : vector<72x32xf32> to vector<8x32xf32>
    %142 = vector.extract_strided_slice %135 {offsets = [48, 0], sizes = [8, 32], strides = [1, 1]} : vector<72x32xf32> to vector<8x32xf32>
    %143 = vector.extract_strided_slice %135 {offsets = [56, 0], sizes = [8, 32], strides = [1, 1]} : vector<72x32xf32> to vector<8x32xf32>
    %144 = vector.extract_strided_slice %135 {offsets = [64, 0], sizes = [8, 32], strides = [1, 1]} : vector<72x32xf32> to vector<8x32xf32>
    %145 = tpu.concatenate %136, %137, %138, %139, %140, %141, %142, %143, %144 in 1 : vector<8x32xf32>, vector<8x32xf32>, vector<8x32xf32>, vector<8x32xf32>, vector<8x32xf32>, vector<8x32xf32>, vector<8x32xf32>, vector<8x32xf32>, vector<8x32xf32> -> vector<8x288xf32>
    %146 = vector.extract_strided_slice %133 {offsets = [16, 0], sizes = [16, 32], strides = [1, 1]} : vector<32x32xbf16> to vector<16x32xbf16>
    %cst_29 = arith.constant dense<0.000000e+00> : vector<72x32xf32>
    %147 = tpu.matmul %132, %146, %cst_29 {dimension_numbers = #tpu.dot_dimension_numbers<[1], [0], [0], [1], [0, 0, 1, 1], [], []>} : vector<72x16xbf16>, vector<16x32xbf16>, vector<72x32xf32> -> vector<72x32xf32>
    %148 = vector.extract_strided_slice %147 {offsets = [0, 0], sizes = [8, 32], strides = [1, 1]} : vector<72x32xf32> to vector<8x32xf32>
    %149 = vector.extract_strided_slice %147 {offsets = [8, 0], sizes = [8, 32], strides = [1, 1]} : vector<72x32xf32> to vector<8x32xf32>
    %150 = vector.extract_strided_slice %147 {offsets = [16, 0], sizes = [8, 32], strides = [1, 1]} : vector<72x32xf32> to vector<8x32xf32>
    %151 = vector.extract_strided_slice %147 {offsets = [24, 0], sizes = [8, 32], strides = [1, 1]} : vector<72x32xf32> to vector<8x32xf32>
    %152 = vector.extract_strided_slice %147 {offsets = [32, 0], sizes = [8, 32], strides = [1, 1]} : vector<72x32xf32> to vector<8x32xf32>
    %153 = vector.extract_strided_slice %147 {offsets = [40, 0], sizes = [8, 32], strides = [1, 1]} : vector<72x32xf32> to vector<8x32xf32>
    %154 = vector.extract_strided_slice %147 {offsets = [48, 0], sizes = [8, 32], strides = [1, 1]} : vector<72x32xf32> to vector<8x32xf32>
    %155 = vector.extract_strided_slice %147 {offsets = [56, 0], sizes = [8, 32], strides = [1, 1]} : vector<72x32xf32> to vector<8x32xf32>
    %156 = vector.extract_strided_slice %147 {offsets = [64, 0], sizes = [8, 32], strides = [1, 1]} : vector<72x32xf32> to vector<8x32xf32>
    %157 = tpu.concatenate %148, %149, %150, %151, %152, %153, %154, %155, %156 in 1 : vector<8x32xf32>, vector<8x32xf32>, vector<8x32xf32>, vector<8x32xf32>, vector<8x32xf32>, vector<8x32xf32>, vector<8x32xf32>, vector<8x32xf32>, vector<8x32xf32> -> vector<8x288xf32>
    %158 = tpu.concatenate %145, %157 in 0 : vector<8x288xf32>, vector<8x288xf32> -> vector<16x288xf32>
    %159 = arith.truncf %158 : vector<16x288xf32> to vector<16x288xbf16>
    %c0_30 = arith.constant 0 : index
    %c0_31 = arith.constant 0 : index
    %160 = vector.load %arg10[%c0_30, %c0_31] : memref<288x32xbf16, #tpu.memory_space<vmem>>, vector<288x32xbf16>
    %cst_32 = arith.constant dense<0.000000e+00> : vector<16x32xf32>
    %161 = tpu.matmul %159, %160, %cst_32 {dimension_numbers = #tpu.dot_dimension_numbers<[1], [0], [0], [1], [0, 0, 1, 1], [], []>} : vector<16x288xbf16>, vector<288x32xbf16>, vector<16x32xf32> -> vector<16x32xf32>
    %c0_33 = arith.constant 0 : index
    %c0_34 = arith.constant 0 : index
    %162 = vector.load %arg11[%c0_33, %c0_34] : memref<1x32xf32, #tpu.memory_space<vmem>>, vector<1x32xf32>
    %163 = vector.broadcast %162 : vector<1x32xf32> to vector<16x32xf32>
    %164 = arith.addf %161, %163 : vector<16x32xf32>
    %cst_35 = arith.constant 0.000000e+00 : f32
    %165 = vector.broadcast %cst_35 : f32 to vector<16x32xf32>
    %166 = arith.maximumf %164, %165 : vector<16x32xf32>
    %c0_36 = arith.constant 0 : index
    %c0_37 = arith.constant 0 : index
    %167 = vector.load %arg12[%c0_36, %c0_37] : memref<2x16xbf16, #tpu.memory_space<vmem>>, vector<2x16xbf16>
    %168 = arith.truncf %166 : vector<16x32xf32> to vector<16x32xbf16>
    %cst_38 = arith.constant dense<0.000000e+00> : vector<2x32xf32>
    %169 = tpu.matmul %167, %168, %cst_38 {dimension_numbers = #tpu.dot_dimension_numbers<[1], [0], [0], [1], [0, 0, 1, 1], [], []>} : vector<2x16xbf16>, vector<16x32xbf16>, vector<2x32xf32> -> vector<2x32xf32>
    %c0_39 = arith.constant 0 : index
    %c0_40 = arith.constant 0 : index
    %170 = vector.load %arg13[%c0_39, %c0_40] : memref<2x128xf32, #tpu.memory_space<vmem>>, vector<2x128xf32>
    %171 = tpu.concatenate %169, %170 in 1 : vector<2x32xf32>, vector<2x128xf32> -> vector<2x160xf32>
    %172 = arith.truncf %171 : vector<2x160xf32> to vector<2x160xbf16>
    %c0_41 = arith.constant 0 : index
    %c0_42 = arith.constant 0 : index
    %173 = vector.load %arg15[%c0_41, %c0_42] : memref<160x512xbf16, #tpu.memory_space<vmem>>, vector<160x512xbf16>
    %cst_43 = arith.constant dense<0.000000e+00> : vector<2x512xf32>
    %174 = tpu.matmul %172, %173, %cst_43 {dimension_numbers = #tpu.dot_dimension_numbers<[1], [0], [0], [1], [0, 0, 1, 1], [], []>} : vector<2x160xbf16>, vector<160x512xbf16>, vector<2x512xf32> -> vector<2x512xf32>
    %c0_44 = arith.constant 0 : index
    %c0_45 = arith.constant 0 : index
    %175 = vector.load %arg16[%c0_44, %c0_45] : memref<1x512xf32, #tpu.memory_space<vmem>>, vector<1x512xf32>
    %176 = vector.broadcast %175 : vector<1x512xf32> to vector<2x512xf32>
    %177 = arith.addf %174, %176 : vector<2x512xf32>
    %178 = vector.extract_strided_slice %177 {offsets = [0, 0], sizes = [2, 128], strides = [1, 1]} : vector<2x512xf32> to vector<2x128xf32>
    %179 = arith.negf %178 : vector<2x128xf32>
    %180 = math.exp %179 : vector<2x128xf32>
    %cst_46 = arith.constant 1.000000e+00 : f32
    %181 = vector.broadcast %cst_46 : f32 to vector<2x128xf32>
    %182 = arith.addf %181, %180 : vector<2x128xf32>
    %183 = arith.divf %181, %182 : vector<2x128xf32>
    %184 = vector.extract_strided_slice %177 {offsets = [0, 128], sizes = [2, 128], strides = [1, 1]} : vector<2x512xf32> to vector<2x128xf32>
    %185 = arith.negf %184 : vector<2x128xf32>
    %186 = math.exp %185 : vector<2x128xf32>
    %cst_47 = arith.constant 1.000000e+00 : f32
    %187 = vector.broadcast %cst_47 : f32 to vector<2x128xf32>
    %188 = arith.addf %187, %186 : vector<2x128xf32>
    %189 = arith.divf %187, %188 : vector<2x128xf32>
    %190 = vector.extract_strided_slice %177 {offsets = [0, 256], sizes = [2, 128], strides = [1, 1]} : vector<2x512xf32> to vector<2x128xf32>
    %191 = math.tanh %190 : vector<2x128xf32>
    %192 = vector.extract_strided_slice %177 {offsets = [0, 384], sizes = [2, 128], strides = [1, 1]} : vector<2x512xf32> to vector<2x128xf32>
    %193 = arith.negf %192 : vector<2x128xf32>
    %194 = math.exp %193 : vector<2x128xf32>
    %cst_48 = arith.constant 1.000000e+00 : f32
    %195 = vector.broadcast %cst_48 : f32 to vector<2x128xf32>
    %196 = arith.addf %195, %194 : vector<2x128xf32>
    %197 = arith.divf %195, %196 : vector<2x128xf32>
    %c0_49 = arith.constant 0 : index
    %c0_50 = arith.constant 0 : index
    %198 = vector.load %arg14[%c0_49, %c0_50] : memref<2x128xf32, #tpu.memory_space<vmem>>, vector<2x128xf32>
    %199 = arith.mulf %189, %198 : vector<2x128xf32>
    %200 = arith.mulf %183, %191 : vector<2x128xf32>
    %201 = arith.addf %199, %200 : vector<2x128xf32>
    %202 = math.tanh %201 : vector<2x128xf32>
    %203 = arith.mulf %197, %202 : vector<2x128xf32>
    %c0_51 = arith.constant 0 : index
    %c0_52 = arith.constant 0 : index
    %204 = vector.load %arg20[%c0_51, %c0_52] : memref<2x128xf32, #tpu.memory_space<vmem>>, vector<2x128xf32>
    tpu.vector_store %arg20[%c0_51, %c0_52], %201 {strides = array<i32>} : memref<2x128xf32, #tpu.memory_space<vmem>>, vector<2x128xf32>,
    %c0_53 = arith.constant 0 : index
    %c0_54 = arith.constant 0 : index
    %205 = vector.load %arg19[%c0_53, %c0_54] : memref<2x128xf32, #tpu.memory_space<vmem>>, vector<2x128xf32>
    tpu.vector_store %arg19[%c0_53, %c0_54], %203 {strides = array<i32>} : memref<2x128xf32, #tpu.memory_space<vmem>>, vector<2x128xf32>,
    %206 = arith.truncf %203 : vector<2x128xf32> to vector<2x128xbf16>
    %c0_55 = arith.constant 0 : index
    %c0_56 = arith.constant 0 : index
    %207 = vector.load %arg17[%c0_55, %c0_56] : memref<128x128xbf16, #tpu.memory_space<vmem>>, vector<128x128xbf16>
    %cst_57 = arith.constant dense<0.000000e+00> : vector<2x128xf32>
    %208 = tpu.matmul %206, %207, %cst_57 {dimension_numbers = #tpu.dot_dimension_numbers<[1], [0], [0], [1], [0, 0, 1, 1], [], []>} : vector<2x128xbf16>, vector<128x128xbf16>, vector<2x128xf32> -> vector<2x128xf32>
    %c0_58 = arith.constant 0 : index
    %c0_59 = arith.constant 0 : index
    %209 = vector.load %arg18[%c0_58, %c0_59] : memref<1x128xf32, #tpu.memory_space<vmem>>, vector<1x128xf32>
    %210 = vector.broadcast %209 : vector<1x128xf32> to vector<2x128xf32>
    %211 = arith.addf %208, %210 : vector<2x128xf32>
    %c0_60 = arith.constant 0 : index
    %c0_61 = arith.constant 0 : index
    %212 = vector.load %arg21[%c0_60, %c0_61] : memref<2x128xf32, #tpu.memory_space<vmem>>, vector<2x128xf32>
    tpu.vector_store %arg21[%c0_60, %c0_61], %211 {strides = array<i32>} : memref<2x128xf32, #tpu.memory_space<vmem>>, vector<2x128xf32>,
    return
  }
}

</mosaic_0001>

<bundles_post_ra>
// kernel: _lambda_.1
= control target key start
LH: loop header
LB: loop body
LE: loop exit
PB: predicated region body
PF: predicated region fallthrough
CT: control target
= control target key end

     0   :  { %s14637_s0 = inlined_call_operand.vmem [shape: f32[512,9], index: 0, kind: input, shape index: {}]   ;;  %s14638_s1 = inlined_call_operand.vmem [shape: f32[9,32], index: 1, kind: input, shape index: {}]   ;;  %s14639_s2 = inlined_call_operand.vmem [shape: f32[1,32], index: 2, kind: input, shape index: {}]   ;;  %s14640_s3 = inlined_call_operand.vmem [shape: bf16[504,256], index: 3, kind: input, shape index: {}]   ;;  %s14641_s4 = inlined_call_operand.vmem [shape: bf16[288,32], index: 4, kind: input, shape index: {}]   ;;  %s14642_s5 = inlined_call_operand.vmem [shape: f32[1,32], index: 5, kind: input, shape index: {}]   ;;  %s14643_s6 = inlined_call_operand.vmem [shape: bf16[144,56], index: 6, kind: input, shape index: {}]   ;;  %s14644_s7 = inlined_call_operand.vmem [shape: bf16[288,32], index: 7, kind: input, shape index: {}]   ;;  %s14645_s8 = inlined_call_operand.vmem [shape: f32[1,32], index: 8, kind: input, shape index: {}]   ;;  %s14646_s9 = inlined_call_operand.vmem [shape: bf16[72,16], index: 9, kind: input, shape index: {}]   ;;  %s14647_s10 = inlined_call_operand.vmem [shape: bf16[288,32], index: 10, kind: input, shape index: {}]   ;;  %s14648_s11 = inlined_call_operand.vmem [shape: f32[1,32], index: 11, kind: input, shape index: {}]   ;;  %s14649_s12 = inlined_call_operand.vmem [shape: bf16[2,16], index: 12, kind: input, shape index: {}]   ;;  %s14650_s13 = inlined_call_operand.vmem [shape: f32[2,128], index: 13, kind: input, shape index: {}]   ;;  %s14651_s14 = inlined_call_operand.vmem [shape: f32[2,128], index: 14, kind: input, shape index: {}]   ;;  %s14652_s15 = inlined_call_operand.vmem [shape: bf16[160,512], index: 15, kind: input, shape index: {}]   ;;  %s14653_s16 = inlined_call_operand.vmem [shape: f32[1,512], index: 16, kind: input, shape index: {}]   ;;  %s14654_s17 = inlined_call_operand.vmem [shape: bf16[128,128], index: 17, kind: input, shape index: {}]   ;;  %s14655_s18 = inlined_call_operand.vmem [shape: f32[1,128], index: 18, kind: input, shape index: {}]   ;;  %s14656_s19 = inlined_call_operand.hbm [shape: f32[2,128], index: 19, kind: output, shape index: {0}]   ;;  %s14657_s20 = inlined_call_operand.hbm [shape: f32[2,128], index: 20, kind: output, shape index: {1}]   ;;  %s14658_s21 = inlined_call_operand.vmem [shape: f32[2,128], index: 21, kind: output, shape index: {2}]  }
   0x1   :  { %14705 = sst [smem:[#allocation273_spill]] %s14637_s0 }
   0x2   :  { %14706 = sst [smem:[#allocation274_spill]] %s14638_s1 }
   0x3   :  { %14707 = sst [smem:[#allocation275_spill]] %s14639_s2 }
   0x4   :  { %14708 = sst [smem:[#allocation276_spill]] %s14640_s3 }
   0x5   :  { %14709 = sst [smem:[#allocation277_spill]] %s14641_s4 }
   0x6   :  { %14710 = sst [smem:[#allocation278_spill]] %s14642_s5 }
   0x7   :  { %27 = vsyncpa [#allocation3], 0  ;;  %s14711_s26 = sld [smem:[#allocation273_spill]]  ;;  %v14680_v1 = vmov 8   ;;  %v14678_v2 = vmov 1   ;;  %v14664_v5 = vmov 0  }
   0x8   :  { %7988 = vset.pattern.permute.xlu0 %v14680_v1  ;;  %7965 = vset.pattern.permute.xlu1 %v14678_v2  ;;  %v14666_v10 = vmov 2   ;;  %v14672_v12 = vmov 3   ;;  %v14674_v15 = vmov 4   ;;  %v14670_v21 = vmov 5  }
   0x9   :  { %4174 = vmatprep.subr.bf16.mxu0 %v14664_v5  ;;  %4675 = vmatprep.subr.bf16.mxu1 %v14664_v5  ;;  %v14676_v29 = vmov 6  }
   0xd   :  { %v9153_v0 = vld [vmem:[%s14711_s26] sm:$0xff]  ;;  %v9162_v3 = vld [vmem:[%s14711_s26 + $0x10] sm:$0xff]  ;;  %v9167_v4 = vld [vmem:[%s14711_s26 + $0x8] sm:$0xff] }
   0xe   :  { %3311 = vperm.xlu0 %7988, %v9153_v0   ;;  %595 = vperm.xlu1 %7965, %v9153_v0   ;;  %v9176_v6 = vld [vmem:[%s14711_s26 + $0x20] sm:$0xff]  ;;  %v9181_v7 = vld [vmem:[%s14711_s26 + $0x18] sm:$0xff]  ;;  %v9188_v8 = vld [vmem:[%s14711_s26 + $0x30] sm:$0xff] }
   0xf   :  { %v9194_v9 = vld [vmem:[%s14711_s26 + $0x50] sm:$0xff]  ;;  %v9203_v11 = vld [vmem:[%s14711_s26 + $0x60] sm:$0xff]  ;;  %v9216_v13 = vld [vmem:[%s14711_s26 + $0x28] sm:$0xff] }
  0x10   :  { %v9228_v14 = vld [vmem:[%s14711_s26 + $0x108] sm:$0xff]  ;;  %v84_v16 = vld [vmem:[%s14711_s26 + $0x80] sm:$0xff]  ;;  %v9241_v17 = vld [vmem:[%s14711_s26 + $0x110] sm:$0xff] }
  0x11   :  { %v86_v18 = vld [vmem:[%s14711_s26 + $0x90] sm:$0xff]  ;;  %v9253_v19 = vld [vmem:[%s14711_s26 + $0x128] sm:$0xff]  ;;  %v9259_v20 = vld [vmem:[%s14711_s26 + $0x138] sm:$0xff] }
  0x12   :  { %3319 = vperm.xlu0 %7988, %v9162_v3   ;;  %599 = vperm.xlu1 %7965, %v9167_v4   ;;  %v90_v22 = vld [vmem:[%s14711_s26 + $0xb0] sm:$0xff]  ;;  %v9272_v23 = vld [vmem:[%s14711_s26 + $0x38] sm:$0xff]  ;;  %v9277_v24 = vld [vmem:[%s14711_s26 + $0x140] sm:$0xff] }
  0x13   :  { %v9284_v25 = vld [vmem:[%s14711_s26 + $0xc0] sm:$0xff]  ;;  %v9293_v26 = vld [vmem:[%s14711_s26 + $0x150] sm:$0xff] }
  0x14   :  { %v9299_v27 = vld [vmem:[%s14711_s26 + $0xd0] sm:$0xff]  ;;  %v9308_v28 = vld [vmem:[%s14711_s26 + $0x160] sm:$0xff] }
  0x15   :  { %v9316_v30 = vld [vmem:[%s14711_s26 + $0xe0] sm:$0xff]  ;;  %v114_v31 = vld [vmem:[%s14711_s26 + $0x170] sm:$0xff] }
  0x16   :  { %3327 = vperm.xlu0 %7988, %v9176_v6   ;;  %7966 = vset.pattern.permute.xlu1 %v14664_v5 }
  0x17   :  { %159 = vperm.xlu1 %7966, %v9181_v7  }
  0x1a   :  { %3335 = vperm.xlu0 %7988, %v9188_v8  }
  0x1b   :  { %7967 = vset.pattern.permute.xlu1 %v14666_v10 }
  0x1c   :  { %987 = vperm.xlu1 %7967, %v9167_v4  }
  0x1e   :  { %3351 = vperm.xlu0 %7988, %v9194_v9  }
  0x20   :  { %7968 = vset.pattern.permute.xlu1 %v14678_v2 }
  0x21   :  { %603 = vperm.xlu1 %7968, %v9162_v3  }
  0x22   :  { %3359 = vperm.xlu0 %7988, %v9203_v11  }
  0x25   :  { %7969 = vset.pattern.permute.xlu1 %v14672_v12 }
  0x26   :  { %8055 = vset.pattern.permute.xlu0 %v14664_v5  ;;  %1371 = vperm.xlu1 %7969, %v9153_v0  }
  0x27   :  { %144 = vperm.xlu0 %8055, %v9153_v0  }
  0x2a   :  { %1375 = vperm.xlu1 %7969, %v9167_v4  }
  0x2b   :  { %149 = vperm.xlu0 %8055, %v9167_v4  }
  0x2e   :  { %7970 = vset.pattern.permute.xlu1 %v14664_v5 }
  0x2f   :  { %154 = vperm.xlu0 %8055, %v9162_v3   ;;  %169 = vperm.xlu1 %7970, %v9216_v13  }
  0x33   :  { %164 = vperm.xlu0 %8055, %v9176_v6   ;;  %7971 = vset.pattern.permute.xlu1 %v14666_v10 }
  0x34   :  { %991 = vperm.xlu1 %7971, %v9162_v3  }
  0x37   :  { %174 = vperm.xlu0 %8055, %v9188_v8  }
  0x38   :  { %7972 = vset.pattern.permute.xlu1 %v14674_v15 }
  0x39   :  { %1759 = vperm.xlu1 %7972, %v9153_v0  }
  0x3b   :  { %309 = vperm.xlu0 %8055, %v9228_v14  }
  0x3d   :  { %1763 = vperm.xlu1 %7972, %v9167_v4  }
  0x3f   :  { %224 = vperm.xlu0 %8055, %v84_v16  }
  0x41   :  { %7973 = vset.pattern.permute.xlu1 %v14678_v2 }
  0x42   :  { %615 = vperm.xlu1 %7973, %v9216_v13  }
  0x43   :  { %314 = vperm.xlu0 %8055, %v9241_v17  }
  0x46   :  { %7974 = vset.pattern.permute.xlu1 %v14672_v12 }
  0x47   :  { %234 = vperm.xlu0 %8055, %v86_v18   ;;  %1379 = vperm.xlu1 %7974, %v9162_v3  }
  0x4b   :  { %329 = vperm.xlu0 %8055, %v9253_v19   ;;  %7975 = vset.pattern.permute.xlu1 %v14670_v21 }
  0x4c   :  { %2147 = vperm.xlu1 %7975, %v9153_v0  }
  0x4f   :  { %339 = vperm.xlu0 %8055, %v9259_v20  }
  0x50   :  { %2151 = vperm.xlu1 %7975, %v9167_v4  }
  0x53   :  { %254 = vperm.xlu0 %8055, %v90_v22  }
  0x54   :  { %7976 = vset.pattern.permute.xlu1 %v14664_v5 }
  0x55   :  { %179 = vperm.xlu1 %7976, %v9272_v23  }
  0x57   :  { %344 = vperm.xlu0 %8055, %v9277_v24  }
  0x59   :  { %7977 = vset.pattern.permute.xlu1 %v14666_v10 }
  0x5a   :  { %999 = vperm.xlu1 %7977, %v9176_v6  }
  0x5b   :  { %264 = vperm.xlu0 %8055, %v9284_v25  }
  0x5e   :  { %7978 = vset.pattern.permute.xlu1 %v14674_v15 }
  0x5f   :  { %354 = vperm.xlu0 %8055, %v9293_v26   ;;  %1767 = vperm.xlu1 %7978, %v9162_v3  }
  0x63   :  { %274 = vperm.xlu0 %8055, %v9299_v27   ;;  %1771 = vperm.xlu1 %7978, %v9181_v7  }
  0x67   :  { %364 = vperm.xlu0 %8055, %v9308_v28   ;;  %7979 = vset.pattern.permute.xlu1 %v14676_v29 }
  0x68   :  { %2539 = vperm.xlu1 %7979, %v9167_v4  }
  0x6b   :  { %284 = vperm.xlu0 %8055, %v9316_v30  }
  0x6c   :  { %7980 = vset.pattern.permute.xlu1 %v14678_v2 }
  0x6d   :  { %619 = vperm.xlu1 %7980, %v9188_v8  }
  0x6f   :  { %374 = vperm.xlu0 %8055, %v114_v31  }
  0x70   :  { %28 = vsyncpa [#allocation5], 0  ;;  %v98_v32 = vld [vmem:[%s14711_s26 + $0xf0] sm:$0xff]  ;;  %v9332_v33 = vld [vmem:[%s14711_s26 + $0x180] sm:$0xff]  ;;  %v14668_v35 = vmov 7   ;;  %s14960_s28 = sld [smem:[#allocation274_spill]] }
  0x71   :  { %7981 = vset.pattern.permute.xlu1 %v14672_v12  ;;  %v9339_v34 = vld [vmem:[%s14711_s26 + $0x1b0] sm:$0xff]  ;;  %v9351_v36 = vld [vmem:[%s14711_s26 + $0x40] sm:$0xff]  ;;  %v9359_v37 = vld [vmem:[%s14711_s26 + $0x48] sm:$0xff]  ;;  %s14964_s4 = sld [smem:[#allocation275_spill]]  ;;  %s15377_s1 = sld [smem:[#allocation276_spill]]  ;;  %vm4630_vm0 = vcmask 261120  }
  0x72   :  { %1387 = vperm.xlu1 %7981, %v9176_v6   ;;  %v9396_v47 = vld [vmem:[%s14711_s26 + $0x98] sm:$0xff]  ;;  %v9408_v50 = vld [vmem:[%s14711_s26 + $0x120] sm:$0xff]  ;;  %v118_v56 = vld [vmem:[%s14711_s26 + $0x190] sm:$0xff]  ;;  %s9033_s22 = smov 32   ;;  %s9034_s27 = smov 64   ;;  %vm4638_vm1 = vcmask 523264  }
  0x73   :  { %294 = vperm.xlu0 %8055, %v98_v32   ;;  %v9417_v52 = vld [vmem:[%s14711_s26 + $0xf8] sm:$0xff]  ;;  %v9441_v59 = vld [vmem:[%s14711_s26 + $0x1a8] sm:$0xff]  ;;  %v9481_v31 = vld [vmem:[%s14711_s26 + $0x1e0] sm:$0xff]  ;;  %s15474_s5 = sld [smem:[#allocation277_spill]]  ;;  %vm4646_vm2 = vcmask 785408   ;;  %vm9037_vm3 = vmmov 0  }
  0x74   :  { %vm5656_vm4 = vcmask 1043456   ;;  %vm5628_vm5 = vcmask 457728   ;;  %vm6307_vm6 = vcmask 130048   ;;  %s9039_s0 = smov [#allocation4]  }
  0x76   :  { %1391 = vperm.xlu1 %7981, %v9216_v13  }
  0x77   :  { %384 = vperm.xlu0 %8055, %v9332_v33  }
  0x7a   :  { %7982 = vset.pattern.permute.xlu1 %v14670_v21 }
  0x7b   :  { %414 = vperm.xlu0 %8055, %v9339_v34   ;;  %2159 = vperm.xlu1 %7982, %v9181_v7  }
  0x7f   :  { %8191 = vset.pattern.permute.xlu0 %v14666_v10  ;;  %7983 = vset.pattern.permute.xlu1 %v14668_v35 }
  0x80   :  { %983 = vperm.xlu0 %8191, %v9153_v0   ;;  %2923 = vperm.xlu1 %7983, %v9153_v0   ;;  %v124_v0 = vld [vmem:[%s14711_s26 + $0x1c0] sm:$0xff] }
  0x84   :  { %995 = vperm.xlu0 %8191, %v9181_v7   ;;  %7984 = vset.pattern.permute.xlu1 %v14664_v5 }
  0x85   :  { %184 = vperm.xlu1 %7984, %v9351_v36  }
  0x88   :  { %1003 = vperm.xlu0 %8191, %v9216_v13  }
  0x89   :  { %189 = vperm.xlu1 %7984, %v9359_v37  }
  0x8c   :  { %1007 = vperm.xlu0 %8191, %v9188_v8  }
  0x8d   :  { %7985 = vset.pattern.permute.xlu1 %v14666_v10  ;;  %v9365_v38 = vpop.permute.xlu1 %595  ;;  %v9367_v39 = vpop.permute.xlu0 %3311 }
  0x8e   :  { %14712 = vst [vmem:[#allocation8_spill] sm:$0xff] %v9367_v39  ;;  %1011 = vperm.xlu1 %7985, %v9272_v23  }
  0x90   :  { %1015 = vperm.xlu0 %8191, %v9351_v36  }
  0x91   :  { %v9371_v40 = vpop.permute.xlu1 %599  ;;  %v9373_v41 = vpop.permute.xlu0 %3319 }
  0x92   :  { %14713 = vst [vmem:[#allocation9_spill] sm:$0xff] %v9373_v41  ;;  %7986 = vset.pattern.permute.xlu1 %v14674_v15 }
  0x93   :  { %1775 = vperm.xlu1 %7986, %v9176_v6  }
  0x94   :  { %1023 = vperm.xlu0 %8191, %v9194_v9  }
  0x95   :  { %v9378_v42 = vpop.permute.xlu0 %3327 }
  0x96   :  { %14714 = vst [vmem:[#allocation10_spill] sm:$0xff] %v9378_v42  ;;  %v9380_v43 = vpop.permute.xlu1 %159 }
  0x97   :  { %14715 = vst [vmem:[#allocation11_spill] sm:$0xff] %v9380_v43  ;;  %7987 = vset.pattern.permute.xlu1 %v14676_v29  ;;  %v14771_v43 = vmov 8  }
  0x98   :  { %1031 = vperm.xlu0 %8191, %v9203_v11   ;;  %2543 = vperm.xlu1 %7987, %v9162_v3  }
  0x99   :  { %v9385_v44 = vpop.permute.xlu0 %3335 }
  0x9a   :  { %14716 = vst [vmem:[#allocation12_spill] sm:$0xff] %v9385_v44 }
  0x9b   :  { %v9387_v45 = vpop.permute.xlu1 %987 }
  0x9c   :  { %1119 = vperm.xlu0 %8191, %v9241_v17   ;;  %2547 = vperm.xlu1 %7987, %v9181_v7   ;;  %v126_v17 = vld [vmem:[%s14711_s26 + $0x1d0] sm:$0xff] }
  0x9d   :  { %v9391_v46 = vpop.permute.xlu0 %3351 }
  0x9e   :  { %14717 = vst [vmem:[#allocation13_spill] sm:$0xff] %v9391_v46 }
  0xa0   :  { %1059 = vperm.xlu0 %8191, %v9396_v47   ;;  %7989 = vset.pattern.permute.xlu1 %v14680_v1  ;;  %v9400_v48 = vpop.permute.xlu1 %603 }
  0xa1   :  { %14718 = vst [vmem:[#allocation14_spill] sm:$0xff] %v9400_v48  ;;  %3315 = vperm.xlu1 %7989, %v9167_v4   ;;  %v9403_v49 = vpop.permute.xlu0 %3359 }
  0xa2   :  { %14719 = vst [vmem:[#allocation15_spill] sm:$0xff] %v9403_v49 }
  0xa4   :  { %1127 = vperm.xlu0 %8191, %v9408_v50  }
  0xa5   :  { %7990 = vset.pattern.permute.xlu1 %v14678_v2  ;;  %v9412_v51 = vpop.permute.xlu1 %1371 }
  0xa6   :  { %v9419_v53 = vpop.permute.xlu0 %144  ;;  %627 = vperm.xlu1 %7990, %v9351_v36  }
  0xa8   :  { %1107 = vperm.xlu0 %8191, %v9417_v52  }
  0xa9   :  { %v9423_v54 = vpop.permute.xlu1 %1375 }
  0xaa   :  { %v9425_v55 = vpop.permute.xlu0 %149  ;;  %7991 = vset.pattern.permute.xlu1 %v14672_v12 }
  0xab   :  { %1395 = vperm.xlu1 %7991, %v9188_v8  }
  0xac   :  { %1175 = vperm.xlu0 %8191, %v9332_v33  }
  0xae   :  { %v9433_v57 = vpop.permute.xlu0 %154  ;;  %v9435_v58 = vpop.permute.xlu1 %169 }
  0xaf   :  { %14720 = vst [vmem:[#allocation16_spill] sm:$0xff] %v9433_v57  ;;  %14721 = vst [vmem:[#allocation17_spill] sm:$0xff] %v9435_v58  ;;  %1399 = vperm.xlu1 %7991, %v9272_v23  }
  0xb0   :  { %1183 = vperm.xlu0 %8191, %v118_v56  }
  0xb2   :  { %v9443_v60 = vpop.permute.xlu0 %164 }
  0xb3   :  { %14722 = vst [vmem:[#allocation18_spill] sm:$0xff] %v9443_v60  ;;  %7992 = vset.pattern.permute.xlu1 %v14670_v21  ;;  %v9446_v61 = vpop.permute.xlu1 %991 }
  0xb4   :  { %14723 = vst [vmem:[#allocation19_spill] sm:$0xff] %v9446_v61  ;;  %1195 = vperm.xlu0 %8191, %v9441_v59   ;;  %2167 = vperm.xlu1 %7992, %v9216_v13  }
  0xb6   :  { %v9450_v62 = vpop.permute.xlu0 %174 }
  0xb7   :  { %14724 = vst [vmem:[#allocation20_spill] sm:$0xff] %v9450_v62 }
  0xb8   :  { %1199 = vperm.xlu0 %8191, %v9339_v34   ;;  %7993 = vset.pattern.permute.xlu1 %v14668_v35  ;;  %v9454_v63 = vpop.permute.xlu1 %1759 }
  0xb9   :  { %14725 = vst [vmem:[#allocation21_spill] sm:$0xff] %v9454_v63  ;;  %2931 = vperm.xlu1 %7993, %v9162_v3   ;;  %v9474_v3 = vld [vmem:[%s14711_s26 + $0x58] sm:$0xff]  ;;  %v8813_v63 = vld [vmem:[%s14711_s26 + $0x8] sm:$0xff] }
  0xba   :  { %v9460_v4 = vpop.permute.xlu0 %309 }
  0xbb   :  { %14726 = vst [vmem:[#allocation22_spill] sm:$0xff] %v9460_v4  ;;  %v14752_v4 = vmov 7  }
  0xbc   :  { %1207 = vperm.xlu0 %8191, %v124_v0   ;;  %v9462_v16 = vpop.permute.xlu1 %1763 }
  0xbd   :  { %7994 = vset.pattern.permute.xlu1 %v14664_v5 }
  0xbe   :  { %194 = vperm.xlu1 %7994, %v9194_v9   ;;  %v9469_v18 = vpop.permute.xlu0 %224 }
  0xbf   :  { %14727 = vst [vmem:[#allocation23_spill] sm:$0xff] %v9469_v18 }
  0xc0   :  { %1215 = vperm.xlu0 %8191, %v126_v17  }
  0xc1   :  { %v9476_v22 = vpop.permute.xlu1 %615 }
  0xc2   :  { %14728 = vst [vmem:[#allocation24_spill] sm:$0xff] %v9476_v22  ;;  %199 = vperm.xlu1 %7994, %v9474_v3   ;;  %v9484_v32 = vpop.permute.xlu0 %314  ;;  %v9649_v22 = vld [vmem:[%s14711_s26 + $0xe8] sm:$0xff] }
  0xc3   :  { %14729 = vst [vmem:[#allocation25_spill] sm:$0xff] %v9484_v32  ;;  %v14749_v32 = vmov 5  }
  0xc4   :  { %1223 = vperm.xlu0 %8191, %v9481_v31  }
  0xc6   :  { %7995 = vset.pattern.permute.xlu1 %v14666_v10  ;;  %v9488_v56 = vpop.permute.xlu1 %1379  ;;  %v9490_v0 = vpop.permute.xlu0 %234 }
  0xc7   :  { %14730 = vst [vmem:[#allocation26_spill] sm:$0xff] %v9488_v56  ;;  %14731 = vst [vmem:[#allocation27_spill] sm:$0xff] %v9490_v0  ;;  %1019 = vperm.xlu1 %7995, %v9359_v37   ;;  %v9632_v56 = vld [vmem:[%s14711_s26 + $0x168] sm:$0xff] }
  0xc8   :  { %8231 = vset.pattern.permute.xlu0 %v14678_v2  ;;  %v9527_v2 = vld [vmem:[%s14711_s26 + $0x68] sm:$0xff] }
  0xc9   :  { %607 = vperm.xlu0 %8231, %v9181_v7  }
  0xca   :  { %v9495_v17 = vpop.permute.xlu0 %329 }
  0xcb   :  { %14732 = vst [vmem:[#allocation28_spill] sm:$0xff] %v9495_v17  ;;  %7996 = vset.pattern.permute.xlu1 %v14674_v15  ;;  %v9498_v5 = vpop.permute.xlu1 %2147  ;;  %v14745_v17 = vmov 3  }
  0xcc   :  { %14733 = vst [vmem:[#allocation29_spill] sm:$0xff] %v9498_v5  ;;  %1783 = vperm.xlu1 %7996, %v9188_v8  }
  0xcd   :  { %611 = vperm.xlu0 %8231, %v9176_v6  }
  0xce   :  { %v9502_v10 = vpop.permute.xlu0 %339 }
  0xcf   :  { %14734 = vst [vmem:[#allocation30_spill] sm:$0xff] %v9502_v10  ;;  %v9504_v35 = vpop.permute.xlu1 %2151 }
  0xd0   :  { %7997 = vset.pattern.permute.xlu1 %v14676_v29 }
  0xd1   :  { %623 = vperm.xlu0 %8231, %v9272_v23   ;;  %2551 = vperm.xlu1 %7997, %v9176_v6  }
  0xd2   :  { %v9509_v21 = vpop.permute.xlu0 %254 }
  0xd3   :  { %14735 = vst [vmem:[#allocation31_spill] sm:$0xff] %v9509_v21  ;;  %v14740_v21 = vmov 1  }
  0xd4   :  { %v9511_v12 = vpop.permute.xlu1 %179 }
  0xd5   :  { %14736 = vst [vmem:[#allocation32_spill] sm:$0xff] %v9511_v12  ;;  %631 = vperm.xlu0 %8231, %v9359_v37   ;;  %2555 = vperm.xlu1 %7997, %v9216_v13   ;;  %v14763_v12 = vmov 4  }
  0xd6   :  { %v9515_v8 = vpop.permute.xlu0 %344 }
  0xd7   :  { %14737 = vst [vmem:[#allocation33_spill] sm:$0xff] %v9515_v8 }
  0xd9   :  { %639 = vperm.xlu0 %8231, %v9474_v3   ;;  %7998 = vset.pattern.permute.xlu1 %v14680_v1  ;;  %v9519_v15 = vpop.permute.xlu1 %999 }
  0xda   :  { %14738 = vst [vmem:[#allocation34_spill] sm:$0xff] %v9519_v15  ;;  %3323 = vperm.xlu1 %7998, %v9181_v7   ;;  %v9522_v29 = vpop.permute.xlu0 %264 }
  0xdb   :  { %14739 = vst [vmem:[#allocation35_spill] sm:$0xff] %v9522_v29  ;;  %v9544_v29 = vld [vmem:[%s14711_s26 + $0x88] sm:$0xff] }
  0xdd   :  { %647 = vperm.xlu0 %8231, %v9527_v2  }
  0xde   :  { %7999 = vset.pattern.permute.xlu1 %v14740_v21  ;;  %v9531_v8 = vpop.permute.xlu1 %1767  ;;  %v9533_v10 = vpop.permute.xlu0 %354 }
  0xdf   :  { %14741 = vst [vmem:[#allocation36_spill] sm:$0xff] %v9531_v8  ;;  %14742 = vst [vmem:[#allocation37_spill] sm:$0xff] %v9533_v10  ;;  %635 = vperm.xlu1 %7999, %v9194_v9   ;;  %v9554_v9 = vld [vmem:[%s14711_s26 + $0x118] sm:$0xff]  ;;  %v14760_v8 = vmov 2  }
  0xe1   :  { %727 = vperm.xlu0 %8231, %v9228_v14  }
  0xe2   :  { %v9537_v7 = vpop.permute.xlu1 %1771  ;;  %v9539_v1 = vpop.permute.xlu0 %274 }
  0xe3   :  { %14743 = vst [vmem:[#allocation38_spill] sm:$0xff] %v9537_v7  ;;  %14744 = vst [vmem:[#allocation39_spill] sm:$0xff] %v9539_v1  ;;  %8000 = vset.pattern.permute.xlu1 %v14745_v17 }
  0xe4   :  { %1403 = vperm.xlu1 %8000, %v9351_v36  }
  0xe5   :  { %663 = vperm.xlu0 %8231, %v9544_v29  }
  0xe6   :  { %v9549_v10 = vpop.permute.xlu0 %364 }
  0xe7   :  { %14746 = vst [vmem:[#allocation40_spill] sm:$0xff] %v9549_v10  ;;  %v9556_v0 = vpop.permute.xlu1 %2539 }
  0xe8   :  { %14747 = vst [vmem:[#allocation41_spill] sm:$0xff] %v9556_v0  ;;  %1407 = vperm.xlu1 %8000, %v9359_v37  }
  0xe9   :  { %735 = vperm.xlu0 %8231, %v9554_v9  }
  0xea   :  { %v9560_v1 = vpop.permute.xlu0 %284 }
  0xeb   :  { %14748 = vst [vmem:[#allocation42_spill] sm:$0xff] %v9560_v1  ;;  %v9579_v1 = vld [vmem:[%s14711_s26 + $0xb8] sm:$0xff] }
  0xec   :  { %8001 = vset.pattern.permute.xlu1 %v14749_v32  ;;  %v9563_v18 = vpop.permute.xlu1 %619 }
  0xed   :  { %14750 = vst [vmem:[#allocation43_spill] sm:$0xff] %v9563_v18  ;;  %739 = vperm.xlu0 %8231, %v9408_v50   ;;  %2175 = vperm.xlu1 %8001, %v9272_v23  }
  0xee   :  { %v9567_v10 = vpop.permute.xlu0 %374 }
  0xef   :  { %14751 = vst [vmem:[#allocation44_spill] sm:$0xff] %v9567_v10  ;;  %v14756_v10 = vmov 0  }
  0xf1   :  { %751 = vperm.xlu0 %8231, %v9259_v20   ;;  %8002 = vset.pattern.permute.xlu1 %v14752_v4  ;;  %v9571_v7 = vpop.permute.xlu1 %1387 }
  0xf2   :  { %14753 = vst [vmem:[#allocation45_spill] sm:$0xff] %v9571_v7  ;;  %2939 = vperm.xlu1 %8002, %v9176_v6   ;;  %v9574_v15 = vpop.permute.xlu0 %294  ;;  %v9590_v7 = vld [vmem:[%s14711_s26 + $0x148] sm:$0xff] }
  0xf3   :  { %14754 = vst [vmem:[#allocation46_spill] sm:$0xff] %v9574_v15 }
  0xf5   :  { %687 = vperm.xlu0 %8231, %v9579_v1   ;;  %v9582_v49 = vpop.permute.xlu1 %1391 }
  0xf6   :  { %14755 = vst [vmem:[#allocation47_spill] sm:$0xff] %v9582_v49  ;;  %8003 = vset.pattern.permute.xlu1 %v14756_v10  ;;  %v9585_v18 = vpop.permute.xlu0 %384  ;;  %v9601_v49 = vld [vmem:[%s14711_s26 + $0xc8] sm:$0xff] }
  0xf7   :  { %14757 = vst [vmem:[#allocation48_spill] sm:$0xff] %v9585_v18  ;;  %204 = vperm.xlu1 %8003, %v9203_v11   ;;  %v9608_v18 = vld [vmem:[%s14711_s26 + $0x158] sm:$0xff] }
  0xf9   :  { %759 = vperm.xlu0 %8231, %v9590_v7  }
  0xfa   :  { %v9594_v6 = vpop.permute.xlu1 %2159  ;;  %v9596_v15 = vpop.permute.xlu0 %414 }
  0xfb   :  { %14758 = vst [vmem:[#allocation49_spill] sm:$0xff] %v9594_v6  ;;  %14759 = vst [vmem:[#allocation50_spill] sm:$0xff] %v9596_v15  ;;  %209 = vperm.xlu1 %8003, %v9527_v2   ;;  %v9620_v15 = vld [vmem:[%s14711_s26 + $0xd8] sm:$0xff] }
  0xfd   :  { %695 = vperm.xlu0 %8231, %v9601_v49  }
  0xff   :  { %v9610_v46 = vpop.permute.xlu0 %983  ;;  %8004 = vset.pattern.permute.xlu1 %v14760_v8  ;;  %v9613_v6 = vpop.permute.xlu1 %2923 }
 0x100   :  { %14761 = vst [vmem:[#allocation51_spill] sm:$0xff] %v9613_v6  ;;  %1027 = vperm.xlu1 %8004, %v9474_v3   ;;  %v9714_v6 = vld [vmem:[%s14711_s26 + $0x1c8] sm:$0xff] }
 0x101   :  { %767 = vperm.xlu0 %8231, %v9608_v18  }
 0x103   :  { %v9622_v44 = vpop.permute.xlu0 %995 }
 0x104   :  { %14762 = vst [vmem:[#allocation52_spill] sm:$0xff] %v9622_v44  ;;  %8005 = vset.pattern.permute.xlu1 %v14763_v12  ;;  %v9625_v60 = vpop.permute.xlu1 %184  ;;  %v14767_v44 = vmov 6  }
 0x105   :  { %14764 = vst [vmem:[#allocation53_spill] sm:$0xff] %v9625_v60  ;;  %703 = vperm.xlu0 %8231, %v9620_v15   ;;  %1791 = vperm.xlu1 %8005, %v9351_v36   ;;  %v9643_v60 = vld [vmem:[%s14711_s26 + $0x30] sm:$0xff] }
 0x107   :  { %v9634_v42 = vpop.permute.xlu0 %1003 }
 0x108   :  { %14765 = vst [vmem:[#allocation54_spill] sm:$0xff] %v9634_v42  ;;  %v9636_v41 = vpop.permute.xlu1 %189  ;;  %v9660_v42 = vld [vmem:[%s14711_s26 + $0x178] sm:$0xff] }
 0x109   :  { %14766 = vst [vmem:[#allocation55_spill] sm:$0xff] %v9636_v41  ;;  %775 = vperm.xlu0 %8231, %v9632_v56   ;;  %8006 = vset.pattern.permute.xlu1 %v14767_v44 }
 0x10a   :  { %2559 = vperm.xlu1 %8006, %v9643_v60  }
 0x10b   :  { %v9651_v62 = vpop.permute.xlu0 %1007 }
 0x10c   :  { %14768 = vst [vmem:[#allocation56_spill] sm:$0xff] %v9651_v62 }
 0x10d   :  { %711 = vperm.xlu0 %8231, %v9649_v22   ;;  %v9654_v41 = vpop.permute.xlu1 %1011 }
 0x10e   :  { %14769 = vst [vmem:[#allocation57_spill] sm:$0xff] %v9654_v41  ;;  %2563 = vperm.xlu1 %8006, %v9272_v23  }
 0x10f   :  { %v9662_v61 = vpop.permute.xlu0 %1015 }
 0x110   :  { %14770 = vst [vmem:[#allocation58_spill] sm:$0xff] %v9662_v61 }
 0x111   :  { %783 = vperm.xlu0 %8231, %v9660_v42  }
 0x112   :  { %8007 = vset.pattern.permute.xlu1 %v14771_v43  ;;  %v9666_v58 = vpop.permute.xlu1 %1775 }
 0x113   :  { %14772 = vst [vmem:[#allocation59_spill] sm:$0xff] %v9666_v58  ;;  %3331 = vperm.xlu1 %8007, %v9216_v13   ;;  %v9669_v62 = vpop.permute.xlu0 %1023  ;;  %v9682_v58 = vld [vmem:[%s14711_s26 + $0x198] sm:$0xff] }
 0x114   :  { %14773 = vst [vmem:[#allocation60_spill] sm:$0xff] %v9669_v62 }
 0x115   :  { %719 = vperm.xlu0 %8231, %v9417_v52  }
 0x117   :  { %8008 = vset.pattern.permute.xlu1 %v14740_v21  ;;  %v9673_v41 = vpop.permute.xlu1 %2543  ;;  %v9675_v48 = vpop.permute.xlu0 %1031 }
 0x118   :  { %14774 = vst [vmem:[#allocation61_spill] sm:$0xff] %v9673_v41  ;;  %14775 = vst [vmem:[#allocation62_spill] sm:$0xff] %v9675_v48  ;;  %643 = vperm.xlu1 %8008, %v9203_v11   ;;  %v9693_v48 = vld [vmem:[%s14711_s26 + $0x50] sm:$0xff]  ;;  %v120_v11 = vld [vmem:[%s14711_s26 + $0x1a0] sm:$0xff] }
 0x119   :  { %787 = vperm.xlu0 %8231, %v9332_v33  }
 0x11b   :  { %v9684_v61 = vpop.permute.xlu1 %2547  ;;  %v9686_v62 = vpop.permute.xlu0 %1119 }
 0x11c   :  { %14776 = vst [vmem:[#allocation63_spill] sm:$0xff] %v9684_v61  ;;  %14777 = vst [vmem:[#allocation64_spill] sm:$0xff] %v9686_v62  ;;  %8009 = vset.pattern.permute.xlu1 %v14745_v17 }
 0x11d   :  { %799 = vperm.xlu0 %8231, %v9682_v58   ;;  %1411 = vperm.xlu1 %8009, %v9693_v48  }
 0x11f   :  { %v9699_v41 = vpop.permute.xlu0 %1059 }
 0x120   :  { %14778 = vst [vmem:[#allocation65_spill] sm:$0xff] %v9699_v41  ;;  %v9701_v61 = vpop.permute.xlu1 %3315 }
 0x121   :  { %14779 = vst [vmem:[#allocation66_spill] sm:$0xff] %v9701_v61  ;;  %803 = vperm.xlu0 %8231, %v120_v11   ;;  %1415 = vperm.xlu1 %8009, %v9474_v3  }
 0x123   :  { %v9704_v62 = vpop.permute.xlu0 %1127 }
 0x124   :  { %14780 = vst [vmem:[#allocation67_spill] sm:$0xff] %v9704_v62 }
 0x125   :  { %811 = vperm.xlu0 %8231, %v9339_v34   ;;  %8010 = vset.pattern.permute.xlu1 %v14749_v32  ;;  %v9708_v57 = vpop.permute.xlu1 %627  ;;  %v9725_v34 = vld [vmem:[%s14711_s26 + $0x1d8] sm:$0xff] }
 0x126   :  { %14781 = vst [vmem:[#allocation68_spill] sm:$0xff] %v9708_v57  ;;  %2183 = vperm.xlu1 %8010, %v9359_v37  }
 0x127   :  { %v9716_v41 = vpop.permute.xlu0 %1107 }
 0x128   :  { %14782 = vst [vmem:[#allocation69_spill] sm:$0xff] %v9716_v41  ;;  %v9734_v41 = vld [vmem:[%s14711_s26 + $0x70] sm:$0xff] }
 0x129   :  { %823 = vperm.xlu0 %8231, %v9714_v6  }
 0x12a   :  { %8011 = vset.pattern.permute.xlu1 %v14752_v4  ;;  %v9720_v11 = vpop.permute.xlu1 %1395 }
 0x12b   :  { %14783 = vst [vmem:[#allocation70_spill] sm:$0xff] %v9720_v11  ;;  %2947 = vperm.xlu1 %8011, %v9643_v60   ;;  %v9728_v62 = vpop.permute.xlu0 %1175  ;;  %v9741_v11 = vld [vmem:[%s14711_s26 + $0x1e8] sm:$0xff] }
 0x12c   :  { %14784 = vst [vmem:[#allocation71_spill] sm:$0xff] %v9728_v62  ;;  %v9751_v62 = vld [vmem:[%s14711_s26 + $0x78] sm:$0xff] }
 0x12d   :  { %831 = vperm.xlu0 %8231, %v9725_v34  }
 0x12e   :  { %v9736_v57 = vpop.permute.xlu1 %1399 }
 0x12f   :  { %14785 = vst [vmem:[#allocation72_spill] sm:$0xff] %v9736_v57  ;;  %8012 = vset.pattern.permute.xlu1 %v14756_v10  ;;  %v9744_v61 = vpop.permute.xlu0 %1183  ;;  %v131_v57 = vld [vmem:[%s14711_s26 + $0x1f8] sm:$0xff] }
 0x130   :  { %14786 = vst [vmem:[#allocation73_spill] sm:$0xff] %v9744_v61  ;;  %214 = vperm.xlu1 %8012, %v9734_v41  }
 0x131   :  { %839 = vperm.xlu0 %8231, %v9741_v11  }
 0x133   :  { %v9756_v39 = vpop.permute.xlu1 %2167  ;;  %v9758_v5 = vpop.permute.xlu0 %1195 }
 0x134   :  { %14787 = vst [vmem:[#allocation74_spill] sm:$0xff] %v9756_v39  ;;  %14788 = vst [vmem:[#allocation75_spill] sm:$0xff] %v9758_v5  ;;  %219 = vperm.xlu1 %8012, %v9751_v62  }
 0x135   :  { %847 = vperm.xlu0 %8231, %v131_v57  }
 0x137   :  { %v9761_v61 = vpop.permute.xlu0 %1199 }
 0x138   :  { %14789 = vst [vmem:[#allocation76_spill] sm:$0xff] %v9761_v61  ;;  %8013 = vset.pattern.permute.xlu1 %v14760_v8  ;;  %v9764_v0 = vpop.permute.xlu1 %2931  ;;  %v9779_v61 = vld [vmem:[%s14711_s26 + $0x18] sm:$0xff] }
 0x139   :  { %14790 = vst [vmem:[#allocation77_spill] sm:$0xff] %v9764_v0  ;;  %8237 = vset.pattern.permute.xlu0 %v14752_v4  ;;  %1035 = vperm.xlu1 %8013, %v9527_v2  }
 0x13a   :  { %2927 = vperm.xlu0 %8237, %v8813_v63  }
 0x13b   :  { %v9771_v39 = vpop.permute.xlu0 %1207 }
 0x13c   :  { %14791 = vst [vmem:[#allocation78_spill] sm:$0xff] %v9771_v39 }
 0x13d   :  { %8014 = vset.pattern.permute.xlu1 %v14763_v12  ;;  %v9774_v57 = vpop.permute.xlu1 %194 }
 0x13e   :  { %14792 = vst [vmem:[#allocation79_spill] sm:$0xff] %v9774_v57  ;;  %2935 = vperm.xlu0 %8237, %v9779_v61   ;;  %1799 = vperm.xlu1 %8014, %v9693_v48  }
 0x13f   :  { %v9783_v5 = vpop.permute.xlu0 %1215 }
 0x140   :  { %14793 = vst [vmem:[#allocation80_spill] sm:$0xff] %v9783_v5 }
 0x141   :  { %v9785_v0 = vpop.permute.xlu1 %199 }
 0x142   :  { %14794 = vst [vmem:[#allocation81_spill] sm:$0xff] %v9785_v0  ;;  %2943 = vperm.xlu0 %8237, %v9216_v13   ;;  %8015 = vset.pattern.permute.xlu1 %v14767_v44 }
 0x143   :  { %2567 = vperm.xlu1 %8015, %v9351_v36   ;;  %v9790_v63 = vpop.permute.xlu0 %1223 }
 0x144   :  { %14795 = vst [vmem:[#allocation82_spill] sm:$0xff] %v9790_v63  ;;  %v9809_v63 = vld [vmem:[%s14711_s26 + $0x100] sm:$0xff] }
 0x146   :  { %2951 = vperm.xlu0 %8237, %v9272_v23   ;;  %v9793_v39 = vpop.permute.xlu1 %1019 }
 0x147   :  { %14796 = vst [vmem:[#allocation83_spill] sm:$0xff] %v9793_v39  ;;  %2571 = vperm.xlu1 %8015, %v9359_v37  }
 0x148   :  { %v9796_v57 = vpop.permute.xlu0 %607 }
 0x149   :  { %14797 = vst [vmem:[#allocation84_spill] sm:$0xff] %v9796_v57 }
 0x14a   :  { %2975 = vperm.xlu0 %8237, %v9527_v2  }
 0x14b   :  { %8016 = vset.pattern.permute.xlu1 %v14771_v43  ;;  %v9800_v5 = vpop.permute.xlu1 %1783 }
 0x14c   :  { %14798 = vst [vmem:[#allocation85_spill] sm:$0xff] %v9800_v5  ;;  %v9802_v13 = vpop.permute.xlu0 %611  ;;  %3339 = vperm.xlu1 %8016, %v9272_v23  }
 0x14d   :  { %14799 = vst [vmem:[#allocation86_spill] sm:$0xff] %v9802_v13 }
 0x14e   :  { %3055 = vperm.xlu0 %8237, %v9228_v14  }
 0x150   :  { %v9811_v39 = vpop.permute.xlu0 %623  ;;  %8017 = vset.pattern.permute.xlu1 %v14756_v10  ;;  %v9814_v0 = vpop.permute.xlu1 %2551 }
 0x151   :  { %14800 = vst [vmem:[#allocation87_spill] sm:$0xff] %v9811_v39  ;;  %14801 = vst [vmem:[#allocation88_spill] sm:$0xff] %v9814_v0  ;;  %304 = vperm.xlu1 %8017, %v9809_v63  }
 0x152   :  { %2991 = vperm.xlu0 %8237, %v9544_v29  }
 0x154   :  { %v9818_v5 = vpop.permute.xlu0 %631  ;;  %v9820_v23 = vpop.permute.xlu1 %2555 }
 0x155   :  { %14802 = vst [vmem:[#allocation89_spill] sm:$0xff] %v9818_v5  ;;  %14803 = vst [vmem:[#allocation90_spill] sm:$0xff] %v9820_v23  ;;  %8018 = vset.pattern.permute.xlu1 %v14740_v21 }
 0x156   :  { %3063 = vperm.xlu0 %8237, %v9554_v9   ;;  %651 = vperm.xlu1 %8018, %v9734_v41  }
 0x158   :  { %v9825_v14 = vpop.permute.xlu0 %639 }
 0x159   :  { %14804 = vst [vmem:[#allocation91_spill] sm:$0xff] %v9825_v14  ;;  %v9827_v39 = vpop.permute.xlu1 %3323  ;;  %v9841_v14 = vld [vmem:[%s14711_s26 + $0xa8] sm:$0xff] }
 0x15a   :  { %14805 = vst [vmem:[#allocation92_spill] sm:$0xff] %v9827_v39  ;;  %2999 = vperm.xlu0 %8237, %v9396_v47   ;;  %655 = vperm.xlu1 %8018, %v9751_v62  }
 0x15c   :  { %v9831_v0 = vpop.permute.xlu0 %647 }
 0x15d   :  { %14806 = vst [vmem:[#allocation93_spill] sm:$0xff] %v9831_v0 }
 0x15e   :  { %3071 = vperm.xlu0 %8237, %v9253_v19   ;;  %8019 = vset.pattern.permute.xlu1 %v14745_v17  ;;  %v9835_v23 = vpop.permute.xlu1 %635 }
 0x15f   :  { %14807 = vst [vmem:[#allocation94_spill] sm:$0xff] %v9835_v23  ;;  %1423 = vperm.xlu1 %8019, %v9527_v2  }
 0x160   :  { %v9843_v39 = vpop.permute.xlu0 %727 }
 0x161   :  { %14808 = vst [vmem:[#allocation95_spill] sm:$0xff] %v9843_v39 }
 0x162   :  { %3007 = vperm.xlu0 %8237, %v9841_v14  }
 0x163   :  { %8020 = vset.pattern.permute.xlu1 %v14749_v32  ;;  %v9847_v0 = vpop.permute.xlu1 %1403 }
 0x164   :  { %14809 = vst [vmem:[#allocation96_spill] sm:$0xff] %v9847_v0  ;;  %2187 = vperm.xlu1 %8020, %v9693_v48   ;;  %v9850_v19 = vpop.permute.xlu0 %663 }
 0x165   :  { %14810 = vst [vmem:[#allocation97_spill] sm:$0xff] %v9850_v19 }
 0x166   :  { %3079 = vperm.xlu0 %8237, %v9259_v20  }
 0x167   :  { %v9853_v23 = vpop.permute.xlu1 %1407 }
 0x168   :  { %14811 = vst [vmem:[#allocation98_spill] sm:$0xff] %v9853_v23  ;;  %8021 = vset.pattern.permute.xlu1 %v14752_v4  ;;  %v9856_v5 = vpop.permute.xlu0 %735 }
 0x169   :  { %14812 = vst [vmem:[#allocation99_spill] sm:$0xff] %v9856_v5  ;;  %2955 = vperm.xlu1 %8021, %v9351_v36  }
 0x16a   :  { %3015 = vperm.xlu0 %8237, %v9579_v1  }
 0x16c   :  { %v9860_v39 = vpop.permute.xlu1 %2175  ;;  %v9862_v57 = vpop.permute.xlu0 %739 }
 0x16d   :  { %14813 = vst [vmem:[#allocation100_spill] sm:$0xff] %v9860_v39  ;;  %14814 = vst [vmem:[#allocation101_spill] sm:$0xff] %v9862_v57  ;;  %2959 = vperm.xlu1 %8021, %v9359_v37  }
 0x16e   :  { %3087 = vperm.xlu0 %8237, %v9590_v7  }
 0x170   :  { %v9866_v19 = vpop.permute.xlu0 %751 }
 0x171   :  { %14815 = vst [vmem:[#allocation102_spill] sm:$0xff] %v9866_v19  ;;  %8022 = vset.pattern.permute.xlu1 %v14756_v10  ;;  %v9869_v20 = vpop.permute.xlu1 %2939 }
 0x172   :  { %14816 = vst [vmem:[#allocation103_spill] sm:$0xff] %v9869_v20  ;;  %3023 = vperm.xlu0 %8237, %v9601_v49   ;;  %229 = vperm.xlu1 %8022, %v9544_v29  }
 0x174   :  { %v9873_v5 = vpop.permute.xlu0 %687 }
 0x175   :  { %14817 = vst [vmem:[#allocation104_spill] sm:$0xff] %v9873_v5 }
 0x176   :  { %3091 = vperm.xlu0 %8237, %v9293_v26   ;;  %8023 = vset.pattern.permute.xlu1 %v14740_v21  ;;  %v9877_v57 = vpop.permute.xlu1 %204 }
 0x177   :  { %14818 = vst [vmem:[#allocation105_spill] sm:$0xff] %v9877_v57  ;;  %723 = vperm.xlu1 %8023, %v9809_v63   ;;  %v10029_v57 = vld [vmem:[%s14711_s26 + $0xb0] sm:$0xff] }
 0x178   :  { %v9880_v39 = vpop.permute.xlu0 %759 }
 0x179   :  { %14819 = vst [vmem:[#allocation106_spill] sm:$0xff] %v9880_v39 }
 0x17a   :  { %3099 = vperm.xlu0 %8237, %v9308_v28   ;;  %v9883_v19 = vpop.permute.xlu1 %209 }
 0x17b   :  { %14820 = vst [vmem:[#allocation107_spill] sm:$0xff] %v9883_v19  ;;  %8024 = vset.pattern.permute.xlu1 %v14760_v8 }
 0x17c   :  { %1039 = vperm.xlu1 %8024, %v9734_v41   ;;  %v9887_v20 = vpop.permute.xlu0 %695 }
 0x17d   :  { %14821 = vst [vmem:[#allocation108_spill] sm:$0xff] %v9887_v20 }
 0x17e   :  { %3039 = vperm.xlu0 %8237, %v9649_v22  }
 0x17f   :  { %v9890_v5 = vpop.permute.xlu1 %1027 }
 0x180   :  { %14822 = vst [vmem:[#allocation109_spill] sm:$0xff] %v9890_v5  ;;  %1043 = vperm.xlu1 %8024, %v9751_v62   ;;  %v9893_v23 = vpop.permute.xlu0 %767 }
 0x181   :  { %14823 = vst [vmem:[#allocation110_spill] sm:$0xff] %v9893_v23 }
 0x182   :  { %3111 = vperm.xlu0 %8237, %v9660_v42  }
 0x184   :  { %8025 = vset.pattern.permute.xlu1 %v14763_v12  ;;  %v9897_v39 = vpop.permute.xlu1 %1791  ;;  %v9899_v0 = vpop.permute.xlu0 %703 }
 0x185   :  { %14824 = vst [vmem:[#allocation111_spill] sm:$0xff] %v9897_v39  ;;  %14825 = vst [vmem:[#allocation112_spill] sm:$0xff] %v9899_v0  ;;  %1811 = vperm.xlu1 %8025, %v9527_v2  }
 0x186   :  { %3047 = vperm.xlu0 %8237, %v9417_v52  }
 0x188   :  { %v9903_v20 = vpop.permute.xlu0 %775 }
 0x189   :  { %14826 = vst [vmem:[#allocation113_spill] sm:$0xff] %v9903_v20  ;;  %8026 = vset.pattern.permute.xlu1 %v14767_v44  ;;  %v9906_v22 = vpop.permute.xlu1 %2559 }
 0x18a   :  { %14827 = vst [vmem:[#allocation114_spill] sm:$0xff] %v9906_v22  ;;  %3115 = vperm.xlu0 %8237, %v9332_v33   ;;  %2575 = vperm.xlu1 %8026, %v9693_v48   ;;  %v9926_v33 = vld [vmem:[%s14711_s26 + $0x1b8] sm:$0xff] }
 0x18c   :  { %v9910_v42 = vpop.permute.xlu0 %711 }
 0x18d   :  { %14828 = vst [vmem:[#allocation115_spill] sm:$0xff] %v9910_v42  ;;  %v9912_v23 = vpop.permute.xlu1 %2563 }
 0x18e   :  { %14829 = vst [vmem:[#allocation116_spill] sm:$0xff] %v9912_v23  ;;  %3127 = vperm.xlu0 %8237, %v9682_v58   ;;  %8027 = vset.pattern.permute.xlu1 %v14771_v43 }
 0x18f   :  { %3343 = vperm.xlu1 %8027, %v9351_v36  }
 0x190   :  { %v9917_v0 = vpop.permute.xlu0 %783 }
 0x191   :  { %14830 = vst [vmem:[#allocation117_spill] sm:$0xff] %v9917_v0 }
 0x192   :  { %3135 = vperm.xlu0 %8237, %v9441_v59   ;;  %v9920_v20 = vpop.permute.xlu1 %3331 }
 0x193   :  { %14831 = vst [vmem:[#allocation118_spill] sm:$0xff] %v9920_v20  ;;  %3347 = vperm.xlu1 %8027, %v9359_v37  }
 0x194   :  { %v9928_v42 = vpop.permute.xlu0 %719 }
 0x195   :  { %14832 = vst [vmem:[#allocation119_spill] sm:$0xff] %v9928_v42  ;;  %v9946_v42 = vld [vmem:[%s14711_s26 + $0x80] sm:$0xff] }
 0x196   :  { %3143 = vperm.xlu0 %8237, %v9926_v33  }
 0x197   :  { %8028 = vset.pattern.permute.xlu1 %v14756_v10  ;;  %v9932_v36 = vpop.permute.xlu1 %643 }
 0x198   :  { %14833 = vst [vmem:[#allocation120_spill] sm:$0xff] %v9932_v36  ;;  %319 = vperm.xlu1 %8028, %v9554_v9   ;;  %v9935_v0 = vpop.permute.xlu0 %787 }
 0x199   :  { %14834 = vst [vmem:[#allocation121_spill] sm:$0xff] %v9935_v0 }
 0x19a   :  { %3151 = vperm.xlu0 %8237, %v9714_v6  }
 0x19c   :  { %8029 = vset.pattern.permute.xlu1 %v14740_v21  ;;  %v9939_v20 = vpop.permute.xlu1 %1411  ;;  %v9941_v23 = vpop.permute.xlu0 %799 }
 0x19d   :  { %14835 = vst [vmem:[#allocation122_spill] sm:$0xff] %v9939_v20  ;;  %14836 = vst [vmem:[#allocation123_spill] sm:$0xff] %v9941_v23  ;;  %659 = vperm.xlu1 %8029, %v9946_v42   ;;  %v9960_v23 = vld [vmem:[%s14711_s26 + $0x60] sm:$0xff] }
 0x19e   :  { %8241 = vset.pattern.permute.xlu0 %v14745_v17 }
 0x19f   :  { %1383 = vperm.xlu0 %8241, %v9779_v61   ;;  %v9970_v61 = vld [vmem:[%s14711_s26 + $0x108] sm:$0xff] }
 0x1a0   :  { %v9951_v0 = vpop.permute.xlu1 %1415  ;;  %v9953_v22 = vpop.permute.xlu0 %803 }
 0x1a1   :  { %14837 = vst [vmem:[#allocation124_spill] sm:$0xff] %v9951_v0  ;;  %14838 = vst [vmem:[#allocation125_spill] sm:$0xff] %v9953_v22  ;;  %8030 = vset.pattern.permute.xlu1 %v14760_v8 }
 0x1a2   :  { %1111 = vperm.xlu1 %8030, %v9809_v63  }
 0x1a3   :  { %1419 = vperm.xlu0 %8241, %v9960_v23  }
 0x1a4   :  { %v9963_v20 = vpop.permute.xlu0 %811 }
 0x1a5   :  { %14839 = vst [vmem:[#allocation126_spill] sm:$0xff] %v9963_v20  ;;  %v9965_v39 = vpop.permute.xlu1 %2183 }
 0x1a6   :  { %14840 = vst [vmem:[#allocation127_spill] sm:$0xff] %v9965_v39  ;;  %1115 = vperm.xlu1 %8030, %v9970_v61  }
 0x1a7   :  { %1427 = vperm.xlu0 %8241, %v9734_v41  }
 0x1a8   :  { %v9974_v22 = vpop.permute.xlu0 %823 }
 0x1a9   :  { %14841 = vst [vmem:[#allocation128_spill] sm:$0xff] %v9974_v22 }
 0x1aa   :  { %8031 = vset.pattern.permute.xlu1 %v14745_v17  ;;  %v9977_v0 = vpop.permute.xlu1 %2947 }
 0x1ab   :  { %14842 = vst [vmem:[#allocation129_spill] sm:$0xff] %v9977_v0  ;;  %1499 = vperm.xlu0 %8241, %v9809_v63   ;;  %1431 = vperm.xlu1 %8031, %v9751_v62  }
 0x1ac   :  { %v9981_v20 = vpop.permute.xlu0 %831 }
 0x1ad   :  { %14843 = vst [vmem:[#allocation130_spill] sm:$0xff] %v9981_v20 }
 0x1af   :  { %1439 = vperm.xlu0 %8241, %v9544_v29   ;;  %8032 = vset.pattern.permute.xlu1 %v14749_v32  ;;  %v9985_v39 = vpop.permute.xlu1 %214 }
 0x1b0   :  { %14844 = vst [vmem:[#allocation131_spill] sm:$0xff] %v9985_v39  ;;  %2195 = vperm.xlu1 %8032, %v9960_v23   ;;  %v9988_v5 = vpop.permute.xlu0 %839  ;;  %v10003_v39 = vld [vmem:[%s14711_s26 + $0xa0] sm:$0xff] }
 0x1b1   :  { %14845 = vst [vmem:[#allocation132_spill] sm:$0xff] %v9988_v5 }
 0x1b3   :  { %1447 = vperm.xlu0 %8241, %v9396_v47   ;;  %v9991_v22 = vpop.permute.xlu1 %219 }
 0x1b4   :  { %14846 = vst [vmem:[#allocation133_spill] sm:$0xff] %v9991_v22  ;;  %8033 = vset.pattern.permute.xlu1 %v14752_v4  ;;  %v9994_v0 = vpop.permute.xlu0 %847 }
 0x1b5   :  { %14847 = vst [vmem:[#allocation134_spill] sm:$0xff] %v9994_v0  ;;  %2963 = vperm.xlu1 %8033, %v9693_v48   ;;  %v10012_v0 = vld [vmem:[%s14711_s26 + $0x130] sm:$0xff] }
 0x1b7   :  { %1515 = vperm.xlu0 %8241, %v9408_v50  }
 0x1b8   :  { %v9998_v20 = vpop.permute.xlu1 %1035 }
 0x1b9   :  { %14848 = vst [vmem:[#allocation135_spill] sm:$0xff] %v9998_v20  ;;  %v10005_v5 = vpop.permute.xlu0 %2927  ;;  %2967 = vperm.xlu1 %8033, %v9474_v3  }
 0x1bb   :  { %1451 = vperm.xlu0 %8241, %v10003_v39  }
 0x1bd   :  { %8034 = vset.pattern.permute.xlu1 %v14756_v10  ;;  %v10015_v48 = vpop.permute.xlu1 %1799  ;;  %v10017_v20 = vpop.permute.xlu0 %2935 }
 0x1be   :  { %14849 = vst [vmem:[#allocation136_spill] sm:$0xff] %v10015_v48  ;;  %14850 = vst [vmem:[#allocation137_spill] sm:$0xff] %v10017_v20  ;;  %239 = vperm.xlu1 %8034, %v9396_v47   ;;  %v10035_v20 = vld [vmem:[%s14711_s26 + $0x110] sm:$0xff] }
 0x1bf   :  { %1523 = vperm.xlu0 %8241, %v10012_v0  }
 0x1c1   :  { %v10021_v22 = vpop.permute.xlu0 %2943 }
 0x1c2   :  { %14851 = vst [vmem:[#allocation138_spill] sm:$0xff] %v10021_v22  ;;  %8035 = vset.pattern.permute.xlu1 %v14740_v21  ;;  %v10024_v36 = vpop.permute.xlu1 %2567 }
 0x1c3   :  { %14852 = vst [vmem:[#allocation139_spill] sm:$0xff] %v10024_v36  ;;  %1459 = vperm.xlu0 %8241, %v10029_v57   ;;  %731 = vperm.xlu1 %8035, %v10035_v20  }
 0x1c5   :  { %v10038_v48 = vpop.permute.xlu0 %2951 }
 0x1c6   :  { %v10040_v22 = vpop.permute.xlu1 %2571 }
 0x1c7   :  { %14853 = vst [vmem:[#allocation140_spill] sm:$0xff] %v10040_v22  ;;  %1531 = vperm.xlu0 %8241, %v9277_v24   ;;  %8036 = vset.pattern.permute.xlu1 %v14760_v8 }
 0x1c8   :  { %1047 = vperm.xlu1 %8036, %v9946_v42  }
 0x1c9   :  { %v10045_v36 = vpop.permute.xlu0 %2975 }
 0x1cb   :  { %1467 = vperm.xlu0 %8241, %v9284_v25   ;;  %v10048_v19 = vpop.permute.xlu1 %3339 }
 0x1cc   :  { %14854 = vst [vmem:[#allocation141_spill] sm:$0xff] %v10048_v19  ;;  %1051 = vperm.xlu1 %8036, %v9544_v29  }
 0x1cd   :  { %v10051_v13 = vpop.permute.xlu0 %3055 }
 0x1ce   :  { %14855 = vst [vmem:[#allocation142_spill] sm:$0xff] %v10051_v13 }
 0x1cf   :  { %1539 = vperm.xlu0 %8241, %v9293_v26  }
 0x1d0   :  { %8037 = vset.pattern.permute.xlu1 %v14745_v17  ;;  %v10055_v22 = vpop.permute.xlu1 %304 }
 0x1d1   :  { %14856 = vst [vmem:[#allocation143_spill] sm:$0xff] %v10055_v22  ;;  %1503 = vperm.xlu1 %8037, %v9970_v61   ;;  %v10058_v24 = vpop.permute.xlu0 %2991 }
 0x1d2   :  { %14857 = vst [vmem:[#allocation144_spill] sm:$0xff] %v10058_v24 }
 0x1d3   :  { %1475 = vperm.xlu0 %8241, %v9299_v27  }
 0x1d5   :  { %8038 = vset.pattern.permute.xlu1 %v14763_v12  ;;  %v10062_v25 = vpop.permute.xlu1 %651  ;;  %v10064_v19 = vpop.permute.xlu0 %3063 }
 0x1d6   :  { %14858 = vst [vmem:[#allocation145_spill] sm:$0xff] %v10064_v19  ;;  %1815 = vperm.xlu1 %8038, %v9734_v41  }
 0x1d7   :  { %1547 = vperm.xlu0 %8241, %v9308_v28  }
 0x1d9   :  { %v10068_v26 = vpop.permute.xlu1 %655  ;;  %v10070_v13 = vpop.permute.xlu0 %2999 }
 0x1da   :  { %14859 = vst [vmem:[#allocation146_spill] sm:$0xff] %v10070_v13  ;;  %8039 = vset.pattern.permute.xlu1 %v14767_v44  ;;  %v10111_v13 = vld [vmem:[%s14711_s26 + $0x90] sm:$0xff] }
 0x1db   :  { %1483 = vperm.xlu0 %8241, %v9316_v30   ;;  %2583 = vperm.xlu1 %8039, %v9960_v23  }
 0x1dd   :  { %v10075_v27 = vpop.permute.xlu0 %3071 }
 0x1de   :  { %14860 = vst [vmem:[#allocation147_spill] sm:$0xff] %v10075_v27  ;;  %v10077_v24 = vpop.permute.xlu1 %1423 }
 0x1df   :  { %1495 = vperm.xlu0 %8241, %v9417_v52   ;;  %2587 = vperm.xlu1 %8039, %v9527_v2   ;;  %v10097_v52 = vld [vmem:[%s14711_s26 + $0x1f0] sm:$0xff] }
 0x1e1   :  { %v10081_v19 = vpop.permute.xlu0 %3007 }
 0x1e2   :  { %14861 = vst [vmem:[#allocation148_spill] sm:$0xff] %v10081_v19 }
 0x1e3   :  { %1575 = vperm.xlu0 %8241, %v9682_v58   ;;  %8040 = vset.pattern.permute.xlu1 %v14771_v43  ;;  %v10085_v28 = vpop.permute.xlu1 %2187 }
 0x1e4   :  { %3355 = vperm.xlu1 %8040, %v9474_v3  }
 0x1e5   :  { %v10088_v30 = vpop.permute.xlu0 %3079 }
 0x1e6   :  { %14862 = vst [vmem:[#allocation149_spill] sm:$0xff] %v10088_v30 }
 0x1e7   :  { %1583 = vperm.xlu0 %8241, %v9441_v59  }
 0x1e8   :  { %8041 = vset.pattern.permute.xlu1 %v14756_v10  ;;  %v10092_v27 = vpop.permute.xlu1 %2955 }
 0x1e9   :  { %14863 = vst [vmem:[#allocation150_spill] sm:$0xff] %v10092_v27  ;;  %324 = vperm.xlu1 %8041, %v9408_v50   ;;  %v10100_v58 = vpop.permute.xlu0 %3015  ;;  %v8821_v50 = vld [vmem:[%s14711_s26 + $0x28] sm:$0xff] }
 0x1ea   :  { %14864 = vst [vmem:[#allocation151_spill] sm:$0xff] %v10100_v58 }
 0x1eb   :  { %1619 = vperm.xlu0 %8241, %v10097_v52  }
 0x1ec   :  { %v10103_v19 = vpop.permute.xlu1 %2959 }
 0x1ed   :  { %14865 = vst [vmem:[#allocation152_spill] sm:$0xff] %v10103_v19  ;;  %8042 = vset.pattern.permute.xlu1 %v14740_v21  ;;  %v10106_v30 = vpop.permute.xlu0 %3087 }
 0x1ee   :  { %14866 = vst [vmem:[#allocation153_spill] sm:$0xff] %v10106_v30  ;;  %667 = vperm.xlu1 %8042, %v10111_v13   ;;  %v8822_v30 = vld [vmem:[%s14711_s26 + $0x38] sm:$0xff] }
 0x1ef   :  { %8246 = vset.pattern.permute.xlu0 %v14763_v12 }
 0x1f0   :  { %1779 = vperm.xlu0 %8246, %v8821_v50  }
 0x1f1   :  { %v10118_v58 = vpop.permute.xlu1 %229  ;;  %v10120_v22 = vpop.permute.xlu0 %3023 }
 0x1f2   :  { %14867 = vst [vmem:[#allocation154_spill] sm:$0xff] %v10118_v58  ;;  %14868 = vst [vmem:[#allocation155_spill] sm:$0xff] %v10120_v22  ;;  %671 = vperm.xlu1 %8042, %v9396_v47  }
 0x1f4   :  { %1787 = vperm.xlu0 %8246, %v8822_v30  }
 0x1f5   :  { %v10126_v19 = vpop.permute.xlu0 %3091 }
 0x1f6   :  { %14869 = vst [vmem:[#allocation156_spill] sm:$0xff] %v10126_v19  ;;  %8043 = vset.pattern.permute.xlu1 %v14760_v8  ;;  %v10129_v27 = vpop.permute.xlu1 %723 }
 0x1f7   :  { %14870 = vst [vmem:[#allocation157_spill] sm:$0xff] %v10129_v27  ;;  %1123 = vperm.xlu1 %8043, %v9554_v9  }
 0x1f8   :  { %1795 = vperm.xlu0 %8246, %v9359_v37  }
 0x1f9   :  { %v10133_v50 = vpop.permute.xlu0 %3099 }
 0x1fa   :  { %14871 = vst [vmem:[#allocation158_spill] sm:$0xff] %v10133_v50 }
 0x1fb   :  { %8044 = vset.pattern.permute.xlu1 %v14745_v17  ;;  %v10136_v22 = vpop.permute.xlu1 %1039 }
 0x1fc   :  { %14872 = vst [vmem:[#allocation159_spill] sm:$0xff] %v10136_v22  ;;  %1803 = vperm.xlu0 %8246, %v9474_v3   ;;  %1435 = vperm.xlu1 %8044, %v9946_v42  }
 0x1fd   :  { %v10140_v30 = vpop.permute.xlu0 %3039 }
 0x1fe   :  { %14873 = vst [vmem:[#allocation160_spill] sm:$0xff] %v10140_v30 }
 0x1ff   :  { %v10142_v19 = vpop.permute.xlu1 %1043 }
 0x200   :  { %14874 = vst [vmem:[#allocation161_spill] sm:$0xff] %v10142_v19  ;;  %1807 = vperm.xlu0 %8246, %v9960_v23   ;;  %8045 = vset.pattern.permute.xlu1 %v14763_v12 }
 0x201   :  { %1887 = vperm.xlu1 %8045, %v9809_v63   ;;  %v10147_v37 = vpop.permute.xlu0 %3111 }
 0x202   :  { %14875 = vst [vmem:[#allocation162_spill] sm:$0xff] %v10147_v37 }
 0x204   :  { %1819 = vperm.xlu0 %8246, %v9751_v62   ;;  %v10150_v50 = vpop.permute.xlu1 %1811 }
 0x205   :  { %14876 = vst [vmem:[#allocation163_spill] sm:$0xff] %v10150_v50  ;;  %1891 = vperm.xlu1 %8045, %v9970_v61   ;;  %v10153_v58 = vpop.permute.xlu0 %3047 }
 0x206   :  { %14877 = vst [vmem:[#allocation164_spill] sm:$0xff] %v10153_v58  ;;  %v10172_v58 = vld [vmem:[%s14711_s26 + $0x128] sm:$0xff] }
 0x208   :  { %1823 = vperm.xlu0 %8246, %v9946_v42  }
 0x209   :  { %8046 = vset.pattern.permute.xlu1 %v14749_v32  ;;  %v10157_v30 = vpop.permute.xlu1 %2575  ;;  %v10159_v27 = vpop.permute.xlu0 %3115 }
 0x20a   :  { %14878 = vst [vmem:[#allocation165_spill] sm:$0xff] %v10157_v30  ;;  %14879 = vst [vmem:[#allocation166_spill] sm:$0xff] %v10159_v27  ;;  %2207 = vperm.xlu1 %8046, %v9751_v62  }
 0x20c   :  { %1835 = vperm.xlu0 %8246, %v9396_v47  }
 0x20d   :  { %v10163_v37 = vpop.permute.xlu0 %3127 }
 0x20e   :  { %14880 = vst [vmem:[#allocation167_spill] sm:$0xff] %v10163_v37  ;;  %8047 = vset.pattern.permute.xlu1 %v14752_v4  ;;  %v10166_v50 = vpop.permute.xlu1 %3343  ;;  %v10189_v37 = vld [vmem:[%s14711_s26 + $0x138] sm:$0xff] }
 0x20f   :  { %14881 = vst [vmem:[#allocation168_spill] sm:$0xff] %v10166_v50  ;;  %2971 = vperm.xlu1 %8047, %v9960_v23  }
 0x210   :  { %1907 = vperm.xlu0 %8246, %v10172_v58  }
 0x211   :  { %v10175_v27 = vpop.permute.xlu0 %3135 }
 0x212   :  { %14882 = vst [vmem:[#allocation169_spill] sm:$0xff] %v10175_v27  ;;  %v10177_v30 = vpop.permute.xlu1 %3347 }
 0x213   :  { %14883 = vst [vmem:[#allocation170_spill] sm:$0xff] %v10177_v30  ;;  %8048 = vset.pattern.permute.xlu1 %v14756_v10 }
 0x214   :  { %1843 = vperm.xlu0 %8246, %v9841_v14   ;;  %244 = vperm.xlu1 %8048, %v10003_v39  }
 0x215   :  { %v10182_v47 = vpop.permute.xlu0 %3143 }
 0x216   :  { %14884 = vst [vmem:[#allocation171_spill] sm:$0xff] %v10182_v47 }
 0x217   :  { %v10184_v23 = vpop.permute.xlu1 %319 }
 0x218   :  { %14885 = vst [vmem:[#allocation172_spill] sm:$0xff] %v10184_v23  ;;  %1915 = vperm.xlu0 %8246, %v10189_v37   ;;  %249 = vperm.xlu1 %8048, %v9841_v14  }
 0x219   :  { %v10193_v27 = vpop.permute.xlu0 %3151 }
 0x21a   :  { %14886 = vst [vmem:[#allocation173_spill] sm:$0xff] %v10193_v27 }
 0x21c   :  { %1851 = vperm.xlu0 %8246, %v9579_v1   ;;  %8049 = vset.pattern.permute.xlu1 %v14740_v21  ;;  %v10197_v30 = vpop.permute.xlu1 %659 }
 0x21d   :  { %14887 = vst [vmem:[#allocation174_spill] sm:$0xff] %v10197_v30  ;;  %743 = vperm.xlu1 %8049, %v10172_v58  }
 0x21e   :  { %v10200_v47 = vpop.permute.xlu0 %1383 }
 0x220   :  { %1923 = vperm.xlu0 %8246, %v9590_v7  }
 0x221   :  { %8050 = vset.pattern.permute.xlu1 %v14760_v8  ;;  %v10204_v23 = vpop.permute.xlu1 %1111 }
 0x222   :  { %14888 = vst [vmem:[#allocation175_spill] sm:$0xff] %v10204_v23  ;;  %v10206_v50 = vpop.permute.xlu0 %1419  ;;  %1055 = vperm.xlu1 %8050, %v10111_v13  }
 0x224   :  { %1859 = vperm.xlu0 %8246, %v9601_v49  }
 0x225   :  { %v10210_v27 = vpop.permute.xlu1 %1115 }
 0x226   :  { %14889 = vst [vmem:[#allocation176_spill] sm:$0xff] %v10210_v27  ;;  %v10212_v19 = vpop.permute.xlu0 %1427  ;;  %8051 = vset.pattern.permute.xlu1 %v14745_v17 }
 0x227   :  { %14890 = vst [vmem:[#allocation177_spill] sm:$0xff] %v10212_v19  ;;  %1507 = vperm.xlu1 %8051, %v10035_v20  }
 0x228   :  { %1931 = vperm.xlu0 %8246, %v9608_v18   ;;  %v10235_v18 = vld [vmem:[%s14711_s26 + $0xe0] sm:$0xff] }
 0x22a   :  { %v10217_v30 = vpop.permute.xlu0 %1499  ;;  %v10219_v22 = vpop.permute.xlu1 %1431 }
 0x22b   :  { %14891 = vst [vmem:[#allocation178_spill] sm:$0xff] %v10217_v30  ;;  %14892 = vst [vmem:[#allocation179_spill] sm:$0xff] %v10219_v22  ;;  %1511 = vperm.xlu1 %8051, %v9554_v9   ;;  %v10247_v30 = vld [vmem:[%s14711_s26 + $0xf0] sm:$0xff] }
 0x22c   :  { %1867 = vperm.xlu0 %8246, %v9620_v15  }
 0x22e   :  { %v10223_v23 = vpop.permute.xlu0 %1439 }
 0x22f   :  { %14893 = vst [vmem:[#allocation180_spill] sm:$0xff] %v10223_v23  ;;  %8052 = vset.pattern.permute.xlu1 %v14763_v12  ;;  %v10226_v49 = vpop.permute.xlu1 %2195 }
 0x230   :  { %14894 = vst [vmem:[#allocation181_spill] sm:$0xff] %v10226_v49  ;;  %1939 = vperm.xlu0 %8246, %v9632_v56   ;;  %1827 = vperm.xlu1 %8052, %v9544_v29   ;;  %v117_v49 = vld [vmem:[%s14711_s26 + $0x188] sm:$0xff] }
 0x232   :  { %v10230_v27 = vpop.permute.xlu0 %1447 }
 0x233   :  { %14895 = vst [vmem:[#allocation182_spill] sm:$0xff] %v10230_v27 }
 0x234   :  { %1871 = vperm.xlu0 %8246, %v10235_v18   ;;  %8053 = vset.pattern.permute.xlu1 %v14749_v32  ;;  %v10239_v15 = vpop.permute.xlu1 %2963 }
 0x235   :  { %14896 = vst [vmem:[#allocation183_spill] sm:$0xff] %v10239_v15  ;;  %2275 = vperm.xlu1 %8053, %v9809_v63  }
 0x236   :  { %v10242_v23 = vpop.permute.xlu0 %1515 }
 0x237   :  { %14897 = vst [vmem:[#allocation184_spill] sm:$0xff] %v10242_v23 }
 0x238   :  { %1879 = vperm.xlu0 %8246, %v10247_v30   ;;  %v10250_v27 = vpop.permute.xlu1 %2967 }
 0x239   :  { %14898 = vst [vmem:[#allocation185_spill] sm:$0xff] %v10250_v27  ;;  %8054 = vset.pattern.permute.xlu1 %v14767_v44 }
 0x23a   :  { %2591 = vperm.xlu1 %8054, %v9734_v41   ;;  %v10257_v22 = vpop.permute.xlu0 %1451 }
 0x23b   :  { %14899 = vst [vmem:[#allocation186_spill] sm:$0xff] %v10257_v22 }
 0x23c   :  { %1955 = vperm.xlu0 %8246, %v117_v49  }
 0x23d   :  { %v10259_v23 = vpop.permute.xlu1 %239 }
 0x23e   :  { %14900 = vst [vmem:[#allocation187_spill] sm:$0xff] %v10259_v23  ;;  %2595 = vperm.xlu1 %8054, %v9751_v62   ;;  %v10262_v19 = vpop.permute.xlu0 %1523 }
 0x23f   :  { %14901 = vst [vmem:[#allocation188_spill] sm:$0xff] %v10262_v19 }
 0x240   :  { %1971 = vperm.xlu0 %8246, %v9441_v59  }
 0x242   :  { %8056 = vset.pattern.permute.xlu1 %v14771_v43  ;;  %v10266_v27 = vpop.permute.xlu1 %731  ;;  %v10268_v15 = vpop.permute.xlu0 %1459 }
 0x243   :  { %14902 = vst [vmem:[#allocation189_spill] sm:$0xff] %v10266_v27  ;;  %14903 = vst [vmem:[#allocation190_spill] sm:$0xff] %v10268_v15  ;;  %3363 = vperm.xlu1 %8056, %v9527_v2  }
 0x244   :  { %1979 = vperm.xlu0 %8246, %v9926_v33  }
 0x246   :  { %v10272_v22 = vpop.permute.xlu0 %1531 }
 0x247   :  { %14904 = vst [vmem:[#allocation191_spill] sm:$0xff] %v10272_v22  ;;  %8057 = vset.pattern.permute.xlu1 %v14756_v10  ;;  %v10275_v49 = vpop.permute.xlu1 %1047 }
 0x248   :  { %14905 = vst [vmem:[#allocation192_spill] sm:$0xff] %v10275_v49  ;;  %1987 = vperm.xlu0 %8246, %v9714_v6   ;;  %334 = vperm.xlu1 %8057, %v10012_v0  }
 0x24a   :  { %v10279_v59 = vpop.permute.xlu0 %1467 }
 0x24b   :  { %14906 = vst [vmem:[#allocation193_spill] sm:$0xff] %v10279_v59  ;;  %v10281_v19 = vpop.permute.xlu1 %1051 }
 0x24c   :  { %14907 = vst [vmem:[#allocation194_spill] sm:$0xff] %v10281_v19  ;;  %1995 = vperm.xlu0 %8246, %v9725_v34   ;;  %8058 = vset.pattern.permute.xlu1 %v14740_v21 }
 0x24d   :  { %675 = vperm.xlu1 %8058, %v10003_v39  }
 0x24e   :  { %v10286_v2 = vpop.permute.xlu0 %1539 }
 0x24f   :  { %14908 = vst [vmem:[#allocation195_spill] sm:$0xff] %v10286_v2 }
 0x250   :  { %1999 = vperm.xlu0 %8246, %v9481_v31   ;;  %v10289_v33 = vpop.permute.xlu1 %1503  ;;  %v8827_v31 = vld [vmem:[%s14711_s26] sm:$0xff] }
 0x251   :  { %14909 = vst [vmem:[#allocation196_spill] sm:$0xff] %v10289_v33  ;;  %679 = vperm.xlu1 %8058, %v9841_v14  }
 0x252   :  { %v10292_v6 = vpop.permute.xlu0 %1475 }
 0x253   :  { %14910 = vst [vmem:[#allocation197_spill] sm:$0xff] %v10292_v6 }
 0x254   :  { %2007 = vperm.xlu0 %8246, %v10097_v52  }
 0x255   :  { %8059 = vset.pattern.permute.xlu1 %v14760_v8  ;;  %v10296_v59 = vpop.permute.xlu1 %1815 }
 0x256   :  { %14911 = vst [vmem:[#allocation198_spill] sm:$0xff] %v10296_v59  ;;  %1131 = vperm.xlu1 %8059, %v10172_v58   ;;  %v10299_v22 = vpop.permute.xlu0 %1547 }
 0x257   :  { %14912 = vst [vmem:[#allocation199_spill] sm:$0xff] %v10299_v22 }
 0x258   :  { %8250 = vset.pattern.permute.xlu0 %v14767_v44 }
 0x259   :  { %2535 = vperm.xlu0 %8250, %v8827_v31  }
 0x25a   :  { %8060 = vset.pattern.permute.xlu1 %v14745_v17  ;;  %v10306_v6 = vpop.permute.xlu1 %2583  ;;  %v10308_v2 = vpop.permute.xlu0 %1483 }
 0x25b   :  { %14913 = vst [vmem:[#allocation200_spill] sm:$0xff] %v10306_v6  ;;  %14914 = vst [vmem:[#allocation201_spill] sm:$0xff] %v10308_v2  ;;  %1443 = vperm.xlu1 %8060, %v10111_v13   ;;  %v10396_v6 = vld [vmem:[%s14711_s26 + $0x150] sm:$0xff] }
 0x25d   :  { %2579 = vperm.xlu0 %8250, %v9474_v3  }
 0x25e   :  { %v10312_v15 = vpop.permute.xlu1 %2587  ;;  %v10314_v22 = vpop.permute.xlu0 %1495 }
 0x25f   :  { %14915 = vst [vmem:[#allocation202_spill] sm:$0xff] %v10312_v15  ;;  %14916 = vst [vmem:[#allocation203_spill] sm:$0xff] %v10314_v22  ;;  %8061 = vset.pattern.permute.xlu1 %v14763_v12  ;;  %v10386_v15 = vld [vmem:[%s14711_s26 + $0xc0] sm:$0xff] }
 0x260   :  { %1895 = vperm.xlu1 %8061, %v10035_v20   ;;  %14932 = vst [vmem:[#allocation219_spill] sm:$0xff] %v10386_v15 }
 0x261   :  { %2667 = vperm.xlu0 %8250, %v9970_v61  }
 0x262   :  { %v10319_v31 = vpop.permute.xlu0 %1575 }
 0x263   :  { %14917 = vst [vmem:[#allocation204_spill] sm:$0xff] %v10319_v31  ;;  %v10321_v23 = vpop.permute.xlu1 %3355 }
 0x264   :  { %14918 = vst [vmem:[#allocation205_spill] sm:$0xff] %v10321_v23  ;;  %1899 = vperm.xlu1 %8061, %v9554_v9   ;;  %v10375_v23 = vld [vmem:[%s14711_s26 + $0x140] sm:$0xff] }
 0x265   :  { %2599 = vperm.xlu0 %8250, %v9946_v42   ;;  %14929 = vst [vmem:[#allocation216_spill] sm:$0xff] %v10375_v23 }
 0x266   :  { %v10325_v2 = vpop.permute.xlu0 %1583 }
 0x267   :  { %14919 = vst [vmem:[#allocation206_spill] sm:$0xff] %v10325_v2  ;;  %v10344_v2 = vld [vmem:[%s14711_s26 + $0x120] sm:$0xff] }
 0x268   :  { %8062 = vset.pattern.permute.xlu1 %v14749_v32  ;;  %v10328_v3 = vpop.permute.xlu1 %324 }
 0x269   :  { %14920 = vst [vmem:[#allocation207_spill] sm:$0xff] %v10328_v3  ;;  %2671 = vperm.xlu0 %8250, %v10035_v20   ;;  %2215 = vperm.xlu1 %8062, %v9544_v29  }
 0x26a   :  { %v10332_v22 = vpop.permute.xlu0 %1619 }
 0x26b   :  { %14921 = vst [vmem:[#allocation208_spill] sm:$0xff] %v10332_v22 }
 0x26d   :  { %2607 = vperm.xlu0 %8250, %v10111_v13   ;;  %8063 = vset.pattern.permute.xlu1 %v14767_v44  ;;  %v10336_v31 = vpop.permute.xlu1 %667 }
 0x26e   :  { %14922 = vst [vmem:[#allocation209_spill] sm:$0xff] %v10336_v31  ;;  %2663 = vperm.xlu1 %8063, %v9809_v63  }
 0x26f   :  { %v10339_v27 = vpop.permute.xlu0 %1779 }
 0x271   :  { %2679 = vperm.xlu0 %8250, %v10344_v2   ;;  %v10347_v3 = vpop.permute.xlu1 %671 }
 0x272   :  { %14923 = vst [vmem:[#allocation210_spill] sm:$0xff] %v10347_v3  ;;  %8064 = vset.pattern.permute.xlu1 %v14752_v4 }
 0x273   :  { %v10350_v22 = vpop.permute.xlu0 %1787  ;;  %2979 = vperm.xlu1 %8064, %v9734_v41  }
 0x275   :  { %2615 = vperm.xlu0 %8250, %v10003_v39  }
 0x276   :  { %v10354_v31 = vpop.permute.xlu1 %1123 }
 0x277   :  { %14924 = vst [vmem:[#allocation211_spill] sm:$0xff] %v10354_v31  ;;  %v10356_v19 = vpop.permute.xlu0 %1795  ;;  %2983 = vperm.xlu1 %8064, %v9751_v62  }
 0x279   :  { %2687 = vperm.xlu0 %8250, %v10012_v0  }
 0x27b   :  { %v10360_v49 = vpop.permute.xlu0 %1803  ;;  %8065 = vset.pattern.permute.xlu1 %v14756_v10  ;;  %v10363_v3 = vpop.permute.xlu1 %1435 }
 0x27c   :  { %14925 = vst [vmem:[#allocation212_spill] sm:$0xff] %v10360_v49  ;;  %14926 = vst [vmem:[#allocation213_spill] sm:$0xff] %v10363_v3  ;;  %259 = vperm.xlu1 %8065, %v9579_v1   ;;  %v8832_v49 = vld [vmem:[%s14711_s26 + $0x170] sm:$0xff] }
 0x27d   :  { %2623 = vperm.xlu0 %8250, %v10029_v57  }
 0x27f   :  { %v10367_v33 = vpop.permute.xlu0 %1807 }
 0x280   :  { %14927 = vst [vmem:[#allocation214_spill] sm:$0xff] %v10367_v33  ;;  %8066 = vset.pattern.permute.xlu1 %v14740_v21  ;;  %v10370_v31 = vpop.permute.xlu1 %1887 }
 0x281   :  { %14928 = vst [vmem:[#allocation215_spill] sm:$0xff] %v10370_v31  ;;  %2695 = vperm.xlu0 %8250, %v10375_v23   ;;  %747 = vperm.xlu1 %8066, %v10012_v0  }
 0x283   :  { %v10379_v3 = vpop.permute.xlu0 %1819 }
 0x284   :  { %14930 = vst [vmem:[#allocation217_spill] sm:$0xff] %v10379_v3  ;;  %v10381_v1 = vpop.permute.xlu1 %1891 }
 0x285   :  { %14931 = vst [vmem:[#allocation218_spill] sm:$0xff] %v10381_v1  ;;  %2631 = vperm.xlu0 %8250, %v10386_v15   ;;  %8067 = vset.pattern.permute.xlu1 %v14760_v8 }
 0x286   :  { %1063 = vperm.xlu1 %8067, %v10003_v39  }
 0x287   :  { %v10391_v31 = vpop.permute.xlu0 %1823 }
 0x288   :  { %14933 = vst [vmem:[#allocation220_spill] sm:$0xff] %v10391_v31 }
 0x289   :  { %2703 = vperm.xlu0 %8250, %v10396_v6   ;;  %v10399_v1 = vpop.permute.xlu1 %2207 }
 0x28a   :  { %14934 = vst [vmem:[#allocation221_spill] sm:$0xff] %v10399_v1  ;;  %1067 = vperm.xlu1 %8067, %v9841_v14  }
 0x28b   :  { %v10402_v3 = vpop.permute.xlu0 %1835 }
 0x28c   :  { %14935 = vst [vmem:[#allocation222_spill] sm:$0xff] %v10402_v3 }
 0x28d   :  { %2715 = vperm.xlu0 %8250, %v9632_v56  }
 0x28e   :  { %8068 = vset.pattern.permute.xlu1 %v14745_v17  ;;  %v10406_v59 = vpop.permute.xlu1 %2971 }
 0x28f   :  { %14936 = vst [vmem:[#allocation223_spill] sm:$0xff] %v10406_v59  ;;  %1519 = vperm.xlu1 %8068, %v10172_v58   ;;  %v10409_v31 = vpop.permute.xlu0 %1907 }
 0x290   :  { %14937 = vst [vmem:[#allocation224_spill] sm:$0xff] %v10409_v31 }
 0x291   :  { %2719 = vperm.xlu0 %8250, %v8832_v49   ;;  %v10429_v49 = vld [vmem:[%s14711_s26 + $0x180] sm:$0xff] }
 0x293   :  { %8069 = vset.pattern.permute.xlu1 %v14763_v12  ;;  %v10415_v1 = vpop.permute.xlu1 %244  ;;  %v10417_v3 = vpop.permute.xlu0 %1843 }
 0x294   :  { %14938 = vst [vmem:[#allocation225_spill] sm:$0xff] %v10415_v1  ;;  %14939 = vst [vmem:[#allocation226_spill] sm:$0xff] %v10417_v3  ;;  %1831 = vperm.xlu1 %8069, %v10111_v13  }
 0x295   :  { %2655 = vperm.xlu0 %8250, %v10247_v30  }
 0x297   :  { %v10421_v56 = vpop.permute.xlu1 %249  ;;  %v10423_v59 = vpop.permute.xlu0 %1915 }
 0x298   :  { %14940 = vst [vmem:[#allocation227_spill] sm:$0xff] %v10421_v56  ;;  %14941 = vst [vmem:[#allocation228_spill] sm:$0xff] %v10423_v59  ;;  %8070 = vset.pattern.permute.xlu1 %v14749_v32 }
 0x299   :  { %2727 = vperm.xlu0 %8250, %v10429_v49   ;;  %2283 = vperm.xlu1 %8070, %v10035_v20  }
 0x29b   :  { %v10433_v3 = vpop.permute.xlu0 %1851 }
 0x29c   :  { %14942 = vst [vmem:[#allocation229_spill] sm:$0xff] %v10433_v3  ;;  %v10435_v1 = vpop.permute.xlu1 %743  ;;  %v462_v3 = vlaneseq }
 0x29d   :  { %14943 = vst [vmem:[#allocation230_spill] sm:$0xff] %v10435_v1  ;;  %2771 = vperm.xlu0 %8250, %v9725_v34   ;;  %2287 = vperm.xlu1 %8070, %v9554_v9   ;;  %v8834_v34 = vld [vmem:[%s14711_s26 + $0x10] sm:$0xff] }
 0x29f   :  { %v10439_v30 = vpop.permute.xlu0 %1923 }
 0x2a0   :  { %14944 = vst [vmem:[#allocation231_spill] sm:$0xff] %v10439_v30 }
 0x2a1   :  { %2779 = vperm.xlu0 %8250, %v9741_v11   ;;  %8071 = vset.pattern.permute.xlu1 %v14767_v44  ;;  %v10443_v59 = vpop.permute.xlu1 %1055 }
 0x2a2   :  { %14945 = vst [vmem:[#allocation232_spill] sm:$0xff] %v10443_v59  ;;  %2603 = vperm.xlu1 %8071, %v9544_v29   ;;  %v8835_v29 = vld [vmem:[%s14711_s26 + $0x20] sm:$0xff] }
 0x2a3   :  { %v10446_v56 = vpop.permute.xlu0 %1859 }
 0x2a4   :  { %14946 = vst [vmem:[#allocation233_spill] sm:$0xff] %v10446_v56 }
 0x2a5   :  { %8253 = vset.pattern.permute.xlu0 %v14749_v32 }
 0x2a6   :  { %2155 = vperm.xlu0 %8253, %v8834_v34   ;;  %8072 = vset.pattern.permute.xlu1 %v14752_v4  ;;  %v10453_v9 = vpop.permute.xlu1 %1507 }
 0x2a7   :  { %14947 = vst [vmem:[#allocation234_spill] sm:$0xff] %v10453_v9  ;;  %3051 = vperm.xlu1 %8072, %v9809_v63   ;;  %v10456_v11 = vpop.permute.xlu0 %1931 }
 0x2a8   :  { %14948 = vst [vmem:[#allocation235_spill] sm:$0xff] %v10456_v11 }
 0x2aa   :  { %2163 = vperm.xlu0 %8253, %v8835_v29   ;;  %v10461_v20 = vpop.permute.xlu1 %1511  ;;  %v8836_v29 = vld [vmem:[%s14711_s26 + $0x40] sm:$0xff] }
 0x2ab   :  { %14949 = vst [vmem:[#allocation236_spill] sm:$0xff] %v10461_v20  ;;  %8073 = vset.pattern.permute.xlu1 %v14771_v43  ;;  %v10464_v56 = vpop.permute.xlu0 %1867 }
 0x2ac   :  { %14950 = vst [vmem:[#allocation237_spill] sm:$0xff] %v10464_v56  ;;  %3367 = vperm.xlu1 %8073, %v9734_v41  }
 0x2ae   :  { %2171 = vperm.xlu0 %8253, %v9643_v60   ;;  %v8837_v60 = vld [vmem:[%s14711_s26 + $0x58] sm:$0xff] }
 0x2af   :  { %v10468_v34 = vpop.permute.xlu1 %1827  ;;  %v10470_v30 = vpop.permute.xlu0 %1939 }
 0x2b0   :  { %14951 = vst [vmem:[#allocation238_spill] sm:$0xff] %v10468_v34  ;;  %14952 = vst [vmem:[#allocation239_spill] sm:$0xff] %v10470_v30  ;;  %3371 = vperm.xlu1 %8073, %v9751_v62   ;;  %v10487_v30 = vshrl.u32 %v462_v3, 7  ;;  %v10504_v3 = vld [vmem:[%s14960_s28] sm:$0xff] }
 0x2b2   :  { %2179 = vperm.xlu0 %8253, %v8836_v29   ;;  %14956 = vst [vmem:[#allocation243_spill] sm:$0xff] %v10487_v30  ;;  %v2404_v9 = vsub.s32 5, %v10487_v30 }
 0x2b3   :  { %v10476_v11 = vpop.permute.xlu0 %1871 }
 0x2b4   :  { %14953 = vst [vmem:[#allocation240_spill] sm:$0xff] %v10476_v11  ;;  %8074 = vset.pattern.permute.xlu1 %v14756_v10  ;;  %v10479_v56 = vpop.permute.xlu1 %2275  ;;  %v8838_v11 = vld [vmem:[%s14711_s26 + $0x68] sm:$0xff] }
 0x2b5   :  { %14954 = vst [vmem:[#allocation241_spill] sm:$0xff] %v10479_v56  ;;  %349 = vperm.xlu1 %8074, %v9590_v7   ;;  %v14682_v7 = vsub.s32 0, %v10487_v30 }
 0x2b6   :  { %2191 = vperm.xlu0 %8253, %v8837_v60  }
 0x2b7   :  { %v10485_v62 = vpop.permute.xlu0 %1879 }
 0x2b8   :  { %14955 = vst [vmem:[#allocation242_spill] sm:$0xff] %v10485_v62 }
 0x2b9   :  { %8075 = vset.pattern.permute.xlu1 %v14740_v21  ;;  %v10490_v29 = vpop.permute.xlu1 %2591 }
 0x2ba   :  { %14957 = vst [vmem:[#allocation244_spill] sm:$0xff] %v10490_v29  ;;  %2199 = vperm.xlu0 %8253, %v8838_v11   ;;  %683 = vperm.xlu1 %8075, %v10029_v57   ;;  %v10511_v11 = vrot.slane %v10504_v3, %v14682_v7 }
 0x2bb   :  { %v10497_v31 = vpop.permute.xlu0 %1955 }
 0x2bc   :  { %14958 = vst [vmem:[#allocation245_spill] sm:$0xff] %v10497_v31  ;;  %v14683_v31 = vsub.s32 1, %v10487_v30  ;;  %v467_v1 = vmul.f32 %v10511_v11, %v9425_v55  ;;  %v466_v20 = vmul.f32 %v10511_v11, %v9419_v53 }
 0x2bd   :  { %v10499_v60 = vpop.permute.xlu1 %2595 }
 0x2be   :  { %14959 = vst [vmem:[#allocation246_spill] sm:$0xff] %v10499_v60  ;;  %2203 = vperm.xlu0 %8253, %v9734_v41   ;;  %8076 = vset.pattern.permute.xlu1 %v14760_v8  ;;  %v14684_v41 = vsub.s32 2, %v10487_v30  ;;  %v10536_v55 = vrot.slane %v10504_v3, %v14683_v31 }
 0x2bf   :  { %1135 = vperm.xlu1 %8076, %v10012_v0   ;;  %v10514_v62 = vpop.permute.xlu0 %1971  ;;  %v10531_v0 = vld [vmem:[%s14964_s4] ss:$0 sm:$0xff] }
 0x2c0   :  { %14961 = vst [vmem:[#allocation247_spill] sm:$0xff] %v10514_v62  ;;  %14965 = vst [vmem:[#allocation250_spill] sm:$0xff] %v10536_v55  ;;  %v531_v62 = vadd.f32 %v10531_v0, %v467_v1  ;;  %v855_v53 = vmul.f32 %v10536_v55, %v9371_v40  ;;  %v530_v34 = vadd.f32 %v10531_v0, %v466_v20  ;;  %v2792_v20 = vsub.s32 6, %v10487_v30 }
 0x2c1   :  { %v854_v40 = vmul.f32 %v10536_v55, %v9365_v38  ;;  %v14968_v38 = vsub.s32 3, %v10487_v30 }
 0x2c2   :  { %2279 = vperm.xlu0 %8253, %v9970_v61   ;;  %v10520_v59 = vpop.permute.xlu1 %3363  ;;  %v919_v1 = vadd.f32 %v855_v53, %v531_v62 }
 0x2c3   :  { %14962 = vst [vmem:[#allocation248_spill] sm:$0xff] %v10520_v59  ;;  %1139 = vperm.xlu1 %8076, %v10189_v37   ;;  %v10526_v7 = vpop.permute.xlu0 %1979  ;;  %v2016_v59 = vsub.s32 4, %v10487_v30  ;;  %v10570_v62 = vrot.slane %v10504_v3, %v14968_v38  ;;  %v918_v53 = vadd.f32 %v854_v40, %v530_v34  ;;  %v10585_v38 = vrot.slane %v10504_v3, %v2792_v20 }
 0x2c4   :  { %14963 = vst [vmem:[#allocation249_spill] sm:$0xff] %v10526_v7  ;;  %v10545_v7 = vrot.slane %v10504_v3, %v14684_v41 }
 0x2c5   :  { %v10578_v29 = vrot.slane %v10504_v3, %v2016_v59  ;;  %v1630_v34 = vmul.f32 %v10570_v62, %v9412_v51  ;;  %v1631_v40 = vmul.f32 %v10570_v62, %v9423_v54  ;;  %v8840_v51 = vld [vmem:[%s14711_s26 + $0x178] sm:$0xff]  ;;  %v14973_v54 = vld [vmem:[#allocation21_spill] sm:$0xff] }
 0x2c6   :  { %2211 = vperm.xlu0 %8253, %v9946_v42   ;;  %v1242_v41 = vmul.f32 %v10545_v7, %v9610_v46 }
 0x2c7   :  { %8077 = vset.pattern.permute.xlu1 %v14745_v17  ;;  %v10550_v31 = vpop.permute.xlu1 %334  ;;  %v10552_v56 = vpop.permute.xlu0 %1987  ;;  %v2019_v59 = vmul.f32 %v10578_v29, %v9462_v16  ;;  %v2018_v16 = vmul.f32 %v10578_v29, %v14973_v54 }
 0x2c8   :  { %14966 = vst [vmem:[#allocation251_spill] sm:$0xff] %v10550_v31  ;;  %14967 = vst [vmem:[#allocation252_spill] sm:$0xff] %v10552_v56  ;;  %1455 = vperm.xlu1 %8077, %v9841_v14   ;;  %v8839_v31 = vld [vmem:[%s14711_s26 + $0x168] sm:$0xff]  ;;  %v1243_v14 = vmul.f32 %v10545_v7, %v9387_v45  ;;  %v10582_v45 = vrot.slane %v10504_v3, %v2404_v9 }
 0x2ca   :  { %2327 = vperm.xlu0 %8253, %v8839_v31   ;;  %v1307_v60 = vadd.f32 %v1243_v14, %v919_v1  ;;  %v1306_v31 = vadd.f32 %v1242_v41, %v918_v53  ;;  %v3180_v41 = vsub.s32 7, %v10487_v30  ;;  %v2407_v20 = vmul.f32 %v10582_v45, %v9504_v35  ;;  %v14974_v30 = vld [vmem:[#allocation41_spill] sm:$0xff] }
 0x2cb   :  { %v10572_v56 = vpop.permute.xlu0 %1995 }
 0x2cc   :  { %14969 = vst [vmem:[#allocation253_spill] sm:$0xff] %v10572_v56  ;;  %8078 = vset.pattern.permute.xlu1 %v14763_v12  ;;  %v10575_v46 = vpop.permute.xlu1 %675  ;;  %v1695_v14 = vadd.f32 %v1631_v40, %v1307_v60  ;;  %v2795_v60 = vmul.f32 %v10585_v38, %v14974_v30  ;;  %v10611_v40 = vrot.slane %v10504_v3, %v3180_v41  ;;  %v10628_v30 = vld [vmem:[%s14711_s26 + $0x1a0] sm:$0xff]  ;;  %v14977_v3 = vld [vmem:[#allocation29_spill] sm:$0xff]  ;;  %v10636_v41 = vld [vmem:[%s14960_s28 + $0x8] ss:$0 sm:$0xff] }
 0x2cd   :  { %14970 = vst [vmem:[#allocation254_spill] sm:$0xff] %v10575_v46  ;;  %1903 = vperm.xlu1 %8078, %v10344_v2  }
 0x2ce   :  { %2259 = vperm.xlu0 %8253, %v10235_v18   ;;  %v1694_v18 = vadd.f32 %v1630_v34, %v1306_v31  ;;  %v2083_v53 = vadd.f32 %v2019_v59, %v1695_v14 }
 0x2cf   :  { %v10595_v1 = vpop.permute.xlu0 %1999 }
 0x2d0   :  { %14971 = vst [vmem:[#allocation255_spill] sm:$0xff] %v10595_v1  ;;  %v10597_v9 = vpop.permute.xlu1 %679  ;;  %v2471_v31 = vadd.f32 %v2407_v20, %v2083_v53  ;;  %v2082_v1 = vadd.f32 %v2018_v16, %v1694_v18  ;;  %v10645_v53 = vld [vmem:[%s14711_s26 + $0x1b0] sm:$0xff] }
 0x2d1   :  { %14972 = vst [vmem:[#allocation256_spill] sm:$0xff] %v10597_v9  ;;  %8079 = vset.pattern.permute.xlu1 %v14749_v32 }
 0x2d2   :  { %2219 = vperm.xlu1 %8079, %v10111_v13   ;;  %2335 = vperm.xlu0 %8253, %v8840_v51   ;;  %v3183_v13 = vmul.f32 %v10611_v40, %v10005_v5  ;;  %v10622_v51 = vld [vmem:[%s14711_s26 + $0x98] sm:$0xff]  ;;  %v2406_v5 = vmul.f32 %v10582_v45, %v14977_v3  ;;  %v2859_v59 = vadd.f32 %v2795_v60, %v2471_v31  ;;  %v14979_v60 = vld [vmem:[#allocation8_spill] sm:$0xff] }
 0x2d3   :  { %v10613_v35 = vpop.permute.xlu0 %2007  ;;  %v3570_v31 = vmul.f32 %v10636_v41, %v14979_v60  ;;  %v14980_v3 = vld [vmem:[#allocation51_spill] sm:$0xff] }
 0x2d4   :  { %14975 = vst [vmem:[#allocation21_spill] sm:$0xff] %v10613_v35  ;;  %v3247_v20 = vadd.f32 %v3183_v13, %v2859_v59  ;;  %v2470_v18 = vadd.f32 %v2406_v5, %v2082_v1  ;;  %v3182_v13 = vmul.f32 %v10611_v40, %v14980_v3  ;;  %v14981_v1 = vld [vmem:[#allocation66_spill] sm:$0xff]  ;;  %v8845_v60 = vld [vmem:[%s14711_s26 + $0x1c0] sm:$0xff] }
 0x2d5   :  { %v10617_v34 = vpop.permute.xlu1 %1131  ;;  %v3571_v5 = vmul.f32 %v10636_v41, %v14981_v1 }
 0x2d6   :  { %14976 = vst [vmem:[#allocation41_spill] sm:$0xff] %v10617_v34  ;;  %2223 = vperm.xlu1 %8079, %v10622_v51   ;;  %2355 = vperm.xlu0 %8253, %v10628_v30   ;;  %v10738_v34 = vld [vmem:[%s14711_s26 + $0xb8] sm:$0xff] }
 0x2d7   :  { %v3635_v9 = vadd.f32 %v3571_v5, %v3247_v20  ;;  %v8846_v20 = vld [vmem:[%s14711_s26 + $0x1d0] sm:$0xff]  ;;  %15001 = vst [vmem:[#allocation271_spill] sm:$0xff] %v10738_v34 }
 0x2d8   :  { %v2536_v14 = vpop.permute.xlu0 %2535 }
 0x2d9   :  { %v2794_v54 = vmul.f32 %v10585_v38, %v2536_v14  ;;  %v10657_v14 = vld [vmem:[%s14711_s26 + $0x118] sm:$0xff]  ;;  %v3699_v46 = vmax.f32 %v3635_v9, 0.0 }
 0x2da   :  { %8080 = vset.pattern.permute.xlu1 %v14767_v44  ;;  %v10640_v16 = vpop.permute.xlu1 %1443  ;;  %2363 = vperm.xlu0 %8253, %v10645_v53   ;;  %14982 = vst [vmem:[#allocation8_spill] sm:$0xff] %v10657_v14 }
 0x2db   :  { %14978 = vst [vmem:[#allocation29_spill] sm:$0xff] %v10640_v16  ;;  %v2858_v59 = vadd.f32 %v2794_v54, %v2470_v18  ;;  %2675 = vperm.xlu1 %8080, %v10657_v14   ;;  %v15005_v16 = vld [vmem:[#allocation11_spill] sm:$0xff] }
 0x2dc   :  { %v10660_v35 = vpop.permute.xlu0 %2579 }
 0x2dd   :  { %14983 = vst [vmem:[#allocation51_spill] sm:$0xff] %v10660_v35  ;;  %v3246_v56 = vadd.f32 %v3182_v13, %v2858_v59  ;;  %v15029_v35 = vld [vmem:[#allocation55_spill] sm:$0xff] }
 0x2de   :  { %2371 = vperm.xlu0 %8253, %v8845_v60  }
 0x2df   :  { %8081 = vset.pattern.permute.xlu1 %v14752_v4  ;;  %v10666_v3 = vpop.permute.xlu1 %1895  ;;  %v3634_v18 = vadd.f32 %v3570_v31, %v3246_v56  ;;  %v10701_v31 = vld [vmem:[%s14711_s26 + $0xc8] sm:$0xff] }
 0x2e0   :  { %14984 = vst [vmem:[#allocation66_spill] sm:$0xff] %v10666_v3  ;;  %2987 = vperm.xlu1 %8081, %v9946_v42   ;;  %v10669_v54 = vpop.permute.xlu0 %2667  ;;  %v10684_v42 = vld [vmem:[%s14711_s26 + $0x1e8] sm:$0xff]  ;;  %14992 = vst [vmem:[#allocation264_spill] sm:$0xff] %v10701_v31 }
 0x2e1   :  { %14985 = vst [vmem:[#allocation257_spill] sm:$0xff] %v10669_v54  ;;  %v3698_v1 = vmax.f32 %v3634_v18, 0.0  ;;  %v15017_v54 = vld [vmem:[#allocation32_spill] sm:$0xff] }
 0x2e2   :  { %2379 = vperm.xlu0 %8253, %v8846_v20  }
 0x2e3   :  { %v10674_v13 = vpop.permute.xlu1 %1899  ;;  %v3825_v5 = vpack.c.bf16 %v3699_v46, %v3698_v1  ;;  %v14997_v1 = vld [vmem:[#allocation16_spill] sm:$0xff] }
 0x2e4   :  { %14986 = vst [vmem:[#allocation258_spill] sm:$0xff] %v10674_v13  ;;  %8082 = vset.pattern.permute.xlu1 %v14771_v43  ;;  %v10677_v59 = vpop.permute.xlu0 %2599  ;;  %v468_v20 = vmul.f32 %v10511_v11, %v14997_v1  ;;  %v8850_v1 = vld [vmem:[%s14711_s26 + $0xf8] sm:$0xff] }
 0x2e5   :  { %14987 = vst [vmem:[#allocation259_spill] sm:$0xff] %v10677_v59  ;;  %4175 = vmatpush1.bf16.msra.mxu0 %v3825_v5  ;;  %3439 = vperm.xlu1 %8082, %v9809_v63   ;;  %v10723_v5 = vld [vmem:[%s14711_s26 + $0xd8] sm:$0xff]  ;;  %v15007_v59 = vld [vmem:[#allocation20_spill] sm:$0xff] }
 0x2e6   :  { %4176 = vmatprep.subr.bf16.mxu0 %v14756_v10  ;;  %2391 = vperm.xlu0 %8253, %v10684_v42   ;;  %14998 = vst [vmem:[#allocation16_spill] sm:$0xff] %v10723_v5 }
 0x2e8   :  { %v10687_v56 = vpop.permute.xlu1 %2215  ;;  %v10689_v9 = vpop.permute.xlu0 %2671 }
 0x2e9   :  { %14988 = vst [vmem:[#allocation260_spill] sm:$0xff] %v10687_v56  ;;  %14989 = vst [vmem:[#allocation261_spill] sm:$0xff] %v10689_v9  ;;  %3443 = vperm.xlu1 %8082, %v9970_v61   ;;  %v469_v9 = vmul.f32 %v10511_v11, %v15005_v16  ;;  %v472_v56 = vmul.f32 %v10511_v11, %v15007_v59 }
 0x2ea   :  { %2395 = vperm.xlu0 %8253, %v10097_v52  }
 0x2eb   :  { %v533_v14 = vadd.f32 %v10531_v0, %v469_v9 }
 0x2ec   :  { %v10693_v46 = vpop.permute.xlu0 %2607 }
 0x2ed   :  { %14990 = vst [vmem:[#allocation262_spill] sm:$0xff] %v10693_v46  ;;  %8083 = vset.pattern.permute.xlu1 %v14756_v10  ;;  %v10696_v63 = vpop.permute.xlu1 %2663 }
 0x2ee   :  { %14991 = vst [vmem:[#allocation263_spill] sm:$0xff] %v10696_v63  ;;  %269 = vperm.xlu1 %8083, %v10701_v31   ;;  %8255 = vset.pattern.permute.xlu0 %v14771_v43  ;;  %v15011_v63 = vld [vmem:[#allocation9_spill] sm:$0xff] }
 0x2ef   :  { %3411 = vperm.xlu0 %8255, %v10701_v31   ;;  %v15008_v31 = vld [vmem:[#allocation24_spill] sm:$0xff]  ;;  %v10763_v16 = vmul.f32 %v10636_v41, %v15011_v63 }
 0x2f0   :  { %v10706_v61 = vpop.permute.xlu0 %2679 }
 0x2f1   :  { %14993 = vst [vmem:[#allocation265_spill] sm:$0xff] %v10706_v61  ;;  %15012 = vst [vmem:[#allocation11_spill] sm:$0xff] %v10763_v16 }
 0x2f2   :  { %8084 = vset.pattern.permute.xlu1 %v14740_v21  ;;  %v10709_v52 = vpop.permute.xlu1 %2979 }
 0x2f3   :  { %14994 = vst [vmem:[#allocation266_spill] sm:$0xff] %v10709_v52  ;;  %755 = vperm.xlu1 %8084, %v10375_v23   ;;  %3479 = vperm.xlu0 %8255, %v10396_v6   ;;  %v532_v6 = vadd.f32 %v10531_v0, %v468_v20  ;;  %v15004_v20 = vld [vmem:[#allocation17_spill] sm:$0xff] }
 0x2f4   :  { %v10713_v60 = vpop.permute.xlu0 %2615 }
 0x2f5   :  { %14995 = vst [vmem:[#allocation267_spill] sm:$0xff] %v10713_v60 }
 0x2f6   :  { %v10715_v18 = vpop.permute.xlu1 %2983 }
 0x2f7   :  { %14996 = vst [vmem:[#allocation268_spill] sm:$0xff] %v10715_v18  ;;  %8085 = vset.pattern.permute.xlu1 %v14760_v8  ;;  %3419 = vperm.xlu0 %8255, %v10723_v5   ;;  %v15018_v5 = vld [vmem:[#allocation54_spill] sm:$0xff]  ;;  %v15021_v18 = vld [vmem:[#allocation36_spill] sm:$0xff] }
 0x2f8   :  { %1071 = vperm.xlu1 %8085, %v10029_v57   ;;  %v10727_v61 = vpop.permute.xlu0 %2687  ;;  %v15003_v57 = vld [vmem:[#allocation14_spill] sm:$0xff]  ;;  %v1247_v63 = vmul.f32 %v10545_v7, %v15018_v5  ;;  %v536_v5 = vadd.f32 %v10531_v0, %v472_v56 }
 0x2f9   :  { %14999 = vst [vmem:[#allocation269_spill] sm:$0xff] %v10727_v61  ;;  %v856_v61 = vmul.f32 %v10536_v55, %v15003_v57  ;;  %v15044_v8 = vld [vmem:[#allocation58_spill] sm:$0xff] }
 0x2fb   :  { %v10730_v60 = vpop.permute.xlu1 %259  ;;  %3435 = vperm.xlu0 %8255, %v8850_v1   ;;  %v920_v13 = vadd.f32 %v856_v61, %v532_v6  ;;  %v15006_v1 = vld [vmem:[#allocation19_spill] sm:$0xff]  ;;  %v15013_v61 = vld [vmem:[#allocation10_spill] sm:$0xff] }
 0x2fc   :  { %15000 = vst [vmem:[#allocation270_spill] sm:$0xff] %v10730_v60  ;;  %1075 = vperm.xlu1 %8085, %v10738_v34   ;;  %v10741_v46 = vpop.permute.xlu0 %2623  ;;  %v471_v60 = vmul.f32 %v10511_v11, %v15004_v20  ;;  %v1244_v3 = vmul.f32 %v10545_v7, %v15006_v1  ;;  %v10767_v6 = vmul.f32 %v10636_v41, %v15013_v61  ;;  %v15016_v1 = vld [vmem:[#allocation18_spill] sm:$0xff]  ;;  %v15019_v61 = vld [vmem:[#allocation12_spill] sm:$0xff]  ;;  %v15024_v34 = vld [vmem:[#allocation43_spill] sm:$0xff] }
 0x2fd   :  { %15002 = vst [vmem:[#allocation272_spill] sm:$0xff] %v10741_v46  ;;  %v859_v46 = vmul.f32 %v10536_v55, %v15008_v31  ;;  %v10782_v52 = vmul.f32 %v10636_v41, %v15019_v61  ;;  %v860_v61 = vmul.f32 %v10536_v55, %v15024_v34 }
 0x2fe   :  { %15014 = vst [vmem:[#allocation19_spill] sm:$0xff] %v10767_v6  ;;  %v535_v31 = vadd.f32 %v10531_v0, %v471_v60  ;;  %v8852_v60 = vld [vmem:[%s14711_s26 + $0x190] sm:$0xff] }
 0x2ff   :  { %3503 = vperm.xlu0 %8255, %v10429_v49   ;;  %v15015_v49 = vld [vmem:[#allocation26_spill] sm:$0xff]  ;;  %15020 = vst [vmem:[#allocation20_spill] sm:$0xff] %v10782_v52  ;;  %v15028_v52 = vld [vmem:[#allocation53_spill] sm:$0xff] }
 0x300   :  { %8086 = vset.pattern.permute.xlu1 %v14745_v17  ;;  %v10757_v57 = vpop.permute.xlu1 %747  ;;  %v10759_v20 = vpop.permute.xlu0 %2695  ;;  %v1632_v59 = vmul.f32 %v10570_v62, %v15015_v49  ;;  %v1308_v49 = vadd.f32 %v1244_v3, %v920_v13  ;;  %v923_v9 = vadd.f32 %v859_v46, %v535_v31  ;;  %v15026_v3 = vld [vmem:[#allocation15_spill] sm:$0xff] }
 0x301   :  { %15009 = vst [vmem:[#allocation14_spill] sm:$0xff] %v10757_v57  ;;  %15010 = vst [vmem:[#allocation17_spill] sm:$0xff] %v10759_v20  ;;  %1527 = vperm.xlu1 %8086, %v10189_v37   ;;  %v470_v57 = vmul.f32 %v10511_v11, %v15016_v1  ;;  %v473_v20 = vmul.f32 %v10511_v11, %v15017_v54  ;;  %v2020_v37 = vmul.f32 %v10578_v29, %v15021_v18  ;;  %v15022_v1 = vld [vmem:[#allocation13_spill] sm:$0xff] }
 0x302   :  { %v10791_v54 = vmul.f32 %v10636_v41, %v15022_v1  ;;  %v10800_v13 = vmul.f32 %v10636_v41, %v15026_v3  ;;  %v1696_v18 = vadd.f32 %v1632_v59, %v1308_v49  ;;  %v475_v1 = vmul.f32 %v10511_v11, %v15029_v35  ;;  %v15032_v59 = vld [vmem:[#allocation34_spill] sm:$0xff]  ;;  %v15033_v35 = vld [vmem:[#allocation56_spill] sm:$0xff] }
 0x303   :  { %3511 = vperm.xlu0 %8255, %v8852_v60   ;;  %v474_v60 = vmul.f32 %v10511_v11, %v15028_v52  ;;  %v534_v46 = vadd.f32 %v10531_v0, %v470_v57  ;;  %v537_v34 = vadd.f32 %v10531_v0, %v473_v20  ;;  %v1311_v31 = vadd.f32 %v1247_v63, %v923_v9  ;;  %v15035_v57 = vld [vmem:[#allocation38_spill] sm:$0xff]  ;;  %v15036_v63 = vld [vmem:[#allocation45_spill] sm:$0xff]  ;;  %v15037_v9 = vld [vmem:[#allocation47_spill] sm:$0xff] }
 0x304   :  { %15023 = vst [vmem:[#allocation24_spill] sm:$0xff] %v10791_v54  ;;  %v10796_v17 = vpop.permute.xlu0 %2631  ;;  %15027 = vst [vmem:[#allocation10_spill] sm:$0xff] %v10800_v13  ;;  %v1246_v52 = vmul.f32 %v10545_v7, %v15032_v59  ;;  %v10816_v49 = vadd.f32 %v2020_v37, %v1696_v18  ;;  %v15034_v13 = vld [vmem:[#allocation68_spill] sm:$0xff]  ;;  %v10825_v20 = vmul.f32 %v10578_v29, %v15035_v57  ;;  %v15039_v59 = vld [vmem:[#allocation49_spill] sm:$0xff] }
 0x305   :  { %15025 = vst [vmem:[#allocation9_spill] sm:$0xff] %v10796_v17  ;;  %8087 = vset.pattern.permute.xlu1 %v14763_v12  ;;  %v10807_v56 = vpop.permute.xlu1 %1063  ;;  %v15031_v17 = vld [vmem:[#allocation86_spill] sm:$0xff]  ;;  %v1248_v12 = vmul.f32 %v10545_v7, %v15033_v35  ;;  %v1635_v37 = vmul.f32 %v10570_v62, %v15037_v9  ;;  %v10835_v35 = vmul.f32 %v10582_v45, %v15039_v59  ;;  %v15043_v9 = vld [vmem:[#allocation87_spill] sm:$0xff] }
 0x306   :  { %15030 = vst [vmem:[#allocation26_spill] sm:$0xff] %v10807_v56  ;;  %v858_v3 = vmul.f32 %v10536_v55, %v15031_v17  ;;  %1839 = vperm.xlu1 %8087, %v10003_v39   ;;  %v862_v56 = vmul.f32 %v10536_v55, %v15034_v13  ;;  %v924_v17 = vadd.f32 %v860_v61, %v536_v5  ;;  %v15040_v13 = vld [vmem:[#allocation52_spill] sm:$0xff] }
 0x307   :  { %3519 = vperm.xlu0 %8255, %v10628_v30   ;;  %v1634_v39 = vmul.f32 %v10570_v62, %v15036_v63  ;;  %v1245_v30 = vmul.f32 %v10545_v7, %v15040_v13  ;;  %v538_v6 = vadd.f32 %v10531_v0, %v474_v60  ;;  %v539_v57 = vadd.f32 %v10531_v0, %v475_v1  ;;  %v15042_v61 = vld [vmem:[#allocation84_spill] sm:$0xff]  ;;  %v15045_v1 = vld [vmem:[#allocation57_spill] sm:$0xff] }
 0x308   :  { %v10831_v18 = vpop.permute.xlu0 %2703  ;;  %v857_v63 = vmul.f32 %v10536_v55, %v15042_v61  ;;  %v922_v54 = vadd.f32 %v858_v3, %v534_v46  ;;  %v10847_v23 = vadd.f32 %v1635_v37, %v1311_v31  ;;  %v1312_v59 = vadd.f32 %v1248_v12, %v924_v17  ;;  %v15046_v46 = vld [vmem:[#allocation59_spill] sm:$0xff]  ;;  %v15048_v37 = vld [vmem:[#allocation70_spill] sm:$0xff] }
 0x309   :  { %15038 = vst [vmem:[#allocation18_spill] sm:$0xff] %v10831_v18  ;;  %v10841_v5 = vpop.permute.xlu1 %1067  ;;  %v861_v18 = vmul.f32 %v10536_v55, %v15043_v9  ;;  %v1250_v13 = vmul.f32 %v10545_v7, %v15044_v8  ;;  %v926_v60 = vadd.f32 %v862_v56, %v538_v6  ;;  %v1249_v61 = vmul.f32 %v10545_v7, %v15045_v1  ;;  %v15047_v9 = vld [vmem:[#allocation60_spill] sm:$0xff]  ;;  %v15050_v8 = vld [vmem:[#allocation61_spill] sm:$0xff]  ;;  %v15053_v56 = vld [vmem:[#allocation79_spill] sm:$0xff] }
 0x30a   :  { %15041 = vst [vmem:[#allocation32_spill] sm:$0xff] %v10841_v5  ;;  %8088 = vset.pattern.permute.xlu1 %v14749_v32  ;;  %v2022_v3 = vmul.f32 %v10578_v29, %v15046_v46  ;;  %v10860_v31 = vmul.f32 %v10545_v7, %v15047_v9  ;;  %v1636_v12 = vmul.f32 %v10570_v62, %v15048_v37  ;;  %v15054_v46 = vld [vmem:[#allocation81_spill] sm:$0xff] }
 0x30b   :  { %2291 = vperm.xlu1 %8088, %v10344_v2   ;;  %3527 = vperm.xlu0 %8255, %v10645_v53   ;;  %v10868_v2 = vmul.f32 %v10585_v38, %v15050_v8  ;;  %v15052_v53 = vld [vmem:[#allocation62_spill] sm:$0xff]  ;;  %v476_v1 = vmul.f32 %v10511_v11, %v15053_v56  ;;  %v477_v9 = vmul.f32 %v10511_v11, %v15054_v46  ;;  %v15055_v37 = vld [vmem:[#allocation89_spill] sm:$0xff]  ;;  %v15057_v8 = vld [vmem:[#allocation63_spill] sm:$0xff] }
 0x30c   :  { %v10864_v17 = vpop.permute.xlu0 %2715  ;;  %v10872_v6 = vmul.f32 %v10545_v7, %v15052_v53  ;;  %v921_v5 = vadd.f32 %v857_v63, %v533_v14  ;;  %v1310_v32 = vadd.f32 %v1246_v52, %v922_v54  ;;  %v925_v16 = vadd.f32 %v861_v18, %v537_v34  ;;  %v15058_v53 = vld [vmem:[#allocation85_spill] sm:$0xff]  ;;  %v8853_v14 = vld [vmem:[%s14711_s26 + $0x1e0] sm:$0xff]  ;;  %v15060_v18 = vld [vmem:[#allocation74_spill] sm:$0xff] }
 0x30d   :  { %15049 = vst [vmem:[#allocation54_spill] sm:$0xff] %v10864_v17  ;;  %15051 = vst [vmem:[#allocation12_spill] sm:$0xff] %v10868_v2  ;;  %v863_v17 = vmul.f32 %v10536_v55, %v15055_v37  ;;  %v10884_v21 = vmul.f32 %v10585_v38, %v15057_v8  ;;  %v2024_v33 = vmul.f32 %v10578_v29, %v15058_v53  ;;  %v15059_v34 = vld [vmem:[#allocation72_spill] sm:$0xff]  ;;  %v15061_v56 = vld [vmem:[#allocation77_spill] sm:$0xff] }
 0x30e   :  { %v10880_v15 = vpop.permute.xlu1 %1519  ;;  %v1314_v2 = vadd.f32 %v1250_v13, %v926_v60  ;;  %v1700_v54 = vadd.f32 %v1636_v12, %v1312_v59  ;;  %v1637_v52 = vmul.f32 %v10570_v62, %v15059_v34  ;;  %v10896_v63 = vmul.f32 %v10582_v45, %v15060_v18  ;;  %v15064_v37 = vld [vmem:[#allocation83_spill] sm:$0xff]  ;;  %v15065_v12 = vld [vmem:[#allocation94_spill] sm:$0xff] }
 0x30f   :  { %15056 = vst [vmem:[#allocation36_spill] sm:$0xff] %v10880_v15  ;;  %2295 = vperm.xlu1 %8088, %v10172_v58   ;;  %3551 = vperm.xlu0 %8255, %v8853_v14   ;;  %v10900_v46 = vmul.f32 %v10611_v40, %v15061_v56  ;;  %v540_v58 = vadd.f32 %v10531_v0, %v476_v1  ;;  %v15066_v56 = vld [vmem:[#allocation107_spill] sm:$0xff] }
 0x310   :  { %v10902_v13 = vpop.permute.xlu0 %2719  ;;  %v541_v60 = vadd.f32 %v10531_v0, %v477_v9  ;;  %v1251_v59 = vmul.f32 %v10545_v7, %v15064_v37  ;;  %v864_v8 = vmul.f32 %v10536_v55, %v15065_v12  ;;  %v1313_v53 = vadd.f32 %v1249_v61, %v925_v16  ;;  %v15068_v37 = vld [vmem:[#allocation88_spill] sm:$0xff]  ;;  %v15074_v12 = vld [vmem:[#allocation98_spill] sm:$0xff] }
 0x311   :  { %15062 = vst [vmem:[#allocation13_spill] sm:$0xff] %v10900_v46  ;;  %15063 = vst [vmem:[#allocation43_spill] sm:$0xff] %v10902_v13  ;;  %v927_v14 = vadd.f32 %v863_v17, %v539_v57  ;;  %v1309_v34 = vadd.f32 %v1245_v30, %v921_v5  ;;  %v1698_v18 = vadd.f32 %v1634_v39, %v1310_v32  ;;  %v15069_v30 = vld [vmem:[#allocation91_spill] sm:$0xff]  ;;  %v15073_v17 = vld [vmem:[#allocation96_spill] sm:$0xff] }
 0x312   :  { %v10910_v15 = vadd.f32 %v2024_v33, %v1700_v54  ;;  %v479_v46 = vmul.f32 %v10511_v11, %v15066_v56  ;;  %v1633_v1 = vmul.f32 %v10570_v62, %v10200_v47  ;;  %v10922_v16 = vmul.f32 %v10585_v38, %v15068_v37  ;;  %v15070_v33 = vld [vmem:[#allocation105_spill] sm:$0xff]  ;;  %v15072_v47 = vld [vmem:[#allocation90_spill] sm:$0xff] }
 0x313   :  { %8089 = vset.pattern.permute.xlu1 %v14767_v44  ;;  %v10917_v9 = vpop.permute.xlu1 %1831  ;;  %8259 = vset.pattern.permute.xlu0 %v14752_v4  ;;  %v865_v32 = vmul.f32 %v10536_v55, %v15069_v30  ;;  %v478_v39 = vmul.f32 %v10511_v11, %v15070_v33  ;;  %v10934_v5 = vmul.f32 %v10585_v38, %v15072_v47  ;;  %v15075_v30 = vld [vmem:[#allocation120_spill] sm:$0xff]  ;;  %v15077_v47 = vld [vmem:[#allocation93_spill] sm:$0xff] }
 0x314   :  { %15067 = vst [vmem:[#allocation15_spill] sm:$0xff] %v10917_v9  ;;  %2611 = vperm.xlu1 %8089, %v10622_v51   ;;  %v10929_v57 = vpop.permute.xlu0 %2655  ;;  %3167 = vperm.xlu0 %8259, %v10684_v42   ;;  %v928_v61 = vadd.f32 %v864_v8, %v540_v58  ;;  %v1638_v54 = vmul.f32 %v10570_v62, %v15073_v17  ;;  %v15076_v42 = vld [vmem:[#allocation92_spill] sm:$0xff] }
 0x315   :  { %15071 = vst [vmem:[#allocation53_spill] sm:$0xff] %v10929_v57  ;;  %v1639_v56 = vmul.f32 %v10570_v62, %v15074_v12  ;;  %v1315_v37 = vadd.f32 %v1251_v59, %v927_v14  ;;  %v866_v33 = vmul.f32 %v10536_v55, %v15075_v30  ;;  %v10942_v51 = vadd.f32 %v1637_v52, %v1313_v53  ;;  %v15078_v14 = vld [vmem:[#allocation109_spill] sm:$0xff]  ;;  %v8854_v53 = vld [vmem:[%s14711_s26 + $0x1f8] sm:$0xff] }
 0x316   :  { %v10944_v57 = vadd.f32 %v2022_v3, %v1698_v18  ;;  %v10948_v13 = vmul.f32 %v10636_v41, %v15076_v42  ;;  %v867_v58 = vmul.f32 %v10536_v55, %v15077_v47  ;;  %v543_v8 = vadd.f32 %v10531_v0, %v479_v46  ;;  %v15086_v47 = vld [vmem:[#allocation103_spill] sm:$0xff] }
 0x317   :  { %v1697_v17 = vadd.f32 %v1633_v1, %v1309_v34  ;;  %v929_v9 = vadd.f32 %v865_v32, %v541_v60  ;;  %v542_v59 = vadd.f32 %v10531_v0, %v478_v39  ;;  %v1253_v12 = vmul.f32 %v10545_v7, %v15078_v14  ;;  %v15081_v60 = vld [vmem:[#allocation111_spill] sm:$0xff]  ;;  %v10972_v32 = vld [vmem:[%s14711_s26 + $0x110] sm:$0xff]  ;;  %v15083_v39 = vld [vmem:[#allocation100_spill] sm:$0xff] }
 0x318   :  { %8090 = vset.pattern.permute.xlu1 %v14752_v4  ;;  %v10957_v3 = vpop.permute.xlu1 %2283  ;;  %v10959_v52 = vpop.permute.xlu0 %2727  ;;  %3175 = vperm.xlu0 %8259, %v8854_v53   ;;  %v1702_v18 = vadd.f32 %v1638_v54, %v1314_v2  ;;  %v10964_v46 = vadd.f32 %v1639_v56, %v1315_v37  ;;  %v2026_v34 = vmul.f32 %v10578_v29, %v15081_v60  ;;  %v15084_v2 = vld [vmem:[#allocation122_spill] sm:$0xff]  ;;  %v15085_v56 = vld [vmem:[#allocation124_spill] sm:$0xff] }
 0x319   :  { %15079 = vst [vmem:[#allocation55_spill] sm:$0xff] %v10957_v3  ;;  %15080 = vst [vmem:[#allocation86_spill] sm:$0xff] %v10959_v52  ;;  %v1316_v1 = vadd.f32 %v10860_v31, %v928_v61  ;;  %3059 = vperm.xlu1 %8090, %v10972_v32   ;;  %v10977_v30 = vmul.f32 %v10582_v45, %v15083_v39  ;;  %v930_v42 = vadd.f32 %v866_v33, %v542_v59  ;;  %v15087_v39 = vld [vmem:[#allocation131_spill] sm:$0xff]  ;;  %v15088_v59 = vld [vmem:[#allocation133_spill] sm:$0xff] }
 0x31a   :  { %15082 = vst [vmem:[#allocation34_spill] sm:$0xff] %v10972_v32  ;;  %v1640_v54 = vmul.f32 %v10570_v62, %v15084_v2  ;;  %v1641_v37 = vmul.f32 %v10570_v62, %v15085_v56  ;;  %v10985_v31 = vmul.f32 %v10611_v40, %v15086_v47  ;;  %v931_v61 = vadd.f32 %v867_v58, %v543_v8  ;;  %v15089_v52 = vld [vmem:[#allocation135_spill] sm:$0xff]  ;;  %v15092_v58 = vld [vmem:[#allocation114_spill] sm:$0xff] }
 0x31b   :  { %v2085_v14 = vadd.f32 %v10825_v20, %v1697_v17  ;;  %v2023_v53 = vmul.f32 %v10578_v29, %v10339_v27  ;;  %v1317_v60 = vadd.f32 %v1253_v12, %v929_v9  ;;  %v480_v33 = vmul.f32 %v10511_v11, %v15087_v39  ;;  %v15093_v9 = vld [vmem:[#allocation116_spill] sm:$0xff]  ;;  %v15100_v32 = vld [vmem:[#allocation138_spill] sm:$0xff] }
 0x31c   :  { %v481_v2 = vmul.f32 %v10511_v11, %v15088_v59  ;;  %v1255_v56 = vmul.f32 %v10545_v7, %v15089_v52  ;;  %v10996_v3 = vpop.permute.xlu1 %2287  ;;  %v10998_v47 = vpop.permute.xlu0 %2771  ;;  %8563 = vset.pattern.permute.xlu0 %v14771_v43  ;;  %v11001_v20 = vadd.f32 %v2026_v34, %v1702_v18  ;;  %v11005_v27 = vmul.f32 %v10585_v38, %v15092_v58  ;;  %v15094_v17 = vld [vmem:[#allocation136_spill] sm:$0xff]  ;;  %v15095_v52 = vld [vmem:[#allocation118_spill] sm:$0xff] }
 0x31d   :  { %15090 = vst [vmem:[#allocation56_spill] sm:$0xff] %v10996_v3  ;;  %15091 = vst [vmem:[#allocation68_spill] sm:$0xff] %v10998_v47  ;;  %v11009_v8 = vmul.f32 %v10585_v38, %v15093_v9  ;;  %v2028_v12 = vmul.f32 %v10578_v29, %v15094_v17  ;;  %8091 = vset.pattern.permute.xlu1 %v14771_v43  ;;  %v11016_v39 = vmul.f32 %v10636_v41, %v15095_v52  ;;  %v8856_v58 = vld [vmem:[%s14711_s26 + $0x80] sm:$0xff]  ;;  %v15097_v47 = vld [vmem:[#allocation129_spill] sm:$0xff] }
 0x31e   :  { %v1704_v59 = vadd.f32 %v1640_v54, %v1316_v1  ;;  %v11018_v18 = vadd.f32 %v1641_v37, %v1317_v60  ;;  %v11021_v34 = vadd.f32 %v10872_v6, %v930_v42  ;;  %3375 = vperm.xlu1 %8091, %v8856_v58   ;;  %v15096_v9 = vld [vmem:[#allocation127_spill] sm:$0xff]  ;;  %v11032_v3 = vmul.f32 %v10611_v40, %v15097_v47  ;;  %v15098_v60 = vld [vmem:[#allocation137_spill] sm:$0xff] }
 0x31f   :  { %v11028_v17 = vmul.f32 %v10582_v45, %v15096_v9  ;;  %v2473_v1 = vadd.f32 %v10835_v35, %v2085_v14  ;;  %v2087_v54 = vadd.f32 %v2023_v53, %v10847_v23  ;;  %v544_v6 = vadd.f32 %v10531_v0, %v480_v33  ;;  %v15102_v14 = vld [vmem:[#allocation139_spill] sm:$0xff] }
 0x320   :  { %v545_v42 = vadd.f32 %v10531_v0, %v481_v2  ;;  %v1319_v37 = vadd.f32 %v1255_v56, %v931_v61  ;;  %v3185_v52 = vmul.f32 %v10611_v40, %v15098_v60  ;;  %v11040_v58 = vpop.permute.xlu0 %2779  ;;  %v2092_v9 = vadd.f32 %v2028_v12, %v1704_v59  ;;  %v15105_v60 = vld [vmem:[#allocation159_spill] sm:$0xff] }
 0x321   :  { %15099 = vst [vmem:[#allocation38_spill] sm:$0xff] %v11040_v58  ;;  %v3187_v43 = vmul.f32 %v10611_v40, %v15100_v32  ;;  %v868_v47 = vmul.f32 %v10536_v55, %v10062_v25  ;;  %v2025_v23 = vmul.f32 %v10578_v29, %v10350_v22  ;;  %v11048_v35 = vpop.permute.xlu1 %2603  ;;  %v11052_v61 = vmul.f32 %v10585_v38, %v15102_v14  ;;  %v8857_v22 = vld [vmem:[%s14711_s26 + $0x88] sm:$0xff] }
 0x322   :  { %15101 = vst [vmem:[#allocation45_spill] sm:$0xff] %v11048_v35  ;;  %v11056_v53 = vmul.f32 %v10611_v40, %v10038_v48  ;;  %v869_v33 = vmul.f32 %v10536_v55, %v10068_v26  ;;  %v1643_v32 = vmul.f32 %v10570_v62, %v10077_v24  ;;  %3379 = vperm.xlu1 %8091, %v8857_v22   ;;  %v15103_v25 = vld [vmem:[#allocation140_spill] sm:$0xff]  ;;  %v15104_v24 = vld [vmem:[#allocation141_spill] sm:$0xff] }
 0x323   :  { %v11067_v2 = vmul.f32 %v10585_v38, %v15103_v25  ;;  %v2416_v56 = vmul.f32 %v10582_v45, %v10085_v28  ;;  %v2861_v48 = vadd.f32 %v10884_v21, %v2473_v1  ;;  %v2475_v12 = vadd.f32 %v10896_v63, %v2087_v54  ;;  %v15106_v28 = vld [vmem:[#allocation161_spill] sm:$0xff]  ;;  %v15107_v1 = vld [vmem:[#allocation163_spill] sm:$0xff] }
 0x324   :  { %v11075_v26 = vmul.f32 %v10611_v40, %v10045_v36  ;;  %v11079_v59 = vmul.f32 %v10636_v41, %v15104_v24  ;;  %v1256_v14 = vmul.f32 %v10545_v7, %v15105_v60  ;;  %v2027_v22 = vmul.f32 %v10578_v29, %v10356_v19  ;;  %v15108_v24 = vld [vmem:[#allocation165_spill] sm:$0xff] }
 0x325   :  { %v932_v25 = vadd.f32 %v868_v47, %v544_v6  ;;  %v1257_v21 = vmul.f32 %v10545_v7, %v15106_v28  ;;  %v2031_v63 = vmul.f32 %v10578_v29, %v15107_v1  ;;  %v2089_v36 = vadd.f32 %v2025_v23, %v10942_v51  ;;  %v2156_v54 = vpop.permute.xlu0 %2155  ;;  %v15109_v47 = vld [vmem:[#allocation150_spill] sm:$0xff] }
 0x326   :  { %v933_v58 = vadd.f32 %v869_v33, %v545_v42  ;;  %v1707_v35 = vadd.f32 %v1643_v32, %v1319_v37  ;;  %v2804_v55 = vmul.f32 %v10585_v38, %v15108_v24  ;;  %v2408_v60 = vmul.f32 %v10582_v45, %v2156_v54  ;;  %8092 = vset.pattern.permute.xlu1 %v14756_v10  ;;  %v11094_v19 = vpop.permute.xlu1 %3051  ;;  %v11104_v51 = vld [vmem:[%s14711_s26 + $0x158] sm:$0xff]  ;;  %v15111_v37 = vld [vmem:[#allocation152_spill] sm:$0xff] }
 0x327   :  { %v2480_v6 = vadd.f32 %v2416_v56, %v2092_v9  ;;  %v11098_v28 = vmul.f32 %v10611_v40, %v15109_v47  ;;  %v2863_v1 = vadd.f32 %v10934_v5, %v2475_v12  ;;  %15110 = vst [vmem:[#allocation47_spill] sm:$0xff] %v11104_v51  ;;  %359 = vperm.xlu1 %8092, %v11104_v51   ;;  %v15112_v51 = vld [vmem:[#allocation183_spill] sm:$0xff] }
 0x328   :  { %v3249_v42 = vadd.f32 %v3185_v52, %v2861_v48  ;;  %v3191_v23 = vmul.f32 %v10611_v40, %v15111_v37  ;;  %v1320_v33 = vadd.f32 %v1256_v14, %v932_v25  ;;  %v2091_v9 = vadd.f32 %v2027_v22, %v10964_v46  ;;  %v15113_v48 = vld [vmem:[#allocation12_spill] sm:$0xff]  ;;  %v15114_v46 = vld [vmem:[#allocation177_spill] sm:$0xff] }
 0x329   :  { %v2472_v32 = vadd.f32 %v2408_v60, %v10816_v49  ;;  %v1321_v56 = vadd.f32 %v1257_v21, %v933_v58  ;;  %v11111_v54 = vadd.f32 %v2031_v63, %v1707_v35  ;;  %v1642_v5 = vmul.f32 %v10570_v62, %v10206_v50  ;;  %v2164_v24 = vpop.permute.xlu0 %2163  ;;  %v15115_v58 = vld [vmem:[#allocation214_spill] sm:$0xff]  ;;  %v15117_v25 = vld [vmem:[#allocation168_spill] sm:$0xff] }
 0x32a   :  { %v2477_v12 = vadd.f32 %v10977_v30, %v2089_v36  ;;  %v2868_v47 = vadd.f32 %v2804_v55, %v2480_v6  ;;  %v3192_v52 = vmul.f32 %v10611_v40, %v15112_v51  ;;  %v2410_v14 = vmul.f32 %v10582_v45, %v2164_v24  ;;  %v15118_v36 = vld [vmem:[#allocation13_spill] sm:$0xff]  ;;  %v15119_v51 = vld [vmem:[#allocation219_spill] sm:$0xff] }
 0x32b   :  { %v2860_v37 = vadd.f32 %v15113_v48, %v2472_v32  ;;  %v1644_v49 = vmul.f32 %v10570_v62, %v15114_v46  ;;  %v2030_v35 = vmul.f32 %v10578_v29, %v15115_v58  ;;  %v15116_v22 = vmov 1   ;;  %v11125_v50 = vpop.permute.xlu1 %3367  ;;  %v15120_v32 = vld [vmem:[#allocation170_spill] sm:$0xff]  ;;  %v15121_v46 = vld [vmem:[#allocation179_spill] sm:$0xff] }
 0x32c   :  { %8093 = vset.pattern.permute.xlu1 %v15116_v22  ;;  %v3637_v30 = vadd.f32 %v10948_v13, %v3249_v42  ;;  %v3251_v55 = vadd.f32 %v3187_v43, %v2863_v1  ;;  %v11130_v21 = vmul.f32 %v10636_v41, %v15117_v25  ;;  %v2479_v63 = vadd.f32 %v11028_v17, %v2091_v9 }
 0x32d   :  { %v3248_v60 = vadd.f32 %v15118_v36, %v2860_v37  ;;  %v2474_v6 = vadd.f32 %v2410_v14, %v10944_v57  ;;  %691 = vperm.xlu1 %8093, %v15119_v51   ;;  %v3579_v24 = vmul.f32 %v10636_v41, %v15120_v32  ;;  %v1706_v48 = vadd.f32 %v1642_v5, %v11021_v34  ;;  %v2172_v1 = vpop.permute.xlu0 %2171  ;;  %v15122_v37 = vld [vmem:[#allocation11_spill] sm:$0xff]  ;;  %v15129_v32 = vld [vmem:[#allocation200_spill] sm:$0xff] }
 0x32e   :  { %v1645_v43 = vmul.f32 %v10570_v62, %v15121_v46  ;;  %v2865_v13 = vadd.f32 %v11009_v8, %v2477_v12  ;;  %v3256_v42 = vadd.f32 %v3192_v52, %v2868_v47  ;;  %v2412_v9 = vmul.f32 %v10582_v45, %v2172_v1  ;;  %v15124_v52 = vld [vmem:[#allocation181_spill] sm:$0xff] }
 0x32f   :  { %v2862_v17 = vadd.f32 %v10922_v16, %v2474_v6  ;;  %v3636_v57 = vadd.f32 %v15122_v37, %v3248_v60  ;;  %v1708_v14 = vadd.f32 %v1644_v49, %v1320_v33  ;;  %v2094_v58 = vadd.f32 %v2030_v35, %v1706_v48  ;;  %v11145_v25 = vpop.permute.xlu1 %3371  ;;  %v15125_v33 = vld [vmem:[#allocation212_spill] sm:$0xff]  ;;  %v15132_v37 = vld [vmem:[#allocation223_spill] sm:$0xff] }
 0x330   :  { %v3701_v36 = vmax.f32 %v3637_v30, 0.0  ;;  %v3639_v34 = vadd.f32 %v11016_v39, %v3251_v55  ;;  %v2867_v5 = vadd.f32 %v11067_v2, %v2479_v63  ;;  %v2476_v8 = vadd.f32 %v2412_v9, %v10910_v15  ;;  %v15126_v30 = vld [vmem:[#allocation216_spill] sm:$0xff] }
 0x331   :  { %v3250_v51 = vadd.f32 %v10985_v31, %v2862_v17  ;;  %v15123_v12 = vmov 2   ;;  %v3700_v16 = vmax.f32 %v3636_v57, 0.0  ;;  %v1709_v47 = vadd.f32 %v1645_v43, %v1321_v56  ;;  %v2180_v35 = vpop.permute.xlu0 %2179  ;;  %v15127_v2 = vld [vmem:[#allocation24_spill] sm:$0xff]  ;;  %v15128_v56 = vld [vmem:[#allocation198_spill] sm:$0xff]  ;;  %v15130_v43 = vld [vmem:[#allocation19_spill] sm:$0xff] }
 0x332   :  { %8094 = vset.pattern.permute.xlu1 %v15123_v12  ;;  %v2418_v60 = vmul.f32 %v10582_v45, %v15124_v52  ;;  %v2029_v49 = vmul.f32 %v10578_v29, %v15125_v33  ;;  %v3253_v39 = vadd.f32 %v11056_v53, %v2865_v13  ;;  %v11159_v55 = vadd.f32 %v15127_v2, %v3256_v42 }
 0x333   :  { %1143 = vperm.xlu1 %8094, %v15126_v30   ;;  %v2864_v15 = vadd.f32 %v11005_v27, %v2476_v8  ;;  %v2414_v31 = vmul.f32 %v10582_v45, %v2180_v35  ;;  %v3826_v63 = vpack.c.bf16 %v3701_v36, %v3700_v16  ;;  %v2032_v6 = vmul.f32 %v10578_v29, %v15128_v56  ;;  %v15135_v16 = vld [vmem:[#allocation185_spill] sm:$0xff] }
 0x334   :  { %v2806_v48 = vmul.f32 %v10585_v38, %v15129_v32  ;;  %v2482_v46 = vadd.f32 %v2418_v60, %v2094_v58  ;;  %v3638_v1 = vadd.f32 %v15130_v43, %v3250_v51  ;;  %v11170_v13 = vpop.permute.xlu1 %349  ;;  %v3703_v27 = vmax.f32 %v3639_v34, 0.0  ;;  %v11178_v58 = vld [vmem:[%s14711_s26 + $0x148] sm:$0xff]  ;;  %v15133_v34 = vld [vmem:[#allocation51_spill] sm:$0xff] }
 0x335   :  { %v3252_v17 = vadd.f32 %v11032_v3, %v2864_v15  ;;  %v2478_v53 = vadd.f32 %v2414_v31, %v11001_v20  ;;  %4177 = vmatpush1.bf16.msra.mxu0 %v3826_v63  ;;  %15131 = vst [vmem:[#allocation49_spill] sm:$0xff] %v11170_v13  ;;  %v3255_v42 = vadd.f32 %v3191_v23, %v2867_v5  ;;  %v2192_v36 = vpop.permute.xlu0 %2191  ;;  %v15134_v51 = vld [vmem:[#allocation20_spill] sm:$0xff]  ;;  %v15136_v60 = vld [vmem:[#allocation217_spill] sm:$0xff]  ;;  %v15138_v32 = vmov 3  }
 0x336   :  { %v2093_v9 = vadd.f32 %v2029_v49, %v11018_v18  ;;  %v3194_v57 = vmul.f32 %v10611_v40, %v15132_v37  ;;  %4178 = vmatprep.subr.bf16.mxu0 %v14756_v10  ;;  %v3702_v3 = vmax.f32 %v3638_v1, 0.0  ;;  %v3641_v20 = vadd.f32 %v11079_v59, %v3253_v39  ;;  %v15137_v31 = vld [vmem:[#allocation221_spill] sm:$0xff]  ;;  %v15186_v13 = vld [vmem:[#allocation220_spill] sm:$0xff] }
 0x337   :  { %1147 = vperm.xlu1 %8094, %v11178_v58   ;;  %v2805_v23 = vmul.f32 %v10585_v38, %v15133_v34  ;;  %v2866_v18 = vadd.f32 %v11052_v61, %v2478_v53  ;;  %v2417_v5 = vmul.f32 %v10582_v45, %v2192_v36  ;;  %v3640_v8 = vadd.f32 %v15134_v51, %v3252_v17  ;;  %v15140_v17 = vld [vmem:[#allocation202_spill] sm:$0xff]  ;;  %v15141_v53 = vld [vmem:[#allocation271_spill] sm:$0xff] }
 0x338   :  { %v3193_v52 = vmul.f32 %v10611_v40, %v15135_v16  ;;  %v2033_v33 = vmul.f32 %v10578_v29, %v15136_v60  ;;  %v2870_v49 = vadd.f32 %v2806_v48, %v2482_v46  ;;  %v3827_v35 = vpack.c.bf16 %v3703_v27, %v3702_v3  ;;  %v15144_v34 = vld [vmem:[#allocation10_spill] sm:$0xff] }
 0x339   :  { %v3254_v30 = vadd.f32 %v11098_v28, %v2866_v18  ;;  %v2481_v59 = vadd.f32 %v2417_v5, %v2093_v9  ;;  %v3704_v39 = vmax.f32 %v3640_v8, 0.0  ;;  %v3643_v2 = vadd.f32 %v3579_v24, %v3255_v42  ;;  %v2200_v56 = vpop.permute.xlu0 %2199  ;;  %v11196_v43 = vpop.permute.xlu1 %683  ;;  %v15143_v9 = vld [vmem:[#allocation205_spill] sm:$0xff]  ;;  %v15145_v18 = vld [vmem:[#allocation268_spill] sm:$0xff] }
 0x33a   :  { %v2096_v15 = vadd.f32 %v2032_v6, %v1708_v14  ;;  %v2421_v61 = vmul.f32 %v10582_v45, %v15137_v31  ;;  %v3258_v63 = vadd.f32 %v3194_v57, %v2870_v49  ;;  %4179 = vmatpush1.bf16.msra.mxu0 %v3827_v35  ;;  %15139 = vst [vmem:[#allocation52_spill] sm:$0xff] %v11196_v43  ;;  %v3705_v1 = vmax.f32 %v3641_v20, 0.0  ;;  %v15142_v14 = vld [vmem:[#allocation246_spill] sm:$0xff] }
 0x33b   :  { %8095 = vset.pattern.permute.xlu1 %v15138_v32  ;;  %v2807_v48 = vmul.f32 %v10585_v38, %v15140_v17  ;;  %v2869_v46 = vadd.f32 %v2805_v23, %v2481_v59  ;;  %v2419_v28 = vmul.f32 %v10582_v45, %v2200_v56  ;;  %4180 = vmatprep.subr.bf16.mxu0 %v14756_v10  ;;  %v3707_v3 = vmax.f32 %v3643_v2, 0.0  ;;  %v15150_v56 = vld [vmem:[#allocation266_spill] sm:$0xff] }
 0x33c   :  { %1463 = vperm.xlu1 %8095, %v15141_v53   ;;  %v2097_v24 = vadd.f32 %v2033_v33, %v1709_v47  ;;  %v2809_v6 = vmul.f32 %v10585_v38, %v15142_v14  ;;  %v3828_v27 = vpack.c.bf16 %v3705_v1, %v3704_v39  ;;  %v3642_v42 = vadd.f32 %v11130_v21, %v3254_v30  ;;  %v15148_v33 = vld [vmem:[#allocation244_spill] sm:$0xff]  ;;  %v11225_v39 = vld [vmem:[%s14711_s26 + $0x130] sm:$0xff] }
 0x33d   :  { %v3581_v37 = vmul.f32 %v10636_v41, %v15143_v9  ;;  %v3257_v57 = vadd.f32 %v3193_v52, %v2869_v46  ;;  %v2483_v36 = vadd.f32 %v2419_v28, %v11111_v54  ;;  %v3646_v23 = vadd.f32 %v15144_v34, %v3258_v63  ;;  %v2204_v47 = vpop.permute.xlu0 %2203  ;;  %v15149_v30 = vld [vmem:[#allocation248_spill] sm:$0xff] }
 0x33e   :  { %v2485_v20 = vadd.f32 %v2421_v61, %v2097_v24  ;;  %v3197_v5 = vmul.f32 %v10611_v40, %v15145_v18  ;;  %4181 = vmatpush1.bf16.msra.mxu0 %v3828_v27  ;;  %v3706_v51 = vmax.f32 %v3642_v42, 0.0  ;;  %v2420_v16 = vmul.f32 %v10582_v45, %v2204_v47  ;;  %v11214_v60 = vpop.permute.xlu1 %1135  ;;  %v11242_v27 = vld [vmem:[%s14711_s26 + $0xa0] sm:$0xff]  ;;  %v15153_v18 = vld [vmem:[#allocation22_spill] sm:$0xff] }
 0x33f   :  { %v2871_v8 = vadd.f32 %v2807_v48, %v2483_v36  ;;  %v15146_v21 = vmov 4   ;;  %15147 = vst [vmem:[#allocation84_spill] sm:$0xff] %v11214_v60  ;;  %4182 = vmatprep.subr.bf16.mxu0 %v14756_v10  ;;  %v3645_v54 = vadd.f32 %v3581_v37, %v3257_v57  ;;  %v3708_v52 = vmax.f32 %v11159_v55, 0.0  ;;  %v15209_v60 = vld [vmem:[#allocation66_spill] sm:$0xff] }
 0x340   :  { %8096 = vset.pattern.permute.xlu1 %v15146_v21  ;;  %v2808_v49 = vmul.f32 %v10585_v38, %v15148_v33  ;;  %v2873_v35 = vadd.f32 %v2809_v6, %v2485_v20  ;;  %v3583_v59 = vmul.f32 %v10636_v41, %v15149_v30  ;;  %v3829_v2 = vpack.c.bf16 %v3707_v3, %v3706_v51  ;;  %v11273_v51 = vld [vmem:[%s14711_s26 + $0x90] sm:$0xff]  ;;  %v15156_v33 = vld [vmem:[#allocation143_spill] sm:$0xff] }
 0x341   :  { %1911 = vperm.xlu1 %8096, %v11225_v39   ;;  %v3585_v31 = vmul.f32 %v10636_v41, %v11145_v25  ;;  %v3259_v55 = vadd.f32 %v11075_v26, %v2871_v8  ;;  %v2484_v61 = vadd.f32 %v2420_v16, %v2096_v15  ;;  %v3709_v63 = vmax.f32 %v3645_v54, 0.0  ;;  %v15154_v16 = vld [vmem:[#allocation95_spill] sm:$0xff]  ;;  %v15155_v54 = vld [vmem:[#allocation250_spill] sm:$0xff] }
 0x342   :  { %v3196_v1 = vmul.f32 %v10611_v40, %v15150_v56  ;;  %4183 = vmatpush1.bf16.msra.mxu0 %v3829_v2  ;;  %v3261_v17 = vadd.f32 %v3197_v5, %v2873_v35  ;;  %v11233_v46 = vpop.permute.xlu1 %1139  ;;  %v15152_v14 = vmov 5   ;;  %v3710_v6 = vmax.f32 %v3646_v23, 0.0  ;;  %v11261_v23 = vld [vmem:[%s14711_s26 + $0x128] sm:$0xff] }
 0x343   :  { %v2872_v48 = vadd.f32 %v2808_v49, %v2484_v61  ;;  %15151 = vst [vmem:[#allocation87_spill] sm:$0xff] %v11233_v46  ;;  %4184 = vmatprep.subr.bf16.mxu0 %v14756_v10  ;;  %v3830_v28 = vpack.c.bf16 %v3709_v63, %v3708_v52  ;;  %v3647_v24 = vadd.f32 %v3583_v59, %v3259_v55  ;;  %v15157_v30 = vmov 8   ;;  %v15158_v2 = vld [vmem:[#allocation157_spill] sm:$0xff]  ;;  %v15159_v55 = vld [vmem:[#allocation176_spill] sm:$0xff]  ;;  %v15160_v63 = vld [vmem:[#allocation34_spill] sm:$0xff] }
 0x344   :  { %v3584_v26 = vmul.f32 %v10636_v41, %v11125_v50  ;;  %v3649_v25 = vadd.f32 %v3585_v31, %v3261_v17  ;;  %v11251_v50 = vld [vmem:[%s14711_s26 + $0xa8] sm:$0xff]  ;;  %v499_v5 = vmul.f32 %v10511_v11, %v15153_v18  ;;  %v887_v52 = vmul.f32 %v15155_v54, %v15154_v16 }
 0x345   :  { %8097 = vset.pattern.permute.xlu1 %v15152_v14  ;;  %v3260_v15 = vadd.f32 %v3196_v1, %v2872_v48  ;;  %v3711_v42 = vmax.f32 %v3647_v24, 0.0  ;;  %v498_v49 = vmul.f32 %v10511_v11, %v15156_v33  ;;  %v886_v31 = vmul.f32 %v15155_v54, %v15158_v2  ;;  %v15161_v1 = vld [vmem:[#allocation175_spill] sm:$0xff]  ;;  %v15162_v48 = vld [vmem:[#allocation196_spill] sm:$0xff]  ;;  %v2280_v24 = vpop.permute.xlu0 %2279 }
 0x346   :  { %2227 = vperm.xlu1 %8097, %v11242_v27   ;;  %4185 = vmatpush1.bf16.msra.mxu0 %v3830_v28  ;;  %v3713_v36 = vmax.f32 %v3649_v25, 0.0  ;;  %v563_v8 = vadd.f32 %v10531_v0, %v499_v5  ;;  %v1275_v61 = vmul.f32 %v10545_v7, %v15159_v55  ;;  %v1274_v17 = vmul.f32 %v10545_v7, %v15161_v1  ;;  %v15208_v46 = vld [vmem:[#allocation236_spill] sm:$0xff] }
 0x347   :  { %4186 = vmatprep.subr.bf16.mxu0 %v14756_v10  ;;  %v3831_v9 = vpack.c.bf16 %v3711_v42, %v3710_v6  ;;  %v3648_v37 = vadd.f32 %v3584_v26, %v3260_v15  ;;  %v11246_v57 = vpop.permute.xlu1 %1455  ;;  %v562_v56 = vadd.f32 %v10531_v0, %v498_v49  ;;  %v1663_v28 = vmul.f32 %v10570_v62, %v15162_v48  ;;  %v15163_v15 = vld [vmem:[#allocation178_spill] sm:$0xff] }
 0x348   :  { %v951_v59 = vadd.f32 %v887_v52, %v563_v8  ;;  %v1662_v42 = vmul.f32 %v10570_v62, %v15163_v15  ;;  %v2439_v5 = vmul.f32 %v10582_v45, %v2280_v24  ;;  %v15167_v52 = vld [vmem:[#allocation241_spill] sm:$0xff] }
 0x349   :  { %v3712_v3 = vmax.f32 %v3648_v37, 0.0  ;;  %v950_v26 = vadd.f32 %v886_v31, %v562_v56  ;;  %v2438_v33 = vmul.f32 %v10582_v45, %v15167_v52  ;;  %v15169_v31 = vld [vmem:[#allocation257_spill] sm:$0xff] }
 0x34a   :  { %2231 = vperm.xlu1 %8097, %v11251_v50   ;;  %4187 = vmatpush1.bf16.msra.mxu0 %v3831_v9  ;;  %v1339_v25 = vadd.f32 %v1275_v61, %v951_v59  ;;  %v15164_v9 = vld [vmem:[#allocation218_spill] sm:$0xff]  ;;  %v15168_v59 = vld [vmem:[#allocation16_spill] sm:$0xff]  ;;  %v2827_v55 = vmul.f32 %v10585_v38, %v15169_v31  ;;  %v15170_v61 = vld [vmem:[#allocation263_spill] sm:$0xff] }
 0x34b   :  { %4188 = vmatprep.subr.bf16.mxu0 %v14756_v10  ;;  %v3832_v20 = vpack.c.bf16 %v3713_v36, %v3712_v3  ;;  %v2051_v37 = vmul.f32 %v10578_v29, %v15164_v9  ;;  %v15165_v36 = vld [vmem:[#allocation8_spill] sm:$0xff]  ;;  %v1338_v0 = vadd.f32 %v1274_v17, %v950_v26  ;;  %v3214_v17 = vmul.f32 %v10611_v40, %v11094_v19 }
 0x34c   :  { %v11256_v34 = vpop.permute.xlu1 %1903  ;;  %v1727_v3 = vadd.f32 %v1663_v28, %v1339_v25  ;;  %v15171_v28 = vld [vmem:[#allocation142_spill] sm:$0xff] }
 0x34d   :  { %v1726_v8 = vadd.f32 %v1662_v42, %v1338_v0  ;;  %v3215_v24 = vmul.f32 %v10611_v40, %v15171_v28  ;;  %v11323_v42 = vld [vmem:[%s14711_s26 + $0x150] sm:$0xff]  ;;  %v11377_v28 = vld [vmem:[%s14711_s26 + $0x120] sm:$0xff] }
 0x34e   :  { %8098 = vset.pattern.permute.xlu1 %v14767_v44  ;;  %4189 = vmatpush1.bf16.msra.mxu0 %v3832_v20  ;;  %v15166_v20 = vld [vmem:[#allocation215_spill] sm:$0xff]  ;;  %v2115_v16 = vadd.f32 %v2051_v37, %v1727_v3 }
 0x34f   :  { %2683 = vperm.xlu1 %8098, %v11261_v23   ;;  %4190 = vmatprep.subr.bf16.mxu0 %v14756_v10  ;;  %v2050_v18 = vmul.f32 %v10578_v29, %v15166_v20  ;;  %v11331_v3 = vld [vmem:[%s14711_s26 + $0xc0] sm:$0xff] }
 0x350   :  { %v2503_v56 = vadd.f32 %v2439_v5, %v2115_v16  ;;  %v15173_v16 = vld [vmem:[#allocation264_spill] sm:$0xff] }
 0x351   :  { %v11268_v47 = vpop.permute.xlu1 %2219  ;;  %v2114_v2 = vadd.f32 %v2050_v18, %v1726_v8 }
 0x352   :  { %v2891_v25 = vadd.f32 %v2827_v55, %v2503_v56  ;;  %v11360_v55 = vld [vmem:[%s14711_s26 + $0x138] sm:$0xff] }
 0x353   :  { %8099 = vset.pattern.permute.xlu1 %v14752_v4  ;;  %v2502_v1 = vadd.f32 %v2438_v33, %v2114_v2 }
 0x354   :  { %2995 = vperm.xlu1 %8099, %v11273_v51  }
 0x355   :  { %v11281_v35 = vpop.permute.xlu1 %2223 }
 0x358   :  { %8100 = vset.pattern.permute.xlu1 %v15157_v30 }
 0x359   :  { %3447 = vperm.xlu1 %8100, %v15160_v63   ;;  %v2826_v63 = vmul.f32 %v10585_v38, %v15170_v61 }
 0x35a   :  { %v11294_v6 = vpop.permute.xlu1 %2675 }
 0x35b   :  { %v2890_v26 = vadd.f32 %v2826_v63, %v2502_v1  ;;  %v15178_v63 = vld [vmem:[#allocation23_spill] sm:$0xff]  ;;  %v15179_v1 = vld [vmem:[#allocation154_spill] sm:$0xff] }
 0x35c   :  { %v482_v56 = vmul.f32 %v10511_v11, %v15178_v63  ;;  %v15184_v63 = vld [vmem:[#allocation213_spill] sm:$0xff] }
 0x35d   :  { %3451 = vperm.xlu1 %8100, %v15165_v36   ;;  %v3278_v9 = vadd.f32 %v3214_v17, %v2890_v26  ;;  %v3279_v36 = vadd.f32 %v3215_v24, %v2891_v25  ;;  %v483_v17 = vmul.f32 %v10511_v11, %v15179_v1  ;;  %v11383_v24 = vld [vmem:[%s14964_s4] ss:$0 sm:$0xff]  ;;  %v15180_v25 = vld [vmem:[#allocation97_spill] sm:$0xff]  ;;  %v2212_v1 = vpop.permute.xlu0 %2211 }
 0x35e   :  { %v546_v26 = vadd.f32 %v11383_v24, %v482_v56  ;;  %v1646_v56 = vmul.f32 %v10570_v62, %v15184_v63 }
 0x35f   :  { %v11307_v49 = vpop.permute.xlu1 %2987 }
 0x361   :  { %8101 = vset.pattern.permute.xlu1 %v14756_v10 }
 0x362   :  { %279 = vperm.xlu1 %8101, %v15168_v59   ;;  %v11348_v59 = vld [vmem:[%s14711_s26 + $0xb0] sm:$0xff] }
 0x364   :  { %v3440_v48 = vpop.permute.xlu1 %3439 }
 0x365   :  { %v3602_v15 = vmul.f32 %v10636_v41, %v3440_v48 }
 0x366   :  { %8102 = vset.pattern.permute.xlu1 %v15116_v22 }
 0x367   :  { %763 = vperm.xlu1 %8102, %v11323_v42   ;;  %v3666_v19 = vadd.f32 %v3602_v15, %v3278_v9  ;;  %v871_v15 = vmul.f32 %v15155_v54, %v15180_v25  ;;  %v547_v9 = vadd.f32 %v11383_v24, %v483_v17  ;;  %v15185_v25 = vld [vmem:[#allocation180_spill] sm:$0xff] }
 0x368   :  { %v3444_v37 = vpop.permute.xlu1 %3443 }
 0x369   :  { %v3603_v0 = vmul.f32 %v10636_v41, %v3444_v37  ;;  %v3730_v5 = vmax.f32 %v3666_v19, 0.0  ;;  %v15181_v37 = vld [vmem:[#allocation174_spill] sm:$0xff] }
 0x36a   :  { %v870_v19 = vmul.f32 %v15155_v54, %v15181_v37  ;;  %v1647_v37 = vmul.f32 %v10570_v62, %v15185_v25  ;;  %v3198_v25 = vmul.f32 %v10611_v40, %v11307_v49 }
 0x36b   :  { %8103 = vset.pattern.permute.xlu1 %v15123_v12  ;;  %v3667_v20 = vadd.f32 %v3603_v0, %v3279_v36  ;;  %v15182_v0 = vld [vmem:[#allocation192_spill] sm:$0xff] }
 0x36c   :  { %1079 = vperm.xlu1 %8103, %v11331_v3  }
 0x36d   :  { %v11334_v18 = vpop.permute.xlu1 %269  ;;  %v3731_v8 = vmax.f32 %v3667_v20, 0.0  ;;  %v1258_v20 = vmul.f32 %v10545_v7, %v15182_v0  ;;  %v2034_v0 = vmul.f32 %v10578_v29, %v15186_v13  ;;  %v11421_v13 = vld [vmem:[%s14711_s26 + $0x168] sm:$0xff] }
 0x36e   :  { %15172 = vst [vmem:[#allocation58_spill] sm:$0xff] %v11334_v18 }
 0x36f   :  { %v3841_v52 = vpack.c.bf16 %v3731_v8, %v3730_v5  ;;  %v15183_v5 = vld [vmem:[#allocation194_spill] sm:$0xff] }
 0x370   :  { %1083 = vperm.xlu1 %8103, %v15173_v16   ;;  %v1259_v8 = vmul.f32 %v10545_v7, %v15183_v5  ;;  %v934_v16 = vadd.f32 %v870_v19, %v546_v26  ;;  %v2422_v19 = vmul.f32 %v10582_v45, %v2212_v1 }
 0x371   :  { %4676 = vmatpush1.bf16.msra.mxu1 %v3841_v52  ;;  %v935_v52 = vadd.f32 %v871_v15, %v547_v9  ;;  %v15187_v15 = vld [vmem:[#allocation238_spill] sm:$0xff] }
 0x372   :  { %v11338_v41 = vpop.permute.xlu1 %755  ;;  %4677 = vmatprep.subr.bf16.mxu1 %v14756_v10  ;;  %v1322_v18 = vadd.f32 %v1258_v20, %v934_v16  ;;  %v2035_v9 = vmul.f32 %v10578_v29, %v15187_v15  ;;  %v15189_v16 = vld [vmem:[#allocation259_spill] sm:$0xff] }
 0x373   :  { %15174 = vst [vmem:[#allocation57_spill] sm:$0xff] %v11338_v41  ;;  %v1323_v41 = vadd.f32 %v1259_v8, %v935_v52  ;;  %v2810_v52 = vmul.f32 %v10585_v38, %v15189_v16 }
 0x374   :  { %8104 = vset.pattern.permute.xlu1 %v15138_v32  ;;  %v1710_v26 = vadd.f32 %v1646_v56, %v1322_v18  ;;  %v15190_v56 = vld [vmem:[#allocation45_spill] sm:$0xff] }
 0x375   :  { %1535 = vperm.xlu1 %8104, %v11178_v58   ;;  %v1711_v63 = vadd.f32 %v1647_v37, %v1323_v41  ;;  %v2811_v41 = vmul.f32 %v10585_v38, %v15190_v56 }
 0x376   :  { %v2098_v5 = vadd.f32 %v2034_v0, %v1710_v26  ;;  %v15191_v0 = vld [vmem:[#allocation144_spill] sm:$0xff] }
 0x377   :  { %v11343_v33 = vpop.permute.xlu1 %1071  ;;  %v2099_v18 = vadd.f32 %v2035_v9, %v1711_v63  ;;  %v11436_v9 = vld [vmem:[%s14960_s28 + $0x8] ss:$0 sm:$0xff] }
 0x378   :  { %15175 = vst [vmem:[#allocation59_spill] sm:$0xff] %v11343_v33  ;;  %v2486_v1 = vadd.f32 %v2422_v19, %v2098_v5  ;;  %v11442_v19 = vld [vmem:[%s14711_s26 + $0xd0] sm:$0xff] }
 0x379   :  { %8105 = vset.pattern.permute.xlu1 %v15146_v21  ;;  %v15207_v33 = vld [vmem:[#allocation234_spill] sm:$0xff] }
 0x37a   :  { %1847 = vperm.xlu1 %8105, %v11348_v59   ;;  %v2874_v15 = vadd.f32 %v2810_v52, %v2486_v1 }
 0x37b   :  { %v11351_v2 = vpop.permute.xlu1 %1075 }
 0x37c   :  { %15176 = vst [vmem:[#allocation60_spill] sm:$0xff] %v11351_v2  ;;  %v15188_v2 = vld [vmem:[#allocation260_spill] sm:$0xff]  ;;  %v3262_v49 = vadd.f32 %v3198_v25, %v2874_v15 }
 0x37d   :  { %v2423_v20 = vmul.f32 %v10582_v45, %v15188_v2 }
 0x37e   :  { %8106 = vset.pattern.permute.xlu1 %v15152_v14 }
 0x37f   :  { %2299 = vperm.xlu1 %8106, %v11225_v39   ;;  %v2487_v2 = vadd.f32 %v2423_v20, %v2099_v18 }
 0x380   :  { %v11355_v31 = vpop.permute.xlu1 %1527 }
 0x381   :  { %15177 = vst [vmem:[#allocation70_spill] sm:$0xff] %v11355_v31  ;;  %v2875_v26 = vadd.f32 %v2811_v41, %v2487_v2  ;;  %v15193_v2 = vld [vmem:[#allocation47_spill] sm:$0xff] }
 0x383   :  { %2303 = vperm.xlu1 %8106, %v11360_v55  }
 0x385   :  { %v11364_v61 = vpop.permute.xlu1 %1839 }
 0x387   :  { %8107 = vset.pattern.permute.xlu1 %v14767_v44 }
 0x388   :  { %2619 = vperm.xlu1 %8107, %v11251_v50  }
 0x38a   :  { %v11372_v48 = vpop.permute.xlu1 %2291 }
 0x38c   :  { %8108 = vset.pattern.permute.xlu1 %v14752_v4 }
 0x38d   :  { %3067 = vperm.xlu1 %8108, %v11377_v28  }
 0x38e   :  { %v11391_v36 = vpop.permute.xlu1 %2295 }
 0x391   :  { %8109 = vset.pattern.permute.xlu1 %v15157_v30 }
 0x392   :  { %3383 = vperm.xlu1 %8109, %v11273_v51   ;;  %v8871_v51 = vld [vmem:[%s14711_s26 + $0x98] sm:$0xff] }
 0x393   :  { %v11401_v17 = vpop.permute.xlu1 %2611 }
 0x396   :  { %3387 = vperm.xlu1 %8109, %v8871_v51   ;;  %v3199_v51 = vmul.f32 %v10611_v40, %v15191_v0  ;;  %v11458_v0 = vld [vmem:[%s14711_s26 + $0xc8] sm:$0xff] }
 0x398   :  { %v11416_v8 = vpop.permute.xlu1 %3059  ;;  %v3263_v18 = vadd.f32 %v3199_v51, %v2875_v26  ;;  %v11467_v26 = vld [vmem:[%s14711_s26 + $0x140] sm:$0xff] }
 0x39a   :  { %8110 = vset.pattern.permute.xlu1 %v14756_v10 }
 0x39b   :  { %369 = vperm.xlu1 %8110, %v11421_v13  }
 0x39d   :  { %v3376_v37 = vpop.permute.xlu1 %3375 }
 0x39e   :  { %v3586_v63 = vmul.f32 %v11436_v9, %v3376_v37 }
 0x39f   :  { %8111 = vset.pattern.permute.xlu1 %v15116_v22 }
 0x3a0   :  { %699 = vperm.xlu1 %8111, %v11442_v19   ;;  %v3650_v20 = vadd.f32 %v3586_v63, %v3262_v49 }
 0x3a1   :  { %v3380_v5 = vpop.permute.xlu1 %3379 }
 0x3a2   :  { %v3587_v16 = vmul.f32 %v11436_v9, %v3380_v5  ;;  %v3714_v56 = vmax.f32 %v3650_v20, 0.0  ;;  %v15199_v5 = vld [vmem:[#allocation25_spill] sm:$0xff] }
 0x3a3   :  { %v500_v20 = vmul.f32 %v10511_v11, %v15199_v5 }
 0x3a4   :  { %8112 = vset.pattern.permute.xlu1 %v15123_v12  ;;  %v3651_v52 = vadd.f32 %v3587_v16, %v3263_v18 }
 0x3a5   :  { %1151 = vperm.xlu1 %8112, %v11323_v42   ;;  %v564_v16 = vadd.f32 %v11383_v24, %v500_v20  ;;  %v15206_v20 = vld [vmem:[#allocation211_spill] sm:$0xff] }
 0x3a6   :  { %v3715_v41 = vmax.f32 %v3651_v52, 0.0  ;;  %v11448_v1 = vpop.permute.xlu1 %359  ;;  %v15201_v52 = vld [vmem:[#allocation172_spill] sm:$0xff] }
 0x3a7   :  { %15192 = vst [vmem:[#allocation61_spill] sm:$0xff] %v11448_v1  ;;  %v15204_v1 = vld [vmem:[#allocation64_spill] sm:$0xff] }
 0x3a8   :  { %v3833_v37 = vpack.c.bf16 %v3715_v41, %v3714_v56  ;;  %v15202_v56 = vld [vmem:[#allocation189_spill] sm:$0xff]  ;;  %v1276_v5 = vmul.f32 %v10545_v7, %v15204_v1  ;;  %v1665_v1 = vmul.f32 %v10570_v62, %v15208_v46 }
 0x3a9   :  { %1155 = vperm.xlu1 %8112, %v15193_v2   ;;  %v888_v41 = vmul.f32 %v15155_v54, %v15202_v56  ;;  %v1664_v56 = vmul.f32 %v10570_v62, %v15207_v33 }
 0x3aa   :  { %4191 = vmatpush1.bf16.msra.mxu0 %v3833_v37 }
 0x3ab   :  { %4192 = vmatprep.subr.bf16.mxu0 %v14756_v10 }
 0x3ac   :  { %v11452_v25 = vpop.permute.xlu1 %691 }
 0x3ad   :  { %8113 = vset.pattern.permute.xlu1 %v15138_v32  ;;  %15194 = vst [vmem:[#allocation62_spill] sm:$0xff] %v11452_v25  ;;  %v15205_v25 = vld [vmem:[#allocation99_spill] sm:$0xff] }
 0x3ae   :  { %1471 = vperm.xlu1 %8113, %v11458_v0  }
 0x3b2   :  { %8114 = vset.pattern.permute.xlu1 %v15146_v21  ;;  %v11462_v51 = vpop.permute.xlu1 %1143 }
 0x3b3   :  { %15195 = vst [vmem:[#allocation79_spill] sm:$0xff] %v11462_v51  ;;  %1919 = vperm.xlu1 %8114, %v11467_v26  }
 0x3b6   :  { %v11470_v15 = vpop.permute.xlu1 %1147 }
 0x3b7   :  { %15196 = vst [vmem:[#allocation81_spill] sm:$0xff] %v11470_v15  ;;  %8115 = vset.pattern.permute.xlu1 %v15152_v14  ;;  %v889_v15 = vmul.f32 %v15155_v54, %v15205_v25  ;;  %v2052_v25 = vmul.f32 %v10578_v29, %v15209_v60  ;;  %v11524_v60 = vld [vmem:[%s14711_s26 + $0xe8] sm:$0xff] }
 0x3b8   :  { %2235 = vperm.xlu1 %8115, %v11348_v59  }
 0x3bb   :  { %v11474_v63 = vpop.permute.xlu1 %1463 }
 0x3bc   :  { %15197 = vst [vmem:[#allocation89_spill] sm:$0xff] %v11474_v63  ;;  %2239 = vperm.xlu1 %8115, %v15141_v53   ;;  %v501_v53 = vmul.f32 %v10511_v11, %v15201_v52  ;;  %v952_v63 = vadd.f32 %v888_v41, %v564_v16  ;;  %v1277_v52 = vmul.f32 %v10545_v7, %v15206_v20  ;;  %v15211_v20 = vld [vmem:[#allocation55_spill] sm:$0xff] }
 0x3bd   :  { %v2440_v33 = vmul.f32 %v10582_v45, %v15211_v20 }
 0x3be   :  { %v565_v51 = vadd.f32 %v11383_v24, %v501_v53  ;;  %v1340_v31 = vadd.f32 %v1276_v5, %v952_v63  ;;  %v15210_v53 = vld [vmem:[#allocation258_spill] sm:$0xff]  ;;  %v2829_v5 = vmul.f32 %v10585_v38, %v11294_v6 }
 0x3bf   :  { %v2053_v41 = vmul.f32 %v10578_v29, %v15210_v53 }
 0x3c0   :  { %8116 = vset.pattern.permute.xlu1 %v14767_v44  ;;  %v11478_v49 = vpop.permute.xlu1 %1911 }
 0x3c1   :  { %15198 = vst [vmem:[#allocation63_spill] sm:$0xff] %v11478_v49  ;;  %2691 = vperm.xlu1 %8116, %v11360_v55   ;;  %v953_v49 = vadd.f32 %v889_v15, %v565_v51  ;;  %v15212_v51 = vld [vmem:[#allocation56_spill] sm:$0xff] }
 0x3c2   :  { %v2441_v15 = vmul.f32 %v10582_v45, %v15212_v51 }
 0x3c3   :  { %v1341_v16 = vadd.f32 %v1277_v52, %v953_v49 }
 0x3c5   :  { %8117 = vset.pattern.permute.xlu1 %v14752_v4  ;;  %v11484_v18 = vpop.permute.xlu1 %2227 }
 0x3c6   :  { %15200 = vst [vmem:[#allocation85_spill] sm:$0xff] %v11484_v18  ;;  %3003 = vperm.xlu1 %8117, %v11242_v27  }
 0x3c9   :  { %v11492_v37 = vpop.permute.xlu1 %2231 }
 0x3ca   :  { %15203 = vst [vmem:[#allocation72_spill] sm:$0xff] %v11492_v37  ;;  %8118 = vset.pattern.permute.xlu1 %v15157_v30  ;;  %v1729_v37 = vadd.f32 %v1665_v1, %v1341_v16 }
 0x3cb   :  { %3455 = vperm.xlu1 %8118, %v11377_v28   ;;  %v1728_v28 = vadd.f32 %v1664_v56, %v1340_v31  ;;  %v15213_v31 = vld [vmem:[#allocation261_spill] sm:$0xff]  ;;  %v3216_v56 = vmul.f32 %v10611_v40, %v11416_v8 }
 0x3cc   :  { %v2828_v63 = vmul.f32 %v10585_v38, %v15213_v31 }
 0x3cd   :  { %v2116_v18 = vadd.f32 %v2052_v25, %v1728_v28  ;;  %v15214_v25 = vld [vmem:[#allocation145_spill] sm:$0xff] }
 0x3ce   :  { %v11505_v43 = vpop.permute.xlu1 %2683  ;;  %v3217_v16 = vmul.f32 %v10611_v40, %v15214_v25 }
 0x3cf   :  { %3459 = vperm.xlu1 %8118, %v11261_v23   ;;  %v2117_v23 = vadd.f32 %v2053_v41, %v1729_v37  ;;  %v2504_v49 = vadd.f32 %v2440_v33, %v2116_v18  ;;  %v11540_v18 = vld [vmem:[%s14711_s26 + $0x160] sm:$0xff] }
 0x3d1   :  { %v2505_v52 = vadd.f32 %v2441_v15, %v2117_v23  ;;  %v2892_v53 = vadd.f32 %v2828_v63, %v2504_v49  ;;  %v11551_v63 = vld [vmem:[%s14711_s26 + $0xd8] sm:$0xff] }
 0x3d3   :  { %8119 = vset.pattern.permute.xlu1 %v14756_v10  ;;  %v11519_v46 = vpop.permute.xlu1 %2995  ;;  %v2893_v28 = vadd.f32 %v2829_v5, %v2505_v52  ;;  %v3280_v6 = vadd.f32 %v3216_v56, %v2892_v53  ;;  %v15222_v53 = vld [vmem:[#allocation187_spill] sm:$0xff] }
 0x3d4   :  { %289 = vperm.xlu1 %8119, %v11524_v60  }
 0x3d5   :  { %v3281_v20 = vadd.f32 %v3217_v16, %v2893_v28  ;;  %v15221_v16 = vld [vmem:[#allocation27_spill] sm:$0xff] }
 0x3d6   :  { %v484_v28 = vmul.f32 %v10511_v11, %v15221_v16 }
 0x3d8   :  { %8120 = vset.pattern.permute.xlu1 %v15116_v22  ;;  %v3448_v1 = vpop.permute.xlu1 %3447 }
 0x3d9   :  { %v3604_v37 = vmul.f32 %v11436_v9, %v3448_v1  ;;  %771 = vperm.xlu1 %8120, %v11540_v18  }
 0x3db   :  { %v3668_v8 = vadd.f32 %v3604_v37, %v3280_v6  ;;  %v485_v37 = vmul.f32 %v10511_v11, %v15222_v53 }
 0x3dc   :  { %v3452_v41 = vpop.permute.xlu1 %3451 }
 0x3dd   :  { %v3605_v33 = vmul.f32 %v11436_v9, %v3452_v41  ;;  %8121 = vset.pattern.permute.xlu1 %v15123_v12  ;;  %v3732_v15 = vmax.f32 %v3668_v8, 0.0  ;;  %v15223_v41 = vld [vmem:[#allocation210_spill] sm:$0xff] }
 0x3de   :  { %1087 = vperm.xlu1 %8121, %v11442_v19   ;;  %v873_v8 = vmul.f32 %v15155_v54, %v15223_v41 }
 0x3df   :  { %v3669_v51 = vadd.f32 %v3605_v33, %v3281_v20  ;;  %v548_v20 = vadd.f32 %v11383_v24, %v484_v28  ;;  %v549_v33 = vadd.f32 %v11383_v24, %v485_v37  ;;  %v15228_v28 = vld [vmem:[#allocation29_spill] sm:$0xff] }
 0x3e0   :  { %v1648_v37 = vmul.f32 %v10570_v62, %v15228_v28  ;;  %v2425_v28 = vmul.f32 %v10582_v45, %v11281_v35 }
 0x3e1   :  { %v3733_v23 = vmax.f32 %v3669_v51, 0.0  ;;  %v11546_v31 = vpop.permute.xlu1 %279  ;;  %v15224_v51 = vld [vmem:[#allocation209_spill] sm:$0xff]  ;;  %v937_v53 = vadd.f32 %v873_v8, %v549_v33  ;;  %v15231_v8 = vld [vmem:[#allocation222_spill] sm:$0xff] }
 0x3e2   :  { %15215 = vst [vmem:[#allocation74_spill] sm:$0xff] %v11546_v31  ;;  %1091 = vperm.xlu1 %8121, %v11551_v63   ;;  %v15227_v31 = vld [vmem:[#allocation232_spill] sm:$0xff] }
 0x3e3   :  { %v3842_v49 = vpack.c.bf16 %v3733_v23, %v3732_v15  ;;  %v872_v15 = vmul.f32 %v15155_v54, %v15224_v51  ;;  %v15229_v51 = vld [vmem:[#allocation182_spill] sm:$0xff] }
 0x3e5   :  { %4678 = vmatpush1.bf16.msra.mxu1 %v3842_v49  ;;  %v15226_v49 = vld [vmem:[#allocation65_spill] sm:$0xff]  ;;  %v936_v41 = vadd.f32 %v872_v15, %v548_v20  ;;  %v2424_v20 = vmul.f32 %v10582_v45, %v11268_v47 }
 0x3e6   :  { %8122 = vset.pattern.permute.xlu1 %v15138_v32  ;;  %v11555_v5 = vpop.permute.xlu1 %763  ;;  %4679 = vmatprep.subr.bf16.mxu1 %v14756_v10  ;;  %v1261_v16 = vmul.f32 %v10545_v7, %v15226_v49 }
 0x3e7   :  { %15216 = vst [vmem:[#allocation77_spill] sm:$0xff] %v11555_v5  ;;  %1543 = vperm.xlu1 %8122, %v15193_v2   ;;  %v11576_v2 = vld [vmem:[%s14711_s26 + $0xb8] sm:$0xff]  ;;  %v1260_v5 = vmul.f32 %v10545_v7, %v15227_v31  ;;  %v2037_v31 = vmul.f32 %v10578_v29, %v15231_v8 }
 0x3eb   :  { %8123 = vset.pattern.permute.xlu1 %v15146_v21  ;;  %v11560_v52 = vpop.permute.xlu1 %1079 }
 0x3ec   :  { %15217 = vst [vmem:[#allocation83_spill] sm:$0xff] %v11560_v52  ;;  %1855 = vperm.xlu1 %8123, %v11331_v3  }
 0x3ef   :  { %v11563_v56 = vpop.permute.xlu1 %1083 }
 0x3f0   :  { %15218 = vst [vmem:[#allocation94_spill] sm:$0xff] %v11563_v56  ;;  %8124 = vset.pattern.permute.xlu1 %v15152_v14  ;;  %v1649_v56 = vmul.f32 %v10570_v62, %v15229_v51 }
 0x3f1   :  { %2307 = vperm.xlu1 %8124, %v11467_v26  }
 0x3f4   :  { %v11567_v1 = vpop.permute.xlu1 %1535 }
 0x3f5   :  { %15219 = vst [vmem:[#allocation107_spill] sm:$0xff] %v11567_v1  ;;  %2311 = vperm.xlu1 %8124, %v11178_v58   ;;  %v1325_v1 = vadd.f32 %v1261_v16, %v937_v53  ;;  %v3200_v16 = vmul.f32 %v10611_v40, %v11519_v46 }
 0x3f7   :  { %v1713_v33 = vadd.f32 %v1649_v56, %v1325_v1  ;;  %v2813_v1 = vmul.f32 %v10585_v38, %v11401_v17 }
 0x3f9   :  { %8125 = vset.pattern.permute.xlu1 %v14767_v44  ;;  %v11571_v25 = vpop.permute.xlu1 %1847 }
 0x3fa   :  { %15220 = vst [vmem:[#allocation88_spill] sm:$0xff] %v11571_v25  ;;  %2627 = vperm.xlu1 %8125, %v11576_v2   ;;  %v1324_v25 = vadd.f32 %v1260_v5, %v936_v41  ;;  %v15233_v41 = vld [vmem:[#allocation146_spill] sm:$0xff] }
 0x3fe   :  { %8126 = vset.pattern.permute.xlu1 %v14752_v4  ;;  %v11584_v6 = vpop.permute.xlu1 %2299 }
 0x3ff   :  { %3075 = vperm.xlu1 %8126, %v11225_v39  }
 0x402   :  { %v11593_v23 = vpop.permute.xlu1 %2303 }
 0x403   :  { %15225 = vst [vmem:[#allocation91_spill] sm:$0xff] %v11593_v23  ;;  %8127 = vset.pattern.permute.xlu1 %v15157_v30  ;;  %v15230_v23 = vld [vmem:[#allocation15_spill] sm:$0xff] }
 0x404   :  { %3391 = vperm.xlu1 %8127, %v11242_v27   ;;  %v2036_v49 = vmul.f32 %v10578_v29, %v15230_v23  ;;  %v1712_v27 = vadd.f32 %v1648_v37, %v1324_v25  ;;  %v2101_v25 = vadd.f32 %v2037_v31, %v1713_v33  ;;  %v15232_v23 = vld [vmem:[#allocation262_spill] sm:$0xff]  ;;  %v3201_v37 = vmul.f32 %v10611_v40, %v15233_v41  ;;  %v11638_v31 = vld [vmem:[%s14711_s26 + $0xe0] sm:$0xff] }
 0x405   :  { %v2812_v47 = vmul.f32 %v10585_v38, %v15232_v23  ;;  %v15238_v41 = vld [vmem:[#allocation207_spill] sm:$0xff] }
 0x406   :  { %v2100_v15 = vadd.f32 %v2036_v49, %v1712_v27  ;;  %v2489_v35 = vadd.f32 %v2425_v28, %v2101_v25 }
 0x407   :  { %v11603_v52 = vpop.permute.xlu1 %2619 }
 0x408   :  { %3395 = vperm.xlu1 %8127, %v11251_v50   ;;  %v11622_v50 = vld [vmem:[%s14711_s26 + $0x178] sm:$0xff]  ;;  %v2488_v56 = vadd.f32 %v2424_v20, %v2100_v15  ;;  %v2877_v51 = vadd.f32 %v2813_v1, %v2489_v35 }
 0x40a   :  { %v2876_v49 = vadd.f32 %v2812_v47, %v2488_v56  ;;  %v3265_v20 = vadd.f32 %v3201_v37, %v2877_v51  ;;  %v502_v37 = vmul.f32 %v10511_v11, %v15238_v41  ;;  %v15239_v51 = vld [vmem:[#allocation28_spill] sm:$0xff]  ;;  %v15243_v41 = vld [vmem:[#allocation41_spill] sm:$0xff] }
 0x40c   :  { %8128 = vset.pattern.permute.xlu1 %v14756_v10  ;;  %v11617_v5 = vpop.permute.xlu1 %3067  ;;  %v3264_v17 = vadd.f32 %v3200_v16, %v2876_v49  ;;  %v503_v49 = vmul.f32 %v10511_v11, %v15239_v51  ;;  %v15244_v51 = vld [vmem:[#allocation184_spill] sm:$0xff] }
 0x40d   :  { %379 = vperm.xlu1 %8128, %v11622_v50  }
 0x411   :  { %8129 = vset.pattern.permute.xlu1 %v15116_v22  ;;  %v3384_v53 = vpop.permute.xlu1 %3383 }
 0x412   :  { %v3588_v8 = vmul.f32 %v11436_v9, %v3384_v53  ;;  %707 = vperm.xlu1 %8129, %v11638_v31  }
 0x414   :  { %v3652_v46 = vadd.f32 %v3588_v8, %v3264_v17  ;;  %v15240_v8 = vld [vmem:[#allocation101_spill] sm:$0xff] }
 0x415   :  { %v3388_v27 = vpop.permute.xlu1 %3387  ;;  %v890_v17 = vmul.f32 %v15155_v54, %v15240_v8  ;;  %v1666_v8 = vmul.f32 %v10570_v62, %v15244_v51  ;;  %v15248_v51 = vld [vmem:[#allocation147_spill] sm:$0xff] }
 0x416   :  { %v3589_v33 = vmul.f32 %v11436_v9, %v3388_v27  ;;  %8130 = vset.pattern.permute.xlu1 %v15123_v12  ;;  %v3716_v28 = vmax.f32 %v3652_v46, 0.0  ;;  %v566_v27 = vadd.f32 %v11383_v24, %v502_v37  ;;  %v1279_v37 = vmul.f32 %v10545_v7, %v15243_v41 }
 0x417   :  { %1159 = vperm.xlu1 %8130, %v11540_v18  }
 0x418   :  { %v3653_v15 = vadd.f32 %v3589_v33, %v3265_v20  ;;  %v567_v20 = vadd.f32 %v11383_v24, %v503_v49  ;;  %v15241_v33 = vld [vmem:[#allocation67_spill] sm:$0xff] }
 0x41a   :  { %v3717_v25 = vmax.f32 %v3653_v15, 0.0  ;;  %v11644_v23 = vpop.permute.xlu1 %369  ;;  %v1278_v15 = vmul.f32 %v10545_v7, %v15241_v33 }
 0x41b   :  { %15234 = vst [vmem:[#allocation105_spill] sm:$0xff] %v11644_v23  ;;  %1163 = vperm.xlu1 %8130, %v11421_v13   ;;  %v15245_v23 = vld [vmem:[#allocation36_spill] sm:$0xff] }
 0x41c   :  { %v3834_v47 = vpack.c.bf16 %v3717_v25, %v3716_v28  ;;  %v15242_v28 = vld [vmem:[#allocation230_spill] sm:$0xff]  ;;  %v1667_v33 = vmul.f32 %v10570_v62, %v15245_v23  ;;  %v2443_v23 = vmul.f32 %v10582_v45, %v11391_v36 }
 0x41d   :  { %v891_v25 = vmul.f32 %v15155_v54, %v15242_v28 }
 0x41e   :  { %4193 = vmatpush1.bf16.msra.mxu0 %v3834_v47 }
 0x41f   :  { %8131 = vset.pattern.permute.xlu1 %v15138_v32  ;;  %v11648_v56 = vpop.permute.xlu1 %699  ;;  %4194 = vmatprep.subr.bf16.mxu0 %v14756_v10  ;;  %v955_v49 = vadd.f32 %v891_v25, %v567_v20  ;;  %v2442_v20 = vmul.f32 %v10582_v45, %v11372_v48 }
 0x420   :  { %15235 = vst [vmem:[#allocation90_spill] sm:$0xff] %v11648_v56  ;;  %1479 = vperm.xlu1 %8131, %v11551_v63   ;;  %v2054_v56 = vmul.f32 %v10578_v29, %v11256_v34  ;;  %v11710_v34 = vld [vmem:[%s14711_s26 + $0xf8] sm:$0xff] }
 0x421   :  { %v1343_v28 = vadd.f32 %v1279_v37, %v955_v49 }
 0x424   :  { %8132 = vset.pattern.permute.xlu1 %v15146_v21  ;;  %v11653_v1 = vpop.permute.xlu1 %1151 }
 0x425   :  { %15236 = vst [vmem:[#allocation96_spill] sm:$0xff] %v11653_v1  ;;  %1927 = vperm.xlu1 %8132, %v11323_v42  }
 0x428   :  { %v11656_v35 = vpop.permute.xlu1 %1155 }
 0x429   :  { %15237 = vst [vmem:[#allocation98_spill] sm:$0xff] %v11656_v35  ;;  %8133 = vset.pattern.permute.xlu1 %v15152_v14  ;;  %v15246_v35 = vld [vmem:[#allocation224_spill] sm:$0xff] }
 0x42a   :  { %2243 = vperm.xlu1 %8133, %v11331_v3   ;;  %v2055_v41 = vmul.f32 %v10578_v29, %v15246_v35 }
 0x42d   :  { %v11660_v16 = vpop.permute.xlu1 %1471 }
 0x42e   :  { %2247 = vperm.xlu1 %8133, %v11458_v0  }
 0x432   :  { %8134 = vset.pattern.permute.xlu1 %v14767_v44  ;;  %v11664_v53 = vpop.permute.xlu1 %1919 }
 0x433   :  { %2699 = vperm.xlu1 %8134, %v11178_v58   ;;  %v954_v58 = vadd.f32 %v890_v17, %v566_v27 }
 0x435   :  { %v1342_v17 = vadd.f32 %v1278_v15, %v954_v58 }
 0x437   :  { %8135 = vset.pattern.permute.xlu1 %v14752_v4  ;;  %v11675_v46 = vpop.permute.xlu1 %2235  ;;  %v1730_v1 = vadd.f32 %v1666_v8, %v1342_v17  ;;  %v3219_v8 = vmul.f32 %v10611_v40, %v15248_v51  ;;  %v15254_v51 = vld [vmem:[#allocation225_spill] sm:$0xff] }
 0x438   :  { %3011 = vperm.xlu1 %8135, %v11348_v59  }
 0x439   :  { %v2118_v25 = vadd.f32 %v2054_v56, %v1730_v1  ;;  %v2831_v56 = vmul.f32 %v10585_v38, %v11505_v43  ;;  %v3218_v1 = vmul.f32 %v10611_v40, %v11617_v5 }
 0x43b   :  { %v11683_v47 = vpop.permute.xlu1 %2239  ;;  %v2506_v58 = vadd.f32 %v2442_v20, %v2118_v25 }
 0x43c   :  { %8136 = vset.pattern.permute.xlu1 %v15157_v30 }
 0x43d   :  { %3463 = vperm.xlu1 %8136, %v11225_v39   ;;  %v1731_v39 = vadd.f32 %v1667_v33, %v1343_v28  ;;  %v11726_v28 = vld [vmem:[%s14711_s26 + $0x170] sm:$0xff] }
 0x43f   :  { %v2119_v48 = vadd.f32 %v2055_v41, %v1731_v39 }
 0x440   :  { %v11693_v27 = vpop.permute.xlu1 %2691 }
 0x441   :  { %3467 = vperm.xlu1 %8136, %v11360_v55   ;;  %v15247_v55 = vld [vmem:[#allocation265_spill] sm:$0xff]  ;;  %v2507_v36 = vadd.f32 %v2443_v23, %v2119_v48 }
 0x442   :  { %v2830_v35 = vmul.f32 %v10585_v38, %v15247_v55 }
 0x443   :  { %v2895_v49 = vadd.f32 %v2831_v56, %v2507_v36 }
 0x444   :  { %v2894_v33 = vadd.f32 %v2830_v35, %v2506_v58 }
 0x445   :  { %8137 = vset.pattern.permute.xlu1 %v14756_v10  ;;  %v11705_v15 = vpop.permute.xlu1 %3003  ;;  %v3283_v39 = vadd.f32 %v3219_v8, %v2895_v49  ;;  %v486_v8 = vmul.f32 %v10511_v11, %v15254_v51  ;;  %v15255_v49 = vld [vmem:[#allocation227_spill] sm:$0xff] }
 0x446   :  { %299 = vperm.xlu1 %8137, %v11710_v34   ;;  %v3282_v43 = vadd.f32 %v3218_v1, %v2894_v33  ;;  %v487_v33 = vmul.f32 %v10511_v11, %v15255_v49  ;;  %v15260_v49 = vld [vmem:[#allocation186_spill] sm:$0xff] }
 0x44a   :  { %8138 = vset.pattern.permute.xlu1 %v15116_v22  ;;  %v3456_v37 = vpop.permute.xlu1 %3455 }
 0x44b   :  { %v3606_v17 = vmul.f32 %v11436_v9, %v3456_v37  ;;  %779 = vperm.xlu1 %8138, %v11726_v28   ;;  %v11753_v37 = vld [vmem:[%s14711_s26 + $0x158] sm:$0xff] }
 0x44d   :  { %v3670_v5 = vadd.f32 %v3606_v17, %v3282_v43  ;;  %v15256_v17 = vld [vmem:[#allocation254_spill] sm:$0xff] }
 0x44e   :  { %v3460_v41 = vpop.permute.xlu1 %3459  ;;  %v874_v43 = vmul.f32 %v15155_v54, %v15256_v17 }
 0x44f   :  { %v3607_v20 = vmul.f32 %v11436_v9, %v3460_v41  ;;  %8139 = vset.pattern.permute.xlu1 %v15123_v12  ;;  %v3734_v23 = vmax.f32 %v3670_v5, 0.0  ;;  %v550_v41 = vadd.f32 %v11383_v24, %v486_v8  ;;  %v15257_v5 = vld [vmem:[#allocation256_spill] sm:$0xff]  ;;  %v1650_v8 = vmul.f32 %v10570_v62, %v15260_v49 }
 0x450   :  { %1095 = vperm.xlu1 %8139, %v11638_v31   ;;  %v2815_v49 = vmul.f32 %v10585_v38, %v11603_v52 }
 0x451   :  { %v3671_v25 = vadd.f32 %v3607_v20, %v3283_v39  ;;  %v15258_v39 = vld [vmem:[#allocation26_spill] sm:$0xff] }
 0x452   :  { %v1262_v20 = vmul.f32 %v10545_v7, %v15258_v39  ;;  %v1651_v39 = vmul.f32 %v10570_v62, %v11246_v57 }
 0x453   :  { %v3735_v55 = vmax.f32 %v3671_v25, 0.0  ;;  %v11732_v35 = vpop.permute.xlu1 %289 }
 0x454   :  { %15249 = vst [vmem:[#allocation120_spill] sm:$0xff] %v11732_v35  ;;  %1099 = vperm.xlu1 %8139, %v11524_v60  }
 0x455   :  { %v3843_v58 = vpack.c.bf16 %v3735_v55, %v3734_v23  ;;  %v551_v23 = vadd.f32 %v11383_v24, %v487_v33  ;;  %v938_v55 = vadd.f32 %v874_v43, %v550_v41  ;;  %v2038_v33 = vmul.f32 %v10578_v29, %v11364_v61  ;;  %v15261_v43 = vld [vmem:[#allocation226_spill] sm:$0xff]  ;;  %v11803_v61 = vld [vmem:[%s14711_s26 + $0x188] sm:$0xff] }
 0x456   :  { %v2039_v41 = vmul.f32 %v10578_v29, %v15261_v43 }
 0x457   :  { %4680 = vmatpush1.bf16.msra.mxu1 %v3843_v58  ;;  %v15259_v58 = vld [vmem:[#allocation32_spill] sm:$0xff] }
 0x458   :  { %8140 = vset.pattern.permute.xlu1 %v15138_v32  ;;  %v11736_v48 = vpop.permute.xlu1 %771  ;;  %4681 = vmatprep.subr.bf16.mxu1 %v14756_v10  ;;  %v1263_v51 = vmul.f32 %v10545_v7, %v15259_v58 }
 0x459   :  { %15250 = vst [vmem:[#allocation92_spill] sm:$0xff] %v11736_v48  ;;  %1551 = vperm.xlu1 %8140, %v11421_v13  }
 0x45d   :  { %8141 = vset.pattern.permute.xlu1 %v15146_v21  ;;  %v11741_v56 = vpop.permute.xlu1 %1087 }
 0x45e   :  { %15251 = vst [vmem:[#allocation93_spill] sm:$0xff] %v11741_v56  ;;  %1863 = vperm.xlu1 %8141, %v11442_v19   ;;  %v15262_v56 = vld [vmem:[#allocation85_spill] sm:$0xff] }
 0x461   :  { %v11744_v36 = vpop.permute.xlu1 %1091 }
 0x462   :  { %15252 = vst [vmem:[#allocation109_spill] sm:$0xff] %v11744_v36  ;;  %8142 = vset.pattern.permute.xlu1 %v15152_v14  ;;  %v15279_v36 = vld [vmem:[#allocation63_spill] sm:$0xff] }
 0x463   :  { %2315 = vperm.xlu1 %8142, %v11323_v42  }
 0x466   :  { %v11748_v1 = vpop.permute.xlu1 %1543 }
 0x467   :  { %15253 = vst [vmem:[#allocation111_spill] sm:$0xff] %v11748_v1  ;;  %2319 = vperm.xlu1 %8142, %v11753_v37   ;;  %v2056_v1 = vmul.f32 %v10578_v29, %v15279_v36 }
 0x46b   :  { %8143 = vset.pattern.permute.xlu1 %v14767_v44  ;;  %v11757_v13 = vpop.permute.xlu1 %1855 }
 0x46c   :  { %2635 = vperm.xlu1 %8143, %v11458_v0   ;;  %v875_v0 = vmul.f32 %v15155_v54, %v15257_v5  ;;  %v1326_v5 = vadd.f32 %v1262_v20, %v938_v55 }
 0x46e   :  { %v939_v17 = vadd.f32 %v875_v0, %v551_v23  ;;  %v1714_v58 = vadd.f32 %v1650_v8, %v1326_v5  ;;  %v2426_v0 = vmul.f32 %v10582_v45, %v15262_v56  ;;  %v15263_v23 = vld [vmem:[#allocation72_spill] sm:$0xff] }
 0x46f   :  { %v2427_v57 = vmul.f32 %v10582_v45, %v15263_v23 }
 0x470   :  { %8144 = vset.pattern.permute.xlu1 %v14752_v4  ;;  %v11763_v42 = vpop.permute.xlu1 %2307  ;;  %v1327_v48 = vadd.f32 %v1263_v51, %v939_v17  ;;  %v2102_v20 = vadd.f32 %v2038_v33, %v1714_v58  ;;  %v3202_v17 = vmul.f32 %v10611_v40, %v11705_v15 }
 0x471   :  { %3083 = vperm.xlu1 %8144, %v11467_v26  }
 0x472   :  { %v2490_v51 = vadd.f32 %v2426_v0, %v2102_v20 }
 0x474   :  { %v11775_v25 = vpop.permute.xlu1 %2311 }
 0x475   :  { %8145 = vset.pattern.permute.xlu1 %v15157_v30 }
 0x476   :  { %3399 = vperm.xlu1 %8145, %v11348_v59   ;;  %v1715_v59 = vadd.f32 %v1651_v39, %v1327_v48  ;;  %v15265_v39 = vld [vmem:[#allocation148_spill] sm:$0xff] }
 0x477   :  { %v3203_v33 = vmul.f32 %v10611_v40, %v15265_v39 }
 0x478   :  { %v2103_v56 = vadd.f32 %v2039_v41, %v1715_v59  ;;  %v11819_v41 = vld [vmem:[%s14711_s26 + $0xf0] sm:$0xff] }
 0x479   :  { %v11786_v35 = vpop.permute.xlu1 %2627 }
 0x47a   :  { %3403 = vperm.xlu1 %8145, %v11576_v2   ;;  %v15264_v2 = vld [vmem:[#allocation267_spill] sm:$0xff]  ;;  %v2491_v8 = vadd.f32 %v2427_v57, %v2103_v56 }
 0x47b   :  { %v2814_v48 = vmul.f32 %v10585_v38, %v15264_v2 }
 0x47c   :  { %v2879_v43 = vadd.f32 %v2815_v49, %v2491_v8 }
 0x47d   :  { %v2878_v58 = vadd.f32 %v2814_v48, %v2490_v51 }
 0x47e   :  { %8146 = vset.pattern.permute.xlu1 %v14756_v10  ;;  %v11798_v55 = vpop.permute.xlu1 %3075  ;;  %v3267_v0 = vadd.f32 %v3203_v33, %v2879_v43  ;;  %v15271_v33 = vld [vmem:[#allocation30_spill] sm:$0xff] }
 0x47f   :  { %389 = vperm.xlu1 %8146, %v11803_v61   ;;  %v3266_v52 = vadd.f32 %v3202_v17, %v2878_v58  ;;  %v505_v43 = vmul.f32 %v10511_v11, %v15271_v33  ;;  %v15272_v58 = vld [vmem:[#allocation251_spill] sm:$0xff] }
 0x483   :  { %8147 = vset.pattern.permute.xlu1 %v15116_v22  ;;  %v3392_v5 = vpop.permute.xlu1 %3391 }
 0x484   :  { %v3590_v23 = vmul.f32 %v11436_v9, %v3392_v5  ;;  %715 = vperm.xlu1 %8147, %v11819_v41  }
 0x486   :  { %v3654_v15 = vadd.f32 %v3590_v23, %v3266_v52  ;;  %v504_v23 = vmul.f32 %v10511_v11, %v15272_v58 }
 0x487   :  { %v3396_v59 = vpop.permute.xlu1 %3395 }
 0x488   :  { %v3591_v20 = vmul.f32 %v11436_v9, %v3396_v59  ;;  %8148 = vset.pattern.permute.xlu1 %v15123_v12  ;;  %v3718_v2 = vmax.f32 %v3654_v15, 0.0  ;;  %v569_v59 = vadd.f32 %v11383_v24, %v505_v43  ;;  %v15273_v15 = vld [vmem:[#allocation102_spill] sm:$0xff] }
 0x489   :  { %1167 = vperm.xlu1 %8148, %v11726_v28  }
 0x48a   :  { %v3655_v57 = vadd.f32 %v3591_v20, %v3267_v0  ;;  %v893_v0 = vmul.f32 %v15155_v54, %v15273_v15  ;;  %v15274_v20 = vld [vmem:[#allocation14_spill] sm:$0xff]  ;;  %v15277_v15 = vld [vmem:[#allocation188_spill] sm:$0xff] }
 0x48c   :  { %v3719_v48 = vmax.f32 %v3655_v57, 0.0  ;;  %v11825_v51 = vpop.permute.xlu1 %379  ;;  %v892_v57 = vmul.f32 %v15155_v54, %v15274_v20  ;;  %v957_v58 = vadd.f32 %v893_v0, %v569_v59  ;;  %v8888_v59 = vld [vmem:[%s14711_s26 + $0x148] sm:$0xff] }
 0x48d   :  { %15266 = vst [vmem:[#allocation100_spill] sm:$0xff] %v11825_v51  ;;  %1171 = vperm.xlu1 %8148, %v11622_v50  }
 0x48e   :  { %v3835_v56 = vpack.c.bf16 %v3719_v48, %v3718_v2  ;;  %v568_v2 = vadd.f32 %v11383_v24, %v504_v23  ;;  %v15275_v48 = vld [vmem:[#allocation84_spill] sm:$0xff] }
 0x490   :  { %4195 = vmatpush1.bf16.msra.mxu0 %v3835_v56  ;;  %v1280_v56 = vmul.f32 %v10545_v7, %v15275_v48  ;;  %v956_v51 = vadd.f32 %v892_v57, %v568_v2  ;;  %v15281_v2 = vld [vmem:[#allocation91_spill] sm:$0xff] }
 0x491   :  { %8149 = vset.pattern.permute.xlu1 %v15138_v32  ;;  %v11829_v49 = vpop.permute.xlu1 %707  ;;  %4196 = vmatprep.subr.bf16.mxu0 %v14756_v10 }
 0x492   :  { %15267 = vst [vmem:[#allocation122_spill] sm:$0xff] %v11829_v49  ;;  %1487 = vperm.xlu1 %8149, %v11524_v60   ;;  %v15276_v49 = vld [vmem:[#allocation87_spill] sm:$0xff]  ;;  %v1344_v20 = vadd.f32 %v1280_v56, %v956_v51  ;;  %v2444_v51 = vmul.f32 %v10582_v45, %v11584_v6  ;;  %v2445_v56 = vmul.f32 %v10582_v45, %v15281_v2 }
 0x493   :  { %v1281_v43 = vmul.f32 %v10545_v7, %v15276_v49  ;;  %v15280_v49 = vld [vmem:[#allocation228_spill] sm:$0xff]  ;;  %v3220_v6 = vmul.f32 %v10611_v40, %v11798_v55 }
 0x495   :  { %v1345_v48 = vadd.f32 %v1281_v43, %v957_v58  ;;  %v15282_v58 = vld [vmem:[#allocation269_spill] sm:$0xff] }
 0x496   :  { %8150 = vset.pattern.permute.xlu1 %v15146_v21  ;;  %v11834_v8 = vpop.permute.xlu1 %1159  ;;  %v2832_v43 = vmul.f32 %v10585_v38, %v15282_v58 }
 0x497   :  { %15268 = vst [vmem:[#allocation124_spill] sm:$0xff] %v11834_v8  ;;  %1935 = vperm.xlu1 %8150, %v11540_v18   ;;  %v15278_v8 = vld [vmem:[#allocation70_spill] sm:$0xff] }
 0x498   :  { %v1669_v23 = vmul.f32 %v10570_v62, %v15278_v8 }
 0x49a   :  { %v11837_v17 = vpop.permute.xlu1 %1163  ;;  %v1733_v0 = vadd.f32 %v1669_v23, %v1345_v48  ;;  %v15283_v23 = vld [vmem:[#allocation149_spill] sm:$0xff] }
 0x49b   :  { %15269 = vst [vmem:[#allocation103_spill] sm:$0xff] %v11837_v17  ;;  %8151 = vset.pattern.permute.xlu1 %v15152_v14  ;;  %v1668_v17 = vmul.f32 %v10570_v62, %v15277_v15  ;;  %v3221_v48 = vmul.f32 %v10611_v40, %v15283_v23  ;;  %v15290_v23 = vld [vmem:[#allocation31_spill] sm:$0xff] }
 0x49c   :  { %2251 = vperm.xlu1 %8151, %v11442_v19  }
 0x49d   :  { %v1732_v57 = vadd.f32 %v1668_v17, %v1344_v20  ;;  %v2833_v17 = vmul.f32 %v10585_v38, %v11693_v27 }
 0x49f   :  { %v11841_v5 = vpop.permute.xlu1 %1479  ;;  %v2120_v8 = vadd.f32 %v2056_v1, %v1732_v57 }
 0x4a0   :  { %15270 = vst [vmem:[#allocation131_spill] sm:$0xff] %v11841_v5  ;;  %2255 = vperm.xlu1 %8151, %v11551_v63  }
 0x4a1   :  { %v2508_v15 = vadd.f32 %v2444_v51, %v2120_v8 }
 0x4a3   :  { %v2896_v57 = vadd.f32 %v2832_v43, %v2508_v15 }
 0x4a4   :  { %8152 = vset.pattern.permute.xlu1 %v14767_v44  ;;  %v11845_v39 = vpop.permute.xlu1 %1927 }
 0x4a5   :  { %2707 = vperm.xlu1 %8152, %v11753_v37  }
 0x4a9   :  { %8153 = vset.pattern.permute.xlu1 %v14752_v4  ;;  %v11853_v52 = vpop.permute.xlu1 %2243 }
 0x4aa   :  { %3019 = vperm.xlu1 %8153, %v11331_v3  }
 0x4ad   :  { %v11864_v33 = vpop.permute.xlu1 %2247 }
 0x4ae   :  { %8154 = vset.pattern.permute.xlu1 %v15157_v30 }
 0x4af   :  { %3471 = vperm.xlu1 %8154, %v11467_v26   ;;  %v2057_v26 = vmul.f32 %v10578_v29, %v15280_v49 }
 0x4b2   :  { %v11874_v5 = vpop.permute.xlu1 %2699 }
 0x4b3   :  { %3475 = vperm.xlu1 %8154, %v8888_v59   ;;  %v2121_v59 = vadd.f32 %v2057_v26, %v1733_v0  ;;  %v3284_v26 = vadd.f32 %v3220_v6, %v2896_v57 }
 0x4b5   :  { %v2509_v20 = vadd.f32 %v2445_v56, %v2121_v59 }
 0x4b7   :  { %8155 = vset.pattern.permute.xlu1 %v15116_v22  ;;  %v11888_v36 = vpop.permute.xlu1 %3011  ;;  %v2897_v49 = vadd.f32 %v2833_v17, %v2509_v20 }
 0x4b8   :  { %791 = vperm.xlu1 %8155, %v11803_v61  }
 0x4b9   :  { %v3285_v27 = vadd.f32 %v3221_v48, %v2897_v49  ;;  %v488_v48 = vmul.f32 %v10511_v11, %v15290_v23  ;;  %v15291_v49 = vld [vmem:[#allocation270_spill] sm:$0xff] }
 0x4ba   :  { %v489_v57 = vmul.f32 %v10511_v11, %v15291_v49  ;;  %v15295_v49 = vld [vmem:[#allocation60_spill] sm:$0xff] }
 0x4bc   :  { %8156 = vset.pattern.permute.xlu1 %v15123_v12  ;;  %v3464_v1 = vpop.permute.xlu1 %3463 }
 0x4bd   :  { %v3608_v2 = vmul.f32 %v11436_v9, %v3464_v1  ;;  %1103 = vperm.xlu1 %8156, %v11819_v41  }
 0x4bf   :  { %v3672_v51 = vadd.f32 %v3608_v2, %v3284_v26  ;;  %v552_v26 = vadd.f32 %v11383_v24, %v488_v48  ;;  %v11952_v48 = vld [vmem:[%s14711_s26 + $0x190] sm:$0xff] }
 0x4c0   :  { %v3468_v0 = vpop.permute.xlu1 %3467 }
 0x4c1   :  { %v3609_v8 = vmul.f32 %v11436_v9, %v3468_v0  ;;  %8157 = vset.pattern.permute.xlu1 %v15138_v32  ;;  %v3736_v56 = vmax.f32 %v3672_v51, 0.0  ;;  %v15292_v0 = vld [vmem:[#allocation52_spill] sm:$0xff] }
 0x4c2   :  { %1555 = vperm.xlu1 %8157, %v11726_v28   ;;  %v876_v51 = vmul.f32 %v15155_v54, %v15292_v0  ;;  %v15296_v0 = vld [vmem:[#allocation190_spill] sm:$0xff] }
 0x4c3   :  { %v3673_v55 = vadd.f32 %v3609_v8, %v3285_v27  ;;  %v15293_v27 = vld [vmem:[#allocation104_spill] sm:$0xff] }
 0x4c4   :  { %v877_v8 = vmul.f32 %v15155_v54, %v15293_v27  ;;  %v940_v23 = vadd.f32 %v876_v51, %v552_v26  ;;  %v15298_v51 = vld [vmem:[#allocation88_spill] sm:$0xff] }
 0x4c5   :  { %v3737_v58 = vmax.f32 %v3673_v55, 0.0  ;;  %v11905_v59 = vpop.permute.xlu1 %299  ;;  %v553_v55 = vadd.f32 %v11383_v24, %v489_v57  ;;  %v1652_v24 = vmul.f32 %v10570_v62, %v15296_v0 }
 0x4c6   :  { %15284 = vst [vmem:[#allocation133_spill] sm:$0xff] %v11905_v59  ;;  %1559 = vperm.xlu1 %8157, %v11622_v50  }
 0x4c7   :  { %v3844_v43 = vpack.c.bf16 %v3737_v58, %v3736_v56  ;;  %v15294_v56 = vld [vmem:[#allocation59_spill] sm:$0xff]  ;;  %v941_v27 = vadd.f32 %v877_v8, %v553_v55 }
 0x4c8   :  { %v1264_v58 = vmul.f32 %v10545_v7, %v15294_v56  ;;  %v15297_v56 = vld [vmem:[#allocation89_spill] sm:$0xff] }
 0x4c9   :  { %4682 = vmatpush1.bf16.msra.mxu1 %v3844_v43  ;;  %v1653_v59 = vmul.f32 %v10570_v62, %v15297_v56  ;;  %v15300_v56 = vld [vmem:[#allocation272_spill] sm:$0xff] }
 0x4ca   :  { %8158 = vset.pattern.permute.xlu1 %v15146_v21  ;;  %v11909_v15 = vpop.permute.xlu1 %779  ;;  %4683 = vmatprep.subr.bf16.mxu1 %v14756_v10  ;;  %v1328_v57 = vadd.f32 %v1264_v58, %v940_v23  ;;  %v2428_v23 = vmul.f32 %v10582_v45, %v11675_v46  ;;  %v3204_v46 = vmul.f32 %v10611_v40, %v11888_v36 }
 0x4cb   :  { %15285 = vst [vmem:[#allocation135_spill] sm:$0xff] %v11909_v15  ;;  %1875 = vperm.xlu1 %8158, %v11524_v60  }
 0x4cc   :  { %v1716_v55 = vadd.f32 %v1652_v24, %v1328_v57  ;;  %v15301_v57 = vld [vmem:[#allocation151_spill] sm:$0xff] }
 0x4cf   :  { %8159 = vset.pattern.permute.xlu1 %v15152_v14  ;;  %v11914_v17 = vpop.permute.xlu1 %1095 }
 0x4d0   :  { %15286 = vst [vmem:[#allocation114_spill] sm:$0xff] %v11914_v17  ;;  %2323 = vperm.xlu1 %8159, %v11540_v18   ;;  %v15299_v17 = vld [vmem:[#allocation229_spill] sm:$0xff] }
 0x4d1   :  { %v2041_v58 = vmul.f32 %v10578_v29, %v15299_v17 }
 0x4d3   :  { %v11917_v20 = vpop.permute.xlu1 %1099 }
 0x4d4   :  { %15287 = vst [vmem:[#allocation116_spill] sm:$0xff] %v11917_v20  ;;  %8160 = vset.pattern.permute.xlu1 %v14767_v44  ;;  %v11966_v20 = vld [vmem:[%s14711_s26 + $0x198] sm:$0xff] }
 0x4d5   :  { %2639 = vperm.xlu1 %8160, %v11442_v19  }
 0x4d8   :  { %v11921_v6 = vpop.permute.xlu1 %1551 }
 0x4d9   :  { %15288 = vst [vmem:[#allocation136_spill] sm:$0xff] %v11921_v6  ;;  %2643 = vperm.xlu1 %8160, %v11551_v63  }
 0x4dd   :  { %8161 = vset.pattern.permute.xlu1 %v14752_v4  ;;  %v11925_v1 = vpop.permute.xlu1 %1863 }
 0x4de   :  { %15289 = vst [vmem:[#allocation118_spill] sm:$0xff] %v11925_v1  ;;  %3095 = vperm.xlu1 %8161, %v11753_v37  }
 0x4e2   :  { %8162 = vset.pattern.permute.xlu1 %v15157_v30  ;;  %v11933_v2 = vpop.permute.xlu1 %2315 }
 0x4e3   :  { %3407 = vperm.xlu1 %8162, %v11331_v3   ;;  %v1265_v3 = vmul.f32 %v10545_v7, %v15295_v49  ;;  %v2040_v49 = vmul.f32 %v10578_v29, %v15298_v51  ;;  %v2816_v51 = vmul.f32 %v10585_v38, %v15300_v56 }
 0x4e5   :  { %v1329_v26 = vadd.f32 %v1265_v3, %v941_v27  ;;  %v2104_v0 = vadd.f32 %v2040_v49, %v1716_v55  ;;  %v2429_v3 = vmul.f32 %v10582_v45, %v11683_v47 }
 0x4e6   :  { %v11944_v43 = vpop.permute.xlu1 %2319 }
 0x4e7   :  { %8163 = vset.pattern.permute.xlu1 %v14756_v10  ;;  %v1717_v8 = vadd.f32 %v1653_v59, %v1329_v26  ;;  %v2492_v6 = vadd.f32 %v2428_v23, %v2104_v0  ;;  %v2817_v59 = vmul.f32 %v10585_v38, %v11786_v35  ;;  %v3205_v26 = vmul.f32 %v10611_v40, %v15301_v57 }
 0x4e8   :  { %394 = vperm.xlu1 %8163, %v11952_v48  }
 0x4e9   :  { %v2105_v17 = vadd.f32 %v2041_v58, %v1717_v8  ;;  %v2880_v55 = vadd.f32 %v2816_v51, %v2492_v6 }
 0x4eb   :  { %v11959_v15 = vpop.permute.xlu1 %2635  ;;  %v2493_v24 = vadd.f32 %v2429_v3, %v2105_v17  ;;  %v3268_v58 = vadd.f32 %v3204_v46, %v2880_v55  ;;  %v15306_v46 = vld [vmem:[#allocation33_spill] sm:$0xff]  ;;  %v15309_v55 = vld [vmem:[#allocation106_spill] sm:$0xff] }
 0x4ec   :  { %399 = vperm.xlu1 %8163, %v11966_v20  }
 0x4ed   :  { %v2881_v49 = vadd.f32 %v2817_v59, %v2493_v24 }
 0x4ef   :  { %v3269_v35 = vadd.f32 %v3205_v26, %v2881_v49 }
 0x4f0   :  { %8164 = vset.pattern.permute.xlu1 %v15123_v12  ;;  %v11976_v27 = vpop.permute.xlu1 %3083 }
 0x4f1   :  { %1179 = vperm.xlu1 %8164, %v11803_v61  }
 0x4f5   :  { %8165 = vset.pattern.permute.xlu1 %v15138_v32  ;;  %v3400_v47 = vpop.permute.xlu1 %3399 }
 0x4f6   :  { %v3592_v1 = vmul.f32 %v11436_v9, %v3400_v47  ;;  %1491 = vperm.xlu1 %8165, %v11819_v41   ;;  %v506_v47 = vmul.f32 %v10511_v11, %v15306_v46  ;;  %v15312_v46 = vld [vmem:[#allocation191_spill] sm:$0xff] }
 0x4f8   :  { %v3656_v23 = vadd.f32 %v3592_v1, %v3268_v58  ;;  %v895_v58 = vmul.f32 %v15155_v54, %v15309_v55 }
 0x4f9   :  { %v3404_v8 = vpop.permute.xlu1 %3403 }
 0x4fa   :  { %v3593_v0 = vmul.f32 %v11436_v9, %v3404_v8  ;;  %8166 = vset.pattern.permute.xlu1 %v15146_v21  ;;  %v3720_v3 = vmax.f32 %v3656_v23, 0.0  ;;  %v15310_v23 = vld [vmem:[#allocation79_spill] sm:$0xff] }
 0x4fb   :  { %1943 = vperm.xlu1 %8166, %v11726_v28  }
 0x4fc   :  { %v3657_v36 = vadd.f32 %v3593_v0, %v3269_v35  ;;  %v1282_v35 = vmul.f32 %v10545_v7, %v15310_v23 }
 0x4fe   :  { %v3721_v56 = vmax.f32 %v3657_v36, 0.0  ;;  %v11993_v17 = vpop.permute.xlu1 %389 }
 0x4ff   :  { %15302 = vst [vmem:[#allocation127_spill] sm:$0xff] %v11993_v17  ;;  %1947 = vperm.xlu1 %8166, %v11622_v50  }
 0x500   :  { %v3836_v6 = vpack.c.bf16 %v3721_v56, %v3720_v3  ;;  %v15311_v3 = vld [vmem:[#allocation81_spill] sm:$0xff] }
 0x501   :  { %v1283_v56 = vmul.f32 %v10545_v7, %v15311_v3  ;;  %v15314_v3 = vld [vmem:[#allocation231_spill] sm:$0xff] }
 0x502   :  { %4197 = vmatpush1.bf16.msra.mxu0 %v3836_v6  ;;  %v12045_v6 = vld [vmem:[%s14711_s26 + $0x180] sm:$0xff]  ;;  %v2059_v17 = vmul.f32 %v10578_v29, %v15314_v3 }
 0x503   :  { %8167 = vset.pattern.permute.xlu1 %v15152_v14  ;;  %v11997_v51 = vpop.permute.xlu1 %715  ;;  %4198 = vmatprep.subr.bf16.mxu0 %v14756_v10 }
 0x504   :  { %15303 = vst [vmem:[#allocation129_spill] sm:$0xff] %v11997_v51  ;;  %2263 = vperm.xlu1 %8167, %v11524_v60  }
 0x508   :  { %8168 = vset.pattern.permute.xlu1 %v14767_v44  ;;  %v12002_v9 = vpop.permute.xlu1 %1167 }
 0x509   :  { %15304 = vst [vmem:[#allocation137_spill] sm:$0xff] %v12002_v9  ;;  %2711 = vperm.xlu1 %8168, %v11540_v18   ;;  %v15307_v18 = vld [vmem:[#allocation49_spill] sm:$0xff] }
 0x50a   :  { %v507_v57 = vmul.f32 %v10511_v11, %v15307_v18 }
 0x50c   :  { %v12005_v1 = vpop.permute.xlu1 %1171 }
 0x50d   :  { %15305 = vst [vmem:[#allocation138_spill] sm:$0xff] %v12005_v1  ;;  %8169 = vset.pattern.permute.xlu1 %v14752_v4 }
 0x50e   :  { %3027 = vperm.xlu1 %8169, %v11442_v19   ;;  %v12027_v19 = vld [vmem:[%s14964_s4] ss:$0 sm:$0xff] }
 0x50f   :  { %v571_v8 = vadd.f32 %v12027_v19, %v507_v57 }
 0x511   :  { %v12009_v59 = vpop.permute.xlu1 %1487  ;;  %v959_v57 = vadd.f32 %v895_v58, %v571_v8  ;;  %v12061_v58 = vpop.permute.xlu0 %2327 }
 0x512   :  { %3031 = vperm.xlu1 %8169, %v11551_v63   ;;  %v570_v63 = vadd.f32 %v12027_v19, %v506_v47  ;;  %v1670_v47 = vmul.f32 %v10570_v62, %v15312_v46 }
 0x516   :  { %8170 = vset.pattern.permute.xlu1 %v15157_v30  ;;  %v12013_v24 = vpop.permute.xlu1 %1935 }
 0x517   :  { %3483 = vperm.xlu1 %8170, %v11753_v37   ;;  %v15308_v37 = vld [vmem:[#allocation57_spill] sm:$0xff] }
 0x518   :  { %v894_v49 = vmul.f32 %v15155_v54, %v15308_v37  ;;  %v15313_v37 = vld [vmem:[#allocation107_spill] sm:$0xff] }
 0x519   :  { %v1671_v55 = vmul.f32 %v10570_v62, %v15313_v37  ;;  %v12075_v37 = vpop.permute.xlu0 %2259 }
 0x51a   :  { %v958_v36 = vadd.f32 %v894_v49, %v570_v63  ;;  %v1347_v63 = vadd.f32 %v1283_v56, %v959_v57  ;;  %v2058_v49 = vmul.f32 %v10578_v29, %v11664_v53  ;;  %v15315_v53 = vld [vmem:[#allocation17_spill] sm:$0xff]  ;;  %15316 = vst [vmem:[#allocation139_spill] sm:$0xff] %v12075_v37 }
 0x51b   :  { %8171 = vset.pattern.permute.xlu1 %v15116_v22  ;;  %v12021_v26 = vpop.permute.xlu1 %2251  ;;  %v2834_v46 = vmul.f32 %v10585_v38, %v15315_v53 }
 0x51c   :  { %795 = vperm.xlu1 %8171, %v11952_v48   ;;  %v1346_v18 = vadd.f32 %v1282_v35, %v958_v36  ;;  %v1735_v51 = vadd.f32 %v1671_v55, %v1347_v63  ;;  %v2446_v35 = vmul.f32 %v10582_v45, %v11763_v42  ;;  %v2447_v36 = vmul.f32 %v10582_v45, %v11775_v25  ;;  %v15317_v55 = vld [vmem:[#allocation153_spill] sm:$0xff] }
 0x51d   :  { %v2835_v42 = vmul.f32 %v10585_v38, %v11874_v5  ;;  %v3223_v63 = vmul.f32 %v10611_v40, %v15317_v55  ;;  %v12089_v53 = vpop.permute.xlu0 %2335  ;;  %v12104_v55 = vld [vmem:[%s14711_s26 + $0x168] sm:$0xff] }
 0x51e   :  { %v1734_v1 = vadd.f32 %v1670_v47, %v1346_v18  ;;  %v2123_v47 = vadd.f32 %v2059_v17, %v1735_v51  ;;  %v12083_v17 = vld [vmem:[%s14960_s28 + $0x8] ss:$0 sm:$0xff]  ;;  %15318 = vst [vmem:[#allocation140_spill] sm:$0xff] %v12089_v53  ;;  %v15333_v53 = vld [vmem:[#allocation83_spill] sm:$0xff] }
 0x51f   :  { %v12037_v0 = vpop.permute.xlu1 %2255 }
 0x520   :  { %8172 = vset.pattern.permute.xlu1 %v15138_v32  ;;  %v2122_v8 = vadd.f32 %v2058_v49, %v1734_v1  ;;  %v2511_v18 = vadd.f32 %v2447_v36, %v2123_v47  ;;  %v3222_v1 = vmul.f32 %v10611_v40, %v11976_v27 }
 0x521   :  { %1563 = vperm.xlu1 %8172, %v12045_v6  }
 0x522   :  { %v2510_v57 = vadd.f32 %v2446_v35, %v2122_v8  ;;  %v2899_v49 = vadd.f32 %v2835_v42, %v2511_v18 }
 0x524   :  { %v12052_v23 = vpop.permute.xlu1 %2707  ;;  %v2898_v3 = vadd.f32 %v2834_v46, %v2510_v57  ;;  %v3287_v8 = vadd.f32 %v3223_v63, %v2899_v49  ;;  %v8895_v49 = vld [vmem:[%s14711_s26 + $0xd0] sm:$0xff] }
 0x525   :  { %1567 = vperm.xlu1 %8172, %v11803_v61  }
 0x526   :  { %v3286_v27 = vadd.f32 %v3222_v1, %v2898_v3  ;;  %v12095_v1 = vpop.permute.xlu0 %2355 }
 0x527   :  { %15320 = vst [vmem:[#allocation159_spill] sm:$0xff] %v12095_v1 }
 0x529   :  { %8173 = vset.pattern.permute.xlu1 %v15146_v21  ;;  %v12066_v56 = vpop.permute.xlu1 %3019 }
 0x52a   :  { %1883 = vperm.xlu1 %8173, %v11710_v34   ;;  %v12107_v63 = vpop.permute.xlu0 %2363 }
 0x52b   :  { %15322 = vst [vmem:[#allocation163_spill] sm:$0xff] %v12107_v63 }
 0x52e   :  { %8174 = vset.pattern.permute.xlu1 %v15152_v14  ;;  %v3472_v25 = vpop.permute.xlu1 %3471 }
 0x52f   :  { %v3610_v5 = vmul.f32 %v12083_v17, %v3472_v25  ;;  %2331 = vperm.xlu1 %8174, %v11726_v28  }
 0x531   :  { %v3674_v35 = vadd.f32 %v3610_v5, %v3286_v27  ;;  %v12117_v5 = vpop.permute.xlu0 %2371  ;;  %v15326_v27 = vld [vmem:[#allocation58_spill] sm:$0xff] }
 0x532   :  { %v3476_v51 = vpop.permute.xlu1 %3475  ;;  %15325 = vst [vmem:[#allocation152_spill] sm:$0xff] %v12117_v5  ;;  %v15331_v5 = vld [vmem:[#allocation94_spill] sm:$0xff] }
 0x533   :  { %v3611_v36 = vmul.f32 %v12083_v17, %v3476_v51  ;;  %8175 = vset.pattern.permute.xlu1 %v14767_v44  ;;  %v3738_v57 = vmax.f32 %v3674_v35, 0.0  ;;  %v491_v51 = vmul.f32 %v10511_v11, %v15326_v27  ;;  %v12125_v35 = vld [vmem:[%s14711_s26 + $0x1a0] sm:$0xff]  ;;  %v1267_v63 = vmul.f32 %v10545_v7, %v15331_v5 }
 0x534   :  { %2647 = vperm.xlu1 %8175, %v11638_v31  }
 0x535   :  { %v3675_v46 = vadd.f32 %v3611_v36, %v3287_v8  ;;  %v15328_v36 = vld [vmem:[#allocation35_spill] sm:$0xff]  ;;  %v12141_v27 = vpop.permute.xlu0 %2379 }
 0x536   :  { %15330 = vst [vmem:[#allocation12_spill] sm:$0xff] %v12141_v27  ;;  %v1266_v27 = vmul.f32 %v10545_v7, %v15333_v53  ;;  %v2042_v53 = vmul.f32 %v10578_v29, %v11757_v13 }
 0x537   :  { %v3739_v47 = vmax.f32 %v3675_v46, 0.0  ;;  %v12092_v42 = vpop.permute.xlu1 %791  ;;  %v490_v46 = vmul.f32 %v10511_v11, %v15328_v36  ;;  %v15332_v36 = vld [vmem:[#allocation62_spill] sm:$0xff] }
 0x538   :  { %15319 = vst [vmem:[#allocation141_spill] sm:$0xff] %v12092_v42  ;;  %2651 = vperm.xlu1 %8175, %v11524_v60   ;;  %v878_v42 = vmul.f32 %v15155_v54, %v15332_v36 }
 0x539   :  { %v3845_v18 = vpack.c.bf16 %v3739_v47, %v3738_v57  ;;  %v15329_v57 = vld [vmem:[#allocation108_spill] sm:$0xff]  ;;  %v554_v1 = vadd.f32 %v12027_v19, %v490_v46  ;;  %v12156_v5 = vpop.permute.xlu0 %2391  ;;  %v15335_v46 = vld [vmem:[#allocation233_spill] sm:$0xff] }
 0x53a   :  { %v879_v47 = vmul.f32 %v15155_v54, %v15329_v57  ;;  %15334 = vst [vmem:[#allocation177_spill] sm:$0xff] %v12156_v5 }
 0x53b   :  { %4684 = vmatpush1.bf16.msra.mxu1 %v3845_v18  ;;  %v555_v18 = vadd.f32 %v12027_v19, %v491_v51  ;;  %v1655_v51 = vmul.f32 %v10570_v62, %v11660_v16  ;;  %v942_v36 = vadd.f32 %v878_v42, %v554_v1  ;;  %v2819_v42 = vmul.f32 %v10585_v38, %v11959_v15 }
 0x53c   :  { %8176 = vset.pattern.permute.xlu1 %v14752_v4  ;;  %v12098_v25 = vpop.permute.xlu1 %1103  ;;  %4685 = vmatprep.subr.bf16.mxu1 %v14756_v10 }
 0x53d   :  { %15321 = vst [vmem:[#allocation161_spill] sm:$0xff] %v12098_v25  ;;  %3103 = vperm.xlu1 %8176, %v12104_v55   ;;  %v943_v57 = vadd.f32 %v879_v47, %v555_v18  ;;  %v15336_v18 = vld [vmem:[#allocation193_spill] sm:$0xff]  ;;  %v1330_v37 = vadd.f32 %v1266_v27, %v942_v36  ;;  %v12172_v1 = vpop.permute.xlu0 %2395  ;;  %v2430_v27 = vmul.f32 %v10582_v45, %v11853_v52 }
 0x53e   :  { %v1654_v9 = vmul.f32 %v10570_v62, %v15336_v18  ;;  %15337 = vst [vmem:[#allocation214_spill] sm:$0xff] %v12172_v1  ;;  %v15339_v36 = vld [vmem:[#allocation9_spill] sm:$0xff] }
 0x53f   :  { %v2818_v15 = vmul.f32 %v10585_v38, %v15339_v36 }
 0x541   :  { %8177 = vset.pattern.permute.xlu1 %v15157_v30  ;;  %v12110_v60 = vpop.permute.xlu1 %1555 }
 0x542   :  { %15323 = vst [vmem:[#allocation165_spill] sm:$0xff] %v12110_v60  ;;  %3415 = vperm.xlu1 %8177, %v8895_v49   ;;  %v12138_v49 = vld [vmem:[%s14711_s26 + $0x1a8] sm:$0xff]  ;;  %v2043_v60 = vmul.f32 %v10578_v29, %v15335_v46 }
 0x545   :  { %v12115_v3 = vpop.permute.xlu1 %1559 }
 0x546   :  { %15324 = vst [vmem:[#allocation150_spill] sm:$0xff] %v12115_v3  ;;  %8178 = vset.pattern.permute.xlu1 %v14756_v10  ;;  %v1331_v3 = vadd.f32 %v1267_v63, %v943_v57  ;;  %v1718_v57 = vadd.f32 %v1654_v9, %v1330_v37  ;;  %v3412_v9 = vpop.permute.xlu0 %3411 }
 0x547   :  { %404 = vperm.xlu1 %8178, %v12125_v35   ;;  %v3595_v52 = vmul.f32 %v12083_v17, %v3412_v9 }
 0x548   :  { %v1719_v47 = vadd.f32 %v1655_v51, %v1331_v3 }
 0x54a   :  { %v12128_v8 = vpop.permute.xlu1 %1875  ;;  %v2107_v63 = vadd.f32 %v2043_v60, %v1719_v47  ;;  %v2106_v60 = vadd.f32 %v2042_v53, %v1718_v57 }
 0x54b   :  { %15327 = vst [vmem:[#allocation183_spill] sm:$0xff] %v12128_v8  ;;  %409 = vperm.xlu1 %8178, %v12138_v49   ;;  %v2431_v8 = vmul.f32 %v10582_v45, %v11864_v33  ;;  %v15338_v33 = vld [vmem:[#allocation155_spill] sm:$0xff] }
 0x54c   :  { %v3207_v13 = vmul.f32 %v10611_v40, %v15338_v33  ;;  %v2494_v47 = vadd.f32 %v2430_v27, %v2106_v60 }
 0x54d   :  { %v2495_v51 = vadd.f32 %v2431_v8, %v2107_v63  ;;  %v3206_v8 = vmul.f32 %v10611_v40, %v12066_v56 }
 0x54e   :  { %v2882_v63 = vadd.f32 %v2818_v15, %v2494_v47  ;;  %v15342_v15 = vld [vmem:[#allocation37_spill] sm:$0xff] }
 0x54f   :  { %8179 = vset.pattern.permute.xlu1 %v15123_v12  ;;  %v12151_v25 = vpop.permute.xlu1 %2323  ;;  %v2883_v46 = vadd.f32 %v2819_v42, %v2495_v51  ;;  %v508_v47 = vmul.f32 %v10511_v11, %v15342_v15 }
 0x550   :  { %1187 = vperm.xlu1 %8179, %v11966_v20   ;;  %v3270_v42 = vadd.f32 %v3206_v8, %v2882_v63  ;;  %v15344_v63 = vld [vmem:[#allocation96_spill] sm:$0xff] }
 0x551   :  { %v3271_v37 = vadd.f32 %v3207_v13, %v2883_v46 }
 0x553   :  { %v3659_v27 = vadd.f32 %v3595_v52, %v3271_v37  ;;  %v572_v52 = vadd.f32 %v12027_v19, %v508_v47  ;;  %v15343_v37 = vld [vmem:[#allocation77_spill] sm:$0xff] }
 0x554   :  { %8180 = vset.pattern.permute.xlu1 %v15146_v21  ;;  %v12161_v16 = vpop.permute.xlu1 %2639 }
 0x555   :  { %1951 = vperm.xlu1 %8180, %v12045_v6   ;;  %v3723_v13 = vmax.f32 %v3659_v27, 0.0 }
 0x558   :  { %v12174_v3 = vpop.permute.xlu1 %2643 }
 0x559   :  { %8181 = vset.pattern.permute.xlu1 %v15152_v14 }
 0x55a   :  { %2267 = vperm.xlu1 %8181, %v11819_v41  }
 0x55d   :  { %v12184_v18 = vpop.permute.xlu1 %3095 }
 0x55e   :  { %2271 = vperm.xlu1 %8181, %v11710_v34  }
 0x562   :  { %8182 = vset.pattern.permute.xlu1 %v14767_v44  ;;  %v3408_v53 = vpop.permute.xlu1 %3407 }
 0x563   :  { %v3594_v57 = vmul.f32 %v12083_v17, %v3408_v53  ;;  %2723 = vperm.xlu1 %8182, %v11622_v50   ;;  %v8898_v50 = vld [vmem:[%s14711_s26 + $0x160] sm:$0xff]  ;;  %v1284_v53 = vmul.f32 %v10545_v7, %v15344_v63 }
 0x565   :  { %v3658_v51 = vadd.f32 %v3594_v57, %v3270_v42  ;;  %v15345_v42 = vld [vmem:[#allocation61_spill] sm:$0xff] }
 0x566   :  { %v509_v57 = vmul.f32 %v10511_v11, %v15345_v42 }
 0x567   :  { %v3722_v33 = vmax.f32 %v3658_v51, 0.0  ;;  %8183 = vset.pattern.permute.xlu1 %v14752_v4  ;;  %v12194_v60 = vpop.permute.xlu1 %394  ;;  %v15346_v51 = vld [vmem:[#allocation195_spill] sm:$0xff] }
 0x568   :  { %15340 = vst [vmem:[#allocation168_spill] sm:$0xff] %v12194_v60  ;;  %3035 = vperm.xlu1 %8183, %v11638_v31   ;;  %v573_v47 = vadd.f32 %v12027_v19, %v509_v57  ;;  %v15350_v57 = vld [vmem:[#allocation18_spill] sm:$0xff] }
 0x569   :  { %v3837_v56 = vpack.c.bf16 %v3723_v13, %v3722_v33  ;;  %v1672_v33 = vmul.f32 %v10570_v62, %v15346_v51 }
 0x56b   :  { %4199 = vmatpush1.bf16.msra.mxu0 %v3837_v56  ;;  %v12197_v46 = vpop.permute.xlu1 %399 }
 0x56c   :  { %15341 = vst [vmem:[#allocation13_spill] sm:$0xff] %v12197_v46  ;;  %8184 = vset.pattern.permute.xlu1 %v15157_v30  ;;  %4200 = vmatprep.subr.bf16.mxu0 %v14756_v10 }
 0x56d   :  { %3487 = vperm.xlu1 %8184, %v8898_v50   ;;  %v15347_v50 = vld [vmem:[#allocation110_spill] sm:$0xff] }
 0x56e   :  { %v897_v15 = vmul.f32 %v15155_v54, %v15347_v50 }
 0x570   :  { %v12204_v36 = vpop.permute.xlu1 %1179  ;;  %v961_v42 = vadd.f32 %v897_v15, %v573_v47  ;;  %v15352_v15 = vld [vmem:[#allocation156_spill] sm:$0xff] }
 0x571   :  { %3491 = vperm.xlu1 %8184, %v12104_v55   ;;  %v896_v55 = vmul.f32 %v15155_v54, %v15343_v37  ;;  %v15348_v37 = vld [vmem:[#allocation98_spill] sm:$0xff]  ;;  %v3224_v47 = vmul.f32 %v10611_v40, %v15352_v15 }
 0x572   :  { %v1285_v63 = vmul.f32 %v10545_v7, %v15348_v37 }
 0x573   :  { %v960_v27 = vadd.f32 %v896_v55, %v572_v52  ;;  %v2448_v55 = vmul.f32 %v10582_v45, %v11933_v2 }
 0x574   :  { %v1349_v1 = vadd.f32 %v1285_v63, %v961_v42 }
 0x575   :  { %8185 = vset.pattern.permute.xlu1 %v15116_v22  ;;  %v12208_v31 = vpop.permute.xlu1 %1491  ;;  %v1348_v13 = vadd.f32 %v1284_v53, %v960_v27  ;;  %v15349_v27 = vld [vmem:[#allocation111_spill] sm:$0xff] }
 0x576   :  { %807 = vperm.xlu1 %8185, %v12138_v49   ;;  %v1673_v51 = vmul.f32 %v10570_v62, %v15349_v27 }
 0x577   :  { %v1736_v52 = vadd.f32 %v1672_v33, %v1348_v13  ;;  %v15351_v33 = vld [vmem:[#allocation235_spill] sm:$0xff] }
 0x578   :  { %v2061_v13 = vmul.f32 %v10578_v29, %v15351_v33  ;;  %v1737_v2 = vadd.f32 %v1673_v51, %v1349_v1 }
 0x57a   :  { %8186 = vset.pattern.permute.xlu1 %v15138_v32  ;;  %v12214_v9 = vpop.permute.xlu1 %1943  ;;  %v2125_v63 = vadd.f32 %v2061_v13, %v1737_v2  ;;  %v8900_v13 = vld [vmem:[%s14711_s26 + $0xe8] sm:$0xff] }
 0x57b   :  { %1571 = vperm.xlu1 %8186, %v11952_v48  }
 0x57e   :  { %v12220_v8 = vpop.permute.xlu1 %1947 }
 0x57f   :  { %8187 = vset.pattern.permute.xlu1 %v15152_v14 }
 0x580   :  { %2339 = vperm.xlu1 %8187, %v12045_v6   ;;  %v2060_v6 = vmul.f32 %v10578_v29, %v11845_v39  ;;  %v2836_v39 = vmul.f32 %v10585_v38, %v15350_v57 }
 0x582   :  { %v2124_v50 = vadd.f32 %v2060_v6, %v1736_v52  ;;  %v3480_v52 = vpop.permute.xlu0 %3479 }
 0x583   :  { %v12230_v56 = vpop.permute.xlu1 %2263  ;;  %v3612_v51 = vmul.f32 %v12083_v17, %v3480_v52 }
 0x584   :  { %2343 = vperm.xlu1 %8187, %v11803_v61   ;;  %v2512_v37 = vadd.f32 %v2448_v55, %v2124_v50  ;;  %v2837_v55 = vmul.f32 %v10585_v38, %v12052_v23  ;;  %v3225_v50 = vmul.f32 %v10611_v40, %v12184_v18 }
 0x586   :  { %v2900_v6 = vadd.f32 %v2836_v39, %v2512_v37 }
 0x588   :  { %8188 = vset.pattern.permute.xlu1 %v14767_v44  ;;  %v12243_v53 = vpop.permute.xlu1 %2711  ;;  %v3288_v27 = vadd.f32 %v3224_v47, %v2900_v6  ;;  %v12281_v6 = vld [vmem:[%s14711_s26 + $0x1b8] sm:$0xff] }
 0x589   :  { %2659 = vperm.xlu1 %8188, %v11710_v34   ;;  %v2449_v34 = vmul.f32 %v10582_v45, %v11944_v43  ;;  %v8899_v43 = vld [vmem:[%s14711_s26 + $0xe0] sm:$0xff] }
 0x58a   :  { %v3676_v37 = vadd.f32 %v3612_v51, %v3288_v27  ;;  %v15356_v51 = vld [vmem:[#allocation39_spill] sm:$0xff] }
 0x58b   :  { %v2513_v1 = vadd.f32 %v2449_v34, %v2125_v63 }
 0x58c   :  { %v3740_v15 = vmax.f32 %v3676_v37, 0.0  ;;  %v15358_v37 = vld [vmem:[#allocation109_spill] sm:$0xff] }
 0x58d   :  { %8189 = vset.pattern.permute.xlu1 %v14752_v4  ;;  %v12253_v5 = vpop.permute.xlu1 %3027  ;;  %v2901_v57 = vadd.f32 %v2837_v55, %v2513_v1  ;;  %v15355_v55 = vld [vmem:[#allocation74_spill] sm:$0xff] }
 0x58e   :  { %3107 = vperm.xlu1 %8189, %v11726_v28   ;;  %v493_v1 = vmul.f32 %v10511_v11, %v15355_v55 }
 0x58f   :  { %v3289_v23 = vadd.f32 %v3225_v50, %v2901_v57  ;;  %v492_v50 = vmul.f32 %v10511_v11, %v15356_v51  ;;  %v15361_v51 = vld [vmem:[#allocation93_spill] sm:$0xff] }
 0x591   :  { %v12262_v42 = vpop.permute.xlu1 %3031 }
 0x592   :  { %8190 = vset.pattern.permute.xlu1 %v15157_v30 }
 0x593   :  { %3423 = vperm.xlu1 %8190, %v8899_v43   ;;  %v15357_v43 = vld [vmem:[#allocation112_spill] sm:$0xff] }
 0x594   :  { %v881_v57 = vmul.f32 %v15155_v54, %v15357_v43 }
 0x596   :  { %v3484_v39 = vpop.permute.xlu1 %3483 }
 0x597   :  { %v3613_v33 = vmul.f32 %v12083_v17, %v3484_v39  ;;  %3427 = vperm.xlu1 %8190, %v8900_v13   ;;  %v557_v39 = vadd.f32 %v12027_v19, %v493_v1  ;;  %v556_v13 = vadd.f32 %v12027_v19, %v492_v50  ;;  %v1268_v1 = vmul.f32 %v10545_v7, %v15361_v51 }
 0x599   :  { %v3677_v2 = vadd.f32 %v3613_v33, %v3289_v23  ;;  %v1269_v23 = vmul.f32 %v10545_v7, %v15358_v37 }
 0x59b   :  { %v3741_v47 = vmax.f32 %v3677_v2, 0.0  ;;  %8192 = vset.pattern.permute.xlu1 %v14756_v10  ;;  %v12276_v18 = vpop.permute.xlu1 %795  ;;  %v15359_v2 = vld [vmem:[#allocation90_spill] sm:$0xff] }
 0x59c   :  { %15353 = vst [vmem:[#allocation219_spill] sm:$0xff] %v12276_v18  ;;  %419 = vperm.xlu1 %8192, %v12281_v6   ;;  %v15362_v18 = vld [vmem:[#allocation237_spill] sm:$0xff] }
 0x59d   :  { %v3846_v34 = vpack.c.bf16 %v3741_v47, %v3740_v15  ;;  %v880_v15 = vmul.f32 %v15155_v54, %v15359_v2  ;;  %v945_v47 = vadd.f32 %v881_v57, %v557_v39  ;;  %v2045_v46 = vmul.f32 %v10578_v29, %v15362_v18  ;;  %v15363_v2 = vld [vmem:[#allocation197_spill] sm:$0xff] }
 0x59e   :  { %v1656_v57 = vmul.f32 %v10570_v62, %v15363_v2  ;;  %v2821_v18 = vmul.f32 %v10585_v38, %v12174_v3 }
 0x59f   :  { %4686 = vmatpush1.bf16.msra.mxu1 %v3846_v34  ;;  %v15360_v34 = vld [vmem:[#allocation131_spill] sm:$0xff]  ;;  %v1333_v43 = vadd.f32 %v1269_v23, %v945_v47  ;;  %v944_v60 = vadd.f32 %v880_v15, %v556_v13  ;;  %v15364_v23 = vld [vmem:[#allocation118_spill] sm:$0xff] }
 0x5a0   :  { %8193 = vset.pattern.permute.xlu1 %v15123_v12  ;;  %v12285_v52 = vpop.permute.xlu1 %1563  ;;  %4687 = vmatprep.subr.bf16.mxu1 %v14756_v10  ;;  %v1657_v55 = vmul.f32 %v10570_v62, %v15360_v34  ;;  %v2433_v34 = vmul.f32 %v10582_v45, %v12037_v0  ;;  %v2044_v47 = vmul.f32 %v10578_v29, %v15364_v23 }
 0x5a1   :  { %1191 = vperm.xlu1 %8193, %v12125_v35   ;;  %v1332_v39 = vadd.f32 %v1268_v1, %v944_v60  ;;  %v2432_v60 = vmul.f32 %v10582_v45, %v12021_v26  ;;  %v3209_v0 = vmul.f32 %v10611_v40, %v12262_v42  ;;  %v3208_v26 = vmul.f32 %v10611_v40, %v12253_v5 }
 0x5a2   :  { %v1721_v50 = vadd.f32 %v1657_v55, %v1333_v43  ;;  %v3420_v55 = vpop.permute.xlu0 %3419 }
 0x5a3   :  { %v1720_v13 = vadd.f32 %v1656_v57, %v1332_v39  ;;  %v3597_v42 = vmul.f32 %v12083_v17, %v3420_v55  ;;  %v15368_v55 = vld [vmem:[#allocation40_spill] sm:$0xff] }
 0x5a4   :  { %v12289_v63 = vpop.permute.xlu1 %1567 }
 0x5a5   :  { %15354 = vst [vmem:[#allocation170_spill] sm:$0xff] %v12289_v63  ;;  %8194 = vset.pattern.permute.xlu1 %v15146_v21  ;;  %v2109_v63 = vadd.f32 %v2045_v46, %v1721_v50  ;;  %v2108_v1 = vadd.f32 %v2044_v47, %v1720_v13  ;;  %v2820_v46 = vmul.f32 %v10585_v38, %v12161_v16 }
 0x5a6   :  { %1959 = vperm.xlu1 %8194, %v11952_v48  }
 0x5a7   :  { %v2497_v15 = vadd.f32 %v2433_v34, %v2109_v63  ;;  %v2496_v3 = vadd.f32 %v2432_v60, %v2108_v1  ;;  %v510_v1 = vmul.f32 %v10511_v11, %v15368_v55  ;;  %v12393_v55 = vld [vmem:[%s14711_s26 + $0x1c0] sm:$0xff] }
 0x5a9   :  { %v12295_v27 = vpop.permute.xlu1 %1883  ;;  %v2885_v43 = vadd.f32 %v2821_v18, %v2497_v15  ;;  %v2884_v2 = vadd.f32 %v2820_v46, %v2496_v3  ;;  %v15369_v46 = vld [vmem:[#allocation105_spill] sm:$0xff]  ;;  %v574_v3 = vadd.f32 %v12027_v19, %v510_v1  ;;  %v15375_v1 = vld [vmem:[#allocation199_spill] sm:$0xff] }
 0x5aa   :  { %1963 = vperm.xlu1 %8194, %v11966_v20  }
 0x5ab   :  { %v3273_v63 = vadd.f32 %v3209_v0, %v2885_v43  ;;  %v3272_v16 = vadd.f32 %v3208_v26, %v2884_v2  ;;  %v511_v43 = vmul.f32 %v10511_v11, %v15369_v46  ;;  %v15370_v26 = vld [vmem:[#allocation113_spill] sm:$0xff]  ;;  %v1674_v46 = vmul.f32 %v10570_v62, %v15375_v1 }
 0x5ad   :  { %v3661_v39 = vadd.f32 %v3597_v42, %v3273_v63  ;;  %v899_v63 = vmul.f32 %v15155_v54, %v15370_v26  ;;  %v575_v42 = vadd.f32 %v12027_v19, %v511_v43 }
 0x5ae   :  { %8195 = vset.pattern.permute.xlu1 %v14767_v44  ;;  %v12306_v33 = vpop.permute.xlu1 %2331 }
 0x5af   :  { %2731 = vperm.xlu1 %8195, %v11803_v61   ;;  %v3725_v47 = vmax.f32 %v3661_v39, 0.0  ;;  %v15373_v39 = vld [vmem:[#allocation103_spill] sm:$0xff] }
 0x5b3   :  { %8196 = vset.pattern.permute.xlu1 %v14752_v4  ;;  %v12317_v37 = vpop.permute.xlu1 %2647 }
 0x5b4   :  { %3043 = vperm.xlu1 %8196, %v11819_v41  }
 0x5b7   :  { %v12326_v51 = vpop.permute.xlu1 %2651 }
 0x5b8   :  { %8197 = vset.pattern.permute.xlu1 %v15157_v30 }
 0x5b9   :  { %3495 = vperm.xlu1 %8197, %v11726_v28   ;;  %v8902_v28 = vld [vmem:[%s14711_s26 + $0x178] sm:$0xff] }
 0x5bc   :  { %v12340_v50 = vpop.permute.xlu1 %3103 }
 0x5bd   :  { %3499 = vperm.xlu1 %8197, %v8902_v28  }
 0x5c1   :  { %8198 = vset.pattern.permute.xlu1 %v15116_v22  ;;  %v3416_v57 = vpop.permute.xlu1 %3415 }
 0x5c2   :  { %v3596_v34 = vmul.f32 %v12083_v17, %v3416_v57  ;;  %815 = vperm.xlu1 %8198, %v12281_v6   ;;  %v15372_v57 = vld [vmem:[#allocation124_spill] sm:$0xff] }
 0x5c4   :  { %v3660_v23 = vadd.f32 %v3596_v34, %v3272_v16  ;;  %v1286_v16 = vmul.f32 %v10545_v7, %v15372_v57  ;;  %v1287_v34 = vmul.f32 %v10545_v7, %v15373_v39  ;;  %v15376_v57 = vld [vmem:[#allocation239_spill] sm:$0xff] }
 0x5c6   :  { %v3724_v18 = vmax.f32 %v3660_v23, 0.0  ;;  %8199 = vset.pattern.permute.xlu1 %v15138_v32  ;;  %v12352_v13 = vpop.permute.xlu1 %404 }
 0x5c7   :  { %15365 = vst [vmem:[#allocation179_spill] sm:$0xff] %v12352_v13  ;;  %1579 = vperm.xlu1 %8199, %v12125_v35  }
 0x5c8   :  { %v3838_v5 = vpack.c.bf16 %v3725_v47, %v3724_v18  ;;  %v963_v47 = vadd.f32 %v899_v63, %v575_v42  ;;  %v15374_v18 = vld [vmem:[#allocation136_spill] sm:$0xff]  ;;  %v2062_v42 = vmul.f32 %v10578_v29, %v12013_v24  ;;  %v2451_v24 = vmul.f32 %v10582_v45, %v12061_v58 }
 0x5ca   :  { %4201 = vmatpush1.bf16.msra.mxu0 %v3838_v5  ;;  %v12355_v60 = vpop.permute.xlu1 %409  ;;  %v1675_v5 = vmul.f32 %v10570_v62, %v15374_v18  ;;  %v1351_v26 = vadd.f32 %v1287_v34, %v963_v47  ;;  %v2450_v34 = vmul.f32 %v10582_v45, %v12151_v25  ;;  %v2838_v18 = vmul.f32 %v10585_v38, %v12243_v53 }
 0x5cb   :  { %15366 = vst [vmem:[#allocation11_spill] sm:$0xff] %v12355_v60  ;;  %8200 = vset.pattern.permute.xlu1 %v15152_v14  ;;  %4202 = vmatprep.subr.bf16.mxu0 %v14756_v10  ;;  %v3227_v53 = vmul.f32 %v10611_v40, %v12340_v50  ;;  %v15391_v60 = vld [vmem:[#allocation139_spill] sm:$0xff] }
 0x5cc   :  { %2347 = vperm.xlu1 %8200, %v11952_v48   ;;  %v1739_v63 = vadd.f32 %v1675_v5, %v1351_v26  ;;  %v2434_v13 = vmul.f32 %v10582_v45, %v15391_v60 }
 0x5cf   :  { %v12360_v15 = vpop.permute.xlu1 %1187 }
 0x5d0   :  { %15367 = vst [vmem:[#allocation181_spill] sm:$0xff] %v12360_v15  ;;  %2351 = vperm.xlu1 %8200, %v11966_v20  }
 0x5d4   :  { %8201 = vset.pattern.permute.xlu1 %v14752_v4  ;;  %v12364_v0 = vpop.permute.xlu1 %1951 }
 0x5d5   :  { %3119 = vperm.xlu1 %8201, %v11803_v61   ;;  %v15371_v61 = vld [vmem:[#allocation92_spill] sm:$0xff] }
 0x5d6   :  { %v898_v2 = vmul.f32 %v15155_v54, %v15371_v61 }
 0x5d9   :  { %8202 = vset.pattern.permute.xlu1 %v15157_v30  ;;  %v12372_v28 = vpop.permute.xlu1 %2267 }
 0x5da   :  { %3431 = vperm.xlu1 %8202, %v11819_v41   ;;  %v962_v41 = vadd.f32 %v898_v2, %v574_v3  ;;  %v2063_v3 = vmul.f32 %v10578_v29, %v15376_v57  ;;  %v12407_v2 = vld [vmem:[%s14711_s26 + $0x1c8] sm:$0xff] }
 0x5dc   :  { %v1350_v43 = vadd.f32 %v1286_v16, %v962_v41  ;;  %v8566_v16 = vld [vmem:[%s15377_s1 + $0x4] ss:$8 sps:$4 sm:$0xff]   ;;  %v2127_v41 = vadd.f32 %v2063_v3, %v1739_v63 }
 0x5dd   :  { %v12385_v23 = vpop.permute.xlu1 %2271  ;;  %4206 = vmatprep.mubr.bf16.mxu0 %v8566_v16  ;;  %4707 = vmatprep.mubr.bf16.mxu1 %v8566_v16 }
 0x5de   :  { %8203 = vset.pattern.permute.xlu1 %v14756_v10  ;;  %v1738_v39 = vadd.f32 %v1674_v46, %v1350_v43  ;;  %v15378_v46 = vld [vmem:[#allocation158_spill] sm:$0xff]  ;;  %v2515_v58 = vadd.f32 %v2451_v24, %v2127_v41 }
 0x5df   :  { %424 = vperm.xlu1 %8203, %v12393_v55   ;;  %v3226_v25 = vmul.f32 %v10611_v40, %v15378_v46  ;;  %v15379_v43 = vld [vmem:[#allocation54_spill] sm:$0xff] }
 0x5e0   :  { %v2126_v47 = vadd.f32 %v2062_v42, %v1738_v39  ;;  %v2839_v26 = vmul.f32 %v10585_v38, %v15379_v43  ;;  %v15382_v43 = vld [vmem:[#allocation42_spill] sm:$0xff] }
 0x5e2   :  { %v12398_v61 = vpop.permute.xlu1 %2723  ;;  %v2514_v1 = vadd.f32 %v2450_v34, %v2126_v47  ;;  %v2903_v42 = vadd.f32 %v2839_v26, %v2515_v58  ;;  %v494_v26 = vmul.f32 %v10511_v11, %v15382_v43 }
 0x5e3   :  { %429 = vperm.xlu1 %8203, %v12407_v2  }
 0x5e4   :  { %v2902_v57 = vadd.f32 %v2838_v18, %v2514_v1  ;;  %v3291_v34 = vadd.f32 %v3227_v53, %v2903_v42  ;;  %v558_v58 = vadd.f32 %v12027_v19, %v494_v26  ;;  %v15384_v42 = vld [vmem:[#allocation120_spill] sm:$0xff] }
 0x5e6   :  { %v3290_v16 = vadd.f32 %v3226_v25, %v2902_v57  ;;  %v8905_v57 = vld [vmem:[%s14711_s26 + $0x188] sm:$0xff] }
 0x5e7   :  { %8204 = vset.pattern.permute.xlu1 %v15123_v12  ;;  %v12420_v5 = vpop.permute.xlu1 %3035 }
 0x5e8   :  { %1203 = vperm.xlu1 %8204, %v12281_v6  }
 0x5ec   :  { %8205 = vset.pattern.permute.xlu1 %v15146_v21  ;;  %v3488_v3 = vpop.permute.xlu1 %3487 }
 0x5ed   :  { %v3614_v63 = vmul.f32 %v12083_v17, %v3488_v3  ;;  %1967 = vperm.xlu1 %8205, %v12125_v35   ;;  %v15383_v3 = vld [vmem:[#allocation122_spill] sm:$0xff] }
 0x5ee   :  { %v882_v53 = vmul.f32 %v15155_v54, %v15383_v3 }
 0x5ef   :  { %v3678_v47 = vadd.f32 %v3614_v63, %v3290_v16  ;;  %v495_v16 = vmul.f32 %v10511_v11, %v15384_v42  ;;  %v15389_v42 = vld [vmem:[#allocation240_spill] sm:$0xff] }
 0x5f0   :  { %v3492_v39 = vpop.permute.xlu1 %3491 }
 0x5f1   :  { %v3615_v46 = vmul.f32 %v12083_v17, %v3492_v39  ;;  %8206 = vset.pattern.permute.xlu1 %v14767_v44  ;;  %v3742_v41 = vmax.f32 %v3678_v47, 0.0  ;;  %v15385_v39 = vld [vmem:[#allocation114_spill] sm:$0xff]  ;;  %v946_v47 = vadd.f32 %v882_v53, %v558_v58  ;;  %v559_v43 = vadd.f32 %v12027_v19, %v495_v16  ;;  %v15388_v58 = vld [vmem:[#allocation116_spill] sm:$0xff] }
 0x5f2   :  { %2735 = vperm.xlu1 %8206, %v11952_v48   ;;  %v1271_v3 = vmul.f32 %v10545_v7, %v15388_v58  ;;  %v1659_v16 = vmul.f32 %v10570_v62, %v12009_v59 }
 0x5f3   :  { %v3679_v24 = vadd.f32 %v3615_v46, %v3291_v34  ;;  %v1270_v34 = vmul.f32 %v10545_v7, %v15385_v39  ;;  %v2046_v39 = vmul.f32 %v10578_v29, %v15389_v42 }
 0x5f5   :  { %v3743_v18 = vmax.f32 %v3679_v24, 0.0  ;;  %v12435_v1 = vpop.permute.xlu1 %807  ;;  %v15386_v24 = vld [vmem:[#allocation115_spill] sm:$0xff]  ;;  %v1334_v26 = vadd.f32 %v1270_v34, %v946_v47 }
 0x5f6   :  { %15380 = vst [vmem:[#allocation212_spill] sm:$0xff] %v12435_v1  ;;  %2739 = vperm.xlu1 %8206, %v11966_v20   ;;  %v15390_v47 = vld [vmem:[#allocation183_spill] sm:$0xff] }
 0x5f7   :  { %v3847_v50 = vpack.c.bf16 %v3743_v18, %v3742_v41  ;;  %v883_v41 = vmul.f32 %v15155_v54, %v15386_v24  ;;  %v15387_v18 = vld [vmem:[#allocation201_spill] sm:$0xff]  ;;  %v2047_v1 = vmul.f32 %v10578_v29, %v15390_v47 }
 0x5f9   :  { %4688 = vmatpush1.bf16.msra.mxu1 %v3847_v50  ;;  %v1658_v50 = vmul.f32 %v10570_v62, %v15387_v18  ;;  %v947_v18 = vadd.f32 %v883_v41, %v559_v43  ;;  %v2823_v43 = vmul.f32 %v10585_v38, %v12326_v51 }
 0x5fa   :  { %8207 = vset.pattern.permute.xlu1 %v15157_v30  ;;  %v12439_v25 = vpop.permute.xlu1 %1571  ;;  %4689 = vmatprep.subr.bf16.mxu1 %v14756_v10 }
 0x5fb   :  { %15381 = vst [vmem:[#allocation216_spill] sm:$0xff] %v12439_v25  ;;  %3507 = vperm.xlu1 %8207, %v8905_v57   ;;  %v12469_v57 = vld [vmem:[%s14711_s26 + $0x1b0] sm:$0xff]  ;;  %v1722_v24 = vadd.f32 %v1658_v50, %v1334_v26  ;;  %v1335_v34 = vadd.f32 %v1271_v3, %v947_v18  ;;  %v2435_v25 = vmul.f32 %v10582_v45, %v12230_v56 }
 0x5fc   :  { %v2822_v50 = vmul.f32 %v10585_v38, %v12317_v37  ;;  %v3210_v3 = vmul.f32 %v10611_v40, %v12420_v5 }
 0x5fd   :  { %v1723_v58 = vadd.f32 %v1659_v16, %v1335_v34  ;;  %v2110_v15 = vadd.f32 %v2046_v39, %v1722_v24 }
 0x5ff   :  { %8208 = vset.pattern.permute.xlu1 %v15116_v22  ;;  %v12451_v63 = vpop.permute.xlu1 %2339  ;;  %v2111_v59 = vadd.f32 %v2047_v1, %v1723_v58  ;;  %v2498_v60 = vadd.f32 %v2434_v13, %v2110_v15  ;;  %v15392_v1 = vld [vmem:[#allocation160_spill] sm:$0xff]  ;;  %v12507_v15 = vld [vmem:[%s14711_s26 + $0x1d0] sm:$0xff]  ;;  %v12515_v58 = vld [vmem:[%s14711_s26 + $0x1d8] sm:$0xff] }
 0x600   :  { %819 = vperm.xlu1 %8208, %v12393_v55   ;;  %v3211_v37 = vmul.f32 %v10611_v40, %v15392_v1  ;;  %v15397_v1 = vld [vmem:[#allocation135_spill] sm:$0xff] }
 0x601   :  { %v2499_v26 = vadd.f32 %v2435_v25, %v2111_v59  ;;  %v2886_v42 = vadd.f32 %v2822_v50, %v2498_v60 }
 0x603   :  { %v12458_v46 = vpop.permute.xlu1 %2343  ;;  %v2887_v39 = vadd.f32 %v2823_v43, %v2499_v26  ;;  %v3274_v18 = vadd.f32 %v3210_v3, %v2886_v42  ;;  %v15394_v43 = vld [vmem:[#allocation100_spill] sm:$0xff]  ;;  %v15396_v42 = vld [vmem:[#allocation117_spill] sm:$0xff] }
 0x604   :  { %8209 = vset.pattern.permute.xlu1 %v15138_v32  ;;  %v513_v26 = vmul.f32 %v10511_v11, %v15394_v43  ;;  %v15395_v3 = vld [vmem:[#allocation44_spill] sm:$0xff] }
 0x605   :  { %1587 = vperm.xlu1 %8209, %v12469_v57   ;;  %v3275_v25 = vadd.f32 %v3211_v37, %v2887_v39  ;;  %v901_v39 = vmul.f32 %v15155_v54, %v15396_v42  ;;  %v900_v37 = vmul.f32 %v15155_v54, %v15397_v1 }
 0x608   :  { %v12474_v53 = vpop.permute.xlu1 %2659 }
 0x609   :  { %1591 = vperm.xlu1 %8209, %v12281_v6  }
 0x60d   :  { %8210 = vset.pattern.permute.xlu1 %v15152_v14  ;;  %v12488_v41 = vpop.permute.xlu1 %3107 }
 0x60e   :  { %2359 = vperm.xlu1 %8210, %v12138_v49  }
 0x612   :  { %8211 = vset.pattern.permute.xlu1 %v14752_v4  ;;  %v3424_v56 = vpop.permute.xlu1 %3423 }
 0x613   :  { %v3598_v24 = vmul.f32 %v12083_v17, %v3424_v56  ;;  %3123 = vperm.xlu1 %8211, %v11952_v48   ;;  %v512_v56 = vmul.f32 %v10511_v11, %v15395_v3 }
 0x615   :  { %v3662_v51 = vadd.f32 %v3598_v24, %v3274_v18  ;;  %v577_v24 = vadd.f32 %v12027_v19, %v513_v26  ;;  %v15401_v26 = vld [vmem:[#allocation150_spill] sm:$0xff] }
 0x616   :  { %v3428_v16 = vpop.permute.xlu1 %3427  ;;  %v1677_v3 = vmul.f32 %v10570_v62, %v15401_v26 }
 0x617   :  { %v3599_v13 = vmul.f32 %v12083_v17, %v3428_v16  ;;  %8212 = vset.pattern.permute.xlu1 %v14756_v10  ;;  %v3726_v48 = vmax.f32 %v3662_v51, 0.0  ;;  %v576_v16 = vadd.f32 %v12027_v19, %v512_v56  ;;  %v15398_v51 = vld [vmem:[#allocation137_spill] sm:$0xff] }
 0x618   :  { %434 = vperm.xlu1 %8212, %v12507_v15  }
 0x619   :  { %v3663_v5 = vadd.f32 %v3599_v13, %v3275_v25  ;;  %v1288_v25 = vmul.f32 %v10545_v7, %v15398_v51  ;;  %v15399_v13 = vld [vmem:[#allocation138_spill] sm:$0xff]  ;;  %v2064_v51 = vmul.f32 %v10578_v29, %v12214_v9  ;;  %v15403_v9 = vld [vmem:[#allocation43_spill] sm:$0xff] }
 0x61b   :  { %v3727_v34 = vmax.f32 %v3663_v5, 0.0  ;;  %v12510_v47 = vpop.permute.xlu1 %419  ;;  %v1289_v5 = vmul.f32 %v10545_v7, %v15399_v13  ;;  %v2065_v13 = vmul.f32 %v10578_v29, %v12220_v8  ;;  %v2840_v8 = vmul.f32 %v10585_v38, %v15403_v9 }
 0x61c   :  { %15393 = vst [vmem:[#allocation24_spill] sm:$0xff] %v12510_v47  ;;  %439 = vperm.xlu1 %8212, %v12515_v58  }
 0x61d   :  { %v3839_v59 = vpack.c.bf16 %v3727_v34, %v3726_v48  ;;  %v964_v48 = vadd.f32 %v900_v37, %v576_v16  ;;  %v965_v34 = vadd.f32 %v901_v39, %v577_v24  ;;  %v2452_v24 = vmul.f32 %v10582_v45, %v12306_v33  ;;  %v15402_v16 = vld [vmem:[#allocation140_spill] sm:$0xff] }
 0x61e   :  { %v3228_v33 = vmul.f32 %v10611_v40, %v12488_v41 }
 0x61f   :  { %4203 = vmatpush1.bf16.msra.mxu0 %v3839_v59  ;;  %v15400_v59 = vld [vmem:[#allocation165_spill] sm:$0xff]  ;;  %v1352_v1 = vadd.f32 %v1288_v25, %v964_v48  ;;  %v1353_v56 = vadd.f32 %v1289_v5, %v965_v34  ;;  %v2841_v48 = vmul.f32 %v10585_v38, %v12398_v61 }
 0x620   :  { %8213 = vset.pattern.permute.xlu1 %v15123_v12  ;;  %v12519_v50 = vpop.permute.xlu1 %1191  ;;  %4204 = vmatprep.subr.bf16.mxu0 %v14756_v10  ;;  %v1676_v43 = vmul.f32 %v10570_v62, %v15400_v59  ;;  %v2453_v59 = vmul.f32 %v10582_v45, %v15402_v16 }
 0x621   :  { %1211 = vperm.xlu1 %8213, %v12407_v2   ;;  %v1741_v39 = vadd.f32 %v1677_v3, %v1353_v56 }
 0x622   :  { %v1740_v37 = vadd.f32 %v1676_v43, %v1352_v1 }
 0x623   :  { %v2129_v47 = vadd.f32 %v2065_v13, %v1741_v39 }
 0x624   :  { %v2128_v26 = vadd.f32 %v2064_v51, %v1740_v37  ;;  %v15405_v37 = vld [vmem:[#allocation133_spill] sm:$0xff] }
 0x625   :  { %8214 = vset.pattern.permute.xlu1 %v15146_v21  ;;  %v12526_v60 = vpop.permute.xlu1 %1959  ;;  %v2517_v34 = vadd.f32 %v2453_v59, %v2129_v47  ;;  %v497_v61 = vmul.f32 %v10511_v11, %v15405_v37  ;;  %v15406_v59 = vld [vmem:[#allocation119_spill] sm:$0xff] }
 0x626   :  { %1975 = vperm.xlu1 %8214, %v12469_v57   ;;  %v2516_v5 = vadd.f32 %v2452_v24, %v2128_v26  ;;  %v885_v26 = vmul.f32 %v15155_v54, %v15406_v59  ;;  %v1660_v59 = vmul.f32 %v10570_v62, %v12208_v31  ;;  %v2825_v31 = vmul.f32 %v10585_v38, %v12474_v53 }
 0x627   :  { %v2905_v3 = vadd.f32 %v2841_v48, %v2517_v34  ;;  %v561_v9 = vadd.f32 %v12027_v19, %v497_v61  ;;  %v15410_v61 = vld [vmem:[#allocation203_spill] sm:$0xff] }
 0x628   :  { %v2904_v1 = vadd.f32 %v2840_v8, %v2516_v5 }
 0x629   :  { %v12536_v18 = vpop.permute.xlu1 %1963 }
 0x62a   :  { %8215 = vset.pattern.permute.xlu1 %v14767_v44  ;;  %v3292_v13 = vadd.f32 %v3228_v33, %v2904_v1  ;;  %v15407_v33 = vld [vmem:[#allocation46_spill] sm:$0xff] }
 0x62b   :  { %2743 = vperm.xlu1 %8215, %v12125_v35  }
 0x62e   :  { %v12549_v42 = vpop.permute.xlu1 %2731 }
 0x62f   :  { %2747 = vperm.xlu1 %8215, %v12138_v49  }
 0x633   :  { %8216 = vset.pattern.permute.xlu1 %v15157_v30  ;;  %v12561_v25 = vpop.permute.xlu1 %3043 }
 0x634   :  { %3515 = vperm.xlu1 %8216, %v11966_v20   ;;  %v15404_v20 = vld [vmem:[#allocation162_spill] sm:$0xff] }
 0x635   :  { %v3229_v51 = vmul.f32 %v10611_v40, %v15404_v20  ;;  %v15409_v20 = vld [vmem:[#allocation129_spill] sm:$0xff] }
 0x637   :  { %v3293_v24 = vadd.f32 %v3229_v51, %v2905_v3  ;;  %v15408_v3 = vld [vmem:[#allocation69_spill] sm:$0xff]  ;;  %v884_v51 = vmul.f32 %v15155_v54, %v15409_v20 }
 0x638   :  { %8217 = vset.pattern.permute.xlu1 %v15116_v22  ;;  %v3496_v43 = vpop.permute.xlu1 %3495  ;;  %v1273_v1 = vmul.f32 %v10545_v7, %v15408_v3 }
 0x639   :  { %v3616_v56 = vmul.f32 %v12083_v17, %v3496_v43  ;;  %827 = vperm.xlu1 %8217, %v12507_v15   ;;  %v496_v43 = vmul.f32 %v10511_v11, %v15407_v33 }
 0x63b   :  { %v3680_v39 = vadd.f32 %v3616_v56, %v3292_v13  ;;  %v949_v56 = vadd.f32 %v885_v26, %v561_v9  ;;  %v560_v37 = vadd.f32 %v12027_v19, %v496_v43  ;;  %v2049_v26 = vmul.f32 %v10578_v29, %v12295_v27 }
 0x63c   :  { %v3500_v47 = vpop.permute.xlu1 %3499 }
 0x63d   :  { %v3617_v41 = vmul.f32 %v12083_v17, %v3500_v47  ;;  %8218 = vset.pattern.permute.xlu1 %v15138_v32  ;;  %v3744_v8 = vmax.f32 %v3680_v39, 0.0  ;;  %v1661_v47 = vmul.f32 %v10570_v62, %v15410_v61  ;;  %v15411_v39 = vld [vmem:[#allocation161_spill] sm:$0xff] }
 0x63e   :  { %1595 = vperm.xlu1 %8218, %v12393_v55  }
 0x63f   :  { %v3681_v16 = vadd.f32 %v3617_v41, %v3293_v24  ;;  %v1272_v24 = vmul.f32 %v10545_v7, %v15411_v39  ;;  %v1337_v41 = vadd.f32 %v1273_v1, %v949_v56  ;;  %v2436_v1 = vmul.f32 %v10582_v45, %v12372_v28  ;;  %v3436_v39 = vpop.permute.xlu0 %3435 }
 0x641   :  { %v3745_v5 = vmax.f32 %v3681_v16, 0.0  ;;  %v12583_v48 = vpop.permute.xlu1 %815  ;;  %v948_v16 = vadd.f32 %v884_v51, %v560_v37  ;;  %v1725_v19 = vadd.f32 %v1661_v47, %v1337_v41  ;;  %v15413_v51 = vld [vmem:[#allocation164_spill] sm:$0xff]  ;;  %v15414_v37 = vld [vmem:[#allocation53_spill] sm:$0xff]  ;;  %v3601_v41 = vmul.f32 %v12083_v17, %v3436_v39 }
 0x642   :  { %1599 = vperm.xlu1 %8218, %v12407_v2   ;;  %v3213_v53 = vmul.f32 %v10611_v40, %v15413_v51  ;;  %v2824_v61 = vmul.f32 %v10585_v38, %v15414_v37 }
 0x643   :  { %v3848_v34 = vpack.c.bf16 %v3745_v5, %v3744_v8  ;;  %v1336_v8 = vadd.f32 %v1272_v24, %v948_v16  ;;  %v2437_v5 = vmul.f32 %v10582_v45, %v12385_v23  ;;  %v2113_v3 = vadd.f32 %v2049_v26, %v1725_v19  ;;  %v12636_v24 = vld [vmem:[%s14711_s26 + $0x1e8] sm:$0xff] }
 0x645   :  { %4690 = vmatpush1.bf16.msra.mxu1 %v3848_v34  ;;  %v15412_v34 = vld [vmem:[#allocation242_spill] sm:$0xff]  ;;  %v1724_v43 = vadd.f32 %v1660_v59, %v1336_v8  ;;  %v2501_v56 = vadd.f32 %v2437_v5, %v2113_v3  ;;  %v3212_v59 = vmul.f32 %v10611_v40, %v12561_v25 }
 0x646   :  { %8219 = vset.pattern.permute.xlu1 %v15152_v14  ;;  %v12593_v13 = vpop.permute.xlu1 %1579  ;;  %4691 = vmatprep.subr.bf16.mxu1 %v14756_v10  ;;  %v2048_v33 = vmul.f32 %v10578_v29, %v15412_v34 }
 0x647   :  { %2367 = vperm.xlu1 %8219, %v12281_v6   ;;  %v2889_v20 = vadd.f32 %v2825_v31, %v2501_v56 }
 0x648   :  { %v2112_v23 = vadd.f32 %v2048_v33, %v1724_v43  ;;  %v15415_v43 = vld [vmem:[#allocation48_spill] sm:$0xff] }
 0x649   :  { %v3277_v16 = vadd.f32 %v3213_v53, %v2889_v20  ;;  %v514_v3 = vmul.f32 %v10511_v11, %v15415_v43  ;;  %v15416_v20 = vld [vmem:[#allocation121_spill] sm:$0xff]  ;;  %v8564_v53 = vld [vmem:[%s15377_s1] ss:$8 sps:$4 sm:$0xff]  }
 0x64a   :  { %v2500_v47 = vadd.f32 %v2436_v1, %v2112_v23  ;;  %v902_v51 = vmul.f32 %v15155_v54, %v15416_v20  ;;  %v8569_v43 = vld [vmem:[%s15377_s1 + $0x10] ss:$8 sps:$4 sm:$0xff]  }
 0x64b   :  { %8220 = vset.pattern.permute.xlu1 %v14752_v4  ;;  %v12607_v9 = vpop.permute.xlu1 %2347  ;;  %v3665_v34 = vadd.f32 %v3601_v41, %v3277_v16  ;;  %v15418_v16 = vld [vmem:[#allocation127_spill] sm:$0xff]  ;;  %v15420_v20 = vld [vmem:[#allocation170_spill] sm:$0xff] }
 0x64c   :  { %3131 = vperm.xlu1 %8220, %v12125_v35   ;;  %v12624_v35 = vld [vmem:[%s14711_s26 + $0x1e0] sm:$0xff]  ;;  %v2888_v26 = vadd.f32 %v2824_v61, %v2500_v47  ;;  %v8567_v61 = vld [vmem:[%s15377_s1 + $0x14] ss:$8 sps:$4 sm:$0xff]  }
 0x64d   :  { %v3729_v25 = vmax.f32 %v3665_v34, 0.0  ;;  %v15417_v47 = vld [vmem:[#allocation71_spill] sm:$0xff] }
 0x64e   :  { %v3276_v19 = vadd.f32 %v3212_v59, %v2888_v26  ;;  %v1290_v39 = vmul.f32 %v10545_v7, %v15417_v47  ;;  %v515_v59 = vmul.f32 %v10511_v11, %v15418_v16  ;;  %v1678_v26 = vmul.f32 %v10570_v62, %v12285_v52 }
 0x64f   :  { %v12616_v27 = vpop.permute.xlu1 %2351 }
 0x650   :  { %8221 = vset.pattern.permute.xlu1 %v14756_v10 }
 0x651   :  { %444 = vperm.xlu1 %8221, %v12624_v35  }
 0x654   :  { %v12631_v28 = vpop.permute.xlu1 %3119 }
 0x655   :  { %449 = vperm.xlu1 %8221, %v12636_v24  }
 0x659   :  { %8222 = vset.pattern.permute.xlu1 %v15123_v12  ;;  %v3432_v8 = vpop.permute.xlu1 %3431 }
 0x65a   :  { %v3600_v5 = vmul.f32 %v12083_v17, %v3432_v8  ;;  %1219 = vperm.xlu1 %8222, %v12515_v58   ;;  %v12654_v17 = vld [vmem:[%s14964_s4] ss:$0 sm:$0xff] }
 0x65b   :  { %v578_v23 = vadd.f32 %v12654_v17, %v514_v3  ;;  %v8570_v3 = vld [vmem:[%s15377_s1 + $0x24] ss:$8 sps:$4 sm:$0xff]   ;;  %v579_v52 = vadd.f32 %v12654_v17, %v515_v59 }
 0x65c   :  { %v3664_v33 = vadd.f32 %v3600_v5, %v3276_v19  ;;  %v15419_v19 = vld [vmem:[#allocation141_spill] sm:$0xff] }
 0x65d   :  { %v966_v41 = vadd.f32 %v902_v51, %v578_v23  ;;  %v903_v5 = vmul.f32 %v15155_v54, %v15419_v19  ;;  %v1679_v51 = vmul.f32 %v10570_v62, %v15420_v20  ;;  %v3231_v20 = vmul.f32 %v10611_v40, %v12631_v28 }
 0x65e   :  { %v3728_v31 = vmax.f32 %v3664_v33, 0.0  ;;  %8223 = vset.pattern.permute.xlu1 %v15146_v21  ;;  %v12648_v1 = vpop.permute.xlu1 %424  ;;  %v2066_v33 = vmul.f32 %v10578_v29, %v12364_v0 }
 0x65f   :  { %1983 = vperm.xlu1 %8223, %v12393_v55   ;;  %v1354_v34 = vadd.f32 %v1290_v39, %v966_v41  ;;  %v967_v23 = vadd.f32 %v903_v5, %v579_v52  ;;  %v15422_v41 = vld [vmem:[#allocation245_spill] sm:$0xff]  ;;  %v2455_v5 = vmul.f32 %v10582_v45, %v12458_v46  ;;  %v2843_v52 = vmul.f32 %v10585_v38, %v12549_v42  ;;  %v12725_v46 = vld [vmem:[%s14960_s28 + $0x8] ss:$0 sm:$0xff] }
 0x660   :  { %v3840_v56 = vpack.c.bf16 %v3729_v25, %v3728_v31  ;;  %v1291_v31 = vmul.f32 %v10545_v7, %v12204_v36 }
 0x661   :  { %v1742_v25 = vadd.f32 %v1678_v26, %v1354_v34  ;;  %v8572_v26 = vld [vmem:[%s15377_s1 + $0x20] ss:$8 sps:$4 sm:$0xff]   ;;  %v3504_v34 = vpop.permute.xlu0 %3503 }
 0x662   :  { %4205 = vmatpush1.bf16.msra.mxu0 %v3840_v56  ;;  %v12662_v37 = vpop.permute.xlu1 %429  ;;  %v2454_v56 = vmul.f32 %v10582_v45, %v12451_v63  ;;  %v1355_v47 = vadd.f32 %v1291_v31, %v967_v23  ;;  %v2067_v63 = vmul.f32 %v10578_v29, %v15422_v41  ;;  %v3618_v23 = vmul.f32 %v12725_v46, %v3504_v34 }
 0x663   :  { %8224 = vset.pattern.permute.xlu1 %v14767_v44 }
 0x664   :  { %2751 = vperm.xlu1 %8224, %v12469_v57   ;;  %v1743_v16 = vadd.f32 %v1679_v51, %v1355_v47  ;;  %v8575_v51 = vld [vmem:[%s15377_s1 + $0x30] ss:$8 sps:$4 sm:$0xff]  }
 0x665   :  { %4207 = vmatmul.mubr.bf16.vlgmr.msra.gmra.mrb[0].mxu0 %v8564_v53  ;;  %v2130_v53 = vadd.f32 %v2066_v33, %v1742_v25  ;;  %v15423_v33 = vld [vmem:[#allocation166_spill] sm:$0xff] }
 0x666   :  { %4214 = vmatprep.mubr.bf16.mxu0 %v8567_v61  ;;  %v15421_v61 = vld [vmem:[#allocation86_spill] sm:$0xff] }
 0x667   :  { %v12675_v8 = vpop.permute.xlu1 %1203  ;;  %v2842_v36 = vmul.f32 %v10585_v38, %v15421_v61  ;;  %v2518_v39 = vadd.f32 %v2454_v56, %v2130_v53  ;;  %v8576_v61 = vld [vmem:[%s15377_s1 + $0x44] ss:$8 sps:$4 sm:$0xff]  }
 0x668   :  { %2755 = vperm.xlu1 %8224, %v12281_v6  }
 0x669   :  { %v2906_v19 = vadd.f32 %v2842_v36, %v2518_v39 }
 0x66c   :  { %8225 = vset.pattern.permute.xlu1 %v15157_v30  ;;  %v12694_v0 = vpop.permute.xlu1 %1967 }
 0x66d   :  { %3523 = vperm.xlu1 %8225, %v12138_v49   ;;  %4215 = vmatmul.mubr.bf16.gmra.mrb[4].mxu0 %v8569_v43  ;;  %v8573_v49 = vld [vmem:[%s15377_s1 + $0x34] ss:$8 sps:$4 sm:$0xff]   ;;  %v3230_v43 = vmul.f32 %v10611_v40, %v15423_v33  ;;  %v8581_v33 = vld [vmem:[%s15377_s1 + $0x50] ss:$8 sps:$4 sm:$0xff]  }
 0x66e   :  { %4222 = vmatprep.mubr.bf16.mxu0 %v8570_v3  ;;  %v2131_v3 = vadd.f32 %v2067_v63, %v1743_v16 }
 0x66f   :  { %v3294_v56 = vadd.f32 %v3230_v43, %v2906_v19  ;;  %v8579_v19 = vld [vmem:[%s15377_s1 + $0x54] ss:$8 sps:$4 sm:$0xff]  }
 0x670   :  { %v2519_v25 = vadd.f32 %v2455_v5, %v2131_v3  ;;  %v12763_v43 = vld [vmem:[%s14711_s26 + $0x1f0] sm:$0xff] }
 0x671   :  { %8226 = vset.pattern.permute.xlu1 %v15116_v22  ;;  %v12704_v59 = vpop.permute.xlu1 %2735  ;;  %v3682_v36 = vadd.f32 %v3618_v23, %v3294_v56  ;;  %v8585_v23 = vld [vmem:[%s15377_s1 + $0x74] ss:$8 sps:$4 sm:$0xff]  }
 0x672   :  { %835 = vperm.xlu1 %8226, %v12624_v35   ;;  %v2907_v42 = vadd.f32 %v2843_v52, %v2519_v25  ;;  %v12774_v52 = vld [vmem:[%s14711_s26 + $0x1f8] sm:$0xff]  ;;  %v8584_v25 = vld [vmem:[%s15377_s1 + $0x60] ss:$8 sps:$4 sm:$0xff]  }
 0x673   :  { %v3746_v28 = vmax.f32 %v3682_v36, 0.0 }
 0x674   :  { %v3295_v47 = vadd.f32 %v3231_v20, %v2907_v42  ;;  %v8587_v42 = vld [vmem:[%s15377_s1 + $0x70] ss:$8 sps:$4 sm:$0xff]  }
 0x675   :  { %4223 = vmatmul.mubr.bf16.gmra.mrb[8].mxu0 %v8572_v26  ;;  %v12719_v31 = vpop.permute.xlu1 %2739 }
 0x676   :  { %8227 = vset.pattern.permute.xlu1 %v15138_v32  ;;  %4230 = vmatprep.mubr.bf16.mxu0 %v8573_v49  ;;  %v8578_v49 = vld [vmem:[%s15377_s1 + $0x40] ss:$8 sps:$4 sm:$0xff]  }
 0x677   :  { %1603 = vperm.xlu1 %8227, %v12507_v15  }
 0x67a   :  { %v3508_v53 = vpop.permute.xlu1 %3507 }
 0x67b   :  { %v3619_v39 = vmul.f32 %v12725_v46, %v3508_v53  ;;  %1607 = vperm.xlu1 %8227, %v12515_v58  }
 0x67d   :  { %v3683_v41 = vadd.f32 %v3619_v39, %v3295_v47  ;;  %4231 = vmatmul.mubr.bf16.gmra.mrb[12].mxu0 %v8575_v51  ;;  %v8588_v51 = vld [vmem:[%s15377_s1 + $0x84] ss:$8 sps:$4 sm:$0xff]  }
 0x67e   :  { %4238 = vmatprep.mubr.bf16.mxu0 %v8576_v61  ;;  %v15426_v61 = vld [vmem:[#allocation168_spill] sm:$0xff]  ;;  %v15427_v47 = vld [vmem:[#allocation13_spill] sm:$0xff] }
 0x67f   :  { %v3747_v63 = vmax.f32 %v3683_v41, 0.0  ;;  %8228 = vset.pattern.permute.xlu1 %v15152_v14  ;;  %v12740_v16 = vpop.permute.xlu1 %819  ;;  %v516_v36 = vmul.f32 %v10511_v11, %v15426_v61  ;;  %v517_v39 = vmul.f32 %v10511_v11, %v15427_v47  ;;  %v15428_v41 = vld [vmem:[#allocation219_spill] sm:$0xff]  ;;  %v15431_v61 = vld [vmem:[#allocation73_spill] sm:$0xff] }
 0x680   :  { %2375 = vperm.xlu1 %8228, %v12407_v2  }
 0x681   :  { %v3849_v26 = vpack.c.bf16 %v3747_v63, %v3746_v28  ;;  %v904_v28 = vmul.f32 %v15155_v54, %v15428_v41  ;;  %v580_v63 = vadd.f32 %v12654_v17, %v516_v36  ;;  %v1292_v36 = vmul.f32 %v10545_v7, %v15431_v61 }
 0x683   :  { %4692 = vmatpush1.bf16.msra.mxu1 %v3849_v26  ;;  %v581_v26 = vadd.f32 %v12654_v17, %v517_v39  ;;  %v15432_v39 = vld [vmem:[#allocation216_spill] sm:$0xff] }
 0x684   :  { %8229 = vset.pattern.permute.xlu1 %v14752_v4  ;;  %v12750_v5 = vpop.permute.xlu1 %1587  ;;  %4693 = vmatprep.subr.bf16.mxu1 %v14756_v10  ;;  %v1680_v41 = vmul.f32 %v10570_v62, %v15432_v39 }
 0x685   :  { %3139 = vperm.xlu1 %8229, %v12469_v57   ;;  %4239 = vmatmul.mubr.bf16.gmra.mrb[16].mxu0 %v8578_v49  ;;  %v8582_v57 = vld [vmem:[%s15377_s1 + $0x64] ss:$8 sps:$4 sm:$0xff]  }
 0x686   :  { %4246 = vmatprep.mubr.bf16.mxu0 %v8579_v19  ;;  %v8590_v19 = vld [vmem:[%s15377_s1 + $0x80] ss:$8 sps:$4 sm:$0xff]  }
 0x688   :  { %v12754_v34 = vpop.permute.xlu1 %1591 }
 0x689   :  { %8230 = vset.pattern.permute.xlu1 %v14756_v10 }
 0x68a   :  { %454 = vperm.xlu1 %8230, %v12763_v43  }
 0x68d   :  { %4247 = vmatmul.mubr.bf16.gmra.mrb[20].mxu0 %v8581_v33  ;;  %v12769_v3 = vpop.permute.xlu1 %2359  ;;  %v15429_v33 = vld [vmem:[#allocation123_spill] sm:$0xff] }
 0x68e   :  { %459 = vperm.xlu1 %8230, %v12774_v52   ;;  %4254 = vmatprep.mubr.bf16.mxu0 %v8582_v57  ;;  %v905_v57 = vmul.f32 %v15155_v54, %v15429_v33 }
 0x690   :  { %v969_v47 = vadd.f32 %v905_v57, %v581_v26  ;;  %v2069_v57 = vmul.f32 %v10578_v29, %v12536_v18  ;;  %v8594_v18 = vld [vmem:[%s15377_s1 + $0xa4] ss:$8 sps:$4 sm:$0xff]  }
 0x692   :  { %8232 = vset.pattern.permute.xlu1 %v15123_v12  ;;  %v3124_v56 = vpop.permute.xlu1 %3123 }
 0x693   :  { %1227 = vperm.xlu1 %8232, %v12636_v24  }
 0x695   :  { %4255 = vmatmul.mubr.bf16.gmra.mrb[24].mxu0 %v8584_v25  ;;  %v968_v25 = vadd.f32 %v904_v28, %v580_v63 }
 0x696   :  { %4262 = vmatprep.mubr.bf16.mxu0 %v8585_v23  ;;  %v15430_v23 = vld [vmem:[#allocation181_spill] sm:$0xff] }
 0x697   :  { %8233 = vset.pattern.permute.xlu1 %v15146_v21  ;;  %v12786_v20 = vpop.permute.xlu1 %434  ;;  %v1356_v33 = vadd.f32 %v1292_v36, %v968_v25  ;;  %v2457_v25 = vmul.f32 %v10582_v45, %v12616_v27  ;;  %v3232_v27 = vmul.f32 %v10611_v40, %v3124_v56  ;;  %v3512_v36 = vpop.permute.xlu0 %3511  ;;  %v15434_v56 = vld [vmem:[#allocation167_spill] sm:$0xff] }
 0x698   :  { %15424 = vst [vmem:[#allocation198_spill] sm:$0xff] %v12786_v20  ;;  %1991 = vperm.xlu1 %8233, %v12507_v15  }
 0x699   :  { %v1744_v26 = vadd.f32 %v1680_v41, %v1356_v33  ;;  %v3233_v33 = vmul.f32 %v10611_v40, %v15434_v56  ;;  %v8609_v56 = vld [vmem:[%s15377_s1 + $0xf4] ss:$8 sps:$4 sm:$0xff]  }
 0x69b   :  { %v12795_v53 = vpop.permute.xlu1 %439 }
 0x69c   :  { %15425 = vst [vmem:[#allocation200_spill] sm:$0xff] %v12795_v53  ;;  %8234 = vset.pattern.permute.xlu1 %v14767_v44  ;;  %v15433_v53 = vld [vmem:[#allocation204_spill] sm:$0xff] }
 0x69d   :  { %2759 = vperm.xlu1 %8234, %v12393_v55   ;;  %4263 = vmatmul.mubr.bf16.gmra.mrb[28].mxu0 %v8587_v42  ;;  %v1293_v42 = vmul.f32 %v10545_v7, %v15430_v23  ;;  %v1681_v20 = vmul.f32 %v10570_v62, %v15433_v53  ;;  %v2068_v23 = vmul.f32 %v10578_v29, %v12526_v60 }
 0x69e   :  { %4270 = vmatprep.mubr.bf16.mxu0 %v8588_v51  ;;  %v8591_v51 = vld [vmem:[%s15377_s1 + $0x94] ss:$8 sps:$4 sm:$0xff]   ;;  %v2456_v53 = vmul.f32 %v10582_v45, %v12607_v9 }
 0x69f   :  { %v1357_v63 = vadd.f32 %v1293_v42, %v969_v47  ;;  %v2132_v61 = vadd.f32 %v2068_v23, %v1744_v26  ;;  %v8597_v23 = vld [vmem:[%s15377_s1 + $0xb4] ss:$8 sps:$4 sm:$0xff]  }
 0x6a0   :  { %v12807_v49 = vpop.permute.xlu1 %1211 }
 0x6a1   :  { %2763 = vperm.xlu1 %8234, %v12407_v2   ;;  %v1745_v42 = vadd.f32 %v1681_v20, %v1357_v63  ;;  %v2845_v20 = vmul.f32 %v10585_v38, %v12719_v31  ;;  %v3620_v63 = vmul.f32 %v12725_v46, %v3512_v36  ;;  %v8596_v31 = vld [vmem:[%s15377_s1 + $0xa0] ss:$8 sps:$4 sm:$0xff]  }
 0x6a2   :  { %v8602_v36 = vld [vmem:[%s15377_s1 + $0xc0] ss:$8 sps:$4 sm:$0xff]  }
 0x6a3   :  { %v2133_v9 = vadd.f32 %v2069_v57, %v1745_v42 }
 0x6a5   :  { %8235 = vset.pattern.permute.xlu1 %v15157_v30  ;;  %4271 = vmatmul.mubr.bf16.gmra.mrb[32].mxu0 %v8590_v19  ;;  %v12827_v28 = vpop.permute.xlu1 %1975  ;;  %v8593_v19 = vld [vmem:[%s15377_s1 + $0x90] ss:$8 sps:$4 sm:$0xff]  }
 0x6a6   :  { %3531 = vperm.xlu1 %8235, %v12281_v6   ;;  %4278 = vmatprep.mubr.bf16.mxu0 %v8591_v51  ;;  %v2844_v6 = vmul.f32 %v10585_v38, %v12704_v59  ;;  %v2520_v51 = vadd.f32 %v2456_v53, %v2132_v61  ;;  %v2521_v59 = vadd.f32 %v2457_v25, %v2133_v9 }
 0x6a8   :  { %v2908_v47 = vadd.f32 %v2844_v6, %v2520_v51  ;;  %v2909_v39 = vadd.f32 %v2845_v20, %v2521_v59  ;;  %v8600_v51 = vld [vmem:[%s15377_s1 + $0xc4] ss:$8 sps:$4 sm:$0xff]   ;;  %v8603_v59 = vld [vmem:[%s15377_s1 + $0xd4] ss:$8 sps:$4 sm:$0xff]  }
 0x6aa   :  { %8236 = vset.pattern.permute.xlu1 %v15116_v22  ;;  %v12844_v60 = vpop.permute.xlu1 %2743  ;;  %v3296_v41 = vadd.f32 %v3232_v27, %v2908_v47  ;;  %v3297_v53 = vadd.f32 %v3233_v33, %v2909_v39  ;;  %v8605_v39 = vld [vmem:[%s15377_s1 + $0xd0] ss:$8 sps:$4 sm:$0xff]   ;;  %v15435_v33 = vld [vmem:[#allocation179_spill] sm:$0xff] }
 0x6ab   :  { %843 = vperm.xlu1 %8236, %v12763_v43  }
 0x6ac   :  { %v3684_v57 = vadd.f32 %v3620_v63, %v3296_v41 }
 0x6ad   :  { %4279 = vmatmul.mubr.bf16.gmra.mrb[36].mxu0 %v8593_v19 }
 0x6ae   :  { %v12853_v22 = vpop.permute.xlu1 %2747  ;;  %4286 = vmatprep.mubr.bf16.mxu0 %v8594_v18  ;;  %v3748_v42 = vmax.f32 %v3684_v57, 0.0  ;;  %v8599_v18 = vld [vmem:[%s15377_s1 + $0xb0] ss:$8 sps:$4 sm:$0xff]  }
 0x6af   :  { %8238 = vset.pattern.permute.xlu1 %v15138_v32 }
 0x6b0   :  { %1611 = vperm.xlu1 %8238, %v12624_v35  }
 0x6b3   :  { %v3516_v26 = vpop.permute.xlu1 %3515 }
 0x6b4   :  { %v3621_v19 = vmul.f32 %v12725_v46, %v3516_v26  ;;  %1615 = vperm.xlu1 %8238, %v12636_v24   ;;  %v15436_v26 = vld [vmem:[#allocation11_spill] sm:$0xff] }
 0x6b5   :  { %4287 = vmatmul.mubr.bf16.gmra.mrb[40].mxu0 %v8596_v31  ;;  %v8608_v31 = vld [vmem:[%s15377_s1 + $0xe0] ss:$8 sps:$4 sm:$0xff]   ;;  %v519_v57 = vmul.f32 %v10511_v11, %v15436_v26 }
 0x6b6   :  { %v3685_v61 = vadd.f32 %v3621_v19, %v3297_v53  ;;  %4294 = vmatprep.mubr.bf16.mxu0 %v8597_v23  ;;  %v518_v23 = vmul.f32 %v10511_v11, %v15435_v33  ;;  %v15437_v19 = vld [vmem:[#allocation212_spill] sm:$0xff]  ;;  %v1682_v33 = vmul.f32 %v10570_v62, %v12593_v13 }
 0x6b8   :  { %v3749_v25 = vmax.f32 %v3685_v61, 0.0  ;;  %8239 = vset.pattern.permute.xlu1 %v15152_v14  ;;  %v12869_v6 = vpop.permute.xlu1 %827  ;;  %v907_v61 = vmul.f32 %v15155_v54, %v15437_v19  ;;  %v2070_v19 = vmul.f32 %v10578_v29, %v12694_v0  ;;  %v8614_v0 = vld [vmem:[%s15377_s1 + $0x100] ss:$8 sps:$4 sm:$0xff]  }
 0x6b9   :  { %2383 = vperm.xlu1 %8239, %v12515_v58  }
 0x6ba   :  { %v3850_v9 = vpack.c.bf16 %v3749_v25, %v3748_v42  ;;  %v582_v42 = vadd.f32 %v12654_v17, %v518_v23  ;;  %v583_v25 = vadd.f32 %v12654_v17, %v519_v57 }
 0x6bc   :  { %4694 = vmatpush1.bf16.msra.mxu1 %v3850_v9 }
 0x6bd   :  { %8240 = vset.pattern.permute.xlu1 %v14752_v4  ;;  %4295 = vmatmul.mubr.bf16.gmra.mrb[44].mxu0 %v8599_v18  ;;  %v12879_v20 = vpop.permute.xlu1 %1595  ;;  %v15438_v18 = vld [vmem:[#allocation125_spill] sm:$0xff] }
 0x6be   :  { %3147 = vperm.xlu1 %8240, %v12393_v55   ;;  %4302 = vmatprep.mubr.bf16.mxu0 %v8600_v51  ;;  %v906_v9 = vmul.f32 %v15155_v54, %v15438_v18  ;;  %v971_v51 = vadd.f32 %v907_v61, %v583_v25  ;;  %v15442_v25 = vld [vmem:[#allocation159_spill] sm:$0xff] }
 0x6bf   :  { %4695 = vmatprep.subr.bf16.mxu1 %v14756_v10  ;;  %v2458_v18 = vmul.f32 %v10582_v45, %v15442_v25 }
 0x6c1   :  { %v12883_v27 = vpop.permute.xlu1 %1599 }
 0x6c2   :  { %8242 = vset.pattern.permute.xlu1 %v15123_v12  ;;  %v8606_v12 = vld [vmem:[%s15377_s1 + $0xe4] ss:$8 sps:$4 sm:$0xff]  }
 0x6c3   :  { %1231 = vperm.xlu1 %8242, %v12763_v43  }
 0x6c5   :  { %4303 = vmatmul.mubr.bf16.gmra.mrb[48].mxu0 %v8602_v36  ;;  %v1294_v36 = vmul.f32 %v10545_v7, %v12519_v50  ;;  %v15440_v50 = vld [vmem:[#allocation206_spill] sm:$0xff] }
 0x6c6   :  { %v12893_v47 = vpop.permute.xlu1 %2367  ;;  %4310 = vmatprep.mubr.bf16.mxu0 %v8603_v59  ;;  %v1683_v23 = vmul.f32 %v10570_v62, %v15440_v50  ;;  %v3520_v50 = vpop.permute.xlu0 %3519 }
 0x6c7   :  { %1235 = vperm.xlu1 %8242, %v12774_v52  }
 0x6cb   :  { %8243 = vset.pattern.permute.xlu1 %v15146_v21  ;;  %v3132_v41 = vpop.permute.xlu1 %3131 }
 0x6cc   :  { %2003 = vperm.xlu1 %8243, %v12636_v24  }
 0x6cd   :  { %4311 = vmatmul.mubr.bf16.gmra.mrb[52].mxu0 %v8605_v39  ;;  %v8611_v39 = vld [vmem:[%s15377_s1 + $0xf0] ss:$8 sps:$4 sm:$0xff]  }
 0x6ce   :  { %4318 = vmatprep.mubr.bf16.mxu0 %v8606_v12  ;;  %v15439_v12 = vld [vmem:[#allocation75_spill] sm:$0xff] }
 0x6d0   :  { %8244 = vset.pattern.permute.xlu1 %v14767_v44  ;;  %v12905_v63 = vpop.permute.xlu1 %444 }
 0x6d1   :  { %2767 = vperm.xlu1 %8244, %v12507_v15  }
 0x6d4   :  { %v12918_v53 = vpop.permute.xlu1 %449 }
 0x6d5   :  { %4319 = vmatmul.mubr.bf16.gmra.mrb[56].mxu0 %v8608_v31  ;;  %8245 = vset.pattern.permute.xlu1 %v15157_v30  ;;  %v1295_v31 = vmul.f32 %v10545_v7, %v15439_v12 }
 0x6d6   :  { %3535 = vperm.xlu1 %8245, %v12393_v55   ;;  %4326 = vmatprep.mubr.bf16.mxu0 %v8609_v56  ;;  %v8612_v55 = vld [vmem:[%s15377_s1 + $0x104] ss:$8 sps:$4 sm:$0xff]   ;;  %v970_v56 = vadd.f32 %v906_v9, %v582_v42  ;;  %v15441_v42 = vld [vmem:[#allocation247_spill] sm:$0xff] }
 0x6d7   :  { %v1359_v26 = vadd.f32 %v1295_v31, %v971_v51  ;;  %v2071_v13 = vmul.f32 %v10578_v29, %v15441_v42 }
 0x6d8   :  { %v1358_v57 = vadd.f32 %v1294_v36, %v970_v56  ;;  %v2459_v36 = vmul.f32 %v10582_v45, %v12769_v3  ;;  %v2847_v56 = vmul.f32 %v10585_v38, %v12853_v22  ;;  %v8617_v22 = vld [vmem:[%s15377_s1 + $0x110] ss:$8 sps:$4 sm:$0xff]  }
 0x6d9   :  { %v12930_v59 = vpop.permute.xlu1 %1219  ;;  %v1747_v51 = vadd.f32 %v1683_v23, %v1359_v26 }
 0x6da   :  { %3539 = vperm.xlu1 %8245, %v12407_v2   ;;  %v1746_v61 = vadd.f32 %v1682_v33, %v1358_v57  ;;  %v3234_v33 = vmul.f32 %v10611_v40, %v3132_v41  ;;  %v8618_v41 = vld [vmem:[%s15377_s1 + $0x124] ss:$8 sps:$4 sm:$0xff]  }
 0x6db   :  { %v2135_v12 = vadd.f32 %v2071_v13, %v1747_v51 }
 0x6dc   :  { %v2134_v9 = vadd.f32 %v2070_v19, %v1746_v61  ;;  %v3622_v19 = vmul.f32 %v12725_v46, %v3520_v50  ;;  %v15443_v61 = vld [vmem:[#allocation169_spill] sm:$0xff] }
 0x6dd   :  { %4327 = vmatmul.mubr.bf16.gmra.mrb[60].mxu0 %v8611_v39  ;;  %v2846_v39 = vmul.f32 %v10585_v38, %v12844_v60  ;;  %v2523_v3 = vadd.f32 %v2459_v36, %v2135_v12  ;;  %v3235_v42 = vmul.f32 %v10611_v40, %v15443_v61  ;;  %v8621_v12 = vld [vmem:[%s15377_s1 + $0x134] ss:$8 sps:$4 sm:$0xff]   ;;  %v8624_v50 = vld [vmem:[%s15377_s1 + $0x144] ss:$8 sps:$4 sm:$0xff]  }
 0x6de   :  { %8247 = vset.pattern.permute.xlu1 %v15138_v32  ;;  %v12948_v2 = vpop.permute.xlu1 %1983  ;;  %4334 = vmatprep.mubr.bf16.mxu0 %v8612_v55  ;;  %v8615_v32 = vld [vmem:[%s15377_s1 + $0x114] ss:$8 sps:$4 sm:$0xff]   ;;  %v2522_v31 = vadd.f32 %v2458_v18, %v2134_v9 }
 0x6df   :  { %1623 = vperm.xlu1 %8247, %v12774_v52   ;;  %v2911_v60 = vadd.f32 %v2847_v56, %v2523_v3 }
 0x6e0   :  { %v2910_v23 = vadd.f32 %v2846_v39, %v2522_v31  ;;  %v8620_v39 = vld [vmem:[%s15377_s1 + $0x120] ss:$8 sps:$4 sm:$0xff]  }
 0x6e1   :  { %v3299_v18 = vadd.f32 %v3235_v42, %v2911_v60  ;;  %v8627_v60 = vld [vmem:[%s15377_s1 + $0x154] ss:$8 sps:$4 sm:$0xff]  }
 0x6e2   :  { %v3298_v57 = vadd.f32 %v3234_v33, %v2910_v23  ;;  %v8626_v23 = vld [vmem:[%s15377_s1 + $0x140] ss:$8 sps:$4 sm:$0xff]   ;;  %v15445_v42 = vld [vmem:[#allocation126_spill] sm:$0xff] }
 0x6e3   :  { %8248 = vset.pattern.permute.xlu1 %v15152_v14  ;;  %v12966_v55 = vpop.permute.xlu1 %2751 }
 0x6e4   :  { %2387 = vperm.xlu1 %8248, %v12624_v35   ;;  %v3686_v25 = vadd.f32 %v3622_v19, %v3298_v57  ;;  %v15444_v19 = vld [vmem:[#allocation50_spill] sm:$0xff] }
 0x6e5   :  { %4335 = vmatmul.mubr.bf16.gmra.mrb[64].mxu0 %v8614_v0 }
 0x6e6   :  { %4342 = vmatprep.mubr.bf16.mxu0 %v8615_v32  ;;  %v3750_v0 = vmax.f32 %v3686_v25, 0.0  ;;  %v15446_v25 = vld [vmem:[#allocation24_spill] sm:$0xff] }
 0x6e7   :  { %v12972_v26 = vpop.permute.xlu1 %2755 }
 0x6e8   :  { %8249 = vset.pattern.permute.xlu1 %v14752_v4 }
 0x6e9   :  { %3155 = vperm.xlu1 %8249, %v12507_v15  }
 0x6ec   :  { %v3524_v13 = vpop.permute.xlu1 %3523 }
 0x6ed   :  { %v3623_v9 = vmul.f32 %v12725_v46, %v3524_v13  ;;  %4343 = vmatmul.mubr.bf16.gmra.mrb[68].mxu0 %v8617_v22  ;;  %3159 = vperm.xlu1 %8249, %v12515_v58   ;;  %v520_v22 = vmul.f32 %v10511_v11, %v15444_v19  ;;  %v908_v13 = vmul.f32 %v15155_v54, %v15445_v42  ;;  %v15449_v42 = vld [vmem:[#allocation249_spill] sm:$0xff] }
 0x6ee   :  { %4350 = vmatprep.mubr.bf16.mxu0 %v8618_v41 }
 0x6ef   :  { %v3687_v51 = vadd.f32 %v3623_v9, %v3299_v18  ;;  %v584_v61 = vadd.f32 %v12654_v17, %v520_v22  ;;  %v8632_v18 = vld [vmem:[%s15377_s1 + $0x160] ss:$8 sps:$4 sm:$0xff]  }
 0x6f0   :  { %v15447_v9 = vld [vmem:[#allocation76_spill] sm:$0xff] }
 0x6f1   :  { %v3751_v32 = vmax.f32 %v3687_v51, 0.0  ;;  %8251 = vset.pattern.permute.xlu1 %v15146_v21  ;;  %v12988_v36 = vpop.permute.xlu1 %835  ;;  %v8623_v21 = vld [vmem:[%s15377_s1 + $0x130] ss:$8 sps:$4 sm:$0xff]   ;;  %v1296_v51 = vmul.f32 %v10545_v7, %v15447_v9 }
 0x6f2   :  { %2011 = vperm.xlu1 %8251, %v12774_v52  }
 0x6f3   :  { %v3851_v31 = vpack.c.bf16 %v3751_v32, %v3750_v0  ;;  %v972_v0 = vadd.f32 %v908_v13, %v584_v61  ;;  %v909_v32 = vmul.f32 %v15155_v54, %v12583_v48  ;;  %v1685_v48 = vmul.f32 %v10570_v62, %v12754_v34 }
 0x6f4   :  { %v2073_v13 = vmul.f32 %v10578_v29, %v15449_v42 }
 0x6f5   :  { %4351 = vmatmul.mubr.bf16.gmra.mrb[72].mxu0 %v8620_v39  ;;  %4696 = vmatpush1.bf16.msra.mxu1 %v3851_v31  ;;  %v1297_v31 = vmul.f32 %v10545_v7, %v12675_v8  ;;  %v8635_v8 = vld [vmem:[%s15377_s1 + $0x170] ss:$8 sps:$4 sm:$0xff]  }
 0x6f6   :  { %8252 = vset.pattern.permute.xlu1 %v14767_v44  ;;  %v12998_v56 = vpop.permute.xlu1 %1603  ;;  %4358 = vmatprep.mubr.bf16.mxu0 %v8621_v12 }
 0x6f7   :  { %2775 = vperm.xlu1 %8252, %v12624_v35   ;;  %4697 = vmatprep.subr.bf16.mxu1 %v14756_v10 }
 0x6fa   :  { %v13005_v33 = vpop.permute.xlu1 %1607 }
 0x6fb   :  { %8254 = vset.pattern.permute.xlu1 %v15157_v30 }
 0x6fc   :  { %3543 = vperm.xlu1 %8254, %v12507_v15  }
 0x6fd   :  { %4359 = vmatmul.mubr.bf16.gmra.mrb[76].mxu0 %v8623_v21  ;;  %v1684_v21 = vmul.f32 %v10570_v62, %v12750_v5  ;;  %v15448_v5 = vld [vmem:[#allocation163_spill] sm:$0xff] }
 0x6fe   :  { %4366 = vmatprep.mubr.bf16.mxu0 %v8624_v50 }
 0x6ff   :  { %v13012_v3 = vpop.permute.xlu1 %2375 }
 0x700   :  { %3547 = vperm.xlu1 %8254, %v12515_v58   ;;  %v8629_v58 = vld [vmem:[%s15377_s1 + $0x150] ss:$8 sps:$4 sm:$0xff]  }
 0x704   :  { %8256 = vset.pattern.permute.xlu1 %v15152_v14  ;;  %v3140_v57 = vpop.permute.xlu1 %3139  ;;  %v8630_v14 = vld [vmem:[%s15377_s1 + $0x164] ss:$8 sps:$4 sm:$0xff]  }
 0x705   :  { %4367 = vmatmul.mubr.bf16.gmra.mrb[80].mxu0 %v8626_v23  ;;  %2399 = vperm.xlu1 %8256, %v12774_v52   ;;  %v1360_v23 = vadd.f32 %v1296_v51, %v972_v0  ;;  %v2849_v51 = vmul.f32 %v10585_v38, %v12972_v26  ;;  %v3236_v0 = vmul.f32 %v10611_v40, %v3140_v57  ;;  %v8639_v26 = vld [vmem:[%s15377_s1 + $0x194] ss:$8 sps:$4 sm:$0xff]  }
 0x706   :  { %4374 = vmatprep.mubr.bf16.mxu0 %v8627_v60  ;;  %v2072_v60 = vmul.f32 %v10578_v29, %v12827_v28  ;;  %v8636_v28 = vld [vmem:[%s15377_s1 + $0x184] ss:$8 sps:$4 sm:$0xff]   ;;  %v15450_v57 = vld [vmem:[#allocation171_spill] sm:$0xff] }
 0x707   :  { %v1748_v22 = vadd.f32 %v1684_v21, %v1360_v23 }
 0x709   :  { %8257 = vset.pattern.permute.xlu1 %v14752_v4  ;;  %v13024_v15 = vpop.permute.xlu1 %454  ;;  %v2136_v61 = vadd.f32 %v2072_v60, %v1748_v22 }
 0x70a   :  { %3163 = vperm.xlu1 %8257, %v12624_v35   ;;  %v521_v35 = vmul.f32 %v10511_v11, %v15446_v25  ;;  %v2461_v25 = vmul.f32 %v10582_v45, %v12893_v47 }
 0x70c   :  { %v585_v12 = vadd.f32 %v12654_v17, %v521_v35 }
 0x70d   :  { %4375 = vmatmul.mubr.bf16.gmra.mrb[84].mxu0 %v8629_v58  ;;  %v13035_v41 = vpop.permute.xlu1 %459 }
 0x70e   :  { %8258 = vset.pattern.permute.xlu1 %v14767_v44  ;;  %4382 = vmatprep.mubr.bf16.mxu0 %v8630_v14  ;;  %v8633_v44 = vld [vmem:[%s15377_s1 + $0x174] ss:$8 sps:$4 sm:$0xff]   ;;  %v973_v50 = vadd.f32 %v909_v32, %v585_v12  ;;  %v2460_v14 = vmul.f32 %v10582_v45, %v15448_v5  ;;  %v3528_v32 = vpop.permute.xlu0 %3527 }
 0x70f   :  { %2783 = vperm.xlu1 %8258, %v12763_v43   ;;  %v3624_v21 = vmul.f32 %v12725_v46, %v3528_v32 }
 0x710   :  { %v1361_v19 = vadd.f32 %v1297_v31, %v973_v50  ;;  %v2524_v9 = vadd.f32 %v2460_v14, %v2136_v61  ;;  %v3237_v50 = vmul.f32 %v10611_v40, %v15450_v57  ;;  %v8642_v14 = vld [vmem:[%s15377_s1 + $0x1a4] ss:$8 sps:$4 sm:$0xff]  }
 0x712   :  { %v13051_v39 = vpop.permute.xlu1 %1227  ;;  %v1749_v34 = vadd.f32 %v1685_v48, %v1361_v19 }
 0x713   :  { %2787 = vperm.xlu1 %8258, %v12774_v52  }
 0x715   :  { %4383 = vmatmul.mubr.bf16.gmra.mrb[88].mxu0 %v8632_v18  ;;  %v2137_v18 = vadd.f32 %v2073_v13, %v1749_v34 }
 0x716   :  { %4390 = vmatprep.mubr.bf16.mxu0 %v8633_v44 }
 0x717   :  { %8260 = vset.pattern.permute.xlu1 %v15157_v30  ;;  %v13067_v58 = vpop.permute.xlu1 %1991  ;;  %v2525_v47 = vadd.f32 %v2461_v25, %v2137_v18 }
 0x718   :  { %3555 = vperm.xlu1 %8260, %v12636_v24   ;;  %v2848_v24 = vmul.f32 %v10585_v38, %v12966_v55 }
 0x719   :  { %v2913_v55 = vadd.f32 %v2849_v51, %v2525_v47 }
 0x71a   :  { %v2912_v44 = vadd.f32 %v2848_v24, %v2524_v9  ;;  %v8647_v24 = vld [vmem:[%s15377_s1 + $0x1b0] ss:$8 sps:$4 sm:$0xff]  }
 0x71b   :  { %v3301_v48 = vadd.f32 %v3237_v50, %v2913_v55 }
 0x71c   :  { %8261 = vset.pattern.permute.xlu1 %v14752_v4  ;;  %v13085_v35 = vpop.permute.xlu1 %2759  ;;  %v8638_v4 = vld [vmem:[%s15377_s1 + $0x180] ss:$8 sps:$4 sm:$0xff]   ;;  %v3300_v31 = vadd.f32 %v3236_v0, %v2912_v44  ;;  %v522_v44 = vmul.f32 %v10511_v11, %v12648_v1 }
 0x71d   :  { %4391 = vmatmul.mubr.bf16.gmra.mrb[92].mxu0 %v8635_v8  ;;  %3171 = vperm.xlu1 %8261, %v12763_v43  }
 0x71e   :  { %4398 = vmatprep.mubr.bf16.mxu0 %v8636_v28  ;;  %v8645_v28 = vld [vmem:[%s15377_s1 + $0x1b4] ss:$8 sps:$4 sm:$0xff]   ;;  %v586_v57 = vadd.f32 %v12654_v17, %v522_v44  ;;  %v15453_v44 = vld [vmem:[#allocation252_spill] sm:$0xff] }
 0x720   :  { %v13091_v12 = vpop.permute.xlu1 %2763 }
 0x721   :  { %8262 = vset.pattern.permute.xlu1 %v15157_v30  ;;  %v3688_v30 = vadd.f32 %v3624_v21, %v3300_v31 }
 0x722   :  { %3559 = vperm.xlu1 %8262, %v12763_v43   ;;  %v8641_v43 = vld [vmem:[%s15377_s1 + $0x190] ss:$8 sps:$4 sm:$0xff]  }
 0x723   :  { %v3752_v22 = vmax.f32 %v3688_v30, 0.0  ;;  %v15451_v30 = vld [vmem:[#allocation128_spill] sm:$0xff] }
 0x724   :  { %v911_v1 = vmul.f32 %v15155_v54, %v15451_v30 }
 0x725   :  { %4399 = vmatmul.mubr.bf16.gmra.mrb[96].mxu0 %v8638_v4  ;;  %v3532_v23 = vpop.permute.xlu1 %3531  ;;  %v523_v4 = vmul.f32 %v10511_v11, %v12662_v37  ;;  %v1299_v37 = vmul.f32 %v10545_v7, %v12807_v49 }
 0x726   :  { %v3625_v60 = vmul.f32 %v12725_v46, %v3532_v23  ;;  %3563 = vperm.xlu1 %8262, %v12774_v52   ;;  %4406 = vmatprep.mubr.bf16.mxu0 %v8639_v26  ;;  %v8644_v52 = vld [vmem:[%s15377_s1 + $0x1a0] ss:$8 sps:$4 sm:$0xff]   ;;  %v910_v26 = vmul.f32 %v15155_v54, %v12740_v16 }
 0x727   :  { %v587_v50 = vadd.f32 %v12654_v17, %v523_v4  ;;  %v2075_v4 = vmul.f32 %v10578_v29, %v15453_v44 }
 0x728   :  { %v3689_v19 = vadd.f32 %v3625_v60, %v3301_v48  ;;  %v974_v48 = vadd.f32 %v910_v26, %v586_v57 }
 0x729   :  { %v975_v16 = vadd.f32 %v911_v1, %v587_v50 }
 0x72a   :  { %v3753_v8 = vmax.f32 %v3689_v19, 0.0  ;;  %v13109_v5 = vpop.permute.xlu1 %843 }
 0x72c   :  { %v3852_v34 = vpack.c.bf16 %v3753_v8, %v3752_v22  ;;  %v1686_v8 = vmul.f32 %v10570_v62, %v12879_v20 }
 0x72d   :  { %4407 = vmatmul.mubr.bf16.gmra.mrb[100].mxu0 %v8641_v43  ;;  %v15452_v43 = vld [vmem:[#allocation78_spill] sm:$0xff] }
 0x72e   :  { %4698 = vmatpush1.bf16.msra.mxu1 %v3852_v34  ;;  %4414 = vmatprep.mubr.bf16.mxu0 %v8642_v14  ;;  %v1298_v22 = vmul.f32 %v10545_v7, %v15452_v43  ;;  %v1687_v14 = vmul.f32 %v10570_v62, %v12883_v27  ;;  %v2463_v27 = vmul.f32 %v10582_v45, %v13012_v3  ;;  %v8650_v3 = vld [vmem:[%s15377_s1 + $0x1c0] ss:$8 sps:$4 sm:$0xff]  }
 0x72f   :  { %v13114_v61 = vpop.permute.xlu1 %1611  ;;  %4699 = vmatprep.subr.bf16.mxu1 %v14756_v10 }
 0x730   :  { %v1362_v49 = vadd.f32 %v1298_v22, %v974_v48  ;;  %v2850_v48 = vmul.f32 %v10585_v38, %v13085_v35 }
 0x733   :  { %v13123_v42 = vpop.permute.xlu1 %1615 }
 0x735   :  { %4415 = vmatmul.mubr.bf16.gmra.mrb[104].mxu0 %v8644_v52 }
 0x736   :  { %4422 = vmatprep.mubr.bf16.mxu0 %v8645_v28 }
 0x738   :  { %v13125_v13 = vpop.permute.xlu1 %2383  ;;  %v13127_v25 = vpop.f32.mrb[0].mxu0 }
 0x739   :  { %v4210_v18 = vpop.f32.mrb[1].mxu0 }
 0x73a   :  { %v13132_v9 = vpop.f32.mrb[2].mxu0  ;;  %v2074_v18 = vmul.f32 %v10578_v29, %v12948_v2  ;;  %v8648_v2 = vld [vmem:[%s15377_s1 + $0x1c4] ss:$8 sps:$4 sm:$0xff]  }
 0x73b   :  { %v4213_v51 = vpop.f32.mrb[3].mxu0 }
 0x73c   :  { %v1750_v51 = vadd.f32 %v1686_v8, %v1362_v49  ;;  %v15455_v49 = vld [vmem:[#allocation173_spill] sm:$0xff] }
 0x73d   :  { %v3148_v0 = vpop.permute.xlu1 %3147  ;;  %4423 = vmatmul.mubr.bf16.gmra.mrb[108].mxu0 %v8647_v24  ;;  %v1363_v24 = vadd.f32 %v1299_v37, %v975_v16  ;;  %v2851_v37 = vmul.f32 %v10585_v38, %v13091_v12  ;;  %v3239_v12 = vmul.f32 %v10611_v40, %v15455_v49  ;;  %v15456_v49 = vld [vmem:[#allocation198_spill] sm:$0xff] }
 0x73e   :  { %v2138_v26 = vadd.f32 %v2074_v18, %v1750_v51  ;;  %4430 = vmatprep.mubr.bf16.mxu0 %v8648_v2  ;;  %v3238_v8 = vmul.f32 %v10611_v40, %v3148_v0 }
 0x740   :  { %v13134_v32 = vpop.f32.mrb[4].mxu0 }
 0x741   :  { %v4218_v47 = vpop.f32.mrb[5].mxu0 }
 0x742   :  { %v13140_v55 = vpop.permute.xlu1 %1231  ;;  %v13142_v31 = vpop.f32.mrb[6].mxu0  ;;  %v1751_v47 = vadd.f32 %v1687_v14, %v1363_v24 }
 0x743   :  { %v4221_v21 = vpop.f32.mrb[7].mxu0 }
 0x744   :  { %v15454_v21 = vld [vmem:[#allocation152_spill] sm:$0xff]  ;;  %v2139_v1 = vadd.f32 %v2075_v4, %v1751_v47 }
 0x745   :  { %v2462_v20 = vmul.f32 %v10582_v45, %v15454_v21  ;;  %4431 = vmatmul.mubr.bf16.gmra.mrb[112].mxu0 %v8650_v3  ;;  %v8651_v21 = vld [vmem:[%s15377_s1 + $0x1d4] ss:$8 sps:$4 sm:$0xff]  }
 0x746   :  { %v13148_v23 = vpop.permute.xlu1 %1235  ;;  %v2527_v22 = vadd.f32 %v2463_v27, %v2139_v1  ;;  %4438 = vmatprep.mubr.bf16.mxu0 %v8651_v21 }
 0x747   :  { %v2526_v16 = vadd.f32 %v2462_v20, %v2138_v26 }
 0x748   :  { %v13154_v60 = vpop.f32.mrb[8].mxu0  ;;  %v2915_v24 = vadd.f32 %v2851_v37, %v2527_v22 }
 0x749   :  { %v4226_v19 = vpop.f32.mrb[9].mxu0 }
 0x74a   :  { %v13162_v34 = vpop.f32.mrb[10].mxu0  ;;  %v3303_v0 = vadd.f32 %v3239_v12, %v2915_v24  ;;  %v524_v12 = vmul.f32 %v10511_v11, %v15456_v49 }
 0x74b   :  { %v13164_v52 = vpop.permute.xlu1 %2003  ;;  %v4229_v28 = vpop.f32.mrb[11].mxu0 }
 0x74c   :  { %v2914_v28 = vadd.f32 %v2850_v48, %v2526_v16 }
 0x74e   :  { %v3302_v18 = vadd.f32 %v3238_v8, %v2914_v28  ;;  %v13211_v8 = vld [vmem:[%s15377_s1 + $0x1e4] ss:$8 sps:$4 sm:$0xff]   ;;  %v13218_v28 = vld [vmem:[%s15377_s1 + $0x1e0] ss:$8 sps:$4 sm:$0xff]  }
 0x750   :  { %v13174_v57 = vpop.permute.xlu1 %2767  ;;  %v13176_v50 = vpop.f32.mrb[12].mxu0 }
 0x751   :  { %v4234_v30 = vpop.f32.mrb[13].mxu0 }
 0x752   :  { %v4235_v19 = vpop.f32.mrb[14].mxu0  ;;  %v8653_v30 = vld [vmem:[%s15377_s1 + $0x1d0] ss:$8 sps:$4 sm:$0xff]  }
 0x753   :  { %v4237_v43 = vpop.f32.mrb[15].mxu0  ;;  %4439 = vmatmul.mubr.bf16.gmra.mrb[116].mxu0 %v8653_v30  ;;  %v588_v30 = vadd.f32 %v12654_v17, %v524_v12  ;;  %v1689_v12 = vmul.f32 %v10570_v62, %v13005_v33 }
 0x754   :  { %4446 = vmatprep.mubr.bf16.mxu0 %v13211_v8 }
 0x755   :  { %v3536_v14 = vpop.permute.xlu1 %3535 }
 0x756   :  { %v3626_v35 = vmul.f32 %v12725_v46, %v3536_v14 }
 0x758   :  { %v4240_v51 = vpop.f32.mrb[16].mxu0  ;;  %v3690_v20 = vadd.f32 %v3626_v35, %v3302_v18  ;;  %v15457_v18 = vld [vmem:[#allocation200_spill] sm:$0xff] }
 0x759   :  { %v3540_v47 = vpop.permute.xlu1 %3539  ;;  %v8268_v44 = vpack.i.bf16 %v4240_v51, %v4235_v19  ;;  %v4242_v4 = vpop.f32.mrb[17].mxu0  ;;  %v525_v51 = vmul.f32 %v10511_v11, %v15457_v18 }
 0x75a   :  { %v3627_v26 = vmul.f32 %v12725_v46, %v3540_v47  ;;  %v13196_v27 = vpop.f32.mrb[18].mxu0  ;;  %v3754_v48 = vmax.f32 %v3690_v20, 0.0  ;;  %v912_v20 = vmul.f32 %v15155_v54, %v12869_v6  ;;  %v1688_v6 = vmul.f32 %v10570_v62, %v12998_v56  ;;  %v15460_v56 = vld [vmem:[#allocation253_spill] sm:$0xff] }
 0x75b   :  { %v4245_v2 = vpop.f32.mrb[19].mxu0  ;;  %8269 = vrot.lane.b32.xlu1 %v8268_v44, %s9033_s22  ;;  %4447 = vmatmul.mubr.bf16.gmra.mrb[120].mxu0 %v13218_v28  ;;  %v2077_v33 = vmul.f32 %v10578_v29, %v15460_v56 }
 0x75c   :  { %v3691_v1 = vadd.f32 %v3627_v26, %v3303_v0  ;;  %v589_v2 = vadd.f32 %v12654_v17, %v525_v51 }
 0x75e   :  { %v3755_v37 = vmax.f32 %v3691_v1, 0.0  ;;  %v13202_v19 = vpop.permute.xlu1 %1623 }
 0x760   :  { %v3853_v3 = vpack.c.bf16 %v3755_v37, %v3754_v48  ;;  %v13204_v43 = vpop.f32.mrb[20].mxu0  ;;  %v15458_v48 = vld [vmem:[#allocation130_spill] sm:$0xff] }
 0x761   :  { %v4250_v16 = vpop.f32.mrb[21].mxu0  ;;  %v913_v37 = vmul.f32 %v15155_v54, %v15458_v48 }
 0x762   :  { %4700 = vmatpush1.bf16.msra.mxu1 %v3853_v3  ;;  %v13213_v14 = vpop.f32.mrb[22].mxu0  ;;  %v976_v3 = vadd.f32 %v912_v20, %v588_v30  ;;  %v1301_v16 = vmul.f32 %v10545_v7, %v12930_v59  ;;  %v2076_v20 = vmul.f32 %v10578_v29, %v13067_v58 }
 0x763   :  { %v13220_v24 = vpop.permute.xlu1 %2387  ;;  %4701 = vmatprep.subr.bf16.mxu1 %v14756_v10  ;;  %v4253_v35 = vpop.f32.mrb[23].mxu0  ;;  %v977_v18 = vadd.f32 %v913_v37, %v589_v2  ;;  %v15461_v37 = vld [vmem:[#allocation12_spill] sm:$0xff] }
 0x764   :  { %v15459_v35 = vld [vmem:[#allocation80_spill] sm:$0xff]  ;;  %v2464_v22 = vmul.f32 %v10582_v45, %v15461_v37 }
 0x765   :  { %v1300_v49 = vmul.f32 %v10545_v7, %v15459_v35 }
 0x767   :  { %v1364_v48 = vadd.f32 %v1300_v49, %v976_v3  ;;  %v2465_v3 = vmul.f32 %v10582_v45, %v13125_v13 }
 0x768   :  { %v3156_v47 = vpop.permute.xlu1 %3155  ;;  %v13229_v44 = vpop.f32.mrb[24].mxu0 }
 0x769   :  { %v4258_v21 = vpop.f32.mrb[25].mxu0  ;;  %v1752_v35 = vadd.f32 %v1688_v6, %v1364_v48 }
 0x76a   :  { %v13235_v0 = vpop.f32.mrb[26].mxu0 }
 0x76b   :  { %v4261_v26 = vpop.f32.mrb[27].mxu0 }
 0x76c   :  { %v3160_v1 = vpop.permute.xlu1 %3159  ;;  %v1365_v26 = vadd.f32 %v1301_v16, %v977_v18 }
 0x76e   :  { %v1753_v2 = vadd.f32 %v1689_v12, %v1365_v26 }
 0x770   :  { %v4264_v21 = vpop.f32.mrb[28].mxu0  ;;  %v2141_v58 = vadd.f32 %v2077_v33, %v1753_v2 }
 0x771   :  { %v13249_v17 = vpop.permute.xlu1 %2011  ;;  %v4266_v51 = vpop.f32.mrb[29].mxu0 }
 0x772   :  { %v4267_v59 = vpop.f32.mrb[30].mxu0  ;;  %v2140_v51 = vadd.f32 %v2076_v20, %v1752_v35  ;;  %v2529_v6 = vadd.f32 %v2465_v3, %v2141_v58 }
 0x773   :  { %v8278_v30 = vpack.i.bf16 %v4267_v59, %v4264_v21  ;;  %v4269_v4 = vpop.f32.mrb[31].mxu0  ;;  %v3240_v21 = vmul.f32 %v10611_v40, %v3156_v47  ;;  %v15462_v59 = vld [vmem:[#allocation68_spill] sm:$0xff]  ;;  %v527_v47 = vmul.f32 %v10511_v11, %v12918_v53 }
 0x774   :  { %v2852_v4 = vmul.f32 %v10585_v38, %v13174_v57  ;;  %v2528_v12 = vadd.f32 %v2464_v22, %v2140_v51  ;;  %v3241_v57 = vmul.f32 %v10611_v40, %v3160_v1  ;;  %v526_v22 = vmul.f32 %v10511_v11, %v12905_v63  ;;  %v8915_v63 = vld [vmem:[%s14964_s4] ss:$0 sm:$0xff]  ;;  %s9035_s4 = smov 96  }
 0x775   :  { %8279 = vrot.lane.b32.xlu1 %v8278_v30, %s9034_s27  ;;  %v2853_v30 = vmul.f32 %v10585_v38, %v15462_v59  ;;  %v914_v51 = vmul.f32 %v15155_v54, %v12988_v36 }
 0x776   :  { %v13260_v16 = vpop.permute.xlu1 %2775  ;;  %v2916_v35 = vadd.f32 %v2852_v4, %v2528_v12  ;;  %v590_v12 = vadd.f32 %v8915_v63, %v526_v22  ;;  %v15464_v22 = vld [vmem:[#allocation82_spill] sm:$0xff] }
 0x777   :  { %v2917_v33 = vadd.f32 %v2853_v30, %v2529_v6  ;;  %v15463_v6 = vld [vmem:[#allocation132_spill] sm:$0xff]  ;;  %v1303_v30 = vmul.f32 %v10545_v7, %v13051_v39  ;;  %v2079_v39 = vmul.f32 %v10578_v29, %v13164_v52  ;;  %v2466_v52 = vmul.f32 %v10582_v45, %v13220_v24 }
 0x778   :  { %v13264_v49 = vpop.f32.mrb[32].mxu0  ;;  %v3304_v56 = vadd.f32 %v3240_v21, %v2916_v35 }
 0x779   :  { %v4274_v18 = vpop.f32.mrb[33].mxu0  ;;  %v3305_v3 = vadd.f32 %v3241_v57, %v2917_v33  ;;  %v1690_v33 = vmul.f32 %v10570_v62, %v13114_v61  ;;  %v528_v61 = vmul.f32 %v10511_v11, %v13024_v15 }
 0x77a   :  { %v13267_v26 = vpop.f32.mrb[34].mxu0 }
 0x77b   :  { %v3544_v48 = vpop.permute.xlu1 %3543  ;;  %v8308_v20 = vpack.i.bf16 %v13267_v26, %v13264_v49  ;;  %v4277_v13 = vpop.f32.mrb[35].mxu0 }
 0x77c   :  { %v3628_v2 = vmul.f32 %v12725_v46, %v3544_v48  ;;  %v591_v48 = vadd.f32 %v8915_v63, %v527_v47  ;;  %v915_v13 = vmul.f32 %v15155_v54, %v15463_v6  ;;  %v1302_v47 = vmul.f32 %v10545_v7, %v15464_v22 }
 0x77e   :  { %v3692_v58 = vadd.f32 %v3628_v2, %v3304_v56  ;;  %v979_v56 = vadd.f32 %v915_v13, %v591_v48 }
 0x77f   :  { %v3548_v37 = vpop.permute.xlu1 %3547 }
 0x780   :  { %v3629_v4 = vmul.f32 %v12725_v46, %v3548_v37  ;;  %v13282_v18 = vpop.f32.mrb[36].mxu0  ;;  %v978_v46 = vadd.f32 %v914_v51, %v590_v12  ;;  %v3756_v35 = vmax.f32 %v3692_v58, 0.0  ;;  %v1691_v37 = vmul.f32 %v10570_v62, %v13123_v42  ;;  %v3552_v42 = vpop.permute.xlu0 %3551 }
 0x781   :  { %v4282_v1 = vpop.f32.mrb[37].mxu0 }
 0x782   :  { %v3693_v53 = vadd.f32 %v3629_v4, %v3305_v3  ;;  %v13287_v21 = vpop.f32.mrb[38].mxu0  ;;  %v1367_v4 = vadd.f32 %v1303_v30, %v979_v56  ;;  %v1366_v51 = vadd.f32 %v1302_v47, %v978_v46  ;;  %v2854_v56 = vmul.f32 %v10585_v38, %v13260_v16 }
 0x783   :  { %v8338_v36 = vpack.i.bf16 %v13287_v21, %v13282_v18  ;;  %v4285_v59 = vpop.f32.mrb[39].mxu0  ;;  %v8917_v18 = vld [vmem:[%s15377_s1] ss:$8 sps:$4 sm:$0xff]  }
 0x784   :  { %v3757_v57 = vmax.f32 %v3693_v53, 0.0  ;;  %v13295_v2 = vpop.permute.xlu1 %2399  ;;  %v1754_v48 = vadd.f32 %v1690_v33, %v1366_v51  ;;  %v1755_v53 = vadd.f32 %v1691_v37, %v1367_v4  ;;  %v15465_v59 = vld [vmem:[#allocation255_spill] sm:$0xff]  ;;  %v592_v33 = vadd.f32 %v8915_v63, %v528_v61 }
 0x785   :  { %v2078_v46 = vmul.f32 %v10578_v29, %v15465_v59  ;;  %v529_v37 = vmul.f32 %v10511_v11, %v13035_v41 }
 0x786   :  { %v3854_v3 = vpack.c.bf16 %v3757_v57, %v3756_v35  ;;  %v2143_v30 = vadd.f32 %v2079_v39, %v1755_v53  ;;  %v916_v35 = vmul.f32 %v15155_v54, %v13109_v5  ;;  %v15466_v57 = vld [vmem:[#allocation177_spill] sm:$0xff] }
 0x787   :  { %v2467_v22 = vmul.f32 %v10582_v45, %v15466_v57  ;;  %v2142_v47 = vadd.f32 %v2078_v46, %v1754_v48  ;;  %v593_v57 = vadd.f32 %v8915_v63, %v529_v37  ;;  %v8916_v63 = vld [vmem:[%s14960_s28 + $0x8] ss:$0 sm:$0xff]  ;;  %s15475_s28 = sld [smem:[#allocation278_spill]] }
 0x788   :  { %4702 = vmatpush1.bf16.msra.mxu1 %v3854_v3  ;;  %v13305_v58 = vpop.f32.mrb[40].mxu0  ;;  %v1304_v3 = vmul.f32 %v10545_v7, %v13140_v55  ;;  %v980_v39 = vadd.f32 %v916_v35, %v592_v33  ;;  %v15469_v35 = vld [vmem:[#allocation208_spill] sm:$0xff] }
 0x789   :  { %v3164_v1 = vpop.permute.xlu1 %3163  ;;  %4703 = vmatprep.subr.bf16.mxu1 %v14756_v10  ;;  %v4290_v12 = vpop.f32.mrb[41].mxu0  ;;  %v2531_v4 = vadd.f32 %v2467_v22, %v2143_v30  ;;  %v2530_v24 = vadd.f32 %v2466_v52, %v2142_v47  ;;  %v15468_v52 = vld [vmem:[#allocation134_spill] sm:$0xff]  ;;  %v1692_v22 = vmul.f32 %v10570_v62, %v15469_v35  ;;  %v1305_v47 = vmul.f32 %v10545_v7, %v13148_v23  ;;  %v15471_v23 = vld [vmem:[#allocation21_spill] sm:$0xff] }
 0x78a   :  { %v4291_v6 = vpop.f32.mrb[42].mxu0  ;;  %v3242_v51 = vmul.f32 %v10611_v40, %v3164_v1  ;;  %v3168_v12 = vpop.permute.xlu0 %3167  ;;  %v1368_v11 = vadd.f32 %v1304_v3, %v980_v39  ;;  %v2080_v39 = vmul.f32 %v10578_v29, %v15471_v23 }
 0x78b   :  { %v4293_v13 = vpop.f32.mrb[43].mxu0  ;;  %v2918_v59 = vadd.f32 %v2854_v56, %v2530_v24  ;;  %v3243_v1 = vmul.f32 %v10611_v40, %v3168_v12  ;;  %v3630_v56 = vmul.f32 %v8916_v63, %v3552_v42  ;;  %v1693_v24 = vmul.f32 %v10570_v62, %v13202_v19 }
 0x78c   :  { %v15467_v13 = vld [vmem:[#allocation38_spill] sm:$0xff]  ;;  %v1756_v33 = vadd.f32 %v1692_v22, %v1368_v11  ;;  %v2469_v19 = vmul.f32 %v10582_v45, %v13295_v2 }
 0x78d   :  { %v2855_v16 = vmul.f32 %v10585_v38, %v15467_v13  ;;  %v3306_v30 = vadd.f32 %v3242_v51, %v2918_v59  ;;  %v15472_v11 = vld [vmem:[#allocation214_spill] sm:$0xff] }
 0x78e   :  { %v2784_v15 = vpop.permute.xlu1 %2783 }
 0x78f   :  { %v2919_v55 = vadd.f32 %v2855_v16, %v2531_v4  ;;  %v15470_v4 = vpack.i.bf16 %v13204_v43, %v13196_v27  ;;  %v3694_v51 = vadd.f32 %v3630_v56, %v3306_v30  ;;  %v2144_v27 = vadd.f32 %v2080_v39, %v1756_v33  ;;  %v3176_v30 = vpop.permute.xlu0 %3175 }
 0x790   :  { %v4296_v5 = vpop.f32.mrb[44].mxu0  ;;  %v15473_v56 = vpack.i.bf16 %v13229_v44, %v13213_v14 }
 0x791   :  { %v8288_v53 = vpack.i.bf16 %v4296_v5, %v4291_v6  ;;  %v4298_v48 = vpop.f32.mrb[45].mxu0  ;;  %v917_v6 = vmul.f32 %v15155_v54, %v15468_v52  ;;  %v3307_v54 = vadd.f32 %v3243_v1, %v2919_v55  ;;  %v3758_v59 = vmax.f32 %v3694_v51, 0.0 }
 0x792   :  { %v2788_v61 = vpop.permute.xlu1 %2787  ;;  %v4299_v46 = vpop.f32.mrb[46].mxu0  ;;  %v2081_v48 = vmul.f32 %v10578_v29, %v13249_v17  ;;  %v2856_v17 = vmul.f32 %v10585_v38, %v2784_v15  ;;  %v3245_v15 = vmul.f32 %v10611_v40, %v3176_v30 }
 0x793   :  { %v4301_v41 = vpop.f32.mrb[47].mxu0  ;;  %8289 = vrot.lane.b32.xlu1 %v8288_v53, %s9035_s4  ;;  %v981_v37 = vadd.f32 %v917_v6, %v593_v57  ;;  %v2857_v55 = vmul.f32 %v10585_v38, %v2788_v61 }
 0x794   :  { %v2468_v41 = vmul.f32 %v10582_v45, %v15472_v11  ;;  %v8923_v11 = vld [vmem:[%s15377_s1 + $0x30] ss:$8 sps:$4 sm:$0xff]  }
 0x795   :  { %v1369_v53 = vadd.f32 %v1305_v47, %v981_v37 }
 0x796   :  { %v2532_v26 = vadd.f32 %v2468_v41, %v2144_v27 }
 0x797   :  { %v3556_v3 = vpop.permute.xlu1 %3555  ;;  %8299 = vrot.lane.b32.xlu1 %v15470_v4, %s9033_s22  ;;  %v1757_v62 = vadd.f32 %v1693_v24, %v1369_v53 }
 0x798   :  { %v3631_v5 = vmul.f32 %v8916_v63, %v3556_v3  ;;  %v4304_v7 = vpop.f32.mrb[48].mxu0  ;;  %v2920_v35 = vadd.f32 %v2856_v17, %v2532_v26  ;;  %v8924_v17 = vld [vmem:[%s15377_s1 + $0x44] ss:$8 sps:$4 sm:$0xff]  }
 0x799   :  { %v8318_v12 = vpack.i.bf16 %v4304_v7, %v4299_v46  ;;  %v4306_v42 = vpop.f32.mrb[49].mxu0  ;;  %v2145_v29 = vadd.f32 %v2081_v48, %v1757_v62  ;;  %v8920_v48 = vld [vmem:[%s15377_s1 + $0x24] ss:$8 sps:$4 sm:$0xff]  }
 0x79a   :  { %v3695_v13 = vadd.f32 %v3631_v5, %v3307_v54  ;;  %v4307_v16 = vpop.f32.mrb[50].mxu0  ;;  %v8919_v42 = vld [vmem:[%s15377_s1 + $0x10] ss:$8 sps:$4 sm:$0xff]  }
 0x79b   :  { %v4309_v43 = vpop.f32.mrb[51].mxu0  ;;  %8309 = vrot.lane.b32.xlu1 %v8308_v20, %s9034_s27  ;;  %v2533_v49 = vadd.f32 %v2469_v19, %v2145_v29  ;;  %v8922_v19 = vld [vmem:[%s15377_s1 + $0x34] ss:$8 sps:$4 sm:$0xff]  }
 0x79c   :  { %v3759_v46 = vmax.f32 %v3695_v13, 0.0  ;;  %v3172_v57 = vpop.permute.xlu1 %3171  ;;  %v8921_v43 = vld [vmem:[%s15377_s1 + $0x20] ss:$8 sps:$4 sm:$0xff]  }
 0x79d   :  { %v3244_v20 = vmul.f32 %v10611_v40, %v3172_v57  ;;  %v2921_v22 = vadd.f32 %v2857_v55, %v2533_v49  ;;  %v8925_v49 = vld [vmem:[%s15377_s1 + $0x40] ss:$8 sps:$4 sm:$0xff]  }
 0x79e   :  { %v3855_v1 = vpack.c.bf16 %v3759_v46, %v3758_v59 }
 0x79f   :  { %8319 = vrot.lane.b32.xlu1 %v8318_v12, %s9035_s4  ;;  %v3308_v33 = vadd.f32 %v3244_v20, %v2920_v35  ;;  %v3309_v3 = vadd.f32 %v3245_v15, %v2921_v22  ;;  %v8927_v35 = vld [vmem:[%s15377_s1 + $0x50] ss:$8 sps:$4 sm:$0xff]  }
 0x7a0   :  { %4704 = vmatpush1.bf16.msra.mxu1 %v3855_v1  ;;  %v4312_v2 = vpop.f32.mrb[52].mxu0 }
 0x7a1   :  { %v3560_v52 = vpop.permute.xlu1 %3559  ;;  %4705 = vmatprep.subr.bf16.mxu1 %v14756_v10  ;;  %v8348_v6 = vpack.i.bf16 %v4312_v2, %v4307_v16  ;;  %v4314_v45 = vpop.f32.mrb[53].mxu0  ;;  %v8926_v2 = vld [vmem:[%s15377_s1 + $0x54] ss:$8 sps:$4 sm:$0xff]  }
 0x7a2   :  { %v3632_v38 = vmul.f32 %v8916_v63, %v3560_v52  ;;  %v13362_v61 = vpop.f32.mrb[54].mxu0 }
 0x7a3   :  { %v4317_v47 = vpop.f32.mrb[55].mxu0  ;;  %8329 = vrot.lane.b32.xlu1 %v15473_v56, %s9033_s22  ;;  %v8928_v56 = vld [vmem:[%s15377_s1 + $0x64] ss:$8 sps:$4 sm:$0xff]  }
 0x7a4   :  { %v3696_v4 = vadd.f32 %v3632_v38, %v3308_v33  ;;  %v8657_v38 = vld [vmem:[%s15474_s5 + $0x40] sm:$0xff]  }
 0x7a5   :  { %v3564_v37 = vpop.permute.xlu1 %3563  ;;  %v8658_v47 = vld [vmem:[%s15474_s5] sm:$0xff]   ;;  %7570 = vmatprep.subr.bf16.mxu0 %v8657_v38 }
 0x7a6   :  { %v3633_v10 = vmul.f32 %v8916_v63, %v3564_v37  ;;  %v3760_v51 = vmax.f32 %v3696_v4, 0.0  ;;  %v8659_v37 = vld [vmem:[%s15474_s5 + $0x48] sm:$0xff]   ;;  %7571 = vmatpush3.bf16.msra.mxu0 %v8658_v47 }
 0x7a7   :  { %8339 = vrot.lane.b32.xlu1 %v8338_v36, %s9034_s27  ;;  %v8918_v36 = vld [vmem:[%s15377_s1 + $0x14] ss:$8 sps:$4 sm:$0xff]   ;;  %7572 = vmatprep.subr.bf16.mxu0 %v8659_v37 }
 0x7a8   :  { %v3697_v40 = vadd.f32 %v3633_v10, %v3309_v3  ;;  %v13372_v54 = vpop.f32.mrb[56].mxu0  ;;  %v8660_v10 = vld [vmem:[%s15474_s5 + $0x8] sm:$0xff]   ;;  %v8674_v37 = vld [vmem:[%s15474_s5 + $0x38] sm:$0xff]  }
 0x7a9   :  { %v4322_v24 = vpop.f32.mrb[57].mxu0 }
 0x7aa   :  { %v3761_v5 = vmax.f32 %v3697_v40, 0.0  ;;  %v13374_v7 = vpop.f32.mrb[58].mxu0  ;;  %v8929_v40 = vld [vmem:[%s15377_s1 + $0x60] ss:$8 sps:$4 sm:$0xff]   ;;  %7573 = vmatpush3.bf16.msra.mxu0 %v8660_v10 }
 0x7ab   :  { %v4325_v14 = vpop.f32.mrb[59].mxu0  ;;  %8349 = vrot.lane.b32.xlu1 %v8348_v6, %s9035_s4 }
 0x7ac   :  { %v3856_v44 = vpack.c.bf16 %v3761_v5, %v3760_v51  ;;  %v8661_v51 = vld [vmem:[%s15474_s5 + $0x50] sm:$0xff]  }
 0x7ad   :  { %v8930_v5 = vld [vmem:[%s15377_s1 + $0x74] ss:$8 sps:$4 sm:$0xff]   ;;  %7574 = vmatprep.subr.bf16.mxu0 %v8661_v51  ;;  %v8936_v51 = vld [vmem:[%s15377_s1 + $0xa4] ss:$8 sps:$4 sm:$0xff]  }
 0x7ae   :  { %4706 = vmatpush1.bf16.msra.mxu1 %v3856_v44  ;;  %v8662_v44 = vld [vmem:[%s15474_s5 + $0x10] sm:$0xff]  }
 0x7af   :  { %7575 = vmatpush3.bf16.msra.mxu0 %v8662_v44 }
 0x7b0   :  { %v13377_v23 = vpop.f32.mrb[60].mxu0 }
 0x7b1   :  { %4708 = vmatmul.mubr.bf16.vlgmr.msra.gmra.mrb[0].mxu1 %v8917_v18  ;;  %v4330_v21 = vpop.f32.mrb[61].mxu0 }
 0x7b2   :  { %4715 = vmatprep.mubr.bf16.mxu1 %v8918_v36  ;;  %v13385_v63 = vpop.f32.mrb[62].mxu0  ;;  %v8663_v36 = vld [vmem:[%s15474_s5 + $0x58] sm:$0xff]  }
 0x7b3   :  { %v4333_v39 = vpop.f32.mrb[63].mxu0  ;;  %7576 = vmatprep.subr.bf16.mxu0 %v8663_v36 }
 0x7b8   :  { %v13387_v12 = vpop.f32.mrb[64].mxu0 }
 0x7b9   :  { %4716 = vmatmul.mubr.bf16.gmra.mrb[4].mxu1 %v8919_v42  ;;  %v4338_v53 = vpop.f32.mrb[65].mxu0  ;;  %v8664_v42 = vld [vmem:[%s15474_s5 + $0x18] sm:$0xff]  }
 0x7ba   :  { %4723 = vmatprep.mubr.bf16.mxu1 %v8920_v48  ;;  %v13395_v13 = vpop.f32.mrb[66].mxu0  ;;  %v8931_v53 = vld [vmem:[%s15377_s1 + $0x70] ss:$8 sps:$4 sm:$0xff]   ;;  %7577 = vmatpush3.bf16.msra.mxu0 %v8664_v42  ;;  %v8937_v42 = vld [vmem:[%s15377_s1 + $0xa0] ss:$8 sps:$4 sm:$0xff]  }
 0x7bb   :  { %v4341_v16 = vpop.f32.mrb[67].mxu0 }
 0x7bc   :  { %v8665_v16 = vld [vmem:[%s15474_s5 + $0x60] sm:$0xff]  }
 0x7bd   :  { %7578 = vmatprep.subr.bf16.mxu0 %v8665_v16 }
 0x7c0   :  { %v13397_v27 = vpop.f32.mrb[68].mxu0 }
 0x7c1   :  { %4724 = vmatmul.mubr.bf16.gmra.mrb[8].mxu1 %v8921_v43  ;;  %v4346_v62 = vpop.f32.mrb[69].mxu0  ;;  %v8932_v43 = vld [vmem:[%s15377_s1 + $0x84] ss:$8 sps:$4 sm:$0xff]  }
 0x7c2   :  { %4731 = vmatprep.mubr.bf16.mxu1 %v8922_v19  ;;  %v4347_v59 = vpop.f32.mrb[70].mxu0  ;;  %v8666_v19 = vld [vmem:[%s15474_s5 + $0x20] sm:$0xff]  }
 0x7c3   :  { %v4349_v46 = vpop.f32.mrb[71].mxu0  ;;  %7579 = vmatpush3.bf16.msra.mxu0 %v8666_v19 }
 0x7c8   :  { %v4352_v57 = vpop.f32.mrb[72].mxu0 }
 0x7c9   :  { %4732 = vmatmul.mubr.bf16.gmra.mrb[12].mxu1 %v8923_v11  ;;  %v8263_v41 = vpack.i.bf16 %v4352_v57, %v4347_v59  ;;  %v4354_v29 = vpop.f32.mrb[73].mxu0  ;;  %v8667_v57 = vld [vmem:[%s15474_s5 + $0x68] sm:$0xff]  }
 0x7ca   :  { %4739 = vmatprep.mubr.bf16.mxu1 %v8924_v17  ;;  %v13411_v55 = vpop.f32.mrb[74].mxu0  ;;  %v8668_v11 = vld [vmem:[%s15474_s5 + $0x28] sm:$0xff]   ;;  %7580 = vmatprep.subr.bf16.mxu0 %v8667_v57 }
 0x7cb   :  { %v4357_v1 = vpop.f32.mrb[75].mxu0  ;;  %8264 = vrot.lane.b32.xlu0 %v8263_v41, %s9033_s22  ;;  %v8933_v29 = vld [vmem:[%s15377_s1 + $0x80] ss:$8 sps:$4 sm:$0xff]   ;;  %7581 = vmatpush3.bf16.msra.mxu0 %v8668_v11 }
 0x7cc   :  { %v3824_v1 = vld [vmem:[%s15377_s1 + $0x1f0] sm:$0xff] }
 0x7d0   :  { %v13414_v30 = vpop.f32.mrb[76].mxu0 }
 0x7d1   :  { %4740 = vmatmul.mubr.bf16.gmra.mrb[16].mxu1 %v8925_v49  ;;  %v8293_v26 = vpack.i.bf16 %v13414_v30, %v13411_v55  ;;  %v4362_v20 = vpop.f32.mrb[77].mxu0  ;;  %v8671_v49 = vld [vmem:[%s15474_s5 + $0x70] sm:$0xff]   ;;  %v8940_v55 = vld [vmem:[%s15377_s1 + $0xc4] ss:$8 sps:$4 sm:$0xff]  }
 0x7d2   :  { %4747 = vmatprep.mubr.bf16.mxu1 %v8926_v2  ;;  %v13424_v52 = vpop.f32.mrb[78].mxu0  ;;  %v8934_v20 = vld [vmem:[%s15377_s1 + $0x94] ss:$8 sps:$4 sm:$0xff]   ;;  %7582 = vmatprep.subr.bf16.mxu0 %v8671_v49 }
 0x7d3   :  { %v4365_v6 = vpop.f32.mrb[79].mxu0 }
 0x7d4   :  { %v13509_v6 = vcombine.high %v3824_v1, %v3824_v1 }
 0x7d6   :  { %4454 = vmatprep.mubr.bf16.mxu0 %v13509_v6 }
 0x7d8   :  { %v13426_v45 = vpop.f32.mrb[80].mxu0 }
 0x7d9   :  { %4748 = vmatmul.mubr.bf16.gmra.mrb[20].mxu1 %v8927_v35  ;;  %v8323_v22 = vpack.i.bf16 %v13426_v45, %v13424_v52  ;;  %v4370_v15 = vpop.f32.mrb[81].mxu0  ;;  %v13511_v35 = vcombine.low %v3824_v1, %v3824_v1  ;;  %v8943_v52 = vld [vmem:[%s15377_s1 + $0xd0] ss:$8 sps:$4 sm:$0xff]  }
 0x7da   :  { %4755 = vmatprep.mubr.bf16.mxu1 %v8928_v56  ;;  %v13442_v33 = vpop.f32.mrb[82].mxu0  ;;  %v8672_v15 = vld [vmem:[%s15474_s5 + $0x30] sm:$0xff]   ;;  %v8673_v56 = vld [vmem:[%s15474_s5 + $0x78] sm:$0xff]  }
 0x7db   :  { %v4373_v3 = vpop.f32.mrb[83].mxu0  ;;  %4455 = vmatmul.mubr.bf16.gmra.mrb[124].mxu0 %v13511_v35 }
 0x7dc   :  { %7583 = vmatpush3.bf16.msra.mxu0 %v8672_v15 }
 0x7dd   :  { %7584 = vmatprep.subr.bf16.mxu0 %v8673_v56 }
 0x7e0   :  { %v4376_v4 = vpop.f32.mrb[84].mxu0  ;;  %7585 = vmatpush3.bf16.msra.mxu0 %v8674_v37 }
 0x7e1   :  { %4756 = vmatmul.mubr.bf16.gmra.mrb[24].mxu1 %v8929_v40  ;;  %v4378_v24 = vpop.f32.mrb[85].mxu0  ;;  %v8270_v40 = vpop.permute.xlu1 %8269 }
 0x7e2   :  { %4763 = vmatprep.mubr.bf16.mxu1 %v8930_v5  ;;  %v4379_v14 = vpop.f32.mrb[86].mxu0  ;;  %v8271_v44 = vunpack.i.l.bf16 %v8270_v40 }
 0x7e3   :  { %v8273_v18 = vpack.i.bf16 %v4379_v14, %v4376_v4  ;;  %v4381_v21 = vpop.f32.mrb[87].mxu0  ;;  %v8935_v4 = vld [vmem:[%s15377_s1 + $0x90] ss:$8 sps:$4 sm:$0xff]   ;;  %v8272_v14 = vunpack.i.h.bf16 %v8270_v40 }
 0x7e4   :  { %v4631_v57 = vsel %vm4630_vm0, %v13127_v25, %v8271_v44 }
 0x7e5   :  { %8274 = vrot.lane.b32.xlu0 %v8273_v18, %s9034_s27 }
 0x7e7   :  { %v8280_v18 = vpop.permute.xlu1 %8279 }
 0x7e8   :  { %v13466_v39 = vpop.f32.mrb[88].mxu0  ;;  %v8281_v16 = vunpack.i.l.bf16 %v8280_v18 }
 0x7e9   :  { %4764 = vmatmul.mubr.bf16.gmra.mrb[28].mxu1 %v8931_v53  ;;  %v4386_v48 = vpop.f32.mrb[89].mxu0 }
 0x7ea   :  { %4771 = vmatprep.mubr.bf16.mxu1 %v8932_v43  ;;  %v13480_v62 = vpop.f32.mrb[90].mxu0  ;;  %v8282_v48 = vunpack.i.h.bf16 %v8280_v18  ;;  %v8938_v43 = vld [vmem:[%s15377_s1 + $0xb4] ss:$8 sps:$4 sm:$0xff]  }
 0x7eb   :  { %v8303_v59 = vpack.i.bf16 %v13480_v62, %v13466_v39  ;;  %v4389_v46 = vpop.f32.mrb[91].mxu0 }
 0x7ec   :  { %v4632_v46 = vsel %vm4630_vm0, %v13132_v9, %v8272_v14 }
 0x7f0   :  { %v13493_v41 = vpop.f32.mrb[92].mxu0 }
 0x7f1   :  { %4772 = vmatmul.mubr.bf16.gmra.mrb[32].mxu1 %v8933_v29  ;;  %v4394_v17 = vpop.f32.mrb[93].mxu0  ;;  %v4639_v29 = vsel %vm4638_vm1, %v4631_v57, %v8281_v16 }
 0x7f2   :  { %4779 = vmatprep.mubr.bf16.mxu1 %v8934_v20  ;;  %v13507_v2 = vpop.f32.mrb[94].mxu0  ;;  %v4640_v17 = vsel %vm4638_vm1, %v4632_v46, %v8282_v48 }
 0x7f3   :  { %v8333_v38 = vpack.i.bf16 %v13507_v2, %v13493_v41  ;;  %v4397_v47 = vpop.f32.mrb[95].mxu0 }
 0x7f4   :  { %v8939_v47 = vld [vmem:[%s15377_s1 + $0xb0] ss:$8 sps:$4 sm:$0xff]  }
 0x7f8   :  { %v13526_v3 = vpop.f32.mrb[96].mxu0 }
 0x7f9   :  { %4780 = vmatmul.mubr.bf16.gmra.mrb[36].mxu1 %v8935_v4  ;;  %v4402_v10 = vpop.f32.mrb[97].mxu0 }
 0x7fa   :  { %v4403_v24 = vpop.f32.mrb[98].mxu0  ;;  %4787 = vmatprep.mubr.bf16.mxu1 %v8936_v51 }
 0x7fb   :  { %v4405_v5 = vpop.f32.mrb[99].mxu0 }
 0x800   :  { %v4408_v21 = vpop.f32.mrb[100].mxu0 }
 0x801   :  { %v8283_v36 = vpack.i.bf16 %v4408_v21, %v4403_v24  ;;  %4788 = vmatmul.mubr.bf16.gmra.mrb[40].mxu1 %v8937_v42  ;;  %v4410_v53 = vpop.f32.mrb[101].mxu0 }
 0x802   :  { %4795 = vmatprep.mubr.bf16.mxu1 %v8938_v43  ;;  %v4411_v19 = vpop.f32.mrb[102].mxu0 }
 0x803   :  { %8284 = vrot.lane.b32.xlu0 %v8283_v36, %s9035_s4  ;;  %v4413_v11 = vpop.f32.mrb[103].mxu0  ;;  %v8941_v36 = vld [vmem:[%s15377_s1 + $0xc0] ss:$8 sps:$4 sm:$0xff]  }
 0x805   :  { %v8290_v1 = vpop.permute.xlu1 %8289 }
 0x806   :  { %v8292_v49 = vunpack.i.h.bf16 %v8290_v1  ;;  %v8291_v20 = vunpack.i.l.bf16 %v8290_v1 }
 0x807   :  { %8294 = vrot.lane.b32.xlu0 %v8293_v26, %s9033_s22 }
 0x808   :  { %v4416_v9 = vpop.f32.mrb[104].mxu0  ;;  %v13552_v25 = vsel %vm4646_vm2, %v4639_v29, %v8291_v20  ;;  %v13555_v15 = vsel %vm4646_vm2, %v4640_v17, %v8292_v49 }
 0x809   :  { %4796 = vmatmul.mubr.bf16.gmra.mrb[44].mxu1 %v8939_v47  ;;  %v8313_v56 = vpack.i.bf16 %v4416_v9, %v4411_v19  ;;  %v4418_v37 = vpop.f32.mrb[105].mxu0  ;;  %v5173_v4 = vpack.c.bf16 %v13555_v15, %v13552_v25  ;;  %v8300_v10 = vpop.permute.xlu1 %8299 }
 0x80a   :  { %4803 = vmatprep.mubr.bf16.mxu1 %v8940_v55  ;;  %v4419_v30 = vpop.f32.mrb[106].mxu0  ;;  %v8302_v26 = vunpack.i.h.bf16 %v8300_v10  ;;  %v8301_v40 = vunpack.i.l.bf16 %v8300_v10  ;;  %v8946_v37 = vld [vmem:[%s15377_s1 + $0xf4] ss:$8 sps:$4 sm:$0xff]   ;;  %v8947_v10 = vld [vmem:[%s15377_s1 + $0xf0] ss:$8 sps:$4 sm:$0xff]  }
 0x80b   :  { %8304 = vrot.lane.b32.xlu0 %v8303_v59, %s9034_s27  ;;  %v4421_v24 = vpop.f32.mrb[107].mxu0 }
 0x80c   :  { %v4634_v5 = vsel %vm4630_vm0, %v13142_v31, %v8302_v26  ;;  %v4633_v14 = vsel %vm4630_vm0, %v13134_v32, %v8301_v40  ;;  %v8942_v32 = vld [vmem:[%s15377_s1 + $0xd4] ss:$8 sps:$4 sm:$0xff]   ;;  %v8948_v26 = vld [vmem:[%s15377_s1 + $0x104] ss:$8 sps:$4 sm:$0xff]   ;;  %v9036_v40 = vmov 0.0  }
 0x80d   :  { %v8310_v51 = vpop.permute.xlu1 %8309  ;;  %7743 = vmatprep.subr.bf16.mxu1 %v9036_v40  ;;  %7775 = vmatprep.subr.bf16.mxu0 %v9036_v40 }
 0x80e   :  { %v8312_v44 = vunpack.i.h.bf16 %v8310_v51  ;;  %v8311_v18 = vunpack.i.l.bf16 %v8310_v51 }
 0x80f   :  { %8314 = vrot.lane.b32.xlu0 %v8313_v56, %s9035_s4 }
 0x810   :  { %v4424_v21 = vpop.f32.mrb[108].mxu0  ;;  %v4641_v62 = vsel %vm4638_vm1, %v4633_v14, %v8311_v18  ;;  %v4642_v59 = vsel %vm4638_vm1, %v4634_v5, %v8312_v44  ;;  %v8676_v44 = vld [vmem:[%s15474_s5 + $0x88] sm:$0xff]  }
 0x811   :  { %4804 = vmatmul.mubr.bf16.gmra.mrb[48].mxu1 %v8941_v36  ;;  %v8343_v39 = vpack.i.bf16 %v4424_v21, %v4419_v30  ;;  %v8320_v42 = vpop.permute.xlu1 %8319  ;;  %v4426_v31 = vpop.f32.mrb[109].mxu0  ;;  %v8675_v30 = vld [vmem:[%s15474_s5 + $0x80] sm:$0xff]  }
 0x812   :  { %4811 = vmatprep.mubr.bf16.mxu1 %v8942_v32  ;;  %v8322_v53 = vunpack.i.h.bf16 %v8320_v42  ;;  %v8321_v48 = vunpack.i.l.bf16 %v8320_v42  ;;  %v13628_v55 = vpop.f32.mrb[110].mxu0  ;;  %7744 = vmatpush3.bf16.msra.mxu1 %v8675_v30  ;;  %v8949_v36 = vld [vmem:[%s15377_s1 + $0x100] ss:$8 sps:$4 sm:$0xff]  }
 0x813   :  { %8324 = vrot.lane.b32.xlu0 %v8323_v22, %s9033_s22  ;;  %v8944_v22 = vld [vmem:[%s15377_s1 + $0xe4] ss:$8 sps:$4 sm:$0xff]   ;;  %v4429_v24 = vpop.f32.mrb[111].mxu0  ;;  %7745 = vmatprep.subr.bf16.mxu1 %v9036_v40 }
 0x814   :  { %v13587_v16 = vsel %vm4646_vm2, %v4641_v62, %v8321_v48  ;;  %v13590_v43 = vsel %vm4646_vm2, %v4642_v59, %v8322_v53  ;;  %v8950_v62 = vld [vmem:[%s15377_s1 + $0x114] ss:$8 sps:$4 sm:$0xff]   ;;  %v8951_v53 = vld [vmem:[%s15377_s1 + $0x110] ss:$8 sps:$4 sm:$0xff]  }
 0x815   :  { %v8330_v19 = vpop.permute.xlu1 %8329  ;;  %v5176_v46 = vpack.c.bf16 %v13590_v43, %v13587_v16 }
 0x816   :  { %v8332_v57 = vunpack.i.h.bf16 %v8330_v19  ;;  %v8331_v11 = vunpack.i.l.bf16 %v8330_v19  ;;  %7746 = vmatpush3.bf16.msra.mxu1 %v8676_v44  ;;  %v8952_v19 = vld [vmem:[%s15377_s1 + $0x124] ss:$8 sps:$4 sm:$0xff]  }
 0x817   :  { %8334 = vrot.lane.b32.xlu0 %v8333_v38, %s9034_s27  ;;  %7819 = vmatprep.subr.bf16.mxu1 %v9036_v40 }
 0x818   :  { %v4636_v29 = vsel %vm4630_vm0, %v13162_v34, %v8332_v57  ;;  %v4635_v17 = vsel %vm4630_vm0, %v13154_v60, %v8331_v11  ;;  %v8945_v60 = vld [vmem:[%s15377_s1 + $0xe0] ss:$8 sps:$4 sm:$0xff]   ;;  %v13637_v51 = vpop.f32.mrb[112].mxu0 }
 0x819   :  { %4812 = vmatmul.mubr.bf16.gmra.mrb[52].mxu1 %v8943_v52  ;;  %v8340_v45 = vpop.permute.xlu1 %8339  ;;  %v4434_v5 = vpop.f32.mrb[113].mxu0 }
 0x81a   :  { %4819 = vmatprep.mubr.bf16.mxu1 %v8944_v22  ;;  %v8342_v1 = vunpack.i.h.bf16 %v8340_v45  ;;  %v8341_v41 = vunpack.i.l.bf16 %v8340_v45  ;;  %v13641_v14 = vpop.f32.mrb[114].mxu0  ;;  %v8953_v22 = vld [vmem:[%s15377_s1 + $0x120] ss:$8 sps:$4 sm:$0xff]  }
 0x81b   :  { %8344 = vrot.lane.b32.xlu0 %v8343_v39, %s9035_s4  ;;  %v5175_v18 = vpack.c.bf16 %v13641_v14, %v13637_v51  ;;  %v4437_v21 = vpop.f32.mrb[115].mxu0 }
 0x81c   :  { %v4643_v2 = vsel %vm4638_vm1, %v4635_v17, %v8341_v41  ;;  %v4644_v38 = vsel %vm4638_vm1, %v4636_v29, %v8342_v1  ;;  %v8954_v29 = vld [vmem:[%s15377_s1 + $0x134] ss:$8 sps:$4 sm:$0xff]   ;;  %v8955_v17 = vld [vmem:[%s15377_s1 + $0x130] ss:$8 sps:$4 sm:$0xff]   ;;  %v8956_v1 = vld [vmem:[%s15377_s1 + $0x144] ss:$8 sps:$4 sm:$0xff]  }
 0x81d   :  { %v8350_v49 = vpop.permute.xlu1 %8349  ;;  %v8957_v41 = vld [vmem:[%s15377_s1 + $0x140] ss:$8 sps:$4 sm:$0xff]  }
 0x81e   :  { %v8352_v20 = vunpack.i.h.bf16 %v8350_v49  ;;  %v8351_v9 = vunpack.i.l.bf16 %v8350_v49  ;;  %v8960_v49 = vld [vmem:[%s15377_s1 + $0x164] ss:$8 sps:$4 sm:$0xff]   ;;  %v8965_v21 = vld [vmem:[%s15377_s1 + $0x180] ss:$8 sps:$4 sm:$0xff]  }
 0x820   :  { %v13612_v47 = vsel %vm4646_vm2, %v4643_v2, %v8351_v9  ;;  %v13615_v56 = vsel %vm4646_vm2, %v4644_v38, %v8352_v20  ;;  %v8958_v2 = vld [vmem:[%s15377_s1 + $0x154] ss:$8 sps:$4 sm:$0xff]   ;;  %v8959_v38 = vld [vmem:[%s15377_s1 + $0x150] ss:$8 sps:$4 sm:$0xff]   ;;  %v8961_v20 = vld [vmem:[%s15377_s1 + $0x160] ss:$8 sps:$4 sm:$0xff]  }
 0x821   :  { %4820 = vmatmul.mubr.bf16.gmra.mrb[56].mxu1 %v8945_v60  ;;  %v5179_v34 = vpack.c.bf16 %v13615_v56, %v13612_v47  ;;  %v8962_v9 = vld [vmem:[%s15377_s1 + $0x174] ss:$8 sps:$4 sm:$0xff]   ;;  %v8963_v60 = vld [vmem:[%s15377_s1 + $0x170] ss:$8 sps:$4 sm:$0xff]  }
 0x822   :  { %4827 = vmatprep.mubr.bf16.mxu1 %v8946_v37 }
 0x826   :  { %v13652_v39 = vpop.f32.mrb[116].mxu0 }
 0x827   :  { %v4442_v59 = vpop.f32.mrb[117].mxu0 }
 0x828   :  { %v13657_v42 = vpop.f32.mrb[118].mxu0  ;;  %v8966_v59 = vld [vmem:[%s15377_s1 + $0x194] ss:$8 sps:$4 sm:$0xff]  }
 0x829   :  { %4828 = vmatmul.mubr.bf16.gmra.mrb[60].mxu1 %v8947_v10  ;;  %v5178_v31 = vpack.c.bf16 %v13657_v42, %v13652_v39  ;;  %v4445_v32 = vpop.f32.mrb[119].mxu0  ;;  %v8964_v10 = vld [vmem:[%s15377_s1 + $0x184] ss:$8 sps:$4 sm:$0xff]  }
 0x82a   :  { %4835 = vmatprep.mubr.bf16.mxu1 %v8948_v26 }
 0x82e   :  { %v13664_v48 = vpop.f32.mrb[120].mxu0 }
 0x82f   :  { %v4450_v57 = vpop.f32.mrb[121].mxu0 }
 0x830   :  { %v13669_v11 = vpop.f32.mrb[122].mxu0 }
 0x831   :  { %4836 = vmatmul.mubr.bf16.gmra.mrb[64].mxu1 %v8949_v36  ;;  %v5181_v52 = vpack.c.bf16 %v13669_v11, %v13664_v48  ;;  %v4453_v45 = vpop.f32.mrb[123].mxu0 }
 0x832   :  { %4843 = vmatprep.mubr.bf16.mxu1 %v8950_v62 }
 0x839   :  { %4844 = vmatmul.mubr.bf16.gmra.mrb[68].mxu1 %v8951_v53 }
 0x83a   :  { %4851 = vmatprep.mubr.bf16.mxu1 %v8952_v19 }
 0x83d   :  { %v8265_v37 = vpop.permute.xlu0 %8264 }
 0x83e   :  { %v8267_v30 = vunpack.i.h.bf16 %v8265_v37  ;;  %v8266_v26 = vunpack.i.l.bf16 %v8265_v37 }
 0x840   :  { %v4655_v36 = vsel %vm4630_vm0, %v13374_v7, %v8267_v30  ;;  %v4654_v62 = vsel %vm4630_vm0, %v13372_v54, %v8266_v26  ;;  %v8967_v54 = vld [vmem:[%s15377_s1 + $0x190] ss:$8 sps:$4 sm:$0xff]   ;;  %v8969_v26 = vld [vmem:[%s15377_s1 + $0x1a0] ss:$8 sps:$4 sm:$0xff]  }
 0x841   :  { %4852 = vmatmul.mubr.bf16.gmra.mrb[72].mxu1 %v8953_v22 }
 0x842   :  { %4859 = vmatprep.mubr.bf16.mxu1 %v8954_v29 }
 0x849   :  { %4860 = vmatmul.mubr.bf16.gmra.mrb[76].mxu1 %v8955_v17 }
 0x84a   :  { %4867 = vmatprep.mubr.bf16.mxu1 %v8956_v1 }
 0x851   :  { %4868 = vmatmul.mubr.bf16.gmra.mrb[80].mxu1 %v8957_v41 }
 0x852   :  { %4875 = vmatprep.mubr.bf16.mxu1 %v8958_v2  ;;  %v8968_v2 = vld [vmem:[%s15377_s1 + $0x1a4] ss:$8 sps:$4 sm:$0xff]  }
 0x857   :  { %v8275_v24 = vpop.permute.xlu0 %8274 }
 0x858   :  { %v8277_v5 = vunpack.i.h.bf16 %v8275_v24  ;;  %v8276_v44 = vunpack.i.l.bf16 %v8275_v24 }
 0x859   :  { %4876 = vmatmul.mubr.bf16.gmra.mrb[84].mxu1 %v8959_v38 }
 0x85a   :  { %4883 = vmatprep.mubr.bf16.mxu1 %v8960_v49  ;;  %v4662_v32 = vsel %vm4638_vm1, %v4655_v36, %v8277_v5  ;;  %v4661_v53 = vsel %vm4638_vm1, %v4654_v62, %v8276_v44 }
 0x861   :  { %4884 = vmatmul.mubr.bf16.gmra.mrb[88].mxu1 %v8961_v20 }
 0x862   :  { %4891 = vmatprep.mubr.bf16.mxu1 %v8962_v9 }
 0x869   :  { %4892 = vmatmul.mubr.bf16.gmra.mrb[92].mxu1 %v8963_v60 }
 0x86a   :  { %4899 = vmatprep.mubr.bf16.mxu1 %v8964_v10 }
 0x871   :  { %4900 = vmatmul.mubr.bf16.gmra.mrb[96].mxu1 %v8965_v21 }
 0x872   :  { %4907 = vmatprep.mubr.bf16.mxu1 %v8966_v59 }
 0x875   :  { %v8285_v19 = vpop.permute.xlu0 %8284 }
 0x876   :  { %v8287_v57 = vunpack.i.h.bf16 %v8285_v19  ;;  %v8286_v45 = vunpack.i.l.bf16 %v8285_v19  ;;  %v8971_v19 = vld [vmem:[%s15377_s1 + $0x1b0] ss:$8 sps:$4 sm:$0xff]  }
 0x878   :  { %v4668_v22 = vsel %vm4646_vm2, %v4661_v53, %v8286_v45  ;;  %v4669_v29 = vsel %vm4646_vm2, %v4662_v32, %v8287_v57 }
 0x879   :  { %v8295_v7 = vpop.permute.xlu0 %8294  ;;  %4908 = vmatmul.mubr.bf16.gmra.mrb[100].mxu1 %v8967_v54  ;;  %v5174_v17 = vpack.c.bf16 %v4669_v29, %v4668_v22 }
 0x87a   :  { %v8297_v1 = vunpack.i.h.bf16 %v8295_v7  ;;  %v8296_v41 = vunpack.i.l.bf16 %v8295_v7  ;;  %4915 = vmatprep.mubr.bf16.mxu1 %v8968_v2  ;;  %v8972_v7 = vld [vmem:[%s15377_s1 + $0x1c4] ss:$8 sps:$4 sm:$0xff]  }
 0x87b   :  { %5398 = vmatprep.mubr.bf16.mxu0 %v5174_v17 }
 0x87c   :  { %5399 = vmatmul.mubr.bf16.vlgmr.msra.gmra.mrb[128].mxu0 %v5173_v4  ;;  %v4657_v49 = vsel %vm4630_vm0, %v13385_v63, %v8297_v1  ;;  %v4656_v20 = vsel %vm4630_vm0, %v13377_v23, %v8296_v41  ;;  %v8970_v63 = vld [vmem:[%s15377_s1 + $0x1b4] ss:$8 sps:$4 sm:$0xff]  }
 0x87d   :  { %v8305_v38 = vpop.permute.xlu0 %8304 }
 0x87e   :  { %v8307_v9 = vunpack.i.h.bf16 %v8305_v38  ;;  %v8306_v60 = vunpack.i.l.bf16 %v8305_v38 }
 0x880   :  { %v4663_v37 = vsel %vm4638_vm1, %v4656_v20, %v8306_v60  ;;  %v4664_v10 = vsel %vm4638_vm1, %v4657_v49, %v8307_v9  ;;  %v8973_v49 = vld [vmem:[%s15377_s1 + $0x1c0] ss:$8 sps:$4 sm:$0xff]   ;;  %v8974_v9 = vld [vmem:[%s15377_s1 + $0x1d4] ss:$8 sps:$4 sm:$0xff]  }
 0x881   :  { %v8315_v30 = vpop.permute.xlu0 %8314  ;;  %4916 = vmatmul.mubr.bf16.gmra.mrb[104].mxu1 %v8969_v26  ;;  %v8975_v26 = vld [vmem:[%s15377_s1 + $0x1d0] ss:$8 sps:$4 sm:$0xff]   ;;  %s9038_s1 = smov [#allocation2]  }
 0x882   :  { %v8317_v25 = vunpack.i.h.bf16 %v8315_v30  ;;  %v8316_v15 = vunpack.i.l.bf16 %v8315_v30  ;;  %4923 = vmatprep.mubr.bf16.mxu1 %v8970_v63 }
 0x884   :  { %v13744_v23 = vpop.f32.mrb[0].mxu1  ;;  %v4670_v4 = vsel %vm4646_vm2, %v4663_v37, %v8316_v15  ;;  %v4671_v24 = vsel %vm4646_vm2, %v4664_v10, %v8317_v25 }
 0x885   :  { %v8325_v5 = vpop.permute.xlu0 %8324  ;;  %v4711_v44 = vpop.f32.mrb[1].mxu1  ;;  %v5177_v21 = vpack.c.bf16 %v4671_v24, %v4670_v4 }
 0x886   :  { %v8327_v36 = vunpack.i.h.bf16 %v8325_v5  ;;  %v8326_v62 = vunpack.i.l.bf16 %v8325_v5  ;;  %v13748_v59 = vpop.f32.mrb[2].mxu1 }
 0x887   :  { %v4714_v32 = vpop.f32.mrb[3].mxu1  ;;  %5406 = vmatprep.mubr.bf16.mxu0 %v5177_v21 }
 0x888   :  { %5407 = vmatmul.mubr.bf16.gmra.mrb[132].mxu0 %v5176_v46  ;;  %v4659_v57 = vsel %vm4630_vm0, %v13395_v13, %v8327_v36  ;;  %v4658_v45 = vsel %vm4630_vm0, %v13387_v12, %v8326_v62 }
 0x889   :  { %v8335_v53 = vpop.permute.xlu0 %8334  ;;  %4924 = vmatmul.mubr.bf16.gmra.mrb[108].mxu1 %v8971_v19 }
 0x88a   :  { %v8337_v22 = vunpack.i.h.bf16 %v8335_v53  ;;  %v8336_v29 = vunpack.i.l.bf16 %v8335_v53  ;;  %4931 = vmatprep.mubr.bf16.mxu1 %v8972_v7 }
 0x88c   :  { %v13763_v16 = vpop.f32.mrb[4].mxu1  ;;  %v4665_v43 = vsel %vm4638_vm1, %v4658_v45, %v8336_v29  ;;  %v4666_v46 = vsel %vm4638_vm1, %v4659_v57, %v8337_v22 }
 0x88d   :  { %v8345_v54 = vpop.permute.xlu0 %8344  ;;  %v4719_v17 = vpop.f32.mrb[5].mxu1 }
 0x88e   :  { %v8347_v1 = vunpack.i.h.bf16 %v8345_v54  ;;  %v8346_v13 = vunpack.i.l.bf16 %v8345_v54  ;;  %v13767_v41 = vpop.f32.mrb[6].mxu1 }
 0x88f   :  { %v4722_v12 = vpop.f32.mrb[7].mxu1 }
 0x890   :  { %v4672_v2 = vsel %vm4646_vm2, %v4665_v43, %v8346_v13  ;;  %v4673_v38 = vsel %vm4646_vm2, %v4666_v46, %v8347_v1 }
 0x891   :  { %4932 = vmatmul.mubr.bf16.gmra.mrb[112].mxu1 %v8973_v49  ;;  %v5180_v20 = vpack.c.bf16 %v4673_v38, %v4672_v2 }
 0x892   :  { %4939 = vmatprep.mubr.bf16.mxu1 %v8974_v9 }
 0x893   :  { %5414 = vmatprep.mubr.bf16.mxu0 %v5180_v20 }
 0x894   :  { %v13777_v60 = vpop.f32.mrb[8].mxu1  ;;  %5415 = vmatmul.mubr.bf16.gmra.mrb[136].mxu0 %v5179_v34 }
 0x895   :  { %v4727_v37 = vpop.f32.mrb[9].mxu1 }
 0x896   :  { %v13782_v10 = vpop.f32.mrb[10].mxu1 }
 0x897   :  { %v4730_v30 = vpop.f32.mrb[11].mxu1 }
 0x899   :  { %4940 = vmatmul.mubr.bf16.gmra.mrb[116].mxu1 %v8975_v26 }
 0x89a   :  { %4947 = vmatprep.mubr.bf16.mxu1 %v13211_v8 }
 0x89c   :  { %v13788_v25 = vpop.f32.mrb[12].mxu1 }
 0x89d   :  { %v4735_v15 = vpop.f32.mrb[13].mxu1 }
 0x89e   :  { %v4736_v63 = vpop.f32.mrb[14].mxu1 }
 0x89f   :  { %v8358_v4 = vpack.i.bf16 %v4736_v63, %v13235_v0  ;;  %v4738_v24 = vpop.f32.mrb[15].mxu1 }
 0x8a1   :  { %4948 = vmatmul.mubr.bf16.gmra.mrb[120].mxu1 %v13218_v28  ;;  %8359 = vrot.lane.b32.xlu1 %v8358_v4, %s9033_s22 }
 0x8a2   :  { %4955 = vmatprep.mubr.bf16.mxu1 %v13509_v6 }
 0x8a4   :  { %v4741_v47 = vpop.f32.mrb[16].mxu1 }
 0x8a5   :  { %v4743_v56 = vpop.f32.mrb[17].mxu1 }
 0x8a6   :  { %v4744_v34 = vpop.f32.mrb[18].mxu1 }
 0x8a7   :  { %v8388_v5 = vpack.i.bf16 %v4744_v34, %v4741_v47  ;;  %v4746_v44 = vpop.f32.mrb[19].mxu1 }
 0x8a9   :  { %4956 = vmatmul.mubr.bf16.gmra.mrb[124].mxu1 %v13511_v35 }
 0x8aa   :  { %7747 = vmatprep.mubr.msk.bf16.mxu1 %vm9037_vm3, %v9036_v40 }
 0x8ac   :  { %v4749_v8 = vpop.f32.mrb[20].mxu1 }
 0x8ad   :  { %v4751_v0 = vpop.f32.mrb[21].mxu1 }
 0x8ae   :  { %v4752_v21 = vpop.f32.mrb[22].mxu1  ;;  %v13817_v29 = vpop.f32.mrb[124].mxu0 }
 0x8af   :  { %v8418_v36 = vpack.i.bf16 %v4752_v21, %v4749_v8  ;;  %v4754_v28 = vpop.f32.mrb[23].mxu1 }
 0x8b1   :  { %7748 = vmatmul.mubr.msk.bf16.vlgmr.msra.gmra.mrb[128].mxu1 %vm4630_vm0, %v5175_v18 }
 0x8b2   :  { %7751 = vmatprep.mubr.msk.bf16.mxu1 %vm9037_vm3, %v9036_v40 }
 0x8b4   :  { %v4757_v6 = vpop.f32.mrb[24].mxu1 }
 0x8b5   :  { %v4759_v62 = vpop.f32.mrb[25].mxu1 }
 0x8b6   :  { %v4760_v35 = vpop.f32.mrb[26].mxu1 }
 0x8b7   :  { %v8448_v32 = vpack.i.bf16 %v4760_v35, %v4757_v6  ;;  %v4762_v53 = vpop.f32.mrb[27].mxu1 }
 0x8b9   :  { %7752 = vmatmul.mubr.msk.bf16.gmra.mrb[132].mxu1 %vm4630_vm0, %v5178_v31 }
 0x8ba   :  { %7755 = vmatprep.mubr.msk.bf16.mxu1 %vm9037_vm3, %v9036_v40 }
 0x8bc   :  { %v4765_v19 = vpop.f32.mrb[28].mxu1 }
 0x8bd   :  { %v8368_v51 = vpack.i.bf16 %v4765_v19, %v13305_v58  ;;  %v4767_v14 = vpop.f32.mrb[29].mxu1  ;;  %v4458_v58 = vpop.f32.mrb[125].mxu0 }
 0x8be   :  { %v4768_v18 = vpop.f32.mrb[30].mxu1  ;;  %v4459_v7 = vpop.f32.mrb[126].mxu0 }
 0x8bf   :  { %8369 = vrot.lane.b32.xlu1 %v8368_v51, %s9034_s27  ;;  %v4770_v57 = vpop.f32.mrb[31].mxu1  ;;  %v4460_v46 = vpop.f32.mrb[127].mxu0 }
 0x8c1   :  { %7756 = vmatmul.mubr.msk.bf16.gmra.mrb[136].mxu1 %vm4630_vm0, %v5181_v52 }
 0x8c2   :  { %7759 = vmatprep.mubr.msk.bf16.mxu1 %vm9037_vm3, %v9036_v40 }
 0x8c4   :  { %v4773_v39 = vpop.f32.mrb[32].mxu1 }
 0x8c5   :  { %v8398_v42 = vpack.i.bf16 %v4773_v39, %v4768_v18  ;;  %v4775_v31 = vpop.f32.mrb[33].mxu1 }
 0x8c6   :  { %v4776_v45 = vpop.f32.mrb[34].mxu1 }
 0x8c7   :  { %v4778_v22 = vpop.f32.mrb[35].mxu1 }
 0x8cc   :  { %v4781_v43 = vpop.f32.mrb[36].mxu1 }
 0x8cd   :  { %v8428_v54 = vpack.i.bf16 %v4781_v43, %v4776_v45  ;;  %v4783_v17 = vpop.f32.mrb[37].mxu1 }
 0x8ce   :  { %v4784_v1 = vpop.f32.mrb[38].mxu1 }
 0x8cf   :  { %v4786_v48 = vpop.f32.mrb[39].mxu1 }
 0x8d4   :  { %v4789_v11 = vpop.f32.mrb[40].mxu1 }
 0x8d5   :  { %v8458_v52 = vpack.i.bf16 %v4789_v11, %v4784_v1  ;;  %v4791_v13 = vpop.f32.mrb[41].mxu1 }
 0x8d6   :  { %v4792_v12 = vpop.f32.mrb[42].mxu1 }
 0x8d7   :  { %v8378_v2 = vpack.i.bf16 %v4792_v12, %v13362_v61  ;;  %v4794_v38 = vpop.f32.mrb[43].mxu1 }
 0x8d9   :  { %8379 = vrot.lane.b32.xlu1 %v8378_v2, %s9035_s4 }
 0x8dc   :  { %v4797_v49 = vpop.f32.mrb[44].mxu1 }
 0x8dd   :  { %8389 = vrot.lane.b32.xlu1 %v8388_v5, %s9033_s22  ;;  %v4799_v20 = vpop.f32.mrb[45].mxu1 }
 0x8de   :  { %v4800_v9 = vpop.f32.mrb[46].mxu1 }
 0x8df   :  { %v8408_v37 = vpack.i.bf16 %v4800_v9, %v4797_v49  ;;  %v4802_v30 = vpop.f32.mrb[47].mxu1 }
 0x8e1   :  { %8399 = vrot.lane.b32.xlu1 %v8398_v42, %s9034_s27 }
 0x8e4   :  { %v4805_v26 = vpop.f32.mrb[48].mxu1 }
 0x8e5   :  { %8409 = vrot.lane.b32.xlu1 %v8408_v37, %s9035_s4  ;;  %v4807_v15 = vpop.f32.mrb[49].mxu1 }
 0x8e6   :  { %v4808_v63 = vpop.f32.mrb[50].mxu1 }
 0x8e7   :  { %v8438_v4 = vpack.i.bf16 %v4808_v63, %v4805_v26  ;;  %v4810_v24 = vpop.f32.mrb[51].mxu1 }
 0x8e9   :  { %8419 = vrot.lane.b32.xlu1 %v8418_v36, %s9033_s22 }
 0x8ec   :  { %v4813_v61 = vpop.f32.mrb[52].mxu1 }
 0x8ed   :  { %8429 = vrot.lane.b32.xlu1 %v8428_v54, %s9034_s27  ;;  %v4815_v47 = vpop.f32.mrb[53].mxu1 }
 0x8ee   :  { %v4816_v56 = vpop.f32.mrb[54].mxu1 }
 0x8ef   :  { %v8468_v34 = vpack.i.bf16 %v4816_v56, %v4813_v61  ;;  %v4818_v5 = vpop.f32.mrb[55].mxu1 }
 0x8f1   :  { %8439 = vrot.lane.b32.xlu1 %v8438_v4, %s9035_s4 }
 0x8f4   :  { %v13827_v44 = vpop.f32.mrb[56].mxu1 }
 0x8f5   :  { %8449 = vrot.lane.b32.xlu1 %v8448_v32, %s9033_s22  ;;  %v4823_v8 = vpop.f32.mrb[57].mxu1 }
 0x8f6   :  { %v13830_v0 = vpop.f32.mrb[58].mxu1 }
 0x8f7   :  { %v4826_v21 = vpop.f32.mrb[59].mxu1 }
 0x8f9   :  { %8459 = vrot.lane.b32.xlu1 %v8458_v52, %s9034_s27 }
 0x8fc   :  { %v13833_v36 = vpop.f32.mrb[60].mxu1 }
 0x8fd   :  { %8469 = vrot.lane.b32.xlu1 %v8468_v34, %s9035_s4  ;;  %v4831_v28 = vpop.f32.mrb[61].mxu1 }
 0x8fe   :  { %v13836_v6 = vpop.f32.mrb[62].mxu1 }
 0x8ff   :  { %v4834_v62 = vpop.f32.mrb[63].mxu1 }
 0x904   :  { %v13838_v35 = vpop.f32.mrb[64].mxu1 }
 0x905   :  { %v4839_v53 = vpop.f32.mrb[65].mxu1 }
 0x906   :  { %v13840_v19 = vpop.f32.mrb[66].mxu1 }
 0x907   :  { %v4842_v32 = vpop.f32.mrb[67].mxu1 }
 0x90c   :  { %v13842_v51 = vpop.f32.mrb[68].mxu1 }
 0x90d   :  { %v4847_v14 = vpop.f32.mrb[69].mxu1 }
 0x90e   :  { %v4848_v18 = vpop.f32.mrb[70].mxu1 }
 0x90f   :  { %v8353_v57 = vpack.i.bf16 %v4848_v18, %v13442_v33  ;;  %v4850_v39 = vpop.f32.mrb[71].mxu1 }
 0x911   :  { %8354 = vrot.lane.b32.xlu0 %v8353_v57, %s9033_s22 }
 0x913   :  { %v8360_v61 = vpop.permute.xlu1 %8359 }
 0x914   :  { %v4853_v42 = vpop.f32.mrb[72].mxu1  ;;  %v8362_v62 = vunpack.i.h.bf16 %v8360_v61  ;;  %v8361_v53 = vunpack.i.l.bf16 %v8360_v61 }
 0x915   :  { %v4855_v31 = vpop.f32.mrb[73].mxu1 }
 0x916   :  { %v4856_v45 = vpop.f32.mrb[74].mxu1  ;;  %v5131_v57 = vsel %vm4630_vm0, %v13744_v23, %v8362_v62  ;;  %v4637_v39 = vsel %vm4630_vm0, %v13176_v50, %v8361_v53 }
 0x917   :  { %v8383_v22 = vpack.i.bf16 %v4856_v45, %v4853_v42  ;;  %v4858_v58 = vpop.f32.mrb[75].mxu1 }
 0x91c   :  { %v13846_v7 = vpop.f32.mrb[76].mxu1 }
 0x91d   :  { %v4863_v43 = vpop.f32.mrb[77].mxu1 }
 0x91e   :  { %v13848_v46 = vpop.f32.mrb[78].mxu1 }
 0x91f   :  { %v8413_v54 = vpack.i.bf16 %v13848_v46, %v13846_v7  ;;  %v4866_v17 = vpop.f32.mrb[79].mxu1 }
 0x924   :  { %v13852_v1 = vpop.f32.mrb[80].mxu1 }
 0x925   :  { %v4871_v33 = vpop.f32.mrb[81].mxu1 }
 0x926   :  { %v13854_v48 = vpop.f32.mrb[82].mxu1 }
 0x927   :  { %v8443_v11 = vpack.i.bf16 %v13854_v48, %v13852_v1  ;;  %v4874_v52 = vpop.f32.mrb[83].mxu1 }
 0x92c   :  { %v4877_v13 = vpop.f32.mrb[84].mxu1 }
 0x92d   :  { %v8363_v12 = vpack.i.bf16 %v4877_v13, %v13526_v3  ;;  %v4879_v2 = vpop.f32.mrb[85].mxu1 }
 0x92e   :  { %v4880_v38 = vpop.f32.mrb[86].mxu1 }
 0x92f   :  { %8364 = vrot.lane.b32.xlu0 %v8363_v12, %s9034_s27  ;;  %v4882_v49 = vpop.f32.mrb[87].mxu1 }
 0x931   :  { %v8370_v5 = vpop.permute.xlu1 %8369 }
 0x932   :  { %v8372_v32 = vunpack.i.h.bf16 %v8370_v5  ;;  %v8371_v14 = vunpack.i.l.bf16 %v8370_v5 }
 0x934   :  { %v4885_v20 = vpop.f32.mrb[88].mxu1  ;;  %v4645_v58 = vsel %vm4638_vm1, %v4637_v39, %v8371_v14 }
 0x935   :  { %v8393_v9 = vpack.i.bf16 %v4885_v20, %v4880_v38  ;;  %v4887_v37 = vpop.f32.mrb[89].mxu1 }
 0x936   :  { %v13860_v30 = vpop.f32.mrb[90].mxu1 }
 0x937   :  { %v4890_v26 = vpop.f32.mrb[91].mxu1 }
 0x93c   :  { %v13862_v15 = vpop.f32.mrb[92].mxu1 }
 0x93d   :  { %v8423_v63 = vpack.i.bf16 %v13862_v15, %v13860_v30  ;;  %v4895_v4 = vpop.f32.mrb[93].mxu1 }
 0x93e   :  { %v13866_v24 = vpop.f32.mrb[94].mxu1 }
 0x93f   :  { %v4898_v3 = vpop.f32.mrb[95].mxu1 }
 0x944   :  { %v13868_v47 = vpop.f32.mrb[96].mxu1 }
 0x945   :  { %v8453_v56 = vpack.i.bf16 %v13868_v47, %v13866_v24  ;;  %v4903_v34 = vpop.f32.mrb[97].mxu1 }
 0x946   :  { %v4904_v8 = vpop.f32.mrb[98].mxu1 }
 0x947   :  { %v8373_v21 = vpack.i.bf16 %v4904_v8, %v13628_v55  ;;  %v4906_v28 = vpop.f32.mrb[99].mxu1  ;;  %v5138_v55 = vsel %vm4638_vm1, %v5131_v57, %v8372_v32 }
 0x949   :  { %8374 = vrot.lane.b32.xlu0 %v8373_v21, %s9035_s4 }
 0x94b   :  { %v8380_v18 = vpop.permute.xlu1 %8379 }
 0x94c   :  { %v8382_v42 = vunpack.i.h.bf16 %v8380_v18  ;;  %v8381_v31 = vunpack.i.l.bf16 %v8380_v18  ;;  %v4909_v45 = vpop.f32.mrb[100].mxu1 }
 0x94d   :  { %8384 = vrot.lane.b32.xlu0 %v8383_v22, %s9033_s22  ;;  %v4911_v43 = vpop.f32.mrb[101].mxu1 }
 0x94e   :  { %v4912_v17 = vpop.f32.mrb[102].mxu1  ;;  %v13882_v33 = vsel %vm4646_vm2, %v4645_v58, %v8381_v31  ;;  %v13885_v52 = vsel %vm4646_vm2, %v5138_v55, %v8382_v42 }
 0x94f   :  { %v8403_v23 = vpack.i.bf16 %v4912_v17, %v4909_v45  ;;  %v8390_v13 = vpop.permute.xlu1 %8389  ;;  %v7586_v50 = vpop.f32.mrb[128].mxu0  ;;  %v5182_v12 = vpack.c.bf16 %v13885_v52, %v13882_v33 }
 0x950   :  { %v4914_v2 = vpop.f32.mrb[103].mxu1  ;;  %v7587_v38 = vpop.f32.mrb[129].mxu0  ;;  %v8392_v4 = vunpack.i.h.bf16 %v8390_v13  ;;  %v8391_v3 = vunpack.i.l.bf16 %v8390_v13 }
 0x951   :  { %v13889_v49 = vadd.f32 %v7587_v38, %v7586_v50  ;;  %8394 = vrot.lane.b32.xlu0 %v8393_v9, %s9034_s27  ;;  %v7589_v22 = vpop.f32.mrb[130].mxu0 }
 0x952   :  { %v7590_v20 = vpop.f32.mrb[131].mxu0  ;;  %v5133_v9 = vsel %vm4630_vm0, %v13763_v16, %v8392_v4  ;;  %v5132_v32 = vsel %vm4630_vm0, %v13748_v59, %v8391_v3 }
 0x953   :  { %v13892_v37 = vadd.f32 %v7590_v20, %v7589_v22  ;;  %v8400_v26 = vpop.permute.xlu1 %8399 }
 0x954   :  { %v4917_v61 = vpop.f32.mrb[104].mxu1  ;;  %v8402_v34 = vunpack.i.h.bf16 %v8400_v26  ;;  %v8401_v5 = vunpack.i.l.bf16 %v8400_v26 }
 0x955   :  { %8404 = vrot.lane.b32.xlu0 %v8403_v23, %s9035_s4  ;;  %v4919_v8 = vpop.f32.mrb[105].mxu1 }
 0x956   :  { %v4920_v21 = vpop.f32.mrb[106].mxu1  ;;  %v5139_v57 = vsel %vm4638_vm1, %v5132_v32, %v8401_v5  ;;  %v5140_v39 = vsel %vm4638_vm1, %v5133_v9, %v8402_v34 }
 0x957   :  { %v8410_v28 = vpop.permute.xlu1 %8409  ;;  %v8433_v62 = vpack.i.bf16 %v4920_v21, %v4917_v61  ;;  %v4922_v53 = vpop.f32.mrb[107].mxu1 }
 0x958   :  { %v8412_v14 = vunpack.i.h.bf16 %v8410_v28  ;;  %v8411_v18 = vunpack.i.l.bf16 %v8410_v28 }
 0x959   :  { %8414 = vrot.lane.b32.xlu0 %v8413_v54, %s9033_s22 }
 0x95a   :  { %v13906_v42 = vsel %vm4646_vm2, %v5139_v57, %v8411_v18  ;;  %v13909_v31 = vsel %vm4646_vm2, %v5140_v39, %v8412_v14 }
 0x95b   :  { %v8420_v16 = vpop.permute.xlu1 %8419  ;;  %v7592_v45 = vpop.f32.mrb[132].mxu0  ;;  %v5185_v59 = vpack.c.bf16 %v13909_v31, %v13906_v42 }
 0x95c   :  { %v7593_v58 = vpop.f32.mrb[133].mxu0  ;;  %v4925_v55 = vpop.f32.mrb[108].mxu1  ;;  %v8422_v38 = vunpack.i.h.bf16 %v8420_v16  ;;  %v8421_v22 = vunpack.i.l.bf16 %v8420_v16 }
 0x95d   :  { %v13913_v43 = vadd.f32 %v7593_v58, %v7592_v45  ;;  %8424 = vrot.lane.b32.xlu0 %v8423_v63, %s9034_s27  ;;  %v7595_v7 = vpop.f32.mrb[134].mxu0  ;;  %v4927_v46 = vpop.f32.mrb[109].mxu1 }
 0x95e   :  { %v7596_v54 = vpop.f32.mrb[135].mxu0  ;;  %v4928_v17 = vpop.f32.mrb[110].mxu1  ;;  %v5135_v30 = vsel %vm4630_vm0, %v13777_v60, %v8422_v38  ;;  %v5134_v15 = vsel %vm4630_vm0, %v13767_v41, %v8421_v22 }
 0x95f   :  { %v13919_v23 = vadd.f32 %v7596_v54, %v7595_v7  ;;  %v8430_v13 = vpop.permute.xlu1 %8429  ;;  %v8463_v50 = vpack.i.bf16 %v4928_v17, %v4925_v55  ;;  %v4930_v2 = vpop.f32.mrb[111].mxu1 }
 0x960   :  { %v8432_v20 = vunpack.i.h.bf16 %v8430_v13  ;;  %v8431_v26 = vunpack.i.l.bf16 %v8430_v13 }
 0x961   :  { %8434 = vrot.lane.b32.xlu0 %v8433_v62, %s9035_s4 }
 0x962   :  { %v5141_v34 = vsel %vm4638_vm1, %v5134_v15, %v8431_v26  ;;  %v5142_v5 = vsel %vm4638_vm1, %v5135_v30, %v8432_v20 }
 0x963   :  { %v8440_v4 = vpop.permute.xlu1 %8439 }
 0x964   :  { %v8442_v63 = vunpack.i.h.bf16 %v8440_v4  ;;  %v8441_v3 = vunpack.i.l.bf16 %v8440_v4  ;;  %v4933_v61 = vpop.f32.mrb[112].mxu1 }
 0x965   :  { %8444 = vrot.lane.b32.xlu0 %v8443_v11, %s9033_s22  ;;  %v5184_v8 = vpack.c.bf16 %v4933_v61, %v13817_v29  ;;  %v4935_v21 = vpop.f32.mrb[113].mxu1 }
 0x966   :  { %v4936_v28 = vpop.f32.mrb[114].mxu1  ;;  %v13934_v60 = vsel %vm4646_vm2, %v5141_v34, %v8441_v3  ;;  %v13937_v41 = vsel %vm4646_vm2, %v5142_v5, %v8442_v63  ;;  %v13977_v5 = vld [vmem:[%s15475_s28] ss:$0 sm:$0xff]  ;;  %s7324_s28 = sshll.u32 %s9039_s0, 4  ;;  %s7325_s28 = int_to_ptr.vmem [resolvable:$true] %s7324_s28 }
 0x967   :  { %v8450_v62 = vpop.permute.xlu1 %8449  ;;  %v7598_v53 = vpop.f32.mrb[136].mxu0  ;;  %7760 = vmatmul.mubr.msk.bf16.gmra.mrb[140].mxu1 %vm4630_vm0, %v5184_v8  ;;  %v5188_v9 = vpack.c.bf16 %v13937_v41, %v13934_v60  ;;  %v5401_v8 = vadd.f32 %v13889_v49, %v13977_v5  ;;  %v5412_v49 = vadd.f32 %v13919_v23, %v13977_v5 }
 0x968   :  { %v7599_v32 = vpop.f32.mrb[137].mxu0  ;;  %v4938_v1 = vpop.f32.mrb[115].mxu1  ;;  %7763 = vmatprep.mubr.msk.bf16.mxu1 %vm9037_vm3, %v9036_v40  ;;  %v8452_v57 = vunpack.i.h.bf16 %v8450_v62  ;;  %v8451_v39 = vunpack.i.l.bf16 %v8450_v62 }
 0x969   :  { %v13944_v29 = vadd.f32 %v7599_v32, %v7598_v53  ;;  %8454 = vrot.lane.b32.xlu0 %v8453_v56, %s9034_s27  ;;  %v7601_v48 = vpop.f32.mrb[138].mxu0  ;;  %v5404_v53 = vadd.f32 %v13892_v37, %v13977_v5 }
 0x96a   :  { %v7602_v11 = vpop.f32.mrb[139].mxu0  ;;  %v5137_v24 = vsel %vm4630_vm0, %v13788_v25, %v8452_v57  ;;  %v5136_v47 = vsel %vm4630_vm0, %v13782_v10, %v8451_v39  ;;  %v5409_v39 = vadd.f32 %v13913_v43, %v13977_v5 }
 0x96b   :  { %v13950_v14 = vadd.f32 %v7602_v11, %v7601_v48  ;;  %v8460_v18 = vpop.permute.xlu1 %8459 }
 0x96c   :  { %v4941_v16 = vpop.f32.mrb[116].mxu1  ;;  %v8462_v45 = vunpack.i.h.bf16 %v8460_v18  ;;  %v8461_v58 = vunpack.i.l.bf16 %v8460_v18 }
 0x96d   :  { %8464 = vrot.lane.b32.xlu0 %v8463_v50, %s9035_s4  ;;  %v5187_v55 = vpack.c.bf16 %v4941_v16, %v4936_v28  ;;  %v4943_v7 = vpop.f32.mrb[117].mxu1 }
 0x96e   :  { %v4944_v46 = vpop.f32.mrb[118].mxu1  ;;  %v5143_v50 = vsel %vm4638_vm1, %v5136_v47, %v8461_v58  ;;  %v5144_v2 = vsel %vm4638_vm1, %v5137_v24, %v8462_v45  ;;  %v5417_v24 = vadd.f32 %v13944_v29, %v13977_v5 }
 0x96f   :  { %v8470_v54 = vpop.permute.xlu1 %8469  ;;  %v4946_v17 = vpop.f32.mrb[119].mxu1  ;;  %7764 = vmatmul.mubr.msk.bf16.gmra.mrb[144].mxu1 %vm4630_vm0, %v5187_v55 }
 0x970   :  { %v8472_v56 = vunpack.i.h.bf16 %v8470_v54  ;;  %v8471_v13 = vunpack.i.l.bf16 %v8470_v54  ;;  %7767 = vmatprep.mubr.msk.bf16.mxu1 %vm9037_vm3, %v9036_v40 }
 0x972   :  { %v13963_v38 = vsel %vm4646_vm2, %v5143_v50, %v8471_v13  ;;  %v13966_v22 = vsel %vm4646_vm2, %v5144_v2, %v8472_v56  ;;  %v5420_v13 = vadd.f32 %v13950_v14, %v13977_v5 }
 0x973   :  { %v5191_v25 = vpack.c.bf16 %v13966_v22, %v13963_v38 }
 0x974   :  { %v4949_v20 = vpop.f32.mrb[120].mxu1 }
 0x975   :  { %v5190_v10 = vpack.c.bf16 %v4949_v20, %v4944_v46  ;;  %v4951_v26 = vpop.f32.mrb[121].mxu1 }
 0x976   :  { %v4952_v4 = vpop.f32.mrb[122].mxu1 }
 0x977   :  { %v4954_v30 = vpop.f32.mrb[123].mxu1  ;;  %7768 = vmatmul.mubr.msk.bf16.gmra.mrb[148].mxu1 %vm4630_vm0, %v5190_v10 }
 0x978   :  { %7771 = vmatprep.mubr.msk.bf16.mxu1 %vm9037_vm3, %v9036_v40 }
 0x97c   :  { %v4957_v15 = vpop.f32.mrb[124].mxu1 }
 0x97d   :  { %v5193_v63 = vpack.c.bf16 %v4957_v15, %v4952_v4  ;;  %v4959_v3 = vpop.f32.mrb[125].mxu1 }
 0x97e   :  { %v4960_v61 = vpop.f32.mrb[126].mxu1 }
 0x97f   :  { %v4961_v34 = vpop.f32.mrb[127].mxu1  ;;  %7772 = vmatmul.mubr.msk.bf16.gmra.mrb[152].mxu1 %vm4630_vm0, %v5193_v63 }
 0x980   :  { %7827 = vmatprep.mubr.msk.bf16.mxu1 %vm9037_vm3, %v9036_v40 }
 0x983   :  { %v8355_v4 = vpop.permute.xlu0 %8354 }
 0x984   :  { %v5489_v21 = vpop.f32.mrb[128].mxu1  ;;  %v8357_v30 = vunpack.i.h.bf16 %v8355_v4  ;;  %v8356_v15 = vunpack.i.l.bf16 %v8355_v4 }
 0x985   :  { %v5490_v28 = vadd.f32 %v5489_v21, %v5401_v8  ;;  %v7749_v62 = vpop.f32.mrb[129].mxu1 }
 0x986   :  { %v5492_v32 = vpop.f32.mrb[130].mxu1  ;;  %v5152_v14 = vsel %vm4630_vm0, %v13827_v44, %v8357_v30  ;;  %v4660_v34 = vsel %vm4630_vm0, %v13397_v27, %v8356_v15 }
 0x987   :  { %v5493_v1 = vadd.f32 %v5492_v32, %v5404_v53  ;;  %v7750_v48 = vpop.f32.mrb[131].mxu1  ;;  %v5544_v11 = vmax.f32 %v5490_v28, 0.0 }
 0x989   :  { %v5545_v18 = vmax.f32 %v5493_v1, 0.0 }
 0x98b   :  { %v5576_v57 = vpack.c.bf16 %v5545_v18, %v5544_v11 }
 0x98c   :  { %v5497_v16 = vpop.f32.mrb[132].mxu1 }
 0x98d   :  { %v5498_v45 = vadd.f32 %v5497_v16, %v5409_v39  ;;  %v7753_v58 = vpop.f32.mrb[133].mxu1  ;;  %7776 = vmatpush3.bf16.msra.mxu0 %v5576_v57 }
 0x98e   :  { %v5500_v55 = vpop.f32.mrb[134].mxu1  ;;  %7777 = vmatprep.subr.bf16.mxu0 %v9036_v40 }
 0x98f   :  { %v5501_v37 = vadd.f32 %v5500_v55, %v5412_v49  ;;  %v7754_v7 = vpop.f32.mrb[135].mxu1  ;;  %v5546_v46 = vmax.f32 %v5498_v45, 0.0 }
 0x991   :  { %v5547_v54 = vmax.f32 %v5501_v37, 0.0 }
 0x993   :  { %v5577_v17 = vpack.c.bf16 %v5547_v54, %v5546_v46 }
 0x994   :  { %v5505_v47 = vpop.f32.mrb[136].mxu1 }
 0x995   :  { %v5506_v43 = vadd.f32 %v5505_v47, %v5417_v24  ;;  %v7757_v56 = vpop.f32.mrb[137].mxu1  ;;  %7778 = vmatpush3.bf16.msra.mxu0 %v5577_v17 }
 0x996   :  { %v5508_v50 = vpop.f32.mrb[138].mxu1  ;;  %7779 = vmatprep.subr.bf16.mxu0 %v9036_v40 }
 0x997   :  { %v5509_v23 = vadd.f32 %v5508_v50, %v5420_v13  ;;  %v7758_v2 = vpop.f32.mrb[139].mxu1  ;;  %v5548_v20 = vmax.f32 %v5506_v43, 0.0 }
 0x999   :  { %v5549_v10 = vmax.f32 %v5509_v23, 0.0 }
 0x99b   :  { %v5578_v26 = vpack.c.bf16 %v5549_v10, %v5548_v20 }
 0x99d   :  { %7780 = vmatpush3.bf16.msra.mxu0 %v5578_v26 }
 0x99e   :  { %7781 = vmatprep.subr.bf16.mxu0 %v9036_v40 }
 0x9a1   :  { %v8365_v29 = vpop.permute.xlu0 %8364 }
 0x9a2   :  { %v8367_v63 = vunpack.i.h.bf16 %v8365_v29  ;;  %v8366_v3 = vunpack.i.l.bf16 %v8365_v29 }
 0x9a4   :  { %v5159_v28 = vsel %vm4638_vm1, %v5152_v14, %v8367_v63  ;;  %v4667_v62 = vsel %vm4638_vm1, %v4660_v34, %v8366_v3 }
 0x9bb   :  { %v8375_v61 = vpop.permute.xlu0 %8374 }
 0x9bc   :  { %v8377_v8 = vunpack.i.h.bf16 %v8375_v61  ;;  %v8376_v21 = vunpack.i.l.bf16 %v8375_v61 }
 0x9be   :  { %v4674_v53 = vsel %vm4646_vm2, %v4667_v62, %v8376_v21  ;;  %v5166_v32 = vsel %vm4646_vm2, %v5159_v28, %v8377_v8 }
 0x9bf   :  { %v8385_v1 = vpop.permute.xlu0 %8384  ;;  %v5183_v48 = vpack.c.bf16 %v5166_v32, %v4674_v53 }
 0x9c0   :  { %v8387_v11 = vunpack.i.h.bf16 %v8385_v1  ;;  %v8386_v27 = vunpack.i.l.bf16 %v8385_v1 }
 0x9c1   :  { %5422 = vmatprep.mubr.bf16.mxu0 %v5183_v48 }
 0x9c2   :  { %5423 = vmatmul.mubr.bf16.gmra.mrb[140].mxu0 %v5182_v12  ;;  %v5154_v16 = vsel %vm4630_vm0, %v13833_v36, %v8387_v11  ;;  %v5153_v45 = vsel %vm4630_vm0, %v13830_v0, %v8386_v27 }
 0x9c3   :  { %v8395_v44 = vpop.permute.xlu0 %8394 }
 0x9c4   :  { %v8397_v18 = vunpack.i.h.bf16 %v8395_v44  ;;  %v8396_v57 = vunpack.i.l.bf16 %v8395_v44 }
 0x9c6   :  { %v5160_v55 = vsel %vm4638_vm1, %v5153_v45, %v8396_v57  ;;  %v5161_v37 = vsel %vm4638_vm1, %v5154_v16, %v8397_v18 }
 0x9c7   :  { %v8405_v39 = vpop.permute.xlu0 %8404 }
 0x9c8   :  { %v8407_v58 = vunpack.i.h.bf16 %v8405_v39  ;;  %v8406_v49 = vunpack.i.l.bf16 %v8405_v39 }
 0x9ca   :  { %v5167_v33 = vsel %vm4646_vm2, %v5160_v55, %v8406_v49  ;;  %v5168_v52 = vsel %vm4646_vm2, %v5161_v37, %v8407_v58 }
 0x9cb   :  { %v8415_v12 = vpop.permute.xlu0 %8414  ;;  %v5186_v7 = vpack.c.bf16 %v5168_v52, %v5167_v33 }
 0x9cc   :  { %v8417_v46 = vunpack.i.h.bf16 %v8415_v12  ;;  %v8416_v0 = vunpack.i.l.bf16 %v8415_v12 }
 0x9cd   :  { %5430 = vmatprep.mubr.bf16.mxu0 %v5186_v7 }
 0x9ce   :  { %5431 = vmatmul.mubr.bf16.gmra.mrb[144].mxu0 %v5185_v59  ;;  %v5156_v47 = vsel %vm4630_vm0, %v13838_v35, %v8417_v46  ;;  %v5155_v43 = vsel %vm4630_vm0, %v13836_v6, %v8416_v0 }
 0x9cf   :  { %v8425_v36 = vpop.permute.xlu0 %8424 }
 0x9d0   :  { %v8427_v54 = vunpack.i.h.bf16 %v8425_v36  ;;  %v8426_v17 = vunpack.i.l.bf16 %v8425_v36 }
 0x9d2   :  { %v5162_v50 = vsel %vm4638_vm1, %v5155_v43, %v8426_v17  ;;  %v5163_v23 = vsel %vm4638_vm1, %v5156_v47, %v8427_v54  ;;  %v14052_v54 = vld [vmem:[%s14643_s6] sm:$0xff]  }
 0x9d3   :  { %v8435_v24 = vpop.permute.xlu0 %8434 }
 0x9d4   :  { %v8437_v56 = vunpack.i.h.bf16 %v8435_v24  ;;  %v8436_v13 = vunpack.i.l.bf16 %v8435_v24 }
 0x9d6   :  { %v5169_v42 = vsel %vm4646_vm2, %v5162_v50, %v8436_v13  ;;  %v5170_v31 = vsel %vm4646_vm2, %v5163_v23, %v8437_v56 }
 0x9d7   :  { %v8445_v59 = vpop.permute.xlu0 %8444  ;;  %v5189_v2 = vpack.c.bf16 %v5170_v31, %v5169_v42  ;;  %v14063_v42 = vld [vmem:[%s14643_s6 + $0x8] sm:$0xff]  }
 0x9d8   :  { %v8447_v20 = vunpack.i.h.bf16 %v8445_v59  ;;  %v8446_v6 = vunpack.i.l.bf16 %v8445_v59 }
 0x9d9   :  { %5438 = vmatprep.mubr.bf16.mxu0 %v5189_v2 }
 0x9da   :  { %5439 = vmatmul.mubr.bf16.gmra.mrb[148].mxu0 %v5188_v9  ;;  %v5158_v29 = vsel %vm4630_vm0, %v13842_v51, %v8447_v20  ;;  %v5157_v30 = vsel %vm4630_vm0, %v13840_v19, %v8446_v6 }
 0x9db   :  { %v8455_v35 = vpop.permute.xlu0 %8454 }
 0x9dc   :  { %v8457_v10 = vunpack.i.h.bf16 %v8455_v35  ;;  %v8456_v26 = vunpack.i.l.bf16 %v8455_v35 }
 0x9de   :  { %v5164_v3 = vsel %vm4638_vm1, %v5157_v30, %v8456_v26  ;;  %v5165_v61 = vsel %vm4638_vm1, %v5158_v29, %v8457_v10 }
 0x9df   :  { %v8465_v4 = vpop.permute.xlu0 %8464 }
 0x9e0   :  { %v8467_v15 = vunpack.i.h.bf16 %v8465_v4  ;;  %v8466_v63 = vunpack.i.l.bf16 %v8465_v4 }
 0x9e2   :  { %v5171_v60 = vsel %vm4646_vm2, %v5164_v3, %v8466_v63  ;;  %v5172_v41 = vsel %vm4646_vm2, %v5165_v61, %v8467_v15  ;;  %v8679_v3 = vld [vmem:[%s14643_s6 + $0x10] sm:$0xff]  }
 0x9e3   :  { %v5192_v9 = vpack.c.bf16 %v5172_v41, %v5171_v60 }
 0x9e5   :  { %5446 = vmatprep.mubr.bf16.mxu0 %v5192_v9 }
 0x9e6   :  { %5447 = vmatmul.mubr.bf16.gmra.mrb[152].mxu0 %v5191_v25 }
 0x9e7   :  { %7783 = vmatprep.mubr.msk.bf16.mxu0 %vm9037_vm3, %v9036_v40 }
 0xa3a   :  { %v5513_v19 = vpop.f32.mrb[140].mxu1 }
 0xa3b   :  { %v7761_v51 = vpop.f32.mrb[141].mxu1 }
 0xa3c   :  { %v5516_v14 = vpop.f32.mrb[142].mxu1 }
 0xa3d   :  { %v7762_v34 = vpop.f32.mrb[143].mxu1 }
 0xa42   :  { %v5521_v8 = vpop.f32.mrb[144].mxu1 }
 0xa43   :  { %v7765_v21 = vpop.f32.mrb[145].mxu1 }
 0xa44   :  { %v5524_v28 = vpop.f32.mrb[146].mxu1  ;;  %v8680_v21 = vld [vmem:[%s14643_s6 + $0x18] sm:$0xff]  }
 0xa45   :  { %v7766_v62 = vpop.f32.mrb[147].mxu1 }
 0xa4a   :  { %v5529_v53 = vpop.f32.mrb[148].mxu1 }
 0xa4b   :  { %v7769_v32 = vpop.f32.mrb[149].mxu1 }
 0xa4c   :  { %v5532_v1 = vpop.f32.mrb[150].mxu1 }
 0xa4d   :  { %v7770_v48 = vpop.f32.mrb[151].mxu1 }
 0xa52   :  { %v14042_v44 = vpop.f32.mrb[152].mxu1 }
 0xa53   :  { %v7773_v11 = vpop.f32.mrb[153].mxu1 }
 0xa54   :  { %v14044_v38 = vpop.f32.mrb[154].mxu1 }
 0xa55   :  { %v7774_v22 = vpop.f32.mrb[155].mxu1 }
 0xa95   :  { %v7604_v25 = vpop.f32.mrb[140].mxu0 }
 0xa96   :  { %v7605_v27 = vpop.f32.mrb[141].mxu0 }
 0xa97   :  { %v7606_v18 = vadd.f32 %v7605_v27, %v7604_v25  ;;  %v7607_v57 = vpop.f32.mrb[142].mxu0  ;;  %v8681_v27 = vld [vmem:[%s14643_s6 + $0x20] sm:$0xff]  }
 0xa98   :  { %v7608_v39 = vpop.f32.mrb[143].mxu0 }
 0xa99   :  { %v7609_v16 = vadd.f32 %v7608_v39, %v7607_v57  ;;  %v5425_v45 = vadd.f32 %v7606_v18, %v13977_v5  ;;  %v8683_v39 = vld [vmem:[%s14643_s6 + $0x30] sm:$0xff]  }
 0xa9b   :  { %v5514_v58 = vadd.f32 %v5513_v19, %v5425_v45  ;;  %v5428_v49 = vadd.f32 %v7609_v16, %v13977_v5  ;;  %v8684_v16 = vld [vmem:[%s14643_s6 + $0x38] sm:$0xff]   ;;  %v8685_v45 = vld [vmem:[%s14643_s6 + $0x40] sm:$0xff]  }
 0xa9d   :  { %v5517_v55 = vadd.f32 %v5516_v14, %v5428_v49  ;;  %v5550_v37 = vmax.f32 %v5514_v58, 0.0 }
 0xa9f   :  { %v5551_v33 = vmax.f32 %v5517_v55, 0.0 }
 0xaa1   :  { %v5579_v52 = vpack.c.bf16 %v5551_v33, %v5550_v37  ;;  %v7610_v12 = vpop.f32.mrb[144].mxu0 }
 0xaa2   :  { %v7611_v7 = vpop.f32.mrb[145].mxu0 }
 0xaa3   :  { %v7612_v36 = vadd.f32 %v7611_v7, %v7610_v12  ;;  %v7613_v46 = vpop.f32.mrb[146].mxu0  ;;  %v5658_v0 = vsel %vm5656_vm4, %v5579_v52, 0  ;;  %v5830_v35 = vrot.slane %v5579_v52, 4 }
 0xaa4   :  { %v7614_v17 = vpop.f32.mrb[147].mxu0  ;;  %7782 = vmatpush3.bf16.msra.mxu0 %v5658_v0 }
 0xaa5   :  { %v5433_v24 = vadd.f32 %v7612_v36, %v13977_v5  ;;  %v7615_v47 = vadd.f32 %v7614_v17, %v7613_v46 }
 0xaa7   :  { %v5522_v43 = vadd.f32 %v5521_v8, %v5433_v24  ;;  %v5436_v56 = vadd.f32 %v7615_v47, %v13977_v5  ;;  %7784 = vmatmul.mubr.msk.bf16.vlgmr.msra.gmra.mrb[156].mxu0 %vm5628_vm5, %v14052_v54  ;;  %v8686_v47 = vld [vmem:[%s14644_s7 + $0x40] sm:$0xff]  }
 0xaa8   :  { %7787 = vmatprep.mubr.msk.bf16.mxu0 %vm9037_vm3, %v9036_v40  ;;  %7663 = vmatprep.subr.bf16.mxu0 %v8686_v47 }
 0xaa9   :  { %v5525_v13 = vadd.f32 %v5524_v28, %v5436_v56  ;;  %v5552_v50 = vmax.f32 %v5522_v43, 0.0  ;;  %v8687_v43 = vld [vmem:[%s14644_s7] sm:$0xff]   ;;  %v8688_v56 = vld [vmem:[%s14644_s7 + $0x48] sm:$0xff]  }
 0xaaa   :  { %7664 = vmatpush3.bf16.msra.mxu0 %v8687_v43 }
 0xaab   :  { %v5553_v23 = vmax.f32 %v5525_v13, 0.0  ;;  %v8689_v13 = vld [vmem:[%s14644_s7 + $0x8] sm:$0xff]   ;;  %7665 = vmatprep.subr.bf16.mxu0 %v8688_v56 }
 0xaad   :  { %v5580_v31 = vpack.c.bf16 %v5553_v23, %v5552_v50  ;;  %v7616_v59 = vpop.f32.mrb[148].mxu0  ;;  %v8690_v50 = vld [vmem:[%s14644_s7 + $0x50] sm:$0xff]  }
 0xaae   :  { %v7617_v2 = vpop.f32.mrb[149].mxu0  ;;  %7666 = vmatpush3.bf16.msra.mxu0 %v8689_v13 }
 0xaaf   :  { %v5831_v20 = vrot.slane %v5580_v31, 4  ;;  %v7618_v6 = vadd.f32 %v7617_v2, %v7616_v59  ;;  %v7619_v10 = vpop.f32.mrb[150].mxu0  ;;  %7788 = vmatmul.mubr.msk.bf16.gmra.mrb[160].mxu0 %vm5628_vm5, %v14063_v42  ;;  %v8691_v59 = vld [vmem:[%s14644_s7 + $0x10] sm:$0xff]   ;;  %7667 = vmatprep.subr.bf16.mxu0 %v8690_v50 }
 0xab0   :  { %v7620_v26 = vpop.f32.mrb[151].mxu0  ;;  %7791 = vmatprep.mubr.msk.bf16.mxu0 %vm9037_vm3, %v9036_v40 }
 0xab1   :  { %v5441_v4 = vadd.f32 %v7618_v6, %v13977_v5  ;;  %v7621_v29 = vadd.f32 %v7620_v26, %v7619_v10  ;;  %v5832_v30 = vsel %vm5656_vm4, %v5830_v35, %v5831_v20  ;;  %v8692_v10 = vld [vmem:[%s14644_s7 + $0x58] sm:$0xff]  }
 0xab2   :  { %7820 = vmatpush3.bf16.msra.mxu1 %v5832_v30  ;;  %7668 = vmatpush3.bf16.msra.mxu0 %v8691_v59 }
 0xab3   :  { %v5530_v15 = vadd.f32 %v5529_v53, %v5441_v4  ;;  %v5444_v63 = vadd.f32 %v7621_v29, %v13977_v5  ;;  %7821 = vmatprep.subr.bf16.mxu1 %v9036_v40  ;;  %v8693_v4 = vld [vmem:[%s14644_s7 + $0x18] sm:$0xff]   ;;  %v8694_v29 = vld [vmem:[%s14644_s7 + $0x60] sm:$0xff]   ;;  %7669 = vmatprep.subr.bf16.mxu0 %v8692_v10 }
 0xab4   :  { %v8702_v10 = vld [vmem:[%s14644_s7 + $0x80] sm:$0xff]  }
 0xab5   :  { %v5533_v61 = vadd.f32 %v5532_v1, %v5444_v63  ;;  %v5554_v60 = vmax.f32 %v5530_v15, 0.0  ;;  %v8695_v15 = vld [vmem:[%s14644_s7 + $0x20] sm:$0xff]  }
 0xab6   :  { %7670 = vmatpush3.bf16.msra.mxu0 %v8693_v4 }
 0xab7   :  { %v5555_v41 = vmax.f32 %v5533_v61, 0.0  ;;  %7792 = vmatmul.mubr.msk.bf16.gmra.mrb[164].mxu0 %vm5628_vm5, %v8679_v3  ;;  %7671 = vmatprep.subr.bf16.mxu0 %v8694_v29  ;;  %v8696_v61 = vld [vmem:[%s14644_s7 + $0x68] sm:$0xff]  }
 0xab8   :  { %7795 = vmatprep.mubr.msk.bf16.mxu0 %vm9037_vm3, %v9036_v40 }
 0xab9   :  { %v5581_v9 = vpack.c.bf16 %v5555_v41, %v5554_v60  ;;  %v7622_v19 = vpop.f32.mrb[152].mxu0 }
 0xaba   :  { %v7623_v51 = vpop.f32.mrb[153].mxu0  ;;  %7672 = vmatpush3.bf16.msra.mxu0 %v8695_v15 }
 0xabb   :  { %v5833_v14 = vrot.slane %v5581_v9, 4  ;;  %v7624_v34 = vadd.f32 %v7623_v51, %v7622_v19  ;;  %v7625_v8 = vpop.f32.mrb[154].mxu0  ;;  %v8697_v9 = vld [vmem:[%s14644_s7 + $0x28] sm:$0xff]   ;;  %7673 = vmatprep.subr.bf16.mxu0 %v8696_v61 }
 0xabc   :  { %v7626_v28 = vpop.f32.mrb[155].mxu0 }
 0xabd   :  { %v5449_v62 = vadd.f32 %v7624_v34, %v13977_v5  ;;  %v7627_v53 = vadd.f32 %v7626_v28, %v7625_v8  ;;  %v5834_v32 = vsel %vm5656_vm4, %v5831_v20, %v5833_v14  ;;  %v8698_v8 = vld [vmem:[%s14644_s7 + $0x70] sm:$0xff]  }
 0xabe   :  { %7822 = vmatpush3.bf16.msra.mxu1 %v5834_v32  ;;  %7674 = vmatpush3.bf16.msra.mxu0 %v8697_v9  ;;  %v8700_v32 = vld [vmem:[%s14644_s7 + $0x78] sm:$0xff]  }
 0xabf   :  { %v5538_v1 = vadd.f32 %v14042_v44, %v5449_v62  ;;  %v5452_v48 = vadd.f32 %v7627_v53, %v13977_v5  ;;  %7796 = vmatmul.mubr.msk.bf16.gmra.mrb[168].mxu0 %vm5628_vm5, %v8680_v21  ;;  %7823 = vmatprep.subr.bf16.mxu1 %v9036_v40  ;;  %v8682_v44 = vld [vmem:[%s14643_s6 + $0x28] sm:$0xff]  }
 0xac0   :  { %7799 = vmatprep.mubr.msk.bf16.mxu0 %vm9037_vm3, %v9036_v40  ;;  %7675 = vmatprep.subr.bf16.mxu0 %v8698_v8 }
 0xac1   :  { %v5541_v11 = vadd.f32 %v14044_v38, %v5452_v48  ;;  %v5556_v22 = vmax.f32 %v5538_v1, 0.0 }
 0xac3   :  { %v5557_v25 = vmax.f32 %v5541_v11, 0.0  ;;  %v8701_v11 = vld [vmem:[%s14644_s7 + $0x38] sm:$0xff]  }
 0xac5   :  { %v5582_v18 = vpack.c.bf16 %v5557_v25, %v5556_v22 }
 0xac7   :  { %v5835_v57 = vrot.slane %v5582_v18, 4  ;;  %7800 = vmatmul.mubr.msk.bf16.gmra.mrb[172].mxu0 %vm5628_vm5, %v8681_v27 }
 0xac8   :  { %7803 = vmatprep.mubr.msk.bf16.mxu0 %vm9037_vm3, %v9036_v40 }
 0xac9   :  { %v5836_v5 = vsel %vm5656_vm4, %v5833_v14, %v5835_v57  ;;  %v5841_v38 = vsel %vm5656_vm4, %v5835_v57, 0 }
 0xaca   :  { %7824 = vmatpush3.bf16.msra.mxu1 %v5836_v5 }
 0xacb   :  { %7825 = vmatprep.subr.bf16.mxu1 %v9036_v40 }
 0xace   :  { %7826 = vmatpush3.bf16.msra.mxu1 %v5841_v38 }
 0xacf   :  { %7804 = vmatmul.mubr.msk.bf16.gmra.mrb[176].mxu0 %vm5628_vm5, %v8682_v44  ;;  %7871 = vmatprep.subr.bf16.mxu1 %v9036_v40 }
 0xad0   :  { %7807 = vmatprep.mubr.msk.bf16.mxu0 %vm9037_vm3, %v9036_v40 }
 0xad1   :  { %7828 = vmatmul.mubr.msk.bf16.vlgmr.msra.gmra.mrb[156].mxu1 %vm5628_vm5, %v14052_v54 }
 0xad2   :  { %7831 = vmatprep.mubr.msk.bf16.mxu1 %vm9037_vm3, %v9036_v40 }
 0xad7   :  { %7808 = vmatmul.mubr.msk.bf16.gmra.mrb[180].mxu0 %vm5628_vm5, %v8683_v39 }
 0xad8   :  { %7811 = vmatprep.mubr.msk.bf16.mxu0 %vm9037_vm3, %v9036_v40 }
 0xad9   :  { %7832 = vmatmul.mubr.msk.bf16.gmra.mrb[160].mxu1 %vm5628_vm5, %v14063_v42 }
 0xada   :  { %7835 = vmatprep.mubr.msk.bf16.mxu1 %vm9037_vm3, %v9036_v40 }
 0xadf   :  { %7812 = vmatmul.mubr.msk.bf16.gmra.mrb[184].mxu0 %vm5628_vm5, %v8684_v16 }
 0xae0   :  { %7815 = vmatprep.mubr.msk.bf16.mxu0 %vm9037_vm3, %v9036_v40 }
 0xae1   :  { %7836 = vmatmul.mubr.msk.bf16.gmra.mrb[164].mxu1 %vm5628_vm5, %v8679_v3 }
 0xae2   :  { %7839 = vmatprep.mubr.msk.bf16.mxu1 %vm9037_vm3, %v9036_v40 }
 0xae7   :  { %7816 = vmatmul.mubr.msk.bf16.gmra.mrb[188].mxu0 %vm5628_vm5, %v8685_v45 }
 0xae9   :  { %7840 = vmatmul.mubr.msk.bf16.gmra.mrb[168].mxu1 %vm5628_vm5, %v8680_v21  ;;  %v8699_v21 = vld [vmem:[%s14644_s7 + $0x30] sm:$0xff]  }
 0xaea   :  { %7843 = vmatprep.mubr.msk.bf16.mxu1 %vm9037_vm3, %v9036_v40  ;;  %7676 = vmatpush3.bf16.msra.mxu0 %v8699_v21 }
 0xaeb   :  { %7677 = vmatprep.subr.bf16.mxu0 %v8700_v32 }
 0xaee   :  { %7678 = vmatpush3.bf16.msra.mxu0 %v8701_v11 }
 0xaef   :  { %7863 = vmatprep.subr.bf16.mxu0 %v8702_v10 }
 0xaf1   :  { %7844 = vmatmul.mubr.msk.bf16.gmra.mrb[172].mxu1 %vm5628_vm5, %v8681_v27 }
 0xaf2   :  { %7847 = vmatprep.mubr.msk.bf16.mxu1 %vm9037_vm3, %v9036_v40 }
 0xaf9   :  { %7848 = vmatmul.mubr.msk.bf16.gmra.mrb[176].mxu1 %vm5628_vm5, %v8682_v44 }
 0xafa   :  { %7851 = vmatprep.mubr.msk.bf16.mxu1 %vm9037_vm3, %v9036_v40 }
 0xb01   :  { %7852 = vmatmul.mubr.msk.bf16.gmra.mrb[180].mxu1 %vm5628_vm5, %v8683_v39 }
 0xb02   :  { %7855 = vmatprep.mubr.msk.bf16.mxu1 %vm9037_vm3, %v9036_v40 }
 0xb09   :  { %7856 = vmatmul.mubr.msk.bf16.gmra.mrb[184].mxu1 %vm5628_vm5, %v8684_v16 }
 0xb0a   :  { %7859 = vmatprep.mubr.msk.bf16.mxu1 %vm9037_vm3, %v9036_v40 }
 0xb11   :  { %7860 = vmatmul.mubr.msk.bf16.gmra.mrb[188].mxu1 %vm5628_vm5, %v8685_v45 }
 0xb12   :  { %7873 = vmatprep.mubr.msk.bf16.mxu1 %vm9037_vm3, %v9036_v40 }
 0xb7a   :  { %v14152_v58 = vpop.f32.mrb[156].mxu0 }
 0xb7b   :  { %v7785_v49 = vpop.f32.mrb[157].mxu0 }
 0xb7c   :  { %v14154_v55 = vpop.f32.mrb[158].mxu0 }
 0xb7d   :  { %v7786_v37 = vpop.f32.mrb[159].mxu0 }
 0xb82   :  { %v5702_v33 = vpop.f32.mrb[160].mxu0 }
 0xb83   :  { %v7789_v52 = vpop.f32.mrb[161].mxu0 }
 0xb84   :  { %v5705_v12 = vpop.f32.mrb[162].mxu0 }
 0xb85   :  { %v8478_v7 = vpack.i.bf16 %v5705_v12, %v5702_v33  ;;  %v7790_v36 = vpop.f32.mrb[163].mxu0 }
 0xb87   :  { %8479 = vrot.lane.b32.xlu1 %v8478_v7, %s9033_s22 }
 0xb8a   :  { %v5710_v46 = vpop.f32.mrb[164].mxu0 }
 0xb8b   :  { %v7793_v0 = vpop.f32.mrb[165].mxu0 }
 0xb8c   :  { %v5713_v54 = vpop.f32.mrb[166].mxu0 }
 0xb8d   :  { %v8488_v17 = vpack.i.bf16 %v5713_v54, %v5710_v46  ;;  %v7794_v24 = vpop.f32.mrb[167].mxu0 }
 0xb8f   :  { %8489 = vrot.lane.b32.xlu1 %v8488_v17, %s9034_s27 }
 0xb92   :  { %v5718_v23 = vpop.f32.mrb[168].mxu0 }
 0xb93   :  { %v7797_v42 = vpop.f32.mrb[169].mxu0 }
 0xb94   :  { %v5721_v31 = vpop.f32.mrb[170].mxu0 }
 0xb95   :  { %v8498_v2 = vpack.i.bf16 %v5721_v31, %v5718_v23  ;;  %v7798_v35 = vpop.f32.mrb[171].mxu0 }
 0xb97   :  { %8499 = vrot.lane.b32.xlu1 %v8498_v2, %s9035_s4 }
 0xb9a   :  { %v14177_v20 = vpop.f32.mrb[172].mxu0 }
 0xb9b   :  { %v7801_v6 = vpop.f32.mrb[173].mxu0 }
 0xb9c   :  { %v14182_v26 = vpop.f32.mrb[174].mxu0 }
 0xb9d   :  { %v7802_v30 = vpop.f32.mrb[175].mxu0 }
 0xba2   :  { %v5734_v63 = vpop.f32.mrb[176].mxu0 }
 0xba3   :  { %v7805_v3 = vpop.f32.mrb[177].mxu0 }
 0xba4   :  { %v5737_v60 = vpop.f32.mrb[178].mxu0  ;;  %v14196_v41 = vpop.f32.mrb[156].mxu1 }
 0xba5   :  { %v8473_v19 = vpack.i.bf16 %v5737_v60, %v5734_v63  ;;  %v7829_v51 = vpop.f32.mrb[157].mxu1  ;;  %v7806_v14 = vpop.f32.mrb[179].mxu0 }
 0xba6   :  { %v14201_v34 = vpop.f32.mrb[158].mxu1 }
 0xba7   :  { %v7830_v28 = vpop.f32.mrb[159].mxu1  ;;  %8474 = vrot.lane.b32.xlu0 %v8473_v19, %s9033_s22 }
 0xbaa   :  { %v5742_v62 = vpop.f32.mrb[180].mxu0 }
 0xbab   :  { %v7809_v53 = vpop.f32.mrb[181].mxu0 }
 0xbac   :  { %v5745_v1 = vpop.f32.mrb[182].mxu0  ;;  %v5885_v48 = vpop.f32.mrb[160].mxu1 }
 0xbad   :  { %v8483_v22 = vpack.i.bf16 %v5745_v1, %v5742_v62  ;;  %v7833_v25 = vpop.f32.mrb[161].mxu1  ;;  %v7810_v27 = vpop.f32.mrb[183].mxu0 }
 0xbae   :  { %v5888_v18 = vpop.f32.mrb[162].mxu1 }
 0xbaf   :  { %v8508_v57 = vpack.i.bf16 %v5888_v18, %v5885_v48  ;;  %v7834_v5 = vpop.f32.mrb[163].mxu1  ;;  %8484 = vrot.lane.b32.xlu0 %v8483_v22, %s9034_s27 }
 0xbb1   :  { %8509 = vrot.lane.b32.xlu1 %v8508_v57, %s9033_s22 }
 0xbb2   :  { %v5750_v44 = vpop.f32.mrb[184].mxu0 }
 0xbb3   :  { %v7813_v38 = vpop.f32.mrb[185].mxu0 }
 0xbb4   :  { %v5753_v39 = vpop.f32.mrb[186].mxu0  ;;  %v5893_v16 = vpop.f32.mrb[164].mxu1 }
 0xbb5   :  { %v8493_v45 = vpack.i.bf16 %v5753_v39, %v5750_v44  ;;  %v7837_v49 = vpop.f32.mrb[165].mxu1  ;;  %v7814_v37 = vpop.f32.mrb[187].mxu0 }
 0xbb6   :  { %v5896_v33 = vpop.f32.mrb[166].mxu1 }
 0xbb7   :  { %v8518_v52 = vpack.i.bf16 %v5896_v33, %v5893_v16  ;;  %v7838_v12 = vpop.f32.mrb[167].mxu1  ;;  %8494 = vrot.lane.b32.xlu0 %v8493_v45, %s9035_s4 }
 0xbb9   :  { %8519 = vrot.lane.b32.xlu1 %v8518_v52, %s9034_s27 }
 0xbba   :  { %v14230_v4 = vpop.f32.mrb[188].mxu0 }
 0xbbb   :  { %v7817_v29 = vpop.f32.mrb[189].mxu0 }
 0xbbc   :  { %v5901_v7 = vpop.f32.mrb[168].mxu1  ;;  %v14232_v15 = vpop.f32.mrb[190].mxu0 }
 0xbbd   :  { %v7841_v36 = vpop.f32.mrb[169].mxu1  ;;  %v6010_v3 = vpack.c.bf16 %v14232_v15, %v14230_v4  ;;  %v7818_v61 = vpop.f32.mrb[191].mxu0 }
 0xbbe   :  { %v5904_v46 = vpop.f32.mrb[170].mxu1 }
 0xbbf   :  { %v8528_v0 = vpack.i.bf16 %v5904_v46, %v5901_v7  ;;  %v7842_v54 = vpop.f32.mrb[171].mxu1 }
 0xbc1   :  { %8529 = vrot.lane.b32.xlu1 %v8528_v0, %s9035_s4 }
 0xbc4   :  { %v14221_v17 = vpop.f32.mrb[172].mxu1 }
 0xbc5   :  { %v7845_v24 = vpop.f32.mrb[173].mxu1 }
 0xbc6   :  { %v14223_v47 = vpop.f32.mrb[174].mxu1 }
 0xbc7   :  { %v7846_v43 = vpop.f32.mrb[175].mxu1 }
 0xbcc   :  { %v5917_v56 = vpop.f32.mrb[176].mxu1 }
 0xbcd   :  { %v7849_v13 = vpop.f32.mrb[177].mxu1 }
 0xbce   :  { %v5920_v50 = vpop.f32.mrb[178].mxu1 }
 0xbcf   :  { %v8503_v23 = vpack.i.bf16 %v5920_v50, %v5917_v56  ;;  %v7850_v42 = vpop.f32.mrb[179].mxu1 }
 0xbd1   :  { %8504 = vrot.lane.b32.xlu0 %v8503_v23, %s9033_s22 }
 0xbd4   :  { %v5925_v31 = vpop.f32.mrb[180].mxu1 }
 0xbd5   :  { %v7853_v59 = vpop.f32.mrb[181].mxu1 }
 0xbd6   :  { %v5928_v2 = vpop.f32.mrb[182].mxu1 }
 0xbd7   :  { %v8513_v35 = vpack.i.bf16 %v5928_v2, %v5925_v31  ;;  %v7854_v6 = vpop.f32.mrb[183].mxu1 }
 0xbd9   :  { %8514 = vrot.lane.b32.xlu0 %v8513_v35, %s9034_s27 }
 0xbdc   :  { %v5933_v30 = vpop.f32.mrb[184].mxu1 }
 0xbdd   :  { %v7857_v63 = vpop.f32.mrb[185].mxu1 }
 0xbde   :  { %v5936_v60 = vpop.f32.mrb[186].mxu1 }
 0xbdf   :  { %v8523_v9 = vpack.i.bf16 %v5936_v60, %v5933_v30  ;;  %v7858_v19 = vpop.f32.mrb[187].mxu1 }
 0xbe1   :  { %8524 = vrot.lane.b32.xlu0 %v8523_v9, %s9035_s4 }
 0xbe4   :  { %v14237_v51 = vpop.f32.mrb[188].mxu1 }
 0xbe5   :  { %v7861_v14 = vpop.f32.mrb[189].mxu1 }
 0xbe6   :  { %v14239_v8 = vpop.f32.mrb[190].mxu1 }
 0xbe7   :  { %v6013_v21 = vpack.c.bf16 %v14239_v8, %v14237_v51  ;;  %v7862_v28 = vpop.f32.mrb[191].mxu1  ;;  %v7459_v51 = vld [vmem:[%s14645_s8] ss:$0 sm:$0xff] }
 0xbf9   :  { %v8480_v62 = vpop.permute.xlu1 %8479 }
 0xbfa   :  { %v8482_v32 = vunpack.i.h.bf16 %v8480_v62  ;;  %v8481_v1 = vunpack.i.l.bf16 %v8480_v62 }
 0xbfc   :  { %v5814_v25 = vsel %vm4630_vm0, %v14154_v55, %v8482_v32  ;;  %v5813_v27 = vsel %vm4630_vm0, %v14152_v58, %v8481_v1 }
 0xc01   :  { %v8490_v53 = vpop.permute.xlu1 %8489 }
 0xc02   :  { %v8492_v48 = vunpack.i.h.bf16 %v8490_v53  ;;  %v8491_v11 = vunpack.i.l.bf16 %v8490_v53 }
 0xc04   :  { %v5816_v5 = vsel %vm4638_vm1, %v5814_v25, %v8492_v48  ;;  %v5815_v44 = vsel %vm4638_vm1, %v5813_v27, %v8491_v11 }
 0xc09   :  { %v8500_v22 = vpop.permute.xlu1 %8499 }
 0xc0a   :  { %v8502_v18 = vunpack.i.h.bf16 %v8500_v22  ;;  %v8501_v57 = vunpack.i.l.bf16 %v8500_v22 }
 0xc0c   :  { %v5818_v38 = vsel %vm4646_vm2, %v5816_v5, %v8502_v18  ;;  %v5817_v39 = vsel %vm4646_vm2, %v5815_v44, %v8501_v57 }
 0xc0d   :  { %v6008_v16 = vpack.c.bf16 %v5818_v38, %v5817_v39 }
 0xc19   :  { %v8475_v45 = vpop.permute.xlu0 %8474 }
 0xc1a   :  { %v8477_v37 = vunpack.i.h.bf16 %v8475_v45  ;;  %v8476_v33 = vunpack.i.l.bf16 %v8475_v45 }
 0xc1c   :  { %v5820_v58 = vsel %vm4630_vm0, %v14182_v26, %v8477_v37  ;;  %v5819_v7 = vsel %vm4630_vm0, %v14177_v20, %v8476_v33  ;;  %v8703_v26 = vld [vmem:[%s14644_s7 + $0x88] sm:$0xff]  }
 0xc21   :  { %v8485_v49 = vpop.permute.xlu0 %8484 }
 0xc22   :  { %v8487_v52 = vunpack.i.h.bf16 %v8485_v49  ;;  %v8486_v55 = vunpack.i.l.bf16 %v8485_v49 }
 0xc23   :  { %v8510_v36 = vpop.permute.xlu1 %8509 }
 0xc24   :  { %v5822_v54 = vsel %vm4638_vm1, %v5820_v58, %v8487_v52  ;;  %v5821_v24 = vsel %vm4638_vm1, %v5819_v7, %v8486_v55  ;;  %v8512_v23 = vunpack.i.h.bf16 %v8510_v36  ;;  %v8511_v20 = vunpack.i.l.bf16 %v8510_v36 }
 0xc26   :  { %v5997_v2 = vsel %vm4630_vm0, %v14201_v34, %v8512_v23  ;;  %v5996_v35 = vsel %vm4630_vm0, %v14196_v41, %v8511_v20  ;;  %v8706_v23 = vld [vmem:[%s14646_s9 + $0x10] sm:$0xff]   ;;  %v8707_v20 = vld [vmem:[%s14646_s9 + $0x18] sm:$0xff]  }
 0xc29   :  { %v8495_v12 = vpop.permute.xlu0 %8494 }
 0xc2a   :  { %v8497_v46 = vunpack.i.h.bf16 %v8495_v12  ;;  %v8496_v0 = vunpack.i.l.bf16 %v8495_v12 }
 0xc2b   :  { %v8520_v50 = vpop.permute.xlu1 %8519 }
 0xc2c   :  { %v5823_v43 = vsel %vm4646_vm2, %v5821_v24, %v8496_v0  ;;  %v5824_v56 = vsel %vm4646_vm2, %v5822_v54, %v8497_v46  ;;  %v8522_v42 = vunpack.i.h.bf16 %v8520_v50  ;;  %v8521_v31 = vunpack.i.l.bf16 %v8520_v50  ;;  %v8704_v50 = vld [vmem:[%s14646_s9] sm:$0xff]  }
 0xc2d   :  { %v6009_v13 = vpack.c.bf16 %v5824_v56, %v5823_v43 }
 0xc2e   :  { %v5998_v30 = vsel %vm4638_vm1, %v5996_v35, %v8521_v31  ;;  %v5999_v63 = vsel %vm4638_vm1, %v5997_v2, %v8522_v42  ;;  %v8708_v42 = vld [vmem:[%s14646_s9 + $0x20] ss:$0 sps:$4 sm:$0xff]   ;;  %v8711_v2 = vld [vmem:[%s14647_s10 + $0x48] sm:$0xff]  }
 0xc2f   :  { %6203 = vmatprep.mubr.bf16.mxu0 %v6009_v13  ;;  %v8709_v31 = vld [vmem:[%s14647_s10 + $0x40] sm:$0xff]   ;;  %v8712_v35 = vld [vmem:[%s14647_s10 + $0x8] sm:$0xff]  }
 0xc30   :  { %6204 = vmatmul.mubr.bf16.vlgmr.msra.gmra.mrb[192].mxu0 %v6008_v16 }
 0xc31   :  { %7864 = vmatpush3.bf16.msra.mxu0 %v8702_v10 }
 0xc32   :  { %7865 = vmatprep.subr.bf16.mxu0 %v8703_v26 }
 0xc33   :  { %v8530_v59 = vpop.permute.xlu1 %8529 }
 0xc34   :  { %v8532_v6 = vunpack.i.h.bf16 %v8530_v59  ;;  %v8531_v29 = vunpack.i.l.bf16 %v8530_v59  ;;  %v8710_v59 = vld [vmem:[%s14647_s10] sm:$0xff]  }
 0xc35   :  { %7866 = vmatpush3.bf16.msra.mxu0 %v8703_v26  ;;  %v8705_v26 = vld [vmem:[%s14646_s9 + $0x8] sm:$0xff]  }
 0xc36   :  { %v6000_v61 = vsel %vm4646_vm2, %v5998_v30, %v8531_v29  ;;  %v6001_v60 = vsel %vm4646_vm2, %v5999_v63, %v8532_v6  ;;  %7893 = vmatprep.subr.bf16.mxu0 %v9036_v40  ;;  %v8713_v29 = vld [vmem:[%s14647_s10 + $0x50] sm:$0xff]  }
 0xc37   :  { %v6011_v10 = vpack.c.bf16 %v6001_v60, %v6000_v61  ;;  %v8714_v61 = vld [vmem:[%s14647_s10 + $0x10] sm:$0xff]  }
 0xc43   :  { %v8505_v9 = vpop.permute.xlu0 %8504 }
 0xc44   :  { %v8507_v34 = vunpack.i.h.bf16 %v8505_v9  ;;  %v8506_v14 = vunpack.i.l.bf16 %v8505_v9 }
 0xc46   :  { %v6003_v53 = vsel %vm4630_vm0, %v14223_v47, %v8507_v34  ;;  %v6002_v32 = vsel %vm4630_vm0, %v14221_v17, %v8506_v14 }
 0xc4b   :  { %v8515_v19 = vpop.permute.xlu0 %8514 }
 0xc4c   :  { %v8517_v28 = vunpack.i.h.bf16 %v8515_v19  ;;  %v8516_v41 = vunpack.i.l.bf16 %v8515_v19 }
 0xc4e   :  { %v6004_v11 = vsel %vm4638_vm1, %v6002_v32, %v8516_v41  ;;  %v6005_v22 = vsel %vm4638_vm1, %v6003_v53, %v8517_v28  ;;  %v8715_v28 = vld [vmem:[%s14647_s10 + $0x58] sm:$0xff]   ;;  %v8717_v53 = vld [vmem:[%s14647_s10 + $0x60] sm:$0xff]  }
 0xc4f   :  { %v8716_v41 = vld [vmem:[%s14647_s10 + $0x18] sm:$0xff]  }
 0xc53   :  { %v8525_v62 = vpop.permute.xlu0 %8524 }
 0xc54   :  { %v8527_v1 = vunpack.i.h.bf16 %v8525_v62  ;;  %v8526_v48 = vunpack.i.l.bf16 %v8525_v62 }
 0xc56   :  { %v6006_v25 = vsel %vm4646_vm2, %v6004_v11, %v8526_v48  ;;  %v6007_v27 = vsel %vm4646_vm2, %v6005_v22, %v8527_v1  ;;  %v8718_v48 = vld [vmem:[%s14647_s10 + $0x20] sm:$0xff]  }
 0xc57   :  { %v6012_v18 = vpack.c.bf16 %v6007_v27, %v6006_v25 }
 0xc59   :  { %6211 = vmatprep.mubr.bf16.mxu0 %v6012_v18 }
 0xc5a   :  { %6212 = vmatmul.mubr.bf16.gmra.mrb[196].mxu0 %v6011_v10 }
 0xc5b   :  { %7867 = vmatprep.mubr.msk.bf16.mxu0 %vm4630_vm0, %v6010_v3 }
 0xc62   :  { %7868 = vmatmul.mubr.msk.bf16.vlgmr.msra.gmra.mrb[200].mxu0 %vm4630_vm0, %v6013_v21 }
 0xc63   :  { %7895 = vmatprep.mubr.msk.bf16.mxu0 %vm9037_vm3, %v9036_v40 }
 0xd03   :  { %v7679_v17 = vpop.f32.mrb[192].mxu0 }
 0xd04   :  { %v7680_v47 = vpop.f32.mrb[193].mxu0 }
 0xd05   :  { %v7681_v57 = vadd.f32 %v7680_v47, %v7679_v17  ;;  %v7682_v5 = vpop.f32.mrb[194].mxu0  ;;  %v8719_v17 = vld [vmem:[%s14647_s10 + $0x68] sm:$0xff]  }
 0xd06   :  { %v7683_v44 = vpop.f32.mrb[195].mxu0  ;;  %v8720_v47 = vld [vmem:[%s14647_s10 + $0x28] sm:$0xff]  }
 0xd07   :  { %v7684_v38 = vadd.f32 %v7683_v44, %v7682_v5  ;;  %v6206_v49 = vadd.f32 %v7681_v57, %v7459_v51 }
 0xd09   :  { %v6209_v58 = vadd.f32 %v7684_v38, %v7459_v51  ;;  %v8721_v38 = vld [vmem:[%s14647_s10 + $0x70] sm:$0xff]  }
 0xd2d   :  { %v7685_v39 = vpop.f32.mrb[196].mxu0 }
 0xd2e   :  { %v7686_v16 = vpop.f32.mrb[197].mxu0 }
 0xd2f   :  { %v7687_v45 = vadd.f32 %v7686_v16, %v7685_v39  ;;  %v7688_v4 = vpop.f32.mrb[198].mxu0 }
 0xd30   :  { %v7689_v15 = vpop.f32.mrb[199].mxu0 }
 0xd31   :  { %v7690_v3 = vadd.f32 %v7689_v15, %v7688_v4  ;;  %v6214_v8 = vadd.f32 %v7687_v45, %v7459_v51  ;;  %v8722_v45 = vld [vmem:[%s14647_s10 + $0x30] sm:$0xff]  }
 0xd33   :  { %v6217_v52 = vadd.f32 %v7690_v3, %v7459_v51 }
 0xd35   :  { %v7869_v21 = vpop.f32.mrb[200].mxu0 }
 0xd36   :  { %v6263_v37 = vadd.f32 %v7869_v21, %v6214_v8  ;;  %v6254_v33 = vpop.f32.mrb[201].mxu0  ;;  %v8723_v8 = vld [vmem:[%s14647_s10 + $0x78] sm:$0xff]  }
 0xd37   :  { %v6255_v55 = vadd.f32 %v6254_v33, %v6206_v49  ;;  %v7870_v12 = vpop.f32.mrb[202].mxu0  ;;  %v8724_v21 = vld [vmem:[%s14647_s10 + $0x38] sm:$0xff]  }
 0xd38   :  { %v6266_v7 = vadd.f32 %v7870_v12, %v6217_v52  ;;  %v6257_v36 = vpop.f32.mrb[203].mxu0  ;;  %v6271_v0 = vmax.f32 %v6263_v37, 0.0 }
 0xd39   :  { %v6258_v46 = vadd.f32 %v6257_v36, %v6209_v58  ;;  %v6269_v24 = vmax.f32 %v6255_v55, 0.0 }
 0xd3a   :  { %v6272_v54 = vmax.f32 %v6266_v7, 0.0 }
 0xd3b   :  { %v6270_v43 = vmax.f32 %v6258_v46, 0.0 }
 0xd3c   :  { %v6283_v56 = vpack.c.bf16 %v6272_v54, %v6271_v0 }
 0xd3d   :  { %v6282_v13 = vpack.c.bf16 %v6270_v43, %v6269_v24 }
 0xd3e   :  { %7894 = vmatpush3.bf16.msra.mxu0 %v6283_v56 }
 0xd3f   :  { %7872 = vmatpush3.bf16.msra.mxu1 %v6282_v13 }
 0xd40   :  { %7707 = vmatprep.subr.bf16.mxu1 %v8709_v31 }
 0xd41   :  { %7896 = vmatmul.mubr.msk.bf16.vlgmr.msra.gmra.mrb[204].mxu0 %vm6307_vm6, %v8704_v50 }
 0xd42   :  { %7874 = vmatmul.mubr.msk.bf16.vlgmr.msra.gmra.mrb[192].mxu1 %vm6307_vm6, %v8704_v50  ;;  %7899 = vmatprep.mubr.msk.bf16.mxu0 %vm9037_vm3, %v9036_v40 }
 0xd43   :  { %7877 = vmatprep.mubr.msk.bf16.mxu1 %vm9037_vm3, %v9036_v40  ;;  %7708 = vmatpush3.bf16.msra.mxu1 %v8710_v59 }
 0xd44   :  { %7709 = vmatprep.subr.bf16.mxu1 %v8711_v2 }
 0xd47   :  { %7710 = vmatpush3.bf16.msra.mxu1 %v8712_v35 }
 0xd48   :  { %7711 = vmatprep.subr.bf16.mxu1 %v8713_v29 }
 0xd49   :  { %7900 = vmatmul.mubr.msk.bf16.gmra.mrb[208].mxu0 %vm6307_vm6, %v8705_v26 }
 0xd4a   :  { %7878 = vmatmul.mubr.msk.bf16.gmra.mrb[196].mxu1 %vm6307_vm6, %v8705_v26  ;;  %7903 = vmatprep.mubr.msk.bf16.mxu0 %vm9037_vm3, %v9036_v40 }
 0xd4b   :  { %7881 = vmatprep.mubr.msk.bf16.mxu1 %vm9037_vm3, %v9036_v40  ;;  %7712 = vmatpush3.bf16.msra.mxu1 %v8714_v61 }
 0xd4c   :  { %7713 = vmatprep.subr.bf16.mxu1 %v8715_v28 }
 0xd4f   :  { %7714 = vmatpush3.bf16.msra.mxu1 %v8716_v41 }
 0xd50   :  { %7715 = vmatprep.subr.bf16.mxu1 %v8717_v53 }
 0xd51   :  { %7904 = vmatmul.mubr.msk.bf16.gmra.mrb[212].mxu0 %vm6307_vm6, %v8706_v23 }
 0xd52   :  { %7882 = vmatmul.mubr.msk.bf16.gmra.mrb[200].mxu1 %vm6307_vm6, %v8706_v23  ;;  %7907 = vmatprep.mubr.msk.bf16.mxu0 %vm9037_vm3, %v9036_v40 }
 0xd53   :  { %7885 = vmatprep.mubr.msk.bf16.mxu1 %vm9037_vm3, %v9036_v40  ;;  %7716 = vmatpush3.bf16.msra.mxu1 %v8718_v48 }
 0xd54   :  { %7717 = vmatprep.subr.bf16.mxu1 %v8719_v17 }
 0xd57   :  { %7718 = vmatpush3.bf16.msra.mxu1 %v8720_v47 }
 0xd58   :  { %7719 = vmatprep.subr.bf16.mxu1 %v8721_v38 }
 0xd59   :  { %7908 = vmatmul.mubr.msk.bf16.gmra.mrb[216].mxu0 %vm6307_vm6, %v8707_v20 }
 0xd5a   :  { %7886 = vmatmul.mubr.msk.bf16.gmra.mrb[204].mxu1 %vm6307_vm6, %v8707_v20  ;;  %7911 = vmatprep.mubr.msk.bf16.mxu0 %vm9037_vm3, %v9036_v40 }
 0xd5b   :  { %7889 = vmatprep.mubr.msk.bf16.mxu1 %vm9037_vm3, %v9036_v40  ;;  %7720 = vmatpush3.bf16.msra.mxu1 %v8722_v45  ;;  %v8727_v45 = vld [vmem:[%s14652_s15] ss:$16 sps:$4 sm:$0xff]  }
 0xd5c   :  { %7721 = vmatprep.subr.bf16.mxu1 %v8723_v8  ;;  %v8733_v8 = vld [vmem:[%s14652_s15 + $0x40] ss:$16 sps:$4 sm:$0xff]  }
 0xd5f   :  { %7722 = vmatpush3.bf16.msra.mxu1 %v8724_v21  ;;  %v8738_v21 = vld [vmem:[%s14652_s15 + $0x64] ss:$16 sps:$4 sm:$0xff]  }
 0xd60   :  { %7915 = vmatprep.subr.bf16.mxu1 %v9036_v40 }
 0xd61   :  { %7912 = vmatmul.mubr.msk.bf16.gmra.mrb[220].mxu0 %vm6307_vm6, %v8708_v42 }
 0xd62   :  { %7890 = vmatmul.mubr.msk.bf16.gmra.mrb[208].mxu1 %vm6307_vm6, %v8708_v42 }
 0xe14   :  { %v14345_v6 = vpop.f32.mrb[204].mxu0 }
 0xe15   :  { %v14350_v30 = vpop.f32.mrb[192].mxu1  ;;  %v7897_v63 = vpop.f32.mrb[205].mxu0 }
 0xe16   :  { %v7875_v60 = vpop.f32.mrb[193].mxu1  ;;  %v6462_v10 = vpop.f32.mrb[206].mxu0 }
 0xe17   :  { %v6360_v9 = vpop.f32.mrb[194].mxu1  ;;  %v7898_v19 = vpop.f32.mrb[207].mxu0 }
 0xe18   :  { %v8533_v34 = vpack.i.bf16 %v6462_v10, %v6360_v9  ;;  %v7876_v14 = vpop.f32.mrb[195].mxu1 }
 0xe1a   :  { %8534 = vrot.lane.b32.xlu1 %v8533_v34, %s9033_s22 }
 0xe1c   :  { %v6467_v62 = vpop.f32.mrb[208].mxu0 }
 0xe1d   :  { %v6365_v32 = vpop.f32.mrb[196].mxu1  ;;  %v7901_v1 = vpop.f32.mrb[209].mxu0 }
 0xe1e   :  { %v8538_v11 = vpack.i.bf16 %v6467_v62, %v6365_v32  ;;  %v7879_v22 = vpop.f32.mrb[197].mxu1  ;;  %v6470_v25 = vpop.f32.mrb[210].mxu0 }
 0xe1f   :  { %v6368_v27 = vpop.f32.mrb[198].mxu1  ;;  %v7902_v18 = vpop.f32.mrb[211].mxu0 }
 0xe20   :  { %8539 = vrot.lane.b32.xlu1 %v8538_v11, %s9034_s27  ;;  %v8558_v57 = vpack.i.bf16 %v6470_v25, %v6368_v27  ;;  %v7880_v5 = vpop.f32.mrb[199].mxu1 }
 0xe24   :  { %8559 = vrot.lane.b32.xlu1 %v8558_v57, %s9035_s4  ;;  %v14376_v44 = vpop.f32.mrb[212].mxu0 }
 0xe25   :  { %v14381_v39 = vpop.f32.mrb[200].mxu1  ;;  %v7905_v16 = vpop.f32.mrb[213].mxu0 }
 0xe26   :  { %v7883_v4 = vpop.f32.mrb[201].mxu1  ;;  %v6478_v15 = vpop.f32.mrb[214].mxu0  ;;  %v8725_v16 = vld [vmem:[%s14647_s10 + $0x80] sm:$0xff]  }
 0xe27   :  { %v6376_v3 = vpop.f32.mrb[202].mxu1  ;;  %v7906_v51 = vpop.f32.mrb[215].mxu0  ;;  %v8729_v4 = vld [vmem:[%s14652_s15 + $0x4] ss:$16 sps:$4 sm:$0xff]  }
 0xe28   :  { %v8543_v49 = vpack.i.bf16 %v6478_v15, %v6376_v3  ;;  %v7884_v37 = vpop.f32.mrb[203].mxu1  ;;  %v8732_v15 = vld [vmem:[%s14652_s15 + $0x24] ss:$16 sps:$4 sm:$0xff]   ;;  %7086 = vmatprep.subr.bf16.mxu0 %v8729_v4  ;;  %v8730_v3 = vld [vmem:[%s14652_s15 + $0x20] ss:$16 sps:$4 sm:$0xff]  }
 0xe29   :  { %7087 = vmatpush1.bf16.msra.mxu0 %v8727_v45  ;;  %v8735_v51 = vld [vmem:[%s14652_s15 + $0x44] ss:$16 sps:$4 sm:$0xff]  }
 0xe2a   :  { %8544 = vrot.lane.b32.xlu0 %v8543_v49, %s9033_s22  ;;  %7088 = vmatprep.subr.bf16.mxu0 %v8732_v15  ;;  %v8736_v49 = vld [vmem:[%s14652_s15 + $0x60] ss:$16 sps:$4 sm:$0xff]   ;;  %v8744_v37 = vld [vmem:[%s14652_s15 + $0x84] ss:$16 sps:$4 sm:$0xff]  }
 0xe2c   :  { %v6483_v33 = vpop.f32.mrb[216].mxu0 }
 0xe2d   :  { %v6381_v52 = vpop.f32.mrb[204].mxu1  ;;  %v7909_v55 = vpop.f32.mrb[217].mxu0  ;;  %7089 = vmatpush1.bf16.msra.mxu0 %v8730_v3 }
 0xe2e   :  { %v8548_v12 = vpack.i.bf16 %v6483_v33, %v6381_v52  ;;  %v7887_v58 = vpop.f32.mrb[205].mxu1  ;;  %v6486_v7 = vpop.f32.mrb[218].mxu0  ;;  %7090 = vmatprep.subr.bf16.mxu0 %v8735_v51  ;;  %v8742_v33 = vld [vmem:[%s14652_s15 + $0x80] ss:$16 sps:$4 sm:$0xff]   ;;  %v8750_v52 = vld [vmem:[%s14652_s15 + $0xa4] ss:$16 sps:$4 sm:$0xff]  }
 0xe2f   :  { %v6384_v36 = vpop.f32.mrb[206].mxu1  ;;  %v7910_v46 = vpop.f32.mrb[219].mxu0  ;;  %v8748_v55 = vld [vmem:[%s14652_s15 + $0xa0] ss:$16 sps:$4 sm:$0xff]  }
 0xe30   :  { %8549 = vrot.lane.b32.xlu0 %v8548_v12, %s9034_s27  ;;  %v8553_v0 = vpack.i.bf16 %v6486_v7, %v6384_v36  ;;  %v7888_v54 = vpop.f32.mrb[207].mxu1  ;;  %v8756_v12 = vld [vmem:[%s14652_s15 + $0xc4] ss:$16 sps:$4 sm:$0xff]   ;;  %v8754_v58 = vld [vmem:[%s14652_s15 + $0xc0] ss:$16 sps:$4 sm:$0xff]  }
 0xe31   :  { %7091 = vmatpush1.bf16.msra.mxu0 %v8733_v8  ;;  %v8762_v7 = vld [vmem:[%s14652_s15 + $0xe4] ss:$16 sps:$4 sm:$0xff]   ;;  %v8760_v36 = vld [vmem:[%s14652_s15 + $0xe0] ss:$16 sps:$4 sm:$0xff]   ;;  %v8788_v8 = vld [vmem:[%s14654_s17 + $0x8] sm:$0xff]  }
 0xe32   :  { %7092 = vmatprep.subr.bf16.mxu0 %v8738_v21  ;;  %v8768_v46 = vld [vmem:[%s14652_s15 + $0x104] ss:$16 sps:$4 sm:$0xff]  }
 0xe33   :  { %v8774_v54 = vld [vmem:[%s14652_s15 + $0x124] ss:$16 sps:$4 sm:$0xff]  }
 0xe34   :  { %8554 = vrot.lane.b32.xlu0 %v8553_v0, %s9035_s4  ;;  %v6491_v24 = vpop.f32.mrb[220].mxu0  ;;  %v8766_v0 = vld [vmem:[%s14652_s15 + $0x100] ss:$16 sps:$4 sm:$0xff]  }
 0xe35   :  { %v6389_v43 = vpop.f32.mrb[208].mxu1  ;;  %v7913_v56 = vpop.f32.mrb[221].mxu0  ;;  %7093 = vmatpush1.bf16.msra.mxu0 %v8736_v49  ;;  %v8787_v51 = vld [vmem:[%s14654_s17] sm:$0xff]   ;;  %v8789_v21 = vld [vmem:[%s14654_s17 + $0x10] sm:$0xff]   ;;  %v8790_v49 = vld [vmem:[%s14654_s17 + $0x18] sm:$0xff]  }
 0xe36   :  { %v6529_v13 = vpack.c.bf16 %v6491_v24, %v6389_v43  ;;  %v7891_v50 = vpop.f32.mrb[209].mxu1  ;;  %v6494_v26 = vpop.f32.mrb[222].mxu0  ;;  %7094 = vmatprep.subr.bf16.mxu0 %v8744_v37  ;;  %v8772_v24 = vld [vmem:[%s14652_s15 + $0x120] ss:$16 sps:$4 sm:$0xff]  }
 0xe37   :  { %v6392_v23 = vpop.f32.mrb[210].mxu1  ;;  %v7914_v20 = vpop.f32.mrb[223].mxu0  ;;  %v8791_v37 = vld [vmem:[%s14654_s17 + $0x20] sm:$0xff]  }
 0xe38   :  { %v7892_v42 = vpop.f32.mrb[211].mxu1  ;;  %v7495_v20 = vld [vmem:[%s14648_s11] ss:$0 sm:$0xff] }
 0xe39   :  { %7095 = vmatpush1.bf16.msra.mxu0 %v8742_v33  ;;  %v8792_v33 = vld [vmem:[%s14654_s17 + $0x28] sm:$0xff]  }
 0xe3a   :  { %7096 = vmatprep.subr.bf16.mxu0 %v8750_v52  ;;  %v8793_v52 = vld [vmem:[%s14654_s17 + $0x30] sm:$0xff]  }
 0xe3d   :  { %7097 = vmatpush1.bf16.msra.mxu0 %v8748_v55  ;;  %v8794_v55 = vld [vmem:[%s14654_s17 + $0x38] sm:$0xff]  }
 0xe3e   :  { %7098 = vmatprep.subr.bf16.mxu0 %v8756_v12  ;;  %v6861_v12 = vld [vmem:[%s14653_s16] sm:$0xf] }
 0xe41   :  { %7099 = vmatpush1.bf16.msra.mxu0 %v8754_v58  ;;  %v15476_v58 = vld [vmem:[#allocation243_spill] sm:$0xff] }
 0xe42   :  { %7100 = vmatprep.subr.bf16.mxu0 %v8762_v7  ;;  %v15477_v7 = vsub.s32 0, %v15476_v58 }
 0xe45   :  { %7101 = vmatpush1.bf16.msra.mxu0 %v8760_v36  ;;  %v6866_v36 = vrot.slane %v6861_v12, %v15477_v7 }
 0xe46   :  { %7102 = vmatprep.subr.bf16.mxu0 %v8768_v46  ;;  %v15478_v46 = vsub.s32 1, %v15476_v58 }
 0xe49   :  { %7103 = vmatpush1.bf16.msra.mxu0 %v8766_v0  ;;  %v6870_v0 = vrot.slane %v6861_v12, %v15478_v46 }
 0xe4a   :  { %7104 = vmatprep.subr.bf16.mxu0 %v8774_v54 }
 0xe4d   :  { %7105 = vmatpush1.bf16.msra.mxu0 %v8772_v24 }
 0xe4e   :  { %7929 = vmatprep.subr.bf16.mxu0 %v9036_v40 }
 0xe8c   :  { %v8535_v31 = vpop.permute.xlu1 %8534 }
 0xe8d   :  { %v8537_v2 = vunpack.i.h.bf16 %v8535_v31  ;;  %v8536_v35 = vunpack.i.l.bf16 %v8535_v31 }
 0xe8f   :  { %v6521_v60 = vsel %vm4630_vm0, %v14345_v6, %v8537_v2  ;;  %v6419_v10 = vsel %vm4630_vm0, %v14350_v30, %v8536_v35 }
 0xe92   :  { %v8540_v59 = vpop.permute.xlu1 %8539 }
 0xe93   :  { %v8542_v29 = vunpack.i.h.bf16 %v8540_v59  ;;  %v8541_v63 = vunpack.i.l.bf16 %v8540_v59 }
 0xe95   :  { %v6522_v34 = vsel %vm4638_vm1, %v6521_v60, %v8542_v29  ;;  %v6420_v14 = vsel %vm4638_vm1, %v6419_v10, %v8541_v63 }
 0xe96   :  { %v8560_v61 = vpop.permute.xlu1 %8559 }
 0xe97   :  { %v8562_v9 = vunpack.i.h.bf16 %v8560_v61  ;;  %v8561_v19 = vunpack.i.l.bf16 %v8560_v61 }
 0xe99   :  { %v6523_v28 = vsel %vm4646_vm2, %v6522_v34, %v8562_v9  ;;  %v6421_v41 = vsel %vm4646_vm2, %v6420_v14, %v8561_v19  ;;  %v8741_v34 = vld [vmem:[%s14652_s15 + $0xc] ss:$16 sps:$4 sm:$0xff]  }
 0xe9a   :  { %v6527_v62 = vpack.c.bf16 %v6523_v28, %v6421_v41  ;;  %v6768_v28 = vld [vmem:[%s14649_s12] sm:$0x1]  ;;  %v8739_v41 = vld [vmem:[%s14652_s15 + $0x8] ss:$16 sps:$4 sm:$0xff]  }
 0xe9c   :  { %v8545_v53 = vpop.permute.xlu0 %8544 }
 0xe9d   :  { %v8547_v1 = vunpack.i.h.bf16 %v8545_v53  ;;  %v8546_v48 = vunpack.i.l.bf16 %v8545_v53  ;;  %v8745_v53 = vld [vmem:[%s14652_s15 + $0x28] ss:$16 sps:$4 sm:$0xff]  }
 0xe9f   :  { %v6524_v30 = vsel %vm4630_vm0, %v14376_v44, %v8547_v1  ;;  %v6422_v25 = vsel %vm4630_vm0, %v14381_v39, %v8546_v48  ;;  %v8726_v44 = vld [vmem:[%s14647_s10 + $0x88] sm:$0xff]   ;;  %v6813_v39 = vld [vmem:[%s14650_s13] sm:$0x3] }
 0xea0   :  { %6815 = vrot.lane.b32.xlu0 %v6813_v39, %s9033_s22  ;;  %v8751_v1 = vld [vmem:[%s14652_s15 + $0x48] ss:$16 sps:$4 sm:$0xff]   ;;  %v8759_v48 = vld [vmem:[%s14652_s15 + $0x6c] ss:$16 sps:$4 sm:$0xff]   ;;  %s7314_s22 = sshll.u32 %s9038_s1, 4  ;;  %s7315_s22 = int_to_ptr.vmem [resolvable:$true] %s7314_s22 }
 0xea1   :  { %p8981_p1 = scmp.lt.s32.totalorder %s7315_s22, %s7315_s22 }
 0xea2   :  { %v8550_v32 = vpop.permute.xlu0 %8549 }
 0xea3   :  { %v8552_v11 = vunpack.i.h.bf16 %v8550_v32  ;;  %v8551_v6 = vunpack.i.l.bf16 %v8550_v32  ;;  %v8753_v32 = vld [vmem:[%s14652_s15 + $0x4c] ss:$16 sps:$4 sm:$0xff]  }
 0xea5   :  { %v6525_v17 = vsel %vm4638_vm1, %v6524_v30, %v8552_v11  ;;  %v6423_v47 = vsel %vm4638_vm1, %v6422_v25, %v8551_v6  ;;  %v8757_v11 = vld [vmem:[%s14652_s15 + $0x68] ss:$16 sps:$4 sm:$0xff]   ;;  %v8765_v6 = vld [vmem:[%s14652_s15 + $0x8c] ss:$16 sps:$4 sm:$0xff]  }
 0xea6   :  { %v8555_v22 = vpop.permute.xlu0 %8554  ;;  %v8771_v30 = vld [vmem:[%s14652_s15 + $0xac] ss:$16 sps:$4 sm:$0xff]   ;;  %v8769_v25 = vld [vmem:[%s14652_s15 + $0xa8] ss:$16 sps:$4 sm:$0xff]  }
 0xea7   :  { %v8557_v27 = vunpack.i.h.bf16 %v8555_v22  ;;  %v8556_v18 = vunpack.i.l.bf16 %v8555_v22  ;;  %v8763_v22 = vld [vmem:[%s14652_s15 + $0x88] ss:$16 sps:$4 sm:$0xff]  }
 0xea9   :  { %v6424_v57 = vsel %vm4646_vm2, %v6423_v47, %v8556_v18  ;;  %v6526_v5 = vsel %vm4646_vm2, %v6525_v17, %v8557_v27  ;;  %v8777_v27 = vld [vmem:[%s14652_s15 + $0xcc] ss:$16 sps:$4 sm:$0xff]   ;;  %v8775_v18 = vld [vmem:[%s14652_s15 + $0xc8] ss:$16 sps:$4 sm:$0xff]  }
 0xeaa   :  { %v6528_v38 = vpack.c.bf16 %v6526_v5, %v6424_v57  ;;  %v8780_v17 = vld [vmem:[%s14652_s15 + $0xec] ss:$16 sps:$4 sm:$0xff]   ;;  %v8778_v47 = vld [vmem:[%s14652_s15 + $0xe8] ss:$16 sps:$4 sm:$0xff]  }
 0xeab   :  { %v8783_v57 = vld [vmem:[%s14652_s15 + $0x10c] ss:$16 sps:$4 sm:$0xff]   ;;  %v8781_v5 = vld [vmem:[%s14652_s15 + $0x108] ss:$16 sps:$4 sm:$0xff]  }
 0xeac   :  { %6716 = vmatprep.mubr.bf16.mxu1 %v6528_v38  ;;  %v8786_v38 = vld [vmem:[%s14652_s15 + $0x12c] ss:$16 sps:$4 sm:$0xff]  }
 0xead   :  { %6717 = vmatmul.mubr.bf16.vlgmr.msra.gmra.mrb[212].mxu1 %v6527_v62  ;;  %v8747_v62 = vld [vmem:[%s14652_s15 + $0x2c] ss:$16 sps:$4 sm:$0xff]  }
 0xeae   :  { %7916 = vmatpush3.bf16.msra.mxu1 %v8725_v16  ;;  %7919 = vmatprep.mubr.msk.bf16.mxu1 %vm9037_vm3, %v9036_v40  ;;  %v8784_v16 = vld [vmem:[%s14652_s15 + $0x128] ss:$16 sps:$4 sm:$0xff]  }
 0xeaf   :  { %7917 = vmatprep.subr.bf16.mxu1 %v9036_v40 }
 0xeb2   :  { %7918 = vmatpush3.bf16.msra.mxu1 %v8726_v44 }
 0xeb3   :  { %7923 = vmatprep.subr.bf16.mxu1 %v9036_v40 }
 0xeb5   :  { %7920 = vmatmul.mubr.msk.bf16.vlgmr.msra.gmra.mrb[216].mxu1 %vm4630_vm0, %v6529_v13 }
 0xeb6   :  { %7925 = vmatprep.mubr.msk.bf16.mxu1 %vm9037_vm3, %v9036_v40 }
 0xf12   :  { %v6816_v31 = vpop.permute.xlu0 %6815 }
 0xf13   :  { %v6820_v2 = vpack.c.bf16 %v6816_v31, %v6816_v31 }
 0xf15   :  { %7556 = vmatprep.mubr.msk.bf16.mxu0 %vm4630_vm0, %v6820_v2 }
 0xf80   :  { %v7723_v43 = vpop.f32.mrb[212].mxu1 }
 0xf81   :  { %v7724_v56 = vpop.f32.mrb[213].mxu1 }
 0xf82   :  { %v7725_v13 = vadd.f32 %v7724_v56, %v7723_v43  ;;  %v7726_v50 = vpop.f32.mrb[214].mxu1 }
 0xf83   :  { %v7727_v26 = vpop.f32.mrb[215].mxu1 }
 0xf84   :  { %v7728_v23 = vadd.f32 %v7727_v26, %v7726_v50  ;;  %v6719_v42 = vadd.f32 %v7725_v13, %v7495_v20 }
 0xf86   :  { %v6722_v63 = vadd.f32 %v7728_v23, %v7495_v20 }
 0xf88   :  { %v6759_v59 = vpop.f32.mrb[216].mxu1 }
 0xf89   :  { %v6760_v35 = vadd.f32 %v6759_v59, %v6719_v42  ;;  %v7921_v29 = vpop.f32.mrb[217].mxu1  ;;  %v15479_v59 = vsub.s32 3, %v15476_v58 }
 0xf8a   :  { %v6762_v61 = vpop.f32.mrb[218].mxu1  ;;  %v15480_v29 = vsub.s32 2, %v15476_v58 }
 0xf8b   :  { %v6763_v60 = vadd.f32 %v6762_v61, %v6722_v63  ;;  %v7922_v10 = vpop.f32.mrb[219].mxu1  ;;  %v6766_v9 = vmax.f32 %v6760_v35, 0.0 }
 0xf8c   :  { %v6874_v63 = vrot.slane %v6861_v12, %v15480_v29 }
 0xf8d   :  { %v6767_v19 = vmax.f32 %v6763_v60, 0.0 }
 0xf8f   :  { %v6769_v14 = vpack.c.bf16 %v6767_v19, %v6766_v9 }
 0xf91   :  { %7924 = vmatpush3.bf16.msra.mxu1 %v6769_v14 }
 0xf92   :  { %7127 = vmatprep.subr.bf16.mxu1 %v8741_v34 }
 0xf94   :  { %7926 = vmatmul.mubr.msk.bf16.vlgmr.msra.gmra.mrb[220].mxu1 %vm6307_vm6, %v6768_v28 }
 0xf95   :  { %7128 = vmatpush1.bf16.msra.mxu1 %v8739_v41  ;;  %7557 = vmatprep.mubr.msk.bf16.mxu1 %vm4630_vm0, %v6820_v2  ;;  %v6878_v2 = vrot.slane %v6861_v12, %v15479_v59  ;;  %v7187_v41 = vld [vmem:[%s14651_s14] sm:$0x3]  ;;  %s8976_s14 = scalar_lea.vmem %s7315_s22, 32 }
 0xf96   :  { %7129 = vmatprep.subr.bf16.mxu1 %v8747_v62  ;;  %p8977_p0 = scmp.ne.s32.totalorder %s7315_s22, %s8976_s14  ;;  %p8982_p2 = scmp.lt.s32.totalorder %s8976_s14, %s8976_s14 }
 0xf98   :  { %p8983_p3 = por %p8982_p2, %p8981_p1 }
 0xf99   :  { %7130 = vmatpush1.bf16.msra.mxu1 %v8745_v53 }
 0xf9a   :  { %7131 = vmatprep.subr.bf16.mxu1 %v8753_v32  ;;  %p8984_p4 = pnand %p8983_p3, %p8977_p0 }
 0xf9d   :  { %7132 = vmatpush1.bf16.msra.mxu1 %v8751_v1 }
 0xf9e   :  { %7133 = vmatprep.subr.bf16.mxu1 %v8759_v48 }
 0xfa1   :  { %7134 = vmatpush1.bf16.msra.mxu1 %v8757_v11 }
 0xfa2   :  { %7135 = vmatprep.subr.bf16.mxu1 %v8765_v6 }
 0xfa5   :  { %7136 = vmatpush1.bf16.msra.mxu1 %v8763_v22 }
 0xfa6   :  { %7137 = vmatprep.subr.bf16.mxu1 %v8771_v30 }
 0xfa9   :  { %7138 = vmatpush1.bf16.msra.mxu1 %v8769_v25 }
 0xfaa   :  { %7139 = vmatprep.subr.bf16.mxu1 %v8777_v27 }
 0xfad   :  { %7140 = vmatpush1.bf16.msra.mxu1 %v8775_v18 }
 0xfae   :  { %7141 = vmatprep.subr.bf16.mxu1 %v8780_v17 }
 0xfb1   :  { %7142 = vmatpush1.bf16.msra.mxu1 %v8778_v47 }
 0xfb2   :  { %7143 = vmatprep.subr.bf16.mxu1 %v8783_v57 }
 0xfb5   :  { %7144 = vmatpush1.bf16.msra.mxu1 %v8781_v5 }
 0xfb6   :  { %7145 = vmatprep.subr.bf16.mxu1 %v8786_v38 }
 0xfb9   :  { %7146 = vmatpush1.bf16.msra.mxu1 %v8784_v16 }
0x1067   :  { %v6807_v44 = vpop.f32.mrb[220].mxu1 }
0x1068   :  { %v6818_v39 = vsel %vm4630_vm0, %v6807_v44, %v6816_v31  ;;  %v7927_v45 = vpop.f32.mrb[221].mxu1 }
0x1069   :  { %v6819_v4 = vpack.c.bf16 %v6818_v39, %v6818_v39  ;;  %v6810_v15 = vpop.f32.mrb[222].mxu1 }
0x106a   :  { %v7928_v3 = vpop.f32.mrb[223].mxu1 }
0x106b   :  { %7119 = vmatmul.mubr.bf16.vlgmr.msra.gmra.mrb[224].mxu0 %v6819_v4  ;;  %7160 = vmatmul.mubr.bf16.vlgmr.msra.gmra.mrb[224].mxu1 %v6819_v4 }
0x106c   :  { %7945 = vmatprep.mubr.msk.bf16.mxu0 %vm9037_vm3, %v9036_v40  ;;  %7930 = vmatpush3.bf16.msra.mxu0 %v8787_v51 }
0x106d   :  { %7931 = vmatprep.subr.bf16.mxu0 %v9036_v40 }
0x1070   :  { %7932 = vmatpush3.bf16.msra.mxu0 %v8788_v8 }
0x1071   :  { %7933 = vmatprep.subr.bf16.mxu0 %v9036_v40 }
0x1074   :  { %7934 = vmatpush3.bf16.msra.mxu0 %v8789_v21 }
0x1075   :  { %7935 = vmatprep.subr.bf16.mxu0 %v9036_v40 }
0x1078   :  { %7936 = vmatpush3.bf16.msra.mxu0 %v8790_v49 }
0x1079   :  { %7937 = vmatprep.subr.bf16.mxu0 %v9036_v40 }
0x107c   :  { %7938 = vmatpush3.bf16.msra.mxu0 %v8791_v37 }
0x107d   :  { %7939 = vmatprep.subr.bf16.mxu0 %v9036_v40 }
0x1080   :  { %7940 = vmatpush3.bf16.msra.mxu0 %v8792_v33 }
0x1081   :  { %7941 = vmatprep.subr.bf16.mxu0 %v9036_v40 }
0x1084   :  { %7942 = vmatpush3.bf16.msra.mxu0 %v8793_v52 }
0x1085   :  { %7943 = vmatprep.subr.bf16.mxu0 %v9036_v40 }
0x1088   :  { %7944 = vmatpush3.bf16.msra.mxu0 %v8794_v55 }
0x113e   :  { %v7120_v54 = vpop.f32.mrb[224].mxu0  ;;  %v7161_v24 = vpop.f32.mrb[224].mxu1 }
0x113f   :  { %v7121_v43 = vadd.f32 %v7120_v54, %v6866_v36  ;;  %v7122_v56 = vpop.f32.mrb[225].mxu0  ;;  %v7163_v13 = vpop.f32.mrb[225].mxu1  ;;  %v7162_v60 = vadd.f32 %v7161_v24, %v6874_v63 }
0x1140   :  { %v7123_v50 = vadd.f32 %v7122_v56, %v6870_v0  ;;  %v7124_v26 = vpop.f32.mrb[226].mxu0  ;;  %v7165_v23 = vpop.f32.mrb[226].mxu1  ;;  %v7164_v35 = vadd.f32 %v7163_v13, %v6878_v2 }
0x1141   :  { %v7558_v40 = vmul.f32 -1.442695, %v7121_v43  ;;  %v7125_v20 = vpop.f32.mrb[227].mxu0  ;;  %v7166_v42 = vpop.f32.mrb[227].mxu1 }
0x1142   :  { %v7559_v31 = vmul.f32 -1.442695, %v7123_v50  ;;  %v7560_v61 = vmul.f32 -1.442695, %v7164_v35 }
0x1143   :  { %8795 = vpow2.f32 %v7558_v40 }
0x1144   :  { %8797 = vpow2.f32 %v7559_v31 }
0x1145   :  { %8799 = vpow2.f32 %v7560_v61 }
0x1146   :  { %8801 = vtanh.f32 %v7162_v60 }
0x114d   :  { %v8796_v10 = vpop.eup %8795 }
0x114e   :  { %v8798_v9 = vpop.eup %8797  ;;  %v7171_v19 = vadd.f32 1.0, %v8796_v10 }
0x114f   :  { %v7177_v34 = vadd.f32 1.0, %v8798_v9  ;;  %v8800_v14 = vpop.eup %8799 }
0x1150   :  { %8803 = vrcp.f32 %v7171_v19  ;;  %v8802_v28 = vpop.eup %8801  ;;  %v7184_v1 = vadd.f32 1.0, %v8800_v14 }
0x1151   :  { %8805 = vrcp.f32 %v7177_v34 }
0x1152   :  { %8807 = vrcp.f32 %v7184_v1 }
0x115a   :  { %v8804_v62 = vpop.eup %8803 }
0x115b   :  { %v8806_v53 = vpop.eup %8805  ;;  %v7189_v32 = vmul.f32 %v8804_v62, %v8802_v28 }
0x115c   :  { %v7188_v48 = vmul.f32 %v8806_v53, %v7187_v41  ;;  %v8808_v6 = vpop.eup %8807 }
0x115e   :  { %v7190_v11 = vadd.f32 %v7189_v32, %v7188_v48 }
0x1160   :  { %8809 = vtanh.f32 %v7190_v11  ;;  %7193 = vst [vmem:[#allocation4] sm:$0x3] %v7190_v11 }
0x116a   :  { %v8810_v22 = vpop.eup %8809 }
0x116b   :  { %v7192_v30 = vmul.f32 %v8810_v22, %v8808_v6 }
0x116d   :  { %v7195_v25 = vpack.c.bf16 %v7192_v30, %v7192_v30  ;;  %7194 = vst [vmem:[#allocation2] sm:$0x3] %v7192_v30 }
0x116f   :  { %7946 = vmatmul.mubr.bf16.vlgmr.msra.gmra.mrb[228].mxu0 %v7195_v25 }
0x1170   :  { %8987 = shalt.err (!%p8984_p4)
}
0x1171   :  { %s8988_s30 = scalar_lea.hbm %s14656_s19, 32 }
0x1172   :  { %p8989_p5 = scmp.ne.s32.totalorder %s14656_s19, %s8988_s30  ;;  %p8992_p6 = scmp.lt.u32.totalorder %s8988_s30, %s14656_s19 }
0x1174   :  { %p8994_p7 = pnand %p8992_p6, %p8989_p5 }
0x1176   :  { %8997 = shalt.err (!%p8994_p7)
}
0x1177   :  { %7317 = dma.vmem_to_hbm [thread:$0]  %s7315_s22, 32, %s14656_s19, [#allocation3]  }
0x1178   :  { %s8998_s11 = scalar_lea.vmem %s7325_s28, 32  ;;  %p9003_p9 = scmp.lt.s32.totalorder %s7325_s28, %s7325_s28 }
0x1179   :  { %p8999_p8 = scmp.ne.s32.totalorder %s7325_s28, %s8998_s11  ;;  %p9004_p10 = scmp.lt.s32.totalorder %s8998_s11, %s8998_s11 }
0x117b   :  { %p9005_p11 = por %p9004_p10, %p9003_p9 }
0x117d   :  { %p9006_p12 = pnand %p9005_p11, %p8999_p8 }
0x117f   :  { %9009 = shalt.err (!%p9006_p12)
}
0x1180   :  { %s9010_s9 = scalar_lea.hbm %s14657_s20, 32 }
0x1181   :  { %p9011_p13 = scmp.ne.s32.totalorder %s14657_s20, %s9010_s9  ;;  %p9014_p0 = scmp.lt.u32.totalorder %s9010_s9, %s14657_s20 }
0x1183   :  { %p9016_p1 = pnand %p9014_p0, %p9011_p13 }
0x1185   :  { %9019 = shalt.err (!%p9016_p1)
}
0x1186   :  { %7327 = dma.vmem_to_hbm [thread:$0]  %s7325_s28, 32, %s14657_s20, [#allocation5]   ;;  %v7561_v27 = vld [vmem:[%s14655_s18] ss:$0 sm:$0xff] }
0x1242   :  { %v7301_v18 = vpop.f32.mrb[228].mxu0 }
0x1243   :  { %v7302_v17 = vadd.f32 %v7561_v27, %v7301_v18  ;;  %v7947_v47 = vpop.f32.mrb[229].mxu0 }
0x1244   :  { %v7304_v57 = vpop.f32.mrb[230].mxu0 }
0x1245   :  { %7307 = vst [vmem:[%s14658_s21] sm:$0x3] %v7302_v17  ;;  %v7948_v5 = vpop.f32.mrb[231].mxu0 }
0x1246   :  { %9020 = dma.done.wait [#allocation3], 32  }
0x1247   :  { %9021 = vsyncadd [#allocation3], 4294967264 }
0x1248   :  { %9022 = dma.done.wait [#allocation5], 32  }
0x1249   :  { %9023 = vsyncadd [#allocation5], 4294967264 }
0x124a   :  { %7338 = vsyncpa [#allocation3], 1 }
0x124b   :  { %7339 = vsyncpa [#allocation5], 1 }

</bundles_post_ra>
